<compile_context>
chip_gen: v7x
topology: tpu7x:2x2x1
jax: 0.10.0
libtpu: 0.0.40
codegen_flags: <defaults>
</compile_context>

<pallas_src>
import jax
import jax.numpy as jnp
from jax.experimental import pallas as pl
from jax.experimental.pallas import tpu as pltpu


# ---------------------------------------------------------------------------
# Fused kernel: conv1 + BN + ReLU + conv2 + BN + ReLU + maxpool + 3-layer MLP
# One grid step = one batch element.
# ---------------------------------------------------------------------------
def cnn_fused_kernel(x_ref, w1_ref, o1_ref, w2_ref, o2_ref,
                     w3_ref, fb1_ref, fw2_ref, fb2_ref, fw3_ref, fb3_ref,
                     out_ref, abuf, fbuf):
    _, hin, win, cin = x_ref.shape
    c1 = w1_ref.shape[1]                      # 16
    c2 = w2_ref.shape[1]                      # 32
    ho1, wo1 = hin - 2, win - 2               # 10, 28
    ho2, wo2 = ho1 - 2, wo1 - 2               # 8, 26
    hp, wp = ho2 // 2, wo2 // 2               # 4, 13

    # ---- hoisted parameter loads / broadcasts -----------------------------
    w1taps = [w1_ref[t:t + 1, :] for t in range(cin * 9)]     # (1, c1) each
    o1b = jnp.broadcast_to(o1_ref[...], (wo1, c1))            # hoisted broadcast
    o2v = o2_ref[...]                                         # (1, c2)

    # ---- conv1 (+ folded BN + ReLU): VPU broadcast-MAC, rows kept as values
    # Cache the 3 kx-shifted views of every input row once (not per output row).
    xrows = [x_ref[0, r, :, :] for r in range(hin)]           # (win, cin)
    xsl = [[row[kx:kx + wo1, :] for kx in range(3)] for row in xrows]

    y1_rows = []
    for h in range(ho1):
        acc = None
        for c in range(cin):
            for ky in range(3):
                for kx in range(3):
                    patch = xsl[h + ky][kx][:, c:c + 1]       # (wo1, 1)
                    term = patch * w1taps[c * 9 + ky * 3 + kx]  # (wo1, c1)
                    acc = term if acc is None else acc + term
        y1_rows.append(jnp.maximum(acc + o1b, 0.0))           # (wo1, c1)

    # ---- conv2: im2col into VMEM scratch, then ONE MXU matmul --------------
    # Cache the 3 kx-shifted views of every conv1 row once.
    y1sl = [[y1_rows[r][kx:kx + wo2, :] for kx in range(3)] for r in range(ho1)]
    for r in range(ho2):
        for ky in range(3):
            for kx in range(3):
                t = ky * 3 + kx
                abuf[r * wo2:(r + 1) * wo2, t * c1:(t + 1) * c1] = y1sl[r + ky][kx]
    z = jnp.dot(abuf[...], w2_ref[...], preferred_element_type=jnp.float32)
    z = jnp.maximum(z + o2v, 0.0)                             # (ho2*wo2, c2)

    # ---- MaxPool 2x2: H-pairs now; W-pairs folded into the fc1 reads -------
    # fbuf[w, h2*c2 + c] = max over the H pair of conv row block h2.
    for h2 in range(hp):
        z0 = z[(2 * h2) * wo2:(2 * h2 + 1) * wo2, :]          # (wo2, c2)
        z1 = z[(2 * h2 + 1) * wo2:(2 * h2 + 2) * wo2, :]
        fbuf[:, h2 * c2:(h2 + 1) * c2] = jnp.maximum(z0, z1)

    # ---- MLP head ----------------------------------------------------------
    # fc1: 13 accumulated (1,128)x(128,128) matmuls; the W-direction pool is
    # the max of two adjacent lane-dense rows of fbuf.
    acc1 = fb1_ref[...]                                       # (1, 128)
    for w2i in range(wp):
        rowv = jnp.maximum(fbuf[2 * w2i:2 * w2i + 1, :],
                           fbuf[2 * w2i + 1:2 * w2i + 2, :])   # (1, hp*c2)
        acc1 = acc1 + jnp.dot(rowv, w3_ref[w2i],
                              preferred_element_type=jnp.float32)
    h1 = jnp.maximum(acc1, 0.0)                               # (1, 128)
    h2v = jnp.maximum(
        jnp.dot(h1, fw2_ref[...], preferred_element_type=jnp.float32)
        + fb2_ref[...], 0.0)                                  # (1, 64)
    out = jnp.dot(h2v, fw3_ref[...], preferred_element_type=jnp.float32) \
        + fb3_ref[...]                                        # (1, out)
    out_ref[0, :, :] = out


# ---------------------------------------------------------------------------
# Wrapper: builds the single pallas_call
# ---------------------------------------------------------------------------
@jax.jit
def cnn_forward(x_nchw, kp):
    n, cin, hin, win = x_nchw.shape
    # NCHW (PyTorch) -> NHWC; for cin == 1 this is a free reshape.
    x = jnp.transpose(x_nchw, (0, 2, 3, 1)).astype(jnp.float32)

    c1 = kp["w1m"].shape[1]
    c2 = kp["w2m"].shape[1]
    ho1, wo1 = hin - 2, win - 2
    ho2, wo2 = ho1 - 2, wo1 - 2
    hp, wp = ho2 // 2, wo2 // 2
    dout = kp["fw3"].shape[-1]

    assert kp["w1m"].shape[0] == cin * 9
    assert kp["w2m"].shape[0] == 9 * c1
    assert kp["w3"].shape[0] == wp and kp["w3"].shape[1] == hp * c2

    def full(a):
        return pl.BlockSpec(a.shape, lambda b, nd=a.ndim: (0,) * nd)

    out = pl.pallas_call(
        cnn_fused_kernel,
        out_shape=jax.ShapeDtypeStruct((n, 1, dout), jnp.float32),
        grid=(n,),
        in_specs=[
            pl.BlockSpec((1, hin, win, cin), lambda b: (b, 0, 0, 0)),
            full(kp["w1m"]), full(kp["off1"]),
            full(kp["w2m"]), full(kp["off2"]),
            full(kp["w3"]), full(kp["fb1"]),
            full(kp["fw2"]), full(kp["fb2"]),
            full(kp["fw3"]), full(kp["fb3"]),
        ],
        out_specs=pl.BlockSpec((1, 1, dout), lambda b: (b, 0, 0)),
        scratch_shapes=[
            pltpu.VMEM((ho2 * wo2, 9 * c1), jnp.float32),   # conv2 im2col
            pltpu.VMEM((wo2, hp * c2), jnp.float32),        # pooled features
        ],
        compiler_params=pltpu.CompilerParams(dimension_semantics=("parallel",)),
    )(x, kp["w1m"], kp["off1"], kp["w2m"], kp["off2"], kp["w3"],
      kp["fb1"], kp["fw2"], kp["fb2"], kp["fw3"], kp["fb3"])
    return out.reshape(n, dout)


# ---------------------------------------------------------------------------
# Parameters (PyTorch layouts) and one-time kernel-ready transformation
# ---------------------------------------------------------------------------
def init_params(key, in_channel=1, out_channel=2):
    ks = jax.random.split(key, 18)

    def nrm(k, shape, s=0.1):
        return s * jax.random.normal(k, shape, jnp.float32)

    p = {}
    p["conv1_w"] = nrm(ks[0], (16, in_channel, 3, 3))
    p["conv1_b"] = nrm(ks[1], (16,))
    p["bn1_g"] = 1.0 + 0.1 * jax.random.normal(ks[2], (16,), jnp.float32)
    p["bn1_b"] = nrm(ks[3], (16,))
    p["bn1_m"] = nrm(ks[4], (16,))
    p["bn1_v"] = 0.5 + jax.random.uniform(ks[5], (16,), jnp.float32)
    p["conv2_w"] = nrm(ks[6], (32, 16, 3, 3))
    p["conv2_b"] = nrm(ks[7], (32,))
    p["bn2_g"] = 1.0 + 0.1 * jax.random.normal(ks[8], (32,), jnp.float32)
    p["bn2_b"] = nrm(ks[9], (32,))
    p["bn2_m"] = nrm(ks[10], (32,))
    p["bn2_v"] = 0.5 + jax.random.uniform(ks[11], (32,), jnp.float32)
    p["fc1_w"] = nrm(ks[12], (128, 1664), 0.05)
    p["fc1_b"] = nrm(ks[13], (128,))
    p["fc2_w"] = nrm(ks[14], (64, 128))
    p["fc2_b"] = nrm(ks[15], (64,))
    p["fc3_w"] = nrm(ks[16], (out_channel, 64))
    p["fc3_b"] = nrm(ks[17], (out_channel,))
    return p


def prepare_kernel_params(p, pooled_h=4, pooled_w=13, eps=1e-5):
    """One-time (host/XLA) transform: fold BN, reshape weights for the kernel."""
    c1, cin = p["conv1_w"].shape[0], p["conv1_w"].shape[1]
    c2 = p["conv2_w"].shape[0]
    d1 = p["fc1_w"].shape[0]

    # Fold inference-mode BN (+ conv bias) into weight scale + additive offset.
    s1 = p["bn1_g"] / jnp.sqrt(p["bn1_v"] + eps)
    off1 = (p["conv1_b"] - p["bn1_m"]) * s1 + p["bn1_b"]
    # (cin*3*3, c1), row index (c, ky, kx); BN scale folded into the weight.
    w1m = jnp.transpose(p["conv1_w"], (1, 2, 3, 0)).reshape(cin * 9, c1) * s1[None, :]

    s2 = p["bn2_g"] / jnp.sqrt(p["bn2_v"] + eps)
    off2 = (p["conv2_b"] - p["bn2_m"]) * s2 + p["bn2_b"]
    # (3*3*c1, c2), row index (ky, kx, c) -- matches the kernel's im2col order.
    w2m = jnp.transpose(p["conv2_w"], (2, 3, 1, 0)).reshape(9 * c1, c2) * s2[None, :]

    # fc1: PyTorch flatten index is c*(hp*wp) + h2*wp + w2.  Re-block once into
    # (w2, h2*c2 + c, out) so the kernel consumes lane-dense 128-wide rows.
    w3 = (p["fc1_w"].reshape(d1, c2, pooled_h, pooled_w)
          .transpose(3, 2, 1, 0)
          .reshape(pooled_w, pooled_h * c2, d1))

    return {
        "w1m": w1m, "off1": off1.reshape(1, c1),
        "w2m": w2m, "off2": off2.reshape(1, c2),
        "w3": w3, "fb1": p["fc1_b"].reshape(1, d1),
        "fw2": p["fc2_w"].T, "fb2": p["fc2_b"].reshape(1, -1),
        "fw3": p["fc3_w"].T, "fb3": p["fc3_b"].reshape(1, -1),
    }


if __name__ == "__main__":
    key = jax.random.PRNGKey(0)
    kx, kparams_key = jax.random.split(key)

    # Input spatial size chosen so the flatten matches Linear(1664, ...):
    # conv1: 12x30 -> 10x28 ; conv2: -> 8x26 ; pool: -> 4x13 ; 32*4*13 = 1664.
    N, C_IN, H, W = 2, 1, 12, 30
    x = jax.random.normal(kx, (N, C_IN, H, W), jnp.float32)   # NCHW like PyTorch

    params = init_params(kparams_key, in_channel=C_IN, out_channel=2)
    kernel_params = prepare_kernel_params(params)

    out = cnn_forward(x, kernel_params)
    out = jax.block_until_ready(out)

    assert out.shape == (N, 2), out.shape
    assert bool(jnp.all(jnp.isfinite(out)))
    print("KERNEL_OK")
</pallas_src>

<mosaic_0001>
module attributes {stable_mosaic.version = 11 : i64} {
  func.func @cnn_fused_kernel(%arg0: i32, %arg1: memref<1x12x30x1xf32, #tpu.memory_space<vmem>>, %arg2: memref<9x16xf32, #tpu.memory_space<vmem>>, %arg3: memref<1x16xf32, #tpu.memory_space<vmem>>, %arg4: memref<144x32xf32, #tpu.memory_space<vmem>>, %arg5: memref<1x32xf32, #tpu.memory_space<vmem>>, %arg6: memref<13x128x128xf32, #tpu.memory_space<vmem>>, %arg7: memref<1x128xf32, #tpu.memory_space<vmem>>, %arg8: memref<128x64xf32, #tpu.memory_space<vmem>>, %arg9: memref<1x64xf32, #tpu.memory_space<vmem>>, %arg10: memref<64x2xf32, #tpu.memory_space<vmem>>, %arg11: memref<1x2xf32, #tpu.memory_space<vmem>>, %arg12: memref<1x1x2xf32, #tpu.memory_space<vmem>>, %arg13: memref<208x144xf32, #tpu.memory_space<vmem>>, %arg14: memref<26x128xf32, #tpu.memory_space<vmem>>) attributes {dimension_semantics = [#tpu.dimension_semantics<parallel>], iteration_bounds = array<i64: 2>, scalar_prefetch = 0 : i64, scratch_operands = 2 : i64, tpu.core_type = #tpu.core_type<tc>, window_params = [{transform_indices = @transform_0, window_bounds = array<i64: 1, 12, 30, 1>}, {pipeline_mode = #tpu.pipeline_mode<synchronous>, transform_indices = @transform_1, window_bounds = array<i64: 9, 16>}, {pipeline_mode = #tpu.pipeline_mode<synchronous>, transform_indices = @transform_2, window_bounds = array<i64: 1, 16>}, {pipeline_mode = #tpu.pipeline_mode<synchronous>, transform_indices = @transform_3, window_bounds = array<i64: 144, 32>}, {pipeline_mode = #tpu.pipeline_mode<synchronous>, transform_indices = @transform_4, window_bounds = array<i64: 1, 32>}, {pipeline_mode = #tpu.pipeline_mode<synchronous>, transform_indices = @transform_5, window_bounds = array<i64: 13, 128, 128>}, {pipeline_mode = #tpu.pipeline_mode<synchronous>, transform_indices = @transform_6, window_bounds = array<i64: 1, 128>}, {pipeline_mode = #tpu.pipeline_mode<synchronous>, transform_indices = @transform_7, window_bounds = array<i64: 128, 64>}, {pipeline_mode = #tpu.pipeline_mode<synchronous>, transform_indices = @transform_8, window_bounds = array<i64: 1, 64>}, {pipeline_mode = #tpu.pipeline_mode<synchronous>, transform_indices = @transform_9, window_bounds = array<i64: 64, 2>}, {pipeline_mode = #tpu.pipeline_mode<synchronous>, transform_indices = @transform_10, window_bounds = array<i64: 1, 2>}, {transform_indices = @transform_11, window_bounds = array<i64: 1, 1, 2>}]} {
    %c0 = arith.constant 0 : index
    %c0_0 = arith.constant 0 : index
    %0 = vector.load %arg2[%c0, %c0_0] : memref<9x16xf32, #tpu.memory_space<vmem>>, vector<1x16xf32>
    %c1 = arith.constant 1 : index
    %c0_1 = arith.constant 0 : index
    %1 = vector.load %arg2[%c1, %c0_1] : memref<9x16xf32, #tpu.memory_space<vmem>>, vector<1x16xf32>
    %c2 = arith.constant 2 : index
    %c0_2 = arith.constant 0 : index
    %2 = vector.load %arg2[%c2, %c0_2] : memref<9x16xf32, #tpu.memory_space<vmem>>, vector<1x16xf32>
    %c3 = arith.constant 3 : index
    %c0_3 = arith.constant 0 : index
    %3 = vector.load %arg2[%c3, %c0_3] : memref<9x16xf32, #tpu.memory_space<vmem>>, vector<1x16xf32>
    %c4 = arith.constant 4 : index
    %c0_4 = arith.constant 0 : index
    %4 = vector.load %arg2[%c4, %c0_4] : memref<9x16xf32, #tpu.memory_space<vmem>>, vector<1x16xf32>
    %c5 = arith.constant 5 : index
    %c0_5 = arith.constant 0 : index
    %5 = vector.load %arg2[%c5, %c0_5] : memref<9x16xf32, #tpu.memory_space<vmem>>, vector<1x16xf32>
    %c6 = arith.constant 6 : index
    %c0_6 = arith.constant 0 : index
    %6 = vector.load %arg2[%c6, %c0_6] : memref<9x16xf32, #tpu.memory_space<vmem>>, vector<1x16xf32>
    %c7 = arith.constant 7 : index
    %c0_7 = arith.constant 0 : index
    %7 = vector.load %arg2[%c7, %c0_7] : memref<9x16xf32, #tpu.memory_space<vmem>>, vector<1x16xf32>
    %c8 = arith.constant 8 : index
    %c0_8 = arith.constant 0 : index
    %8 = vector.load %arg2[%c8, %c0_8] : memref<9x16xf32, #tpu.memory_space<vmem>>, vector<1x16xf32>
    %c0_9 = arith.constant 0 : index
    %c0_10 = arith.constant 0 : index
    %9 = vector.load %arg3[%c0_9, %c0_10] : memref<1x16xf32, #tpu.memory_space<vmem>>, vector<1x16xf32>
    %10 = vector.shape_cast %9 : vector<1x16xf32> to vector<1x16xf32>
    %11 = vector.broadcast %10 : vector<1x16xf32> to vector<28x16xf32>
    %c0_11 = arith.constant 0 : index
    %c0_12 = arith.constant 0 : index
    %12 = vector.load %arg5[%c0_11, %c0_12] : memref<1x32xf32, #tpu.memory_space<vmem>>, vector<1x32xf32>
    %c0_13 = arith.constant 0 : index
    %c0_14 = arith.constant 0 : index
    %c0_15 = arith.constant 0 : index
    %c0_16 = arith.constant 0 : index
    %13 = vector.load %arg1[%c0_13, %c0_14, %c0_15, %c0_16] : memref<1x12x30x1xf32, #tpu.memory_space<vmem>>, vector<1x1x30x1xf32>
    %14 = vector.shape_cast %13 : vector<1x1x30x1xf32> to vector<30x1xf32>
    %c0_17 = arith.constant 0 : index
    %c1_18 = arith.constant 1 : index
    %c0_19 = arith.constant 0 : index
    %c0_20 = arith.constant 0 : index
    %15 = vector.load %arg1[%c0_17, %c1_18, %c0_19, %c0_20] : memref<1x12x30x1xf32, #tpu.memory_space<vmem>>, vector<1x1x30x1xf32>
    %16 = vector.shape_cast %15 : vector<1x1x30x1xf32> to vector<30x1xf32>
    %c0_21 = arith.constant 0 : index
    %c2_22 = arith.constant 2 : index
    %c0_23 = arith.constant 0 : index
    %c0_24 = arith.constant 0 : index
    %17 = vector.load %arg1[%c0_21, %c2_22, %c0_23, %c0_24] : memref<1x12x30x1xf32, #tpu.memory_space<vmem>>, vector<1x1x30x1xf32>
    %18 = vector.shape_cast %17 : vector<1x1x30x1xf32> to vector<30x1xf32>
    %c0_25 = arith.constant 0 : index
    %c3_26 = arith.constant 3 : index
    %c0_27 = arith.constant 0 : index
    %c0_28 = arith.constant 0 : index
    %19 = vector.load %arg1[%c0_25, %c3_26, %c0_27, %c0_28] : memref<1x12x30x1xf32, #tpu.memory_space<vmem>>, vector<1x1x30x1xf32>
    %20 = vector.shape_cast %19 : vector<1x1x30x1xf32> to vector<30x1xf32>
    %c0_29 = arith.constant 0 : index
    %c4_30 = arith.constant 4 : index
    %c0_31 = arith.constant 0 : index
    %c0_32 = arith.constant 0 : index
    %21 = vector.load %arg1[%c0_29, %c4_30, %c0_31, %c0_32] : memref<1x12x30x1xf32, #tpu.memory_space<vmem>>, vector<1x1x30x1xf32>
    %22 = vector.shape_cast %21 : vector<1x1x30x1xf32> to vector<30x1xf32>
    %c0_33 = arith.constant 0 : index
    %c5_34 = arith.constant 5 : index
    %c0_35 = arith.constant 0 : index
    %c0_36 = arith.constant 0 : index
    %23 = vector.load %arg1[%c0_33, %c5_34, %c0_35, %c0_36] : memref<1x12x30x1xf32, #tpu.memory_space<vmem>>, vector<1x1x30x1xf32>
    %24 = vector.shape_cast %23 : vector<1x1x30x1xf32> to vector<30x1xf32>
    %c0_37 = arith.constant 0 : index
    %c6_38 = arith.constant 6 : index
    %c0_39 = arith.constant 0 : index
    %c0_40 = arith.constant 0 : index
    %25 = vector.load %arg1[%c0_37, %c6_38, %c0_39, %c0_40] : memref<1x12x30x1xf32, #tpu.memory_space<vmem>>, vector<1x1x30x1xf32>
    %26 = vector.shape_cast %25 : vector<1x1x30x1xf32> to vector<30x1xf32>
    %c0_41 = arith.constant 0 : index
    %c7_42 = arith.constant 7 : index
    %c0_43 = arith.constant 0 : index
    %c0_44 = arith.constant 0 : index
    %27 = vector.load %arg1[%c0_41, %c7_42, %c0_43, %c0_44] : memref<1x12x30x1xf32, #tpu.memory_space<vmem>>, vector<1x1x30x1xf32>
    %28 = vector.shape_cast %27 : vector<1x1x30x1xf32> to vector<30x1xf32>
    %c0_45 = arith.constant 0 : index
    %c8_46 = arith.constant 8 : index
    %c0_47 = arith.constant 0 : index
    %c0_48 = arith.constant 0 : index
    %29 = vector.load %arg1[%c0_45, %c8_46, %c0_47, %c0_48] : memref<1x12x30x1xf32, #tpu.memory_space<vmem>>, vector<1x1x30x1xf32>
    %30 = vector.shape_cast %29 : vector<1x1x30x1xf32> to vector<30x1xf32>
    %c0_49 = arith.constant 0 : index
    %c9 = arith.constant 9 : index
    %c0_50 = arith.constant 0 : index
    %c0_51 = arith.constant 0 : index
    %31 = vector.load %arg1[%c0_49, %c9, %c0_50, %c0_51] : memref<1x12x30x1xf32, #tpu.memory_space<vmem>>, vector<1x1x30x1xf32>
    %32 = vector.shape_cast %31 : vector<1x1x30x1xf32> to vector<30x1xf32>
    %c0_52 = arith.constant 0 : index
    %c10 = arith.constant 10 : index
    %c0_53 = arith.constant 0 : index
    %c0_54 = arith.constant 0 : index
    %33 = vector.load %arg1[%c0_52, %c10, %c0_53, %c0_54] : memref<1x12x30x1xf32, #tpu.memory_space<vmem>>, vector<1x1x30x1xf32>
    %34 = vector.shape_cast %33 : vector<1x1x30x1xf32> to vector<30x1xf32>
    %c0_55 = arith.constant 0 : index
    %c11 = arith.constant 11 : index
    %c0_56 = arith.constant 0 : index
    %c0_57 = arith.constant 0 : index
    %35 = vector.load %arg1[%c0_55, %c11, %c0_56, %c0_57] : memref<1x12x30x1xf32, #tpu.memory_space<vmem>>, vector<1x1x30x1xf32>
    %36 = vector.shape_cast %35 : vector<1x1x30x1xf32> to vector<30x1xf32>
    %37 = vector.extract_strided_slice %14 {offsets = [0, 0], sizes = [28, 1], strides = [1, 1]} : vector<30x1xf32> to vector<28x1xf32>
    %38 = vector.extract_strided_slice %14 {offsets = [1, 0], sizes = [28, 1], strides = [1, 1]} : vector<30x1xf32> to vector<28x1xf32>
    %39 = vector.extract_strided_slice %14 {offsets = [2, 0], sizes = [28, 1], strides = [1, 1]} : vector<30x1xf32> to vector<28x1xf32>
    %40 = vector.extract_strided_slice %16 {offsets = [0, 0], sizes = [28, 1], strides = [1, 1]} : vector<30x1xf32> to vector<28x1xf32>
    %41 = vector.extract_strided_slice %16 {offsets = [1, 0], sizes = [28, 1], strides = [1, 1]} : vector<30x1xf32> to vector<28x1xf32>
    %42 = vector.extract_strided_slice %16 {offsets = [2, 0], sizes = [28, 1], strides = [1, 1]} : vector<30x1xf32> to vector<28x1xf32>
    %43 = vector.extract_strided_slice %18 {offsets = [0, 0], sizes = [28, 1], strides = [1, 1]} : vector<30x1xf32> to vector<28x1xf32>
    %44 = vector.extract_strided_slice %18 {offsets = [1, 0], sizes = [28, 1], strides = [1, 1]} : vector<30x1xf32> to vector<28x1xf32>
    %45 = vector.extract_strided_slice %18 {offsets = [2, 0], sizes = [28, 1], strides = [1, 1]} : vector<30x1xf32> to vector<28x1xf32>
    %46 = vector.extract_strided_slice %20 {offsets = [0, 0], sizes = [28, 1], strides = [1, 1]} : vector<30x1xf32> to vector<28x1xf32>
    %47 = vector.extract_strided_slice %20 {offsets = [1, 0], sizes = [28, 1], strides = [1, 1]} : vector<30x1xf32> to vector<28x1xf32>
    %48 = vector.extract_strided_slice %20 {offsets = [2, 0], sizes = [28, 1], strides = [1, 1]} : vector<30x1xf32> to vector<28x1xf32>
    %49 = vector.extract_strided_slice %22 {offsets = [0, 0], sizes = [28, 1], strides = [1, 1]} : vector<30x1xf32> to vector<28x1xf32>
    %50 = vector.extract_strided_slice %22 {offsets = [1, 0], sizes = [28, 1], strides = [1, 1]} : vector<30x1xf32> to vector<28x1xf32>
    %51 = vector.extract_strided_slice %22 {offsets = [2, 0], sizes = [28, 1], strides = [1, 1]} : vector<30x1xf32> to vector<28x1xf32>
    %52 = vector.extract_strided_slice %24 {offsets = [0, 0], sizes = [28, 1], strides = [1, 1]} : vector<30x1xf32> to vector<28x1xf32>
    %53 = vector.extract_strided_slice %24 {offsets = [1, 0], sizes = [28, 1], strides = [1, 1]} : vector<30x1xf32> to vector<28x1xf32>
    %54 = vector.extract_strided_slice %24 {offsets = [2, 0], sizes = [28, 1], strides = [1, 1]} : vector<30x1xf32> to vector<28x1xf32>
    %55 = vector.extract_strided_slice %26 {offsets = [0, 0], sizes = [28, 1], strides = [1, 1]} : vector<30x1xf32> to vector<28x1xf32>
    %56 = vector.extract_strided_slice %26 {offsets = [1, 0], sizes = [28, 1], strides = [1, 1]} : vector<30x1xf32> to vector<28x1xf32>
    %57 = vector.extract_strided_slice %26 {offsets = [2, 0], sizes = [28, 1], strides = [1, 1]} : vector<30x1xf32> to vector<28x1xf32>
    %58 = vector.extract_strided_slice %28 {offsets = [0, 0], sizes = [28, 1], strides = [1, 1]} : vector<30x1xf32> to vector<28x1xf32>
    %59 = vector.extract_strided_slice %28 {offsets = [1, 0], sizes = [28, 1], strides = [1, 1]} : vector<30x1xf32> to vector<28x1xf32>
    %60 = vector.extract_strided_slice %28 {offsets = [2, 0], sizes = [28, 1], strides = [1, 1]} : vector<30x1xf32> to vector<28x1xf32>
    %61 = vector.extract_strided_slice %30 {offsets = [0, 0], sizes = [28, 1], strides = [1, 1]} : vector<30x1xf32> to vector<28x1xf32>
    %62 = vector.extract_strided_slice %30 {offsets = [1, 0], sizes = [28, 1], strides = [1, 1]} : vector<30x1xf32> to vector<28x1xf32>
    %63 = vector.extract_strided_slice %30 {offsets = [2, 0], sizes = [28, 1], strides = [1, 1]} : vector<30x1xf32> to vector<28x1xf32>
    %64 = vector.extract_strided_slice %32 {offsets = [0, 0], sizes = [28, 1], strides = [1, 1]} : vector<30x1xf32> to vector<28x1xf32>
    %65 = vector.extract_strided_slice %32 {offsets = [1, 0], sizes = [28, 1], strides = [1, 1]} : vector<30x1xf32> to vector<28x1xf32>
    %66 = vector.extract_strided_slice %32 {offsets = [2, 0], sizes = [28, 1], strides = [1, 1]} : vector<30x1xf32> to vector<28x1xf32>
    %67 = vector.extract_strided_slice %34 {offsets = [0, 0], sizes = [28, 1], strides = [1, 1]} : vector<30x1xf32> to vector<28x1xf32>
    %68 = vector.extract_strided_slice %34 {offsets = [1, 0], sizes = [28, 1], strides = [1, 1]} : vector<30x1xf32> to vector<28x1xf32>
    %69 = vector.extract_strided_slice %34 {offsets = [2, 0], sizes = [28, 1], strides = [1, 1]} : vector<30x1xf32> to vector<28x1xf32>
    %70 = vector.extract_strided_slice %36 {offsets = [0, 0], sizes = [28, 1], strides = [1, 1]} : vector<30x1xf32> to vector<28x1xf32>
    %71 = vector.extract_strided_slice %36 {offsets = [1, 0], sizes = [28, 1], strides = [1, 1]} : vector<30x1xf32> to vector<28x1xf32>
    %72 = vector.extract_strided_slice %36 {offsets = [2, 0], sizes = [28, 1], strides = [1, 1]} : vector<30x1xf32> to vector<28x1xf32>
    %73 = vector.broadcast %37 : vector<28x1xf32> to vector<28x16xf32>
    %74 = vector.broadcast %0 : vector<1x16xf32> to vector<28x16xf32>
    %75 = arith.mulf %73, %74 : vector<28x16xf32>
    %76 = vector.broadcast %38 : vector<28x1xf32> to vector<28x16xf32>
    %77 = vector.broadcast %1 : vector<1x16xf32> to vector<28x16xf32>
    %78 = arith.mulf %76, %77 : vector<28x16xf32>
    %79 = arith.addf %75, %78 : vector<28x16xf32>
    %80 = vector.broadcast %39 : vector<28x1xf32> to vector<28x16xf32>
    %81 = vector.broadcast %2 : vector<1x16xf32> to vector<28x16xf32>
    %82 = arith.mulf %80, %81 : vector<28x16xf32>
    %83 = arith.addf %79, %82 : vector<28x16xf32>
    %84 = vector.broadcast %40 : vector<28x1xf32> to vector<28x16xf32>
    %85 = vector.broadcast %3 : vector<1x16xf32> to vector<28x16xf32>
    %86 = arith.mulf %84, %85 : vector<28x16xf32>
    %87 = arith.addf %83, %86 : vector<28x16xf32>
    %88 = vector.broadcast %41 : vector<28x1xf32> to vector<28x16xf32>
    %89 = vector.broadcast %4 : vector<1x16xf32> to vector<28x16xf32>
    %90 = arith.mulf %88, %89 : vector<28x16xf32>
    %91 = arith.addf %87, %90 : vector<28x16xf32>
    %92 = vector.broadcast %42 : vector<28x1xf32> to vector<28x16xf32>
    %93 = vector.broadcast %5 : vector<1x16xf32> to vector<28x16xf32>
    %94 = arith.mulf %92, %93 : vector<28x16xf32>
    %95 = arith.addf %91, %94 : vector<28x16xf32>
    %96 = vector.broadcast %43 : vector<28x1xf32> to vector<28x16xf32>
    %97 = vector.broadcast %6 : vector<1x16xf32> to vector<28x16xf32>
    %98 = arith.mulf %96, %97 : vector<28x16xf32>
    %99 = arith.addf %95, %98 : vector<28x16xf32>
    %100 = vector.broadcast %44 : vector<28x1xf32> to vector<28x16xf32>
    %101 = vector.broadcast %7 : vector<1x16xf32> to vector<28x16xf32>
    %102 = arith.mulf %100, %101 : vector<28x16xf32>
    %103 = arith.addf %99, %102 : vector<28x16xf32>
    %104 = vector.broadcast %45 : vector<28x1xf32> to vector<28x16xf32>
    %105 = vector.broadcast %8 : vector<1x16xf32> to vector<28x16xf32>
    %106 = arith.mulf %104, %105 : vector<28x16xf32>
    %107 = arith.addf %103, %106 : vector<28x16xf32>
    %108 = arith.addf %107, %11 : vector<28x16xf32>
    %cst = arith.constant 0.000000e+00 : f32
    %109 = vector.broadcast %cst : f32 to vector<28x16xf32>
    %110 = arith.maximumf %108, %109 : vector<28x16xf32>
    %111 = vector.broadcast %40 : vector<28x1xf32> to vector<28x16xf32>
    %112 = vector.broadcast %0 : vector<1x16xf32> to vector<28x16xf32>
    %113 = arith.mulf %111, %112 : vector<28x16xf32>
    %114 = vector.broadcast %41 : vector<28x1xf32> to vector<28x16xf32>
    %115 = vector.broadcast %1 : vector<1x16xf32> to vector<28x16xf32>
    %116 = arith.mulf %114, %115 : vector<28x16xf32>
    %117 = arith.addf %113, %116 : vector<28x16xf32>
    %118 = vector.broadcast %42 : vector<28x1xf32> to vector<28x16xf32>
    %119 = vector.broadcast %2 : vector<1x16xf32> to vector<28x16xf32>
    %120 = arith.mulf %118, %119 : vector<28x16xf32>
    %121 = arith.addf %117, %120 : vector<28x16xf32>
    %122 = vector.broadcast %43 : vector<28x1xf32> to vector<28x16xf32>
    %123 = vector.broadcast %3 : vector<1x16xf32> to vector<28x16xf32>
    %124 = arith.mulf %122, %123 : vector<28x16xf32>
    %125 = arith.addf %121, %124 : vector<28x16xf32>
    %126 = vector.broadcast %44 : vector<28x1xf32> to vector<28x16xf32>
    %127 = vector.broadcast %4 : vector<1x16xf32> to vector<28x16xf32>
    %128 = arith.mulf %126, %127 : vector<28x16xf32>
    %129 = arith.addf %125, %128 : vector<28x16xf32>
    %130 = vector.broadcast %45 : vector<28x1xf32> to vector<28x16xf32>
    %131 = vector.broadcast %5 : vector<1x16xf32> to vector<28x16xf32>
    %132 = arith.mulf %130, %131 : vector<28x16xf32>
    %133 = arith.addf %129, %132 : vector<28x16xf32>
    %134 = vector.broadcast %46 : vector<28x1xf32> to vector<28x16xf32>
    %135 = vector.broadcast %6 : vector<1x16xf32> to vector<28x16xf32>
    %136 = arith.mulf %134, %135 : vector<28x16xf32>
    %137 = arith.addf %133, %136 : vector<28x16xf32>
    %138 = vector.broadcast %47 : vector<28x1xf32> to vector<28x16xf32>
    %139 = vector.broadcast %7 : vector<1x16xf32> to vector<28x16xf32>
    %140 = arith.mulf %138, %139 : vector<28x16xf32>
    %141 = arith.addf %137, %140 : vector<28x16xf32>
    %142 = vector.broadcast %48 : vector<28x1xf32> to vector<28x16xf32>
    %143 = vector.broadcast %8 : vector<1x16xf32> to vector<28x16xf32>
    %144 = arith.mulf %142, %143 : vector<28x16xf32>
    %145 = arith.addf %141, %144 : vector<28x16xf32>
    %146 = arith.addf %145, %11 : vector<28x16xf32>
    %cst_58 = arith.constant 0.000000e+00 : f32
    %147 = vector.broadcast %cst_58 : f32 to vector<28x16xf32>
    %148 = arith.maximumf %146, %147 : vector<28x16xf32>
    %149 = vector.broadcast %43 : vector<28x1xf32> to vector<28x16xf32>
    %150 = vector.broadcast %0 : vector<1x16xf32> to vector<28x16xf32>
    %151 = arith.mulf %149, %150 : vector<28x16xf32>
    %152 = vector.broadcast %44 : vector<28x1xf32> to vector<28x16xf32>
    %153 = vector.broadcast %1 : vector<1x16xf32> to vector<28x16xf32>
    %154 = arith.mulf %152, %153 : vector<28x16xf32>
    %155 = arith.addf %151, %154 : vector<28x16xf32>
    %156 = vector.broadcast %45 : vector<28x1xf32> to vector<28x16xf32>
    %157 = vector.broadcast %2 : vector<1x16xf32> to vector<28x16xf32>
    %158 = arith.mulf %156, %157 : vector<28x16xf32>
    %159 = arith.addf %155, %158 : vector<28x16xf32>
    %160 = vector.broadcast %46 : vector<28x1xf32> to vector<28x16xf32>
    %161 = vector.broadcast %3 : vector<1x16xf32> to vector<28x16xf32>
    %162 = arith.mulf %160, %161 : vector<28x16xf32>
    %163 = arith.addf %159, %162 : vector<28x16xf32>
    %164 = vector.broadcast %47 : vector<28x1xf32> to vector<28x16xf32>
    %165 = vector.broadcast %4 : vector<1x16xf32> to vector<28x16xf32>
    %166 = arith.mulf %164, %165 : vector<28x16xf32>
    %167 = arith.addf %163, %166 : vector<28x16xf32>
    %168 = vector.broadcast %48 : vector<28x1xf32> to vector<28x16xf32>
    %169 = vector.broadcast %5 : vector<1x16xf32> to vector<28x16xf32>
    %170 = arith.mulf %168, %169 : vector<28x16xf32>
    %171 = arith.addf %167, %170 : vector<28x16xf32>
    %172 = vector.broadcast %49 : vector<28x1xf32> to vector<28x16xf32>
    %173 = vector.broadcast %6 : vector<1x16xf32> to vector<28x16xf32>
    %174 = arith.mulf %172, %173 : vector<28x16xf32>
    %175 = arith.addf %171, %174 : vector<28x16xf32>
    %176 = vector.broadcast %50 : vector<28x1xf32> to vector<28x16xf32>
    %177 = vector.broadcast %7 : vector<1x16xf32> to vector<28x16xf32>
    %178 = arith.mulf %176, %177 : vector<28x16xf32>
    %179 = arith.addf %175, %178 : vector<28x16xf32>
    %180 = vector.broadcast %51 : vector<28x1xf32> to vector<28x16xf32>
    %181 = vector.broadcast %8 : vector<1x16xf32> to vector<28x16xf32>
    %182 = arith.mulf %180, %181 : vector<28x16xf32>
    %183 = arith.addf %179, %182 : vector<28x16xf32>
    %184 = arith.addf %183, %11 : vector<28x16xf32>
    %cst_59 = arith.constant 0.000000e+00 : f32
    %185 = vector.broadcast %cst_59 : f32 to vector<28x16xf32>
    %186 = arith.maximumf %184, %185 : vector<28x16xf32>
    %187 = vector.broadcast %46 : vector<28x1xf32> to vector<28x16xf32>
    %188 = vector.broadcast %0 : vector<1x16xf32> to vector<28x16xf32>
    %189 = arith.mulf %187, %188 : vector<28x16xf32>
    %190 = vector.broadcast %47 : vector<28x1xf32> to vector<28x16xf32>
    %191 = vector.broadcast %1 : vector<1x16xf32> to vector<28x16xf32>
    %192 = arith.mulf %190, %191 : vector<28x16xf32>
    %193 = arith.addf %189, %192 : vector<28x16xf32>
    %194 = vector.broadcast %48 : vector<28x1xf32> to vector<28x16xf32>
    %195 = vector.broadcast %2 : vector<1x16xf32> to vector<28x16xf32>
    %196 = arith.mulf %194, %195 : vector<28x16xf32>
    %197 = arith.addf %193, %196 : vector<28x16xf32>
    %198 = vector.broadcast %49 : vector<28x1xf32> to vector<28x16xf32>
    %199 = vector.broadcast %3 : vector<1x16xf32> to vector<28x16xf32>
    %200 = arith.mulf %198, %199 : vector<28x16xf32>
    %201 = arith.addf %197, %200 : vector<28x16xf32>
    %202 = vector.broadcast %50 : vector<28x1xf32> to vector<28x16xf32>
    %203 = vector.broadcast %4 : vector<1x16xf32> to vector<28x16xf32>
    %204 = arith.mulf %202, %203 : vector<28x16xf32>
    %205 = arith.addf %201, %204 : vector<28x16xf32>
    %206 = vector.broadcast %51 : vector<28x1xf32> to vector<28x16xf32>
    %207 = vector.broadcast %5 : vector<1x16xf32> to vector<28x16xf32>
    %208 = arith.mulf %206, %207 : vector<28x16xf32>
    %209 = arith.addf %205, %208 : vector<28x16xf32>
    %210 = vector.broadcast %52 : vector<28x1xf32> to vector<28x16xf32>
    %211 = vector.broadcast %6 : vector<1x16xf32> to vector<28x16xf32>
    %212 = arith.mulf %210, %211 : vector<28x16xf32>
    %213 = arith.addf %209, %212 : vector<28x16xf32>
    %214 = vector.broadcast %53 : vector<28x1xf32> to vector<28x16xf32>
    %215 = vector.broadcast %7 : vector<1x16xf32> to vector<28x16xf32>
    %216 = arith.mulf %214, %215 : vector<28x16xf32>
    %217 = arith.addf %213, %216 : vector<28x16xf32>
    %218 = vector.broadcast %54 : vector<28x1xf32> to vector<28x16xf32>
    %219 = vector.broadcast %8 : vector<1x16xf32> to vector<28x16xf32>
    %220 = arith.mulf %218, %219 : vector<28x16xf32>
    %221 = arith.addf %217, %220 : vector<28x16xf32>
    %222 = arith.addf %221, %11 : vector<28x16xf32>
    %cst_60 = arith.constant 0.000000e+00 : f32
    %223 = vector.broadcast %cst_60 : f32 to vector<28x16xf32>
    %224 = arith.maximumf %222, %223 : vector<28x16xf32>
    %225 = vector.broadcast %49 : vector<28x1xf32> to vector<28x16xf32>
    %226 = vector.broadcast %0 : vector<1x16xf32> to vector<28x16xf32>
    %227 = arith.mulf %225, %226 : vector<28x16xf32>
    %228 = vector.broadcast %50 : vector<28x1xf32> to vector<28x16xf32>
    %229 = vector.broadcast %1 : vector<1x16xf32> to vector<28x16xf32>
    %230 = arith.mulf %228, %229 : vector<28x16xf32>
    %231 = arith.addf %227, %230 : vector<28x16xf32>
    %232 = vector.broadcast %51 : vector<28x1xf32> to vector<28x16xf32>
    %233 = vector.broadcast %2 : vector<1x16xf32> to vector<28x16xf32>
    %234 = arith.mulf %232, %233 : vector<28x16xf32>
    %235 = arith.addf %231, %234 : vector<28x16xf32>
    %236 = vector.broadcast %52 : vector<28x1xf32> to vector<28x16xf32>
    %237 = vector.broadcast %3 : vector<1x16xf32> to vector<28x16xf32>
    %238 = arith.mulf %236, %237 : vector<28x16xf32>
    %239 = arith.addf %235, %238 : vector<28x16xf32>
    %240 = vector.broadcast %53 : vector<28x1xf32> to vector<28x16xf32>
    %241 = vector.broadcast %4 : vector<1x16xf32> to vector<28x16xf32>
    %242 = arith.mulf %240, %241 : vector<28x16xf32>
    %243 = arith.addf %239, %242 : vector<28x16xf32>
    %244 = vector.broadcast %54 : vector<28x1xf32> to vector<28x16xf32>
    %245 = vector.broadcast %5 : vector<1x16xf32> to vector<28x16xf32>
    %246 = arith.mulf %244, %245 : vector<28x16xf32>
    %247 = arith.addf %243, %246 : vector<28x16xf32>
    %248 = vector.broadcast %55 : vector<28x1xf32> to vector<28x16xf32>
    %249 = vector.broadcast %6 : vector<1x16xf32> to vector<28x16xf32>
    %250 = arith.mulf %248, %249 : vector<28x16xf32>
    %251 = arith.addf %247, %250 : vector<28x16xf32>
    %252 = vector.broadcast %56 : vector<28x1xf32> to vector<28x16xf32>
    %253 = vector.broadcast %7 : vector<1x16xf32> to vector<28x16xf32>
    %254 = arith.mulf %252, %253 : vector<28x16xf32>
    %255 = arith.addf %251, %254 : vector<28x16xf32>
    %256 = vector.broadcast %57 : vector<28x1xf32> to vector<28x16xf32>
    %257 = vector.broadcast %8 : vector<1x16xf32> to vector<28x16xf32>
    %258 = arith.mulf %256, %257 : vector<28x16xf32>
    %259 = arith.addf %255, %258 : vector<28x16xf32>
    %260 = arith.addf %259, %11 : vector<28x16xf32>
    %cst_61 = arith.constant 0.000000e+00 : f32
    %261 = vector.broadcast %cst_61 : f32 to vector<28x16xf32>
    %262 = arith.maximumf %260, %261 : vector<28x16xf32>
    %263 = vector.broadcast %52 : vector<28x1xf32> to vector<28x16xf32>
    %264 = vector.broadcast %0 : vector<1x16xf32> to vector<28x16xf32>
    %265 = arith.mulf %263, %264 : vector<28x16xf32>
    %266 = vector.broadcast %53 : vector<28x1xf32> to vector<28x16xf32>
    %267 = vector.broadcast %1 : vector<1x16xf32> to vector<28x16xf32>
    %268 = arith.mulf %266, %267 : vector<28x16xf32>
    %269 = arith.addf %265, %268 : vector<28x16xf32>
    %270 = vector.broadcast %54 : vector<28x1xf32> to vector<28x16xf32>
    %271 = vector.broadcast %2 : vector<1x16xf32> to vector<28x16xf32>
    %272 = arith.mulf %270, %271 : vector<28x16xf32>
    %273 = arith.addf %269, %272 : vector<28x16xf32>
    %274 = vector.broadcast %55 : vector<28x1xf32> to vector<28x16xf32>
    %275 = vector.broadcast %3 : vector<1x16xf32> to vector<28x16xf32>
    %276 = arith.mulf %274, %275 : vector<28x16xf32>
    %277 = arith.addf %273, %276 : vector<28x16xf32>
    %278 = vector.broadcast %56 : vector<28x1xf32> to vector<28x16xf32>
    %279 = vector.broadcast %4 : vector<1x16xf32> to vector<28x16xf32>
    %280 = arith.mulf %278, %279 : vector<28x16xf32>
    %281 = arith.addf %277, %280 : vector<28x16xf32>
    %282 = vector.broadcast %57 : vector<28x1xf32> to vector<28x16xf32>
    %283 = vector.broadcast %5 : vector<1x16xf32> to vector<28x16xf32>
    %284 = arith.mulf %282, %283 : vector<28x16xf32>
    %285 = arith.addf %281, %284 : vector<28x16xf32>
    %286 = vector.broadcast %58 : vector<28x1xf32> to vector<28x16xf32>
    %287 = vector.broadcast %6 : vector<1x16xf32> to vector<28x16xf32>
    %288 = arith.mulf %286, %287 : vector<28x16xf32>
    %289 = arith.addf %285, %288 : vector<28x16xf32>
    %290 = vector.broadcast %59 : vector<28x1xf32> to vector<28x16xf32>
    %291 = vector.broadcast %7 : vector<1x16xf32> to vector<28x16xf32>
    %292 = arith.mulf %290, %291 : vector<28x16xf32>
    %293 = arith.addf %289, %292 : vector<28x16xf32>
    %294 = vector.broadcast %60 : vector<28x1xf32> to vector<28x16xf32>
    %295 = vector.broadcast %8 : vector<1x16xf32> to vector<28x16xf32>
    %296 = arith.mulf %294, %295 : vector<28x16xf32>
    %297 = arith.addf %293, %296 : vector<28x16xf32>
    %298 = arith.addf %297, %11 : vector<28x16xf32>
    %cst_62 = arith.constant 0.000000e+00 : f32
    %299 = vector.broadcast %cst_62 : f32 to vector<28x16xf32>
    %300 = arith.maximumf %298, %299 : vector<28x16xf32>
    %301 = vector.broadcast %55 : vector<28x1xf32> to vector<28x16xf32>
    %302 = vector.broadcast %0 : vector<1x16xf32> to vector<28x16xf32>
    %303 = arith.mulf %301, %302 : vector<28x16xf32>
    %304 = vector.broadcast %56 : vector<28x1xf32> to vector<28x16xf32>
    %305 = vector.broadcast %1 : vector<1x16xf32> to vector<28x16xf32>
    %306 = arith.mulf %304, %305 : vector<28x16xf32>
    %307 = arith.addf %303, %306 : vector<28x16xf32>
    %308 = vector.broadcast %57 : vector<28x1xf32> to vector<28x16xf32>
    %309 = vector.broadcast %2 : vector<1x16xf32> to vector<28x16xf32>
    %310 = arith.mulf %308, %309 : vector<28x16xf32>
    %311 = arith.addf %307, %310 : vector<28x16xf32>
    %312 = vector.broadcast %58 : vector<28x1xf32> to vector<28x16xf32>
    %313 = vector.broadcast %3 : vector<1x16xf32> to vector<28x16xf32>
    %314 = arith.mulf %312, %313 : vector<28x16xf32>
    %315 = arith.addf %311, %314 : vector<28x16xf32>
    %316 = vector.broadcast %59 : vector<28x1xf32> to vector<28x16xf32>
    %317 = vector.broadcast %4 : vector<1x16xf32> to vector<28x16xf32>
    %318 = arith.mulf %316, %317 : vector<28x16xf32>
    %319 = arith.addf %315, %318 : vector<28x16xf32>
    %320 = vector.broadcast %60 : vector<28x1xf32> to vector<28x16xf32>
    %321 = vector.broadcast %5 : vector<1x16xf32> to vector<28x16xf32>
    %322 = arith.mulf %320, %321 : vector<28x16xf32>
    %323 = arith.addf %319, %322 : vector<28x16xf32>
    %324 = vector.broadcast %61 : vector<28x1xf32> to vector<28x16xf32>
    %325 = vector.broadcast %6 : vector<1x16xf32> to vector<28x16xf32>
    %326 = arith.mulf %324, %325 : vector<28x16xf32>
    %327 = arith.addf %323, %326 : vector<28x16xf32>
    %328 = vector.broadcast %62 : vector<28x1xf32> to vector<28x16xf32>
    %329 = vector.broadcast %7 : vector<1x16xf32> to vector<28x16xf32>
    %330 = arith.mulf %328, %329 : vector<28x16xf32>
    %331 = arith.addf %327, %330 : vector<28x16xf32>
    %332 = vector.broadcast %63 : vector<28x1xf32> to vector<28x16xf32>
    %333 = vector.broadcast %8 : vector<1x16xf32> to vector<28x16xf32>
    %334 = arith.mulf %332, %333 : vector<28x16xf32>
    %335 = arith.addf %331, %334 : vector<28x16xf32>
    %336 = arith.addf %335, %11 : vector<28x16xf32>
    %cst_63 = arith.constant 0.000000e+00 : f32
    %337 = vector.broadcast %cst_63 : f32 to vector<28x16xf32>
    %338 = arith.maximumf %336, %337 : vector<28x16xf32>
    %339 = vector.broadcast %58 : vector<28x1xf32> to vector<28x16xf32>
    %340 = vector.broadcast %0 : vector<1x16xf32> to vector<28x16xf32>
    %341 = arith.mulf %339, %340 : vector<28x16xf32>
    %342 = vector.broadcast %59 : vector<28x1xf32> to vector<28x16xf32>
    %343 = vector.broadcast %1 : vector<1x16xf32> to vector<28x16xf32>
    %344 = arith.mulf %342, %343 : vector<28x16xf32>
    %345 = arith.addf %341, %344 : vector<28x16xf32>
    %346 = vector.broadcast %60 : vector<28x1xf32> to vector<28x16xf32>
    %347 = vector.broadcast %2 : vector<1x16xf32> to vector<28x16xf32>
    %348 = arith.mulf %346, %347 : vector<28x16xf32>
    %349 = arith.addf %345, %348 : vector<28x16xf32>
    %350 = vector.broadcast %61 : vector<28x1xf32> to vector<28x16xf32>
    %351 = vector.broadcast %3 : vector<1x16xf32> to vector<28x16xf32>
    %352 = arith.mulf %350, %351 : vector<28x16xf32>
    %353 = arith.addf %349, %352 : vector<28x16xf32>
    %354 = vector.broadcast %62 : vector<28x1xf32> to vector<28x16xf32>
    %355 = vector.broadcast %4 : vector<1x16xf32> to vector<28x16xf32>
    %356 = arith.mulf %354, %355 : vector<28x16xf32>
    %357 = arith.addf %353, %356 : vector<28x16xf32>
    %358 = vector.broadcast %63 : vector<28x1xf32> to vector<28x16xf32>
    %359 = vector.broadcast %5 : vector<1x16xf32> to vector<28x16xf32>
    %360 = arith.mulf %358, %359 : vector<28x16xf32>
    %361 = arith.addf %357, %360 : vector<28x16xf32>
    %362 = vector.broadcast %64 : vector<28x1xf32> to vector<28x16xf32>
    %363 = vector.broadcast %6 : vector<1x16xf32> to vector<28x16xf32>
    %364 = arith.mulf %362, %363 : vector<28x16xf32>
    %365 = arith.addf %361, %364 : vector<28x16xf32>
    %366 = vector.broadcast %65 : vector<28x1xf32> to vector<28x16xf32>
    %367 = vector.broadcast %7 : vector<1x16xf32> to vector<28x16xf32>
    %368 = arith.mulf %366, %367 : vector<28x16xf32>
    %369 = arith.addf %365, %368 : vector<28x16xf32>
    %370 = vector.broadcast %66 : vector<28x1xf32> to vector<28x16xf32>
    %371 = vector.broadcast %8 : vector<1x16xf32> to vector<28x16xf32>
    %372 = arith.mulf %370, %371 : vector<28x16xf32>
    %373 = arith.addf %369, %372 : vector<28x16xf32>
    %374 = arith.addf %373, %11 : vector<28x16xf32>
    %cst_64 = arith.constant 0.000000e+00 : f32
    %375 = vector.broadcast %cst_64 : f32 to vector<28x16xf32>
    %376 = arith.maximumf %374, %375 : vector<28x16xf32>
    %377 = vector.broadcast %61 : vector<28x1xf32> to vector<28x16xf32>
    %378 = vector.broadcast %0 : vector<1x16xf32> to vector<28x16xf32>
    %379 = arith.mulf %377, %378 : vector<28x16xf32>
    %380 = vector.broadcast %62 : vector<28x1xf32> to vector<28x16xf32>
    %381 = vector.broadcast %1 : vector<1x16xf32> to vector<28x16xf32>
    %382 = arith.mulf %380, %381 : vector<28x16xf32>
    %383 = arith.addf %379, %382 : vector<28x16xf32>
    %384 = vector.broadcast %63 : vector<28x1xf32> to vector<28x16xf32>
    %385 = vector.broadcast %2 : vector<1x16xf32> to vector<28x16xf32>
    %386 = arith.mulf %384, %385 : vector<28x16xf32>
    %387 = arith.addf %383, %386 : vector<28x16xf32>
    %388 = vector.broadcast %64 : vector<28x1xf32> to vector<28x16xf32>
    %389 = vector.broadcast %3 : vector<1x16xf32> to vector<28x16xf32>
    %390 = arith.mulf %388, %389 : vector<28x16xf32>
    %391 = arith.addf %387, %390 : vector<28x16xf32>
    %392 = vector.broadcast %65 : vector<28x1xf32> to vector<28x16xf32>
    %393 = vector.broadcast %4 : vector<1x16xf32> to vector<28x16xf32>
    %394 = arith.mulf %392, %393 : vector<28x16xf32>
    %395 = arith.addf %391, %394 : vector<28x16xf32>
    %396 = vector.broadcast %66 : vector<28x1xf32> to vector<28x16xf32>
    %397 = vector.broadcast %5 : vector<1x16xf32> to vector<28x16xf32>
    %398 = arith.mulf %396, %397 : vector<28x16xf32>
    %399 = arith.addf %395, %398 : vector<28x16xf32>
    %400 = vector.broadcast %67 : vector<28x1xf32> to vector<28x16xf32>
    %401 = vector.broadcast %6 : vector<1x16xf32> to vector<28x16xf32>
    %402 = arith.mulf %400, %401 : vector<28x16xf32>
    %403 = arith.addf %399, %402 : vector<28x16xf32>
    %404 = vector.broadcast %68 : vector<28x1xf32> to vector<28x16xf32>
    %405 = vector.broadcast %7 : vector<1x16xf32> to vector<28x16xf32>
    %406 = arith.mulf %404, %405 : vector<28x16xf32>
    %407 = arith.addf %403, %406 : vector<28x16xf32>
    %408 = vector.broadcast %69 : vector<28x1xf32> to vector<28x16xf32>
    %409 = vector.broadcast %8 : vector<1x16xf32> to vector<28x16xf32>
    %410 = arith.mulf %408, %409 : vector<28x16xf32>
    %411 = arith.addf %407, %410 : vector<28x16xf32>
    %412 = arith.addf %411, %11 : vector<28x16xf32>
    %cst_65 = arith.constant 0.000000e+00 : f32
    %413 = vector.broadcast %cst_65 : f32 to vector<28x16xf32>
    %414 = arith.maximumf %412, %413 : vector<28x16xf32>
    %415 = vector.broadcast %64 : vector<28x1xf32> to vector<28x16xf32>
    %416 = vector.broadcast %0 : vector<1x16xf32> to vector<28x16xf32>
    %417 = arith.mulf %415, %416 : vector<28x16xf32>
    %418 = vector.broadcast %65 : vector<28x1xf32> to vector<28x16xf32>
    %419 = vector.broadcast %1 : vector<1x16xf32> to vector<28x16xf32>
    %420 = arith.mulf %418, %419 : vector<28x16xf32>
    %421 = arith.addf %417, %420 : vector<28x16xf32>
    %422 = vector.broadcast %66 : vector<28x1xf32> to vector<28x16xf32>
    %423 = vector.broadcast %2 : vector<1x16xf32> to vector<28x16xf32>
    %424 = arith.mulf %422, %423 : vector<28x16xf32>
    %425 = arith.addf %421, %424 : vector<28x16xf32>
    %426 = vector.broadcast %67 : vector<28x1xf32> to vector<28x16xf32>
    %427 = vector.broadcast %3 : vector<1x16xf32> to vector<28x16xf32>
    %428 = arith.mulf %426, %427 : vector<28x16xf32>
    %429 = arith.addf %425, %428 : vector<28x16xf32>
    %430 = vector.broadcast %68 : vector<28x1xf32> to vector<28x16xf32>
    %431 = vector.broadcast %4 : vector<1x16xf32> to vector<28x16xf32>
    %432 = arith.mulf %430, %431 : vector<28x16xf32>
    %433 = arith.addf %429, %432 : vector<28x16xf32>
    %434 = vector.broadcast %69 : vector<28x1xf32> to vector<28x16xf32>
    %435 = vector.broadcast %5 : vector<1x16xf32> to vector<28x16xf32>
    %436 = arith.mulf %434, %435 : vector<28x16xf32>
    %437 = arith.addf %433, %436 : vector<28x16xf32>
    %438 = vector.broadcast %70 : vector<28x1xf32> to vector<28x16xf32>
    %439 = vector.broadcast %6 : vector<1x16xf32> to vector<28x16xf32>
    %440 = arith.mulf %438, %439 : vector<28x16xf32>
    %441 = arith.addf %437, %440 : vector<28x16xf32>
    %442 = vector.broadcast %71 : vector<28x1xf32> to vector<28x16xf32>
    %443 = vector.broadcast %7 : vector<1x16xf32> to vector<28x16xf32>
    %444 = arith.mulf %442, %443 : vector<28x16xf32>
    %445 = arith.addf %441, %444 : vector<28x16xf32>
    %446 = vector.broadcast %72 : vector<28x1xf32> to vector<28x16xf32>
    %447 = vector.broadcast %8 : vector<1x16xf32> to vector<28x16xf32>
    %448 = arith.mulf %446, %447 : vector<28x16xf32>
    %449 = arith.addf %445, %448 : vector<28x16xf32>
    %450 = arith.addf %449, %11 : vector<28x16xf32>
    %cst_66 = arith.constant 0.000000e+00 : f32
    %451 = vector.broadcast %cst_66 : f32 to vector<28x16xf32>
    %452 = arith.maximumf %450, %451 : vector<28x16xf32>
    %453 = vector.extract_strided_slice %110 {offsets = [0, 0], sizes = [26, 16], strides = [1, 1]} : vector<28x16xf32> to vector<26x16xf32>
    %454 = vector.extract_strided_slice %110 {offsets = [1, 0], sizes = [26, 16], strides = [1, 1]} : vector<28x16xf32> to vector<26x16xf32>
    %455 = vector.extract_strided_slice %110 {offsets = [2, 0], sizes = [26, 16], strides = [1, 1]} : vector<28x16xf32> to vector<26x16xf32>
    %456 = vector.extract_strided_slice %148 {offsets = [0, 0], sizes = [26, 16], strides = [1, 1]} : vector<28x16xf32> to vector<26x16xf32>
    %457 = vector.extract_strided_slice %148 {offsets = [1, 0], sizes = [26, 16], strides = [1, 1]} : vector<28x16xf32> to vector<26x16xf32>
    %458 = vector.extract_strided_slice %148 {offsets = [2, 0], sizes = [26, 16], strides = [1, 1]} : vector<28x16xf32> to vector<26x16xf32>
    %459 = vector.extract_strided_slice %186 {offsets = [0, 0], sizes = [26, 16], strides = [1, 1]} : vector<28x16xf32> to vector<26x16xf32>
    %460 = vector.extract_strided_slice %186 {offsets = [1, 0], sizes = [26, 16], strides = [1, 1]} : vector<28x16xf32> to vector<26x16xf32>
    %461 = vector.extract_strided_slice %186 {offsets = [2, 0], sizes = [26, 16], strides = [1, 1]} : vector<28x16xf32> to vector<26x16xf32>
    %462 = vector.extract_strided_slice %224 {offsets = [0, 0], sizes = [26, 16], strides = [1, 1]} : vector<28x16xf32> to vector<26x16xf32>
    %463 = vector.extract_strided_slice %224 {offsets = [1, 0], sizes = [26, 16], strides = [1, 1]} : vector<28x16xf32> to vector<26x16xf32>
    %464 = vector.extract_strided_slice %224 {offsets = [2, 0], sizes = [26, 16], strides = [1, 1]} : vector<28x16xf32> to vector<26x16xf32>
    %465 = vector.extract_strided_slice %262 {offsets = [0, 0], sizes = [26, 16], strides = [1, 1]} : vector<28x16xf32> to vector<26x16xf32>
    %466 = vector.extract_strided_slice %262 {offsets = [1, 0], sizes = [26, 16], strides = [1, 1]} : vector<28x16xf32> to vector<26x16xf32>
    %467 = vector.extract_strided_slice %262 {offsets = [2, 0], sizes = [26, 16], strides = [1, 1]} : vector<28x16xf32> to vector<26x16xf32>
    %468 = vector.extract_strided_slice %300 {offsets = [0, 0], sizes = [26, 16], strides = [1, 1]} : vector<28x16xf32> to vector<26x16xf32>
    %469 = vector.extract_strided_slice %300 {offsets = [1, 0], sizes = [26, 16], strides = [1, 1]} : vector<28x16xf32> to vector<26x16xf32>
    %470 = vector.extract_strided_slice %300 {offsets = [2, 0], sizes = [26, 16], strides = [1, 1]} : vector<28x16xf32> to vector<26x16xf32>
    %471 = vector.extract_strided_slice %338 {offsets = [0, 0], sizes = [26, 16], strides = [1, 1]} : vector<28x16xf32> to vector<26x16xf32>
    %472 = vector.extract_strided_slice %338 {offsets = [1, 0], sizes = [26, 16], strides = [1, 1]} : vector<28x16xf32> to vector<26x16xf32>
    %473 = vector.extract_strided_slice %338 {offsets = [2, 0], sizes = [26, 16], strides = [1, 1]} : vector<28x16xf32> to vector<26x16xf32>
    %474 = vector.extract_strided_slice %376 {offsets = [0, 0], sizes = [26, 16], strides = [1, 1]} : vector<28x16xf32> to vector<26x16xf32>
    %475 = vector.extract_strided_slice %376 {offsets = [1, 0], sizes = [26, 16], strides = [1, 1]} : vector<28x16xf32> to vector<26x16xf32>
    %476 = vector.extract_strided_slice %376 {offsets = [2, 0], sizes = [26, 16], strides = [1, 1]} : vector<28x16xf32> to vector<26x16xf32>
    %477 = vector.extract_strided_slice %414 {offsets = [0, 0], sizes = [26, 16], strides = [1, 1]} : vector<28x16xf32> to vector<26x16xf32>
    %478 = vector.extract_strided_slice %414 {offsets = [1, 0], sizes = [26, 16], strides = [1, 1]} : vector<28x16xf32> to vector<26x16xf32>
    %479 = vector.extract_strided_slice %414 {offsets = [2, 0], sizes = [26, 16], strides = [1, 1]} : vector<28x16xf32> to vector<26x16xf32>
    %480 = vector.extract_strided_slice %452 {offsets = [0, 0], sizes = [26, 16], strides = [1, 1]} : vector<28x16xf32> to vector<26x16xf32>
    %481 = vector.extract_strided_slice %452 {offsets = [1, 0], sizes = [26, 16], strides = [1, 1]} : vector<28x16xf32> to vector<26x16xf32>
    %482 = vector.extract_strided_slice %452 {offsets = [2, 0], sizes = [26, 16], strides = [1, 1]} : vector<28x16xf32> to vector<26x16xf32>
    %c0_67 = arith.constant 0 : index
    %c0_68 = arith.constant 0 : index
    %483 = vector.load %arg13[%c0_67, %c0_68] : memref<208x144xf32, #tpu.memory_space<vmem>>, vector<26x16xf32>
    tpu.vector_store %arg13[%c0_67, %c0_68], %453 {strides = array<i32>} : memref<208x144xf32, #tpu.memory_space<vmem>>, vector<26x16xf32>,
    %c0_69 = arith.constant 0 : index
    %c16 = arith.constant 16 : index
    %484 = vector.load %arg13[%c0_69, %c16] : memref<208x144xf32, #tpu.memory_space<vmem>>, vector<26x16xf32>
    tpu.vector_store %arg13[%c0_69, %c16], %454 {strides = array<i32>} : memref<208x144xf32, #tpu.memory_space<vmem>>, vector<26x16xf32>,
    %c0_70 = arith.constant 0 : index
    %c32 = arith.constant 32 : index
    %485 = vector.load %arg13[%c0_70, %c32] : memref<208x144xf32, #tpu.memory_space<vmem>>, vector<26x16xf32>
    tpu.vector_store %arg13[%c0_70, %c32], %455 {strides = array<i32>} : memref<208x144xf32, #tpu.memory_space<vmem>>, vector<26x16xf32>,
    %c0_71 = arith.constant 0 : index
    %c48 = arith.constant 48 : index
    %486 = vector.load %arg13[%c0_71, %c48] : memref<208x144xf32, #tpu.memory_space<vmem>>, vector<26x16xf32>
    tpu.vector_store %arg13[%c0_71, %c48], %456 {strides = array<i32>} : memref<208x144xf32, #tpu.memory_space<vmem>>, vector<26x16xf32>,
    %c0_72 = arith.constant 0 : index
    %c64 = arith.constant 64 : index
    %487 = vector.load %arg13[%c0_72, %c64] : memref<208x144xf32, #tpu.memory_space<vmem>>, vector<26x16xf32>
    tpu.vector_store %arg13[%c0_72, %c64], %457 {strides = array<i32>} : memref<208x144xf32, #tpu.memory_space<vmem>>, vector<26x16xf32>,
    %c0_73 = arith.constant 0 : index
    %c80 = arith.constant 80 : index
    %488 = vector.load %arg13[%c0_73, %c80] : memref<208x144xf32, #tpu.memory_space<vmem>>, vector<26x16xf32>
    tpu.vector_store %arg13[%c0_73, %c80], %458 {strides = array<i32>} : memref<208x144xf32, #tpu.memory_space<vmem>>, vector<26x16xf32>,
    %c0_74 = arith.constant 0 : index
    %c96 = arith.constant 96 : index
    %489 = vector.load %arg13[%c0_74, %c96] : memref<208x144xf32, #tpu.memory_space<vmem>>, vector<26x16xf32>
    tpu.vector_store %arg13[%c0_74, %c96], %459 {strides = array<i32>} : memref<208x144xf32, #tpu.memory_space<vmem>>, vector<26x16xf32>,
    %c0_75 = arith.constant 0 : index
    %c112 = arith.constant 112 : index
    %490 = vector.load %arg13[%c0_75, %c112] : memref<208x144xf32, #tpu.memory_space<vmem>>, vector<26x16xf32>
    tpu.vector_store %arg13[%c0_75, %c112], %460 {strides = array<i32>} : memref<208x144xf32, #tpu.memory_space<vmem>>, vector<26x16xf32>,
    %c0_76 = arith.constant 0 : index
    %c128 = arith.constant 128 : index
    %491 = vector.load %arg13[%c0_76, %c128] : memref<208x144xf32, #tpu.memory_space<vmem>>, vector<26x16xf32>
    tpu.vector_store %arg13[%c0_76, %c128], %461 {strides = array<i32>} : memref<208x144xf32, #tpu.memory_space<vmem>>, vector<26x16xf32>,
    %c26 = arith.constant 26 : index
    %c0_77 = arith.constant 0 : index
    %492 = vector.load %arg13[%c26, %c0_77] : memref<208x144xf32, #tpu.memory_space<vmem>>, vector<26x16xf32>
    tpu.vector_store %arg13[%c26, %c0_77], %456 {strides = array<i32>} : memref<208x144xf32, #tpu.memory_space<vmem>>, vector<26x16xf32>,
    %c26_78 = arith.constant 26 : index
    %c16_79 = arith.constant 16 : index
    %493 = vector.load %arg13[%c26_78, %c16_79] : memref<208x144xf32, #tpu.memory_space<vmem>>, vector<26x16xf32>
    tpu.vector_store %arg13[%c26_78, %c16_79], %457 {strides = array<i32>} : memref<208x144xf32, #tpu.memory_space<vmem>>, vector<26x16xf32>,
    %c26_80 = arith.constant 26 : index
    %c32_81 = arith.constant 32 : index
    %494 = vector.load %arg13[%c26_80, %c32_81] : memref<208x144xf32, #tpu.memory_space<vmem>>, vector<26x16xf32>
    tpu.vector_store %arg13[%c26_80, %c32_81], %458 {strides = array<i32>} : memref<208x144xf32, #tpu.memory_space<vmem>>, vector<26x16xf32>,
    %c26_82 = arith.constant 26 : index
    %c48_83 = arith.constant 48 : index
    %495 = vector.load %arg13[%c26_82, %c48_83] : memref<208x144xf32, #tpu.memory_space<vmem>>, vector<26x16xf32>
    tpu.vector_store %arg13[%c26_82, %c48_83], %459 {strides = array<i32>} : memref<208x144xf32, #tpu.memory_space<vmem>>, vector<26x16xf32>,
    %c26_84 = arith.constant 26 : index
    %c64_85 = arith.constant 64 : index
    %496 = vector.load %arg13[%c26_84, %c64_85] : memref<208x144xf32, #tpu.memory_space<vmem>>, vector<26x16xf32>
    tpu.vector_store %arg13[%c26_84, %c64_85], %460 {strides = array<i32>} : memref<208x144xf32, #tpu.memory_space<vmem>>, vector<26x16xf32>,
    %c26_86 = arith.constant 26 : index
    %c80_87 = arith.constant 80 : index
    %497 = vector.load %arg13[%c26_86, %c80_87] : memref<208x144xf32, #tpu.memory_space<vmem>>, vector<26x16xf32>
    tpu.vector_store %arg13[%c26_86, %c80_87], %461 {strides = array<i32>} : memref<208x144xf32, #tpu.memory_space<vmem>>, vector<26x16xf32>,
    %c26_88 = arith.constant 26 : index
    %c96_89 = arith.constant 96 : index
    %498 = vector.load %arg13[%c26_88, %c96_89] : memref<208x144xf32, #tpu.memory_space<vmem>>, vector<26x16xf32>
    tpu.vector_store %arg13[%c26_88, %c96_89], %462 {strides = array<i32>} : memref<208x144xf32, #tpu.memory_space<vmem>>, vector<26x16xf32>,
    %c26_90 = arith.constant 26 : index
    %c112_91 = arith.constant 112 : index
    %499 = vector.load %arg13[%c26_90, %c112_91] : memref<208x144xf32, #tpu.memory_space<vmem>>, vector<26x16xf32>
    tpu.vector_store %arg13[%c26_90, %c112_91], %463 {strides = array<i32>} : memref<208x144xf32, #tpu.memory_space<vmem>>, vector<26x16xf32>,
    %c26_92 = arith.constant 26 : index
    %c128_93 = arith.constant 128 : index
    %500 = vector.load %arg13[%c26_92, %c128_93] : memref<208x144xf32, #tpu.memory_space<vmem>>, vector<26x16xf32>
    tpu.vector_store %arg13[%c26_92, %c128_93], %464 {strides = array<i32>} : memref<208x144xf32, #tpu.memory_space<vmem>>, vector<26x16xf32>,
    %c52 = arith.constant 52 : index
    %c0_94 = arith.constant 0 : index
    %501 = vector.load %arg13[%c52, %c0_94] : memref<208x144xf32, #tpu.memory_space<vmem>>, vector<26x16xf32>
    tpu.vector_store %arg13[%c52, %c0_94], %459 {strides = array<i32>} : memref<208x144xf32, #tpu.memory_space<vmem>>, vector<26x16xf32>,
    %c52_95 = arith.constant 52 : index
    %c16_96 = arith.constant 16 : index
    %502 = vector.load %arg13[%c52_95, %c16_96] : memref<208x144xf32, #tpu.memory_space<vmem>>, vector<26x16xf32>
    tpu.vector_store %arg13[%c52_95, %c16_96], %460 {strides = array<i32>} : memref<208x144xf32, #tpu.memory_space<vmem>>, vector<26x16xf32>,
    %c52_97 = arith.constant 52 : index
    %c32_98 = arith.constant 32 : index
    %503 = vector.load %arg13[%c52_97, %c32_98] : memref<208x144xf32, #tpu.memory_space<vmem>>, vector<26x16xf32>
    tpu.vector_store %arg13[%c52_97, %c32_98], %461 {strides = array<i32>} : memref<208x144xf32, #tpu.memory_space<vmem>>, vector<26x16xf32>,
    %c52_99 = arith.constant 52 : index
    %c48_100 = arith.constant 48 : index
    %504 = vector.load %arg13[%c52_99, %c48_100] : memref<208x144xf32, #tpu.memory_space<vmem>>, vector<26x16xf32>
    tpu.vector_store %arg13[%c52_99, %c48_100], %462 {strides = array<i32>} : memref<208x144xf32, #tpu.memory_space<vmem>>, vector<26x16xf32>,
    %c52_101 = arith.constant 52 : index
    %c64_102 = arith.constant 64 : index
    %505 = vector.load %arg13[%c52_101, %c64_102] : memref<208x144xf32, #tpu.memory_space<vmem>>, vector<26x16xf32>
    tpu.vector_store %arg13[%c52_101, %c64_102], %463 {strides = array<i32>} : memref<208x144xf32, #tpu.memory_space<vmem>>, vector<26x16xf32>,
    %c52_103 = arith.constant 52 : index
    %c80_104 = arith.constant 80 : index
    %506 = vector.load %arg13[%c52_103, %c80_104] : memref<208x144xf32, #tpu.memory_space<vmem>>, vector<26x16xf32>
    tpu.vector_store %arg13[%c52_103, %c80_104], %464 {strides = array<i32>} : memref<208x144xf32, #tpu.memory_space<vmem>>, vector<26x16xf32>,
    %c52_105 = arith.constant 52 : index
    %c96_106 = arith.constant 96 : index
    %507 = vector.load %arg13[%c52_105, %c96_106] : memref<208x144xf32, #tpu.memory_space<vmem>>, vector<26x16xf32>
    tpu.vector_store %arg13[%c52_105, %c96_106], %465 {strides = array<i32>} : memref<208x144xf32, #tpu.memory_space<vmem>>, vector<26x16xf32>,
    %c52_107 = arith.constant 52 : index
    %c112_108 = arith.constant 112 : index
    %508 = vector.load %arg13[%c52_107, %c112_108] : memref<208x144xf32, #tpu.memory_space<vmem>>, vector<26x16xf32>
    tpu.vector_store %arg13[%c52_107, %c112_108], %466 {strides = array<i32>} : memref<208x144xf32, #tpu.memory_space<vmem>>, vector<26x16xf32>,
    %c52_109 = arith.constant 52 : index
    %c128_110 = arith.constant 128 : index
    %509 = vector.load %arg13[%c52_109, %c128_110] : memref<208x144xf32, #tpu.memory_space<vmem>>, vector<26x16xf32>
    tpu.vector_store %arg13[%c52_109, %c128_110], %467 {strides = array<i32>} : memref<208x144xf32, #tpu.memory_space<vmem>>, vector<26x16xf32>,
    %c78 = arith.constant 78 : index
    %c0_111 = arith.constant 0 : index
    %510 = vector.load %arg13[%c78, %c0_111] : memref<208x144xf32, #tpu.memory_space<vmem>>, vector<26x16xf32>
    tpu.vector_store %arg13[%c78, %c0_111], %462 {strides = array<i32>} : memref<208x144xf32, #tpu.memory_space<vmem>>, vector<26x16xf32>,
    %c78_112 = arith.constant 78 : index
    %c16_113 = arith.constant 16 : index
    %511 = vector.load %arg13[%c78_112, %c16_113] : memref<208x144xf32, #tpu.memory_space<vmem>>, vector<26x16xf32>
    tpu.vector_store %arg13[%c78_112, %c16_113], %463 {strides = array<i32>} : memref<208x144xf32, #tpu.memory_space<vmem>>, vector<26x16xf32>,
    %c78_114 = arith.constant 78 : index
    %c32_115 = arith.constant 32 : index
    %512 = vector.load %arg13[%c78_114, %c32_115] : memref<208x144xf32, #tpu.memory_space<vmem>>, vector<26x16xf32>
    tpu.vector_store %arg13[%c78_114, %c32_115], %464 {strides = array<i32>} : memref<208x144xf32, #tpu.memory_space<vmem>>, vector<26x16xf32>,
    %c78_116 = arith.constant 78 : index
    %c48_117 = arith.constant 48 : index
    %513 = vector.load %arg13[%c78_116, %c48_117] : memref<208x144xf32, #tpu.memory_space<vmem>>, vector<26x16xf32>
    tpu.vector_store %arg13[%c78_116, %c48_117], %465 {strides = array<i32>} : memref<208x144xf32, #tpu.memory_space<vmem>>, vector<26x16xf32>,
    %c78_118 = arith.constant 78 : index
    %c64_119 = arith.constant 64 : index
    %514 = vector.load %arg13[%c78_118, %c64_119] : memref<208x144xf32, #tpu.memory_space<vmem>>, vector<26x16xf32>
    tpu.vector_store %arg13[%c78_118, %c64_119], %466 {strides = array<i32>} : memref<208x144xf32, #tpu.memory_space<vmem>>, vector<26x16xf32>,
    %c78_120 = arith.constant 78 : index
    %c80_121 = arith.constant 80 : index
    %515 = vector.load %arg13[%c78_120, %c80_121] : memref<208x144xf32, #tpu.memory_space<vmem>>, vector<26x16xf32>
    tpu.vector_store %arg13[%c78_120, %c80_121], %467 {strides = array<i32>} : memref<208x144xf32, #tpu.memory_space<vmem>>, vector<26x16xf32>,
    %c78_122 = arith.constant 78 : index
    %c96_123 = arith.constant 96 : index
    %516 = vector.load %arg13[%c78_122, %c96_123] : memref<208x144xf32, #tpu.memory_space<vmem>>, vector<26x16xf32>
    tpu.vector_store %arg13[%c78_122, %c96_123], %468 {strides = array<i32>} : memref<208x144xf32, #tpu.memory_space<vmem>>, vector<26x16xf32>,
    %c78_124 = arith.constant 78 : index
    %c112_125 = arith.constant 112 : index
    %517 = vector.load %arg13[%c78_124, %c112_125] : memref<208x144xf32, #tpu.memory_space<vmem>>, vector<26x16xf32>
    tpu.vector_store %arg13[%c78_124, %c112_125], %469 {strides = array<i32>} : memref<208x144xf32, #tpu.memory_space<vmem>>, vector<26x16xf32>,
    %c78_126 = arith.constant 78 : index
    %c128_127 = arith.constant 128 : index
    %518 = vector.load %arg13[%c78_126, %c128_127] : memref<208x144xf32, #tpu.memory_space<vmem>>, vector<26x16xf32>
    tpu.vector_store %arg13[%c78_126, %c128_127], %470 {strides = array<i32>} : memref<208x144xf32, #tpu.memory_space<vmem>>, vector<26x16xf32>,
    %c104 = arith.constant 104 : index
    %c0_128 = arith.constant 0 : index
    %519 = vector.load %arg13[%c104, %c0_128] : memref<208x144xf32, #tpu.memory_space<vmem>>, vector<26x16xf32>
    tpu.vector_store %arg13[%c104, %c0_128], %465 {strides = array<i32>} : memref<208x144xf32, #tpu.memory_space<vmem>>, vector<26x16xf32>,
    %c104_129 = arith.constant 104 : index
    %c16_130 = arith.constant 16 : index
    %520 = vector.load %arg13[%c104_129, %c16_130] : memref<208x144xf32, #tpu.memory_space<vmem>>, vector<26x16xf32>
    tpu.vector_store %arg13[%c104_129, %c16_130], %466 {strides = array<i32>} : memref<208x144xf32, #tpu.memory_space<vmem>>, vector<26x16xf32>,
    %c104_131 = arith.constant 104 : index
    %c32_132 = arith.constant 32 : index
    %521 = vector.load %arg13[%c104_131, %c32_132] : memref<208x144xf32, #tpu.memory_space<vmem>>, vector<26x16xf32>
    tpu.vector_store %arg13[%c104_131, %c32_132], %467 {strides = array<i32>} : memref<208x144xf32, #tpu.memory_space<vmem>>, vector<26x16xf32>,
    %c104_133 = arith.constant 104 : index
    %c48_134 = arith.constant 48 : index
    %522 = vector.load %arg13[%c104_133, %c48_134] : memref<208x144xf32, #tpu.memory_space<vmem>>, vector<26x16xf32>
    tpu.vector_store %arg13[%c104_133, %c48_134], %468 {strides = array<i32>} : memref<208x144xf32, #tpu.memory_space<vmem>>, vector<26x16xf32>,
    %c104_135 = arith.constant 104 : index
    %c64_136 = arith.constant 64 : index
    %523 = vector.load %arg13[%c104_135, %c64_136] : memref<208x144xf32, #tpu.memory_space<vmem>>, vector<26x16xf32>
    tpu.vector_store %arg13[%c104_135, %c64_136], %469 {strides = array<i32>} : memref<208x144xf32, #tpu.memory_space<vmem>>, vector<26x16xf32>,
    %c104_137 = arith.constant 104 : index
    %c80_138 = arith.constant 80 : index
    %524 = vector.load %arg13[%c104_137, %c80_138] : memref<208x144xf32, #tpu.memory_space<vmem>>, vector<26x16xf32>
    tpu.vector_store %arg13[%c104_137, %c80_138], %470 {strides = array<i32>} : memref<208x144xf32, #tpu.memory_space<vmem>>, vector<26x16xf32>,
    %c104_139 = arith.constant 104 : index
    %c96_140 = arith.constant 96 : index
    %525 = vector.load %arg13[%c104_139, %c96_140] : memref<208x144xf32, #tpu.memory_space<vmem>>, vector<26x16xf32>
    tpu.vector_store %arg13[%c104_139, %c96_140], %471 {strides = array<i32>} : memref<208x144xf32, #tpu.memory_space<vmem>>, vector<26x16xf32>,
    %c104_141 = arith.constant 104 : index
    %c112_142 = arith.constant 112 : index
    %526 = vector.load %arg13[%c104_141, %c112_142] : memref<208x144xf32, #tpu.memory_space<vmem>>, vector<26x16xf32>
    tpu.vector_store %arg13[%c104_141, %c112_142], %472 {strides = array<i32>} : memref<208x144xf32, #tpu.memory_space<vmem>>, vector<26x16xf32>,
    %c104_143 = arith.constant 104 : index
    %c128_144 = arith.constant 128 : index
    %527 = vector.load %arg13[%c104_143, %c128_144] : memref<208x144xf32, #tpu.memory_space<vmem>>, vector<26x16xf32>
    tpu.vector_store %arg13[%c104_143, %c128_144], %473 {strides = array<i32>} : memref<208x144xf32, #tpu.memory_space<vmem>>, vector<26x16xf32>,
    %c130 = arith.constant 130 : index
    %c0_145 = arith.constant 0 : index
    %528 = vector.load %arg13[%c130, %c0_145] : memref<208x144xf32, #tpu.memory_space<vmem>>, vector<26x16xf32>
    tpu.vector_store %arg13[%c130, %c0_145], %468 {strides = array<i32>} : memref<208x144xf32, #tpu.memory_space<vmem>>, vector<26x16xf32>,
    %c130_146 = arith.constant 130 : index
    %c16_147 = arith.constant 16 : index
    %529 = vector.load %arg13[%c130_146, %c16_147] : memref<208x144xf32, #tpu.memory_space<vmem>>, vector<26x16xf32>
    tpu.vector_store %arg13[%c130_146, %c16_147], %469 {strides = array<i32>} : memref<208x144xf32, #tpu.memory_space<vmem>>, vector<26x16xf32>,
    %c130_148 = arith.constant 130 : index
    %c32_149 = arith.constant 32 : index
    %530 = vector.load %arg13[%c130_148, %c32_149] : memref<208x144xf32, #tpu.memory_space<vmem>>, vector<26x16xf32>
    tpu.vector_store %arg13[%c130_148, %c32_149], %470 {strides = array<i32>} : memref<208x144xf32, #tpu.memory_space<vmem>>, vector<26x16xf32>,
    %c130_150 = arith.constant 130 : index
    %c48_151 = arith.constant 48 : index
    %531 = vector.load %arg13[%c130_150, %c48_151] : memref<208x144xf32, #tpu.memory_space<vmem>>, vector<26x16xf32>
    tpu.vector_store %arg13[%c130_150, %c48_151], %471 {strides = array<i32>} : memref<208x144xf32, #tpu.memory_space<vmem>>, vector<26x16xf32>,
    %c130_152 = arith.constant 130 : index
    %c64_153 = arith.constant 64 : index
    %532 = vector.load %arg13[%c130_152, %c64_153] : memref<208x144xf32, #tpu.memory_space<vmem>>, vector<26x16xf32>
    tpu.vector_store %arg13[%c130_152, %c64_153], %472 {strides = array<i32>} : memref<208x144xf32, #tpu.memory_space<vmem>>, vector<26x16xf32>,
    %c130_154 = arith.constant 130 : index
    %c80_155 = arith.constant 80 : index
    %533 = vector.load %arg13[%c130_154, %c80_155] : memref<208x144xf32, #tpu.memory_space<vmem>>, vector<26x16xf32>
    tpu.vector_store %arg13[%c130_154, %c80_155], %473 {strides = array<i32>} : memref<208x144xf32, #tpu.memory_space<vmem>>, vector<26x16xf32>,
    %c130_156 = arith.constant 130 : index
    %c96_157 = arith.constant 96 : index
    %534 = vector.load %arg13[%c130_156, %c96_157] : memref<208x144xf32, #tpu.memory_space<vmem>>, vector<26x16xf32>
    tpu.vector_store %arg13[%c130_156, %c96_157], %474 {strides = array<i32>} : memref<208x144xf32, #tpu.memory_space<vmem>>, vector<26x16xf32>,
    %c130_158 = arith.constant 130 : index
    %c112_159 = arith.constant 112 : index
    %535 = vector.load %arg13[%c130_158, %c112_159] : memref<208x144xf32, #tpu.memory_space<vmem>>, vector<26x16xf32>
    tpu.vector_store %arg13[%c130_158, %c112_159], %475 {strides = array<i32>} : memref<208x144xf32, #tpu.memory_space<vmem>>, vector<26x16xf32>,
    %c130_160 = arith.constant 130 : index
    %c128_161 = arith.constant 128 : index
    %536 = vector.load %arg13[%c130_160, %c128_161] : memref<208x144xf32, #tpu.memory_space<vmem>>, vector<26x16xf32>
    tpu.vector_store %arg13[%c130_160, %c128_161], %476 {strides = array<i32>} : memref<208x144xf32, #tpu.memory_space<vmem>>, vector<26x16xf32>,
    %c156 = arith.constant 156 : index
    %c0_162 = arith.constant 0 : index
    %537 = vector.load %arg13[%c156, %c0_162] : memref<208x144xf32, #tpu.memory_space<vmem>>, vector<26x16xf32>
    tpu.vector_store %arg13[%c156, %c0_162], %471 {strides = array<i32>} : memref<208x144xf32, #tpu.memory_space<vmem>>, vector<26x16xf32>,
    %c156_163 = arith.constant 156 : index
    %c16_164 = arith.constant 16 : index
    %538 = vector.load %arg13[%c156_163, %c16_164] : memref<208x144xf32, #tpu.memory_space<vmem>>, vector<26x16xf32>
    tpu.vector_store %arg13[%c156_163, %c16_164], %472 {strides = array<i32>} : memref<208x144xf32, #tpu.memory_space<vmem>>, vector<26x16xf32>,
    %c156_165 = arith.constant 156 : index
    %c32_166 = arith.constant 32 : index
    %539 = vector.load %arg13[%c156_165, %c32_166] : memref<208x144xf32, #tpu.memory_space<vmem>>, vector<26x16xf32>
    tpu.vector_store %arg13[%c156_165, %c32_166], %473 {strides = array<i32>} : memref<208x144xf32, #tpu.memory_space<vmem>>, vector<26x16xf32>,
    %c156_167 = arith.constant 156 : index
    %c48_168 = arith.constant 48 : index
    %540 = vector.load %arg13[%c156_167, %c48_168] : memref<208x144xf32, #tpu.memory_space<vmem>>, vector<26x16xf32>
    tpu.vector_store %arg13[%c156_167, %c48_168], %474 {strides = array<i32>} : memref<208x144xf32, #tpu.memory_space<vmem>>, vector<26x16xf32>,
    %c156_169 = arith.constant 156 : index
    %c64_170 = arith.constant 64 : index
    %541 = vector.load %arg13[%c156_169, %c64_170] : memref<208x144xf32, #tpu.memory_space<vmem>>, vector<26x16xf32>
    tpu.vector_store %arg13[%c156_169, %c64_170], %475 {strides = array<i32>} : memref<208x144xf32, #tpu.memory_space<vmem>>, vector<26x16xf32>,
    %c156_171 = arith.constant 156 : index
    %c80_172 = arith.constant 80 : index
    %542 = vector.load %arg13[%c156_171, %c80_172] : memref<208x144xf32, #tpu.memory_space<vmem>>, vector<26x16xf32>
    tpu.vector_store %arg13[%c156_171, %c80_172], %476 {strides = array<i32>} : memref<208x144xf32, #tpu.memory_space<vmem>>, vector<26x16xf32>,
    %c156_173 = arith.constant 156 : index
    %c96_174 = arith.constant 96 : index
    %543 = vector.load %arg13[%c156_173, %c96_174] : memref<208x144xf32, #tpu.memory_space<vmem>>, vector<26x16xf32>
    tpu.vector_store %arg13[%c156_173, %c96_174], %477 {strides = array<i32>} : memref<208x144xf32, #tpu.memory_space<vmem>>, vector<26x16xf32>,
    %c156_175 = arith.constant 156 : index
    %c112_176 = arith.constant 112 : index
    %544 = vector.load %arg13[%c156_175, %c112_176] : memref<208x144xf32, #tpu.memory_space<vmem>>, vector<26x16xf32>
    tpu.vector_store %arg13[%c156_175, %c112_176], %478 {strides = array<i32>} : memref<208x144xf32, #tpu.memory_space<vmem>>, vector<26x16xf32>,
    %c156_177 = arith.constant 156 : index
    %c128_178 = arith.constant 128 : index
    %545 = vector.load %arg13[%c156_177, %c128_178] : memref<208x144xf32, #tpu.memory_space<vmem>>, vector<26x16xf32>
    tpu.vector_store %arg13[%c156_177, %c128_178], %479 {strides = array<i32>} : memref<208x144xf32, #tpu.memory_space<vmem>>, vector<26x16xf32>,
    %c182 = arith.constant 182 : index
    %c0_179 = arith.constant 0 : index
    %546 = vector.load %arg13[%c182, %c0_179] : memref<208x144xf32, #tpu.memory_space<vmem>>, vector<26x16xf32>
    tpu.vector_store %arg13[%c182, %c0_179], %474 {strides = array<i32>} : memref<208x144xf32, #tpu.memory_space<vmem>>, vector<26x16xf32>,
    %c182_180 = arith.constant 182 : index
    %c16_181 = arith.constant 16 : index
    %547 = vector.load %arg13[%c182_180, %c16_181] : memref<208x144xf32, #tpu.memory_space<vmem>>, vector<26x16xf32>
    tpu.vector_store %arg13[%c182_180, %c16_181], %475 {strides = array<i32>} : memref<208x144xf32, #tpu.memory_space<vmem>>, vector<26x16xf32>,
    %c182_182 = arith.constant 182 : index
    %c32_183 = arith.constant 32 : index
    %548 = vector.load %arg13[%c182_182, %c32_183] : memref<208x144xf32, #tpu.memory_space<vmem>>, vector<26x16xf32>
    tpu.vector_store %arg13[%c182_182, %c32_183], %476 {strides = array<i32>} : memref<208x144xf32, #tpu.memory_space<vmem>>, vector<26x16xf32>,
    %c182_184 = arith.constant 182 : index
    %c48_185 = arith.constant 48 : index
    %549 = vector.load %arg13[%c182_184, %c48_185] : memref<208x144xf32, #tpu.memory_space<vmem>>, vector<26x16xf32>
    tpu.vector_store %arg13[%c182_184, %c48_185], %477 {strides = array<i32>} : memref<208x144xf32, #tpu.memory_space<vmem>>, vector<26x16xf32>,
    %c182_186 = arith.constant 182 : index
    %c64_187 = arith.constant 64 : index
    %550 = vector.load %arg13[%c182_186, %c64_187] : memref<208x144xf32, #tpu.memory_space<vmem>>, vector<26x16xf32>
    tpu.vector_store %arg13[%c182_186, %c64_187], %478 {strides = array<i32>} : memref<208x144xf32, #tpu.memory_space<vmem>>, vector<26x16xf32>,
    %c182_188 = arith.constant 182 : index
    %c80_189 = arith.constant 80 : index
    %551 = vector.load %arg13[%c182_188, %c80_189] : memref<208x144xf32, #tpu.memory_space<vmem>>, vector<26x16xf32>
    tpu.vector_store %arg13[%c182_188, %c80_189], %479 {strides = array<i32>} : memref<208x144xf32, #tpu.memory_space<vmem>>, vector<26x16xf32>,
    %c182_190 = arith.constant 182 : index
    %c96_191 = arith.constant 96 : index
    %552 = vector.load %arg13[%c182_190, %c96_191] : memref<208x144xf32, #tpu.memory_space<vmem>>, vector<26x16xf32>
    tpu.vector_store %arg13[%c182_190, %c96_191], %480 {strides = array<i32>} : memref<208x144xf32, #tpu.memory_space<vmem>>, vector<26x16xf32>,
    %c182_192 = arith.constant 182 : index
    %c112_193 = arith.constant 112 : index
    %553 = vector.load %arg13[%c182_192, %c112_193] : memref<208x144xf32, #tpu.memory_space<vmem>>, vector<26x16xf32>
    tpu.vector_store %arg13[%c182_192, %c112_193], %481 {strides = array<i32>} : memref<208x144xf32, #tpu.memory_space<vmem>>, vector<26x16xf32>,
    %c182_194 = arith.constant 182 : index
    %c128_195 = arith.constant 128 : index
    %554 = vector.load %arg13[%c182_194, %c128_195] : memref<208x144xf32, #tpu.memory_space<vmem>>, vector<26x16xf32>
    tpu.vector_store %arg13[%c182_194, %c128_195], %482 {strides = array<i32>} : memref<208x144xf32, #tpu.memory_space<vmem>>, vector<26x16xf32>,
    %c0_196 = arith.constant 0 : index
    %c0_197 = arith.constant 0 : index
    %555 = vector.load %arg13[%c0_196, %c0_197] : memref<208x144xf32, #tpu.memory_space<vmem>>, vector<208x144xf32>
    %c0_198 = arith.constant 0 : index
    %c0_199 = arith.constant 0 : index
    %556 = vector.load %arg4[%c0_198, %c0_199] : memref<144x32xf32, #tpu.memory_space<vmem>>, vector<144x32xf32>
    %cst_200 = arith.constant dense<0.000000e+00> : vector<208x32xf32>
    %557 = tpu.matmul %555, %556, %cst_200 {dimension_numbers = #tpu.dot_dimension_numbers<[1], [0], [0], [1], [0, 0, 1, 1], [], []>} : vector<208x144xf32>, vector<144x32xf32>, vector<208x32xf32> -> vector<208x32xf32>
    %558 = vector.broadcast %12 : vector<1x32xf32> to vector<208x32xf32>
    %559 = arith.addf %557, %558 : vector<208x32xf32>
    %cst_201 = arith.constant 0.000000e+00 : f32
    %560 = vector.broadcast %cst_201 : f32 to vector<208x32xf32>
    %561 = arith.maximumf %559, %560 : vector<208x32xf32>
    %562 = vector.extract_strided_slice %561 {offsets = [0, 0], sizes = [26, 32], strides = [1, 1]} : vector<208x32xf32> to vector<26x32xf32>
    %563 = vector.extract_strided_slice %561 {offsets = [26, 0], sizes = [26, 32], strides = [1, 1]} : vector<208x32xf32> to vector<26x32xf32>
    %564 = arith.maximumf %562, %563 : vector<26x32xf32>
    %c0_202 = arith.constant 0 : index
    %c0_203 = arith.constant 0 : index
    %565 = vector.load %arg14[%c0_202, %c0_203] : memref<26x128xf32, #tpu.memory_space<vmem>>, vector<26x32xf32>
    tpu.vector_store %arg14[%c0_202, %c0_203], %564 {strides = array<i32>} : memref<26x128xf32, #tpu.memory_space<vmem>>, vector<26x32xf32>,
    %566 = vector.extract_strided_slice %561 {offsets = [52, 0], sizes = [26, 32], strides = [1, 1]} : vector<208x32xf32> to vector<26x32xf32>
    %567 = vector.extract_strided_slice %561 {offsets = [78, 0], sizes = [26, 32], strides = [1, 1]} : vector<208x32xf32> to vector<26x32xf32>
    %568 = arith.maximumf %566, %567 : vector<26x32xf32>
    %c0_204 = arith.constant 0 : index
    %c32_205 = arith.constant 32 : index
    %569 = vector.load %arg14[%c0_204, %c32_205] : memref<26x128xf32, #tpu.memory_space<vmem>>, vector<26x32xf32>
    tpu.vector_store %arg14[%c0_204, %c32_205], %568 {strides = array<i32>} : memref<26x128xf32, #tpu.memory_space<vmem>>, vector<26x32xf32>,
    %570 = vector.extract_strided_slice %561 {offsets = [104, 0], sizes = [26, 32], strides = [1, 1]} : vector<208x32xf32> to vector<26x32xf32>
    %571 = vector.extract_strided_slice %561 {offsets = [130, 0], sizes = [26, 32], strides = [1, 1]} : vector<208x32xf32> to vector<26x32xf32>
    %572 = arith.maximumf %570, %571 : vector<26x32xf32>
    %c0_206 = arith.constant 0 : index
    %c64_207 = arith.constant 64 : index
    %573 = vector.load %arg14[%c0_206, %c64_207] : memref<26x128xf32, #tpu.memory_space<vmem>>, vector<26x32xf32>
    tpu.vector_store %arg14[%c0_206, %c64_207], %572 {strides = array<i32>} : memref<26x128xf32, #tpu.memory_space<vmem>>, vector<26x32xf32>,
    %574 = vector.extract_strided_slice %561 {offsets = [156, 0], sizes = [26, 32], strides = [1, 1]} : vector<208x32xf32> to vector<26x32xf32>
    %575 = vector.extract_strided_slice %561 {offsets = [182, 0], sizes = [26, 32], strides = [1, 1]} : vector<208x32xf32> to vector<26x32xf32>
    %576 = arith.maximumf %574, %575 : vector<26x32xf32>
    %c0_208 = arith.constant 0 : index
    %c96_209 = arith.constant 96 : index
    %577 = vector.load %arg14[%c0_208, %c96_209] : memref<26x128xf32, #tpu.memory_space<vmem>>, vector<26x32xf32>
    tpu.vector_store %arg14[%c0_208, %c96_209], %576 {strides = array<i32>} : memref<26x128xf32, #tpu.memory_space<vmem>>, vector<26x32xf32>,
    %c0_210 = arith.constant 0 : index
    %c0_211 = arith.constant 0 : index
    %578 = vector.load %arg7[%c0_210, %c0_211] : memref<1x128xf32, #tpu.memory_space<vmem>>, vector<1x128xf32>
    %c0_212 = arith.constant 0 : index
    %c0_213 = arith.constant 0 : index
    %579 = vector.load %arg14[%c0_212, %c0_213] : memref<26x128xf32, #tpu.memory_space<vmem>>, vector<1x128xf32>
    %c1_214 = arith.constant 1 : index
    %c0_215 = arith.constant 0 : index
    %580 = vector.load %arg14[%c1_214, %c0_215] : memref<26x128xf32, #tpu.memory_space<vmem>>, vector<1x128xf32>
    %581 = arith.maximumf %579, %580 : vector<1x128xf32>
    %c0_216 = arith.constant 0 : index
    %c0_217 = arith.constant 0 : index
    %c0_218 = arith.constant 0 : index
    %582 = vector.load %arg6[%c0_216, %c0_217, %c0_218] : memref<13x128x128xf32, #tpu.memory_space<vmem>>, vector<1x128x128xf32>
    %583 = vector.shape_cast %582 : vector<1x128x128xf32> to vector<128x128xf32>
    %cst_219 = arith.constant dense<0.000000e+00> : vector<1x128xf32>
    %584 = tpu.matmul %581, %583, %cst_219 {dimension_numbers = #tpu.dot_dimension_numbers<[1], [0], [0], [1], [0, 0, 1, 1], [], []>} : vector<1x128xf32>, vector<128x128xf32>, vector<1x128xf32> -> vector<1x128xf32>
    %585 = arith.addf %578, %584 : vector<1x128xf32>
    %c2_220 = arith.constant 2 : index
    %c0_221 = arith.constant 0 : index
    %586 = vector.load %arg14[%c2_220, %c0_221] : memref<26x128xf32, #tpu.memory_space<vmem>>, vector<1x128xf32>
    %c3_222 = arith.constant 3 : index
    %c0_223 = arith.constant 0 : index
    %587 = vector.load %arg14[%c3_222, %c0_223] : memref<26x128xf32, #tpu.memory_space<vmem>>, vector<1x128xf32>
    %588 = arith.maximumf %586, %587 : vector<1x128xf32>
    %c1_224 = arith.constant 1 : index
    %c0_225 = arith.constant 0 : index
    %c0_226 = arith.constant 0 : index
    %589 = vector.load %arg6[%c1_224, %c0_225, %c0_226] : memref<13x128x128xf32, #tpu.memory_space<vmem>>, vector<1x128x128xf32>
    %590 = vector.shape_cast %589 : vector<1x128x128xf32> to vector<128x128xf32>
    %cst_227 = arith.constant dense<0.000000e+00> : vector<1x128xf32>
    %591 = tpu.matmul %588, %590, %cst_227 {dimension_numbers = #tpu.dot_dimension_numbers<[1], [0], [0], [1], [0, 0, 1, 1], [], []>} : vector<1x128xf32>, vector<128x128xf32>, vector<1x128xf32> -> vector<1x128xf32>
    %592 = arith.addf %585, %591 : vector<1x128xf32>
    %c4_228 = arith.constant 4 : index
    %c0_229 = arith.constant 0 : index
    %593 = vector.load %arg14[%c4_228, %c0_229] : memref<26x128xf32, #tpu.memory_space<vmem>>, vector<1x128xf32>
    %c5_230 = arith.constant 5 : index
    %c0_231 = arith.constant 0 : index
    %594 = vector.load %arg14[%c5_230, %c0_231] : memref<26x128xf32, #tpu.memory_space<vmem>>, vector<1x128xf32>
    %595 = arith.maximumf %593, %594 : vector<1x128xf32>
    %c2_232 = arith.constant 2 : index
    %c0_233 = arith.constant 0 : index
    %c0_234 = arith.constant 0 : index
    %596 = vector.load %arg6[%c2_232, %c0_233, %c0_234] : memref<13x128x128xf32, #tpu.memory_space<vmem>>, vector<1x128x128xf32>
    %597 = vector.shape_cast %596 : vector<1x128x128xf32> to vector<128x128xf32>
    %cst_235 = arith.constant dense<0.000000e+00> : vector<1x128xf32>
    %598 = tpu.matmul %595, %597, %cst_235 {dimension_numbers = #tpu.dot_dimension_numbers<[1], [0], [0], [1], [0, 0, 1, 1], [], []>} : vector<1x128xf32>, vector<128x128xf32>, vector<1x128xf32> -> vector<1x128xf32>
    %599 = arith.addf %592, %598 : vector<1x128xf32>
    %c6_236 = arith.constant 6 : index
    %c0_237 = arith.constant 0 : index
    %600 = vector.load %arg14[%c6_236, %c0_237] : memref<26x128xf32, #tpu.memory_space<vmem>>, vector<1x128xf32>
    %c7_238 = arith.constant 7 : index
    %c0_239 = arith.constant 0 : index
    %601 = vector.load %arg14[%c7_238, %c0_239] : memref<26x128xf32, #tpu.memory_space<vmem>>, vector<1x128xf32>
    %602 = arith.maximumf %600, %601 : vector<1x128xf32>
    %c3_240 = arith.constant 3 : index
    %c0_241 = arith.constant 0 : index
    %c0_242 = arith.constant 0 : index
    %603 = vector.load %arg6[%c3_240, %c0_241, %c0_242] : memref<13x128x128xf32, #tpu.memory_space<vmem>>, vector<1x128x128xf32>
    %604 = vector.shape_cast %603 : vector<1x128x128xf32> to vector<128x128xf32>
    %cst_243 = arith.constant dense<0.000000e+00> : vector<1x128xf32>
    %605 = tpu.matmul %602, %604, %cst_243 {dimension_numbers = #tpu.dot_dimension_numbers<[1], [0], [0], [1], [0, 0, 1, 1], [], []>} : vector<1x128xf32>, vector<128x128xf32>, vector<1x128xf32> -> vector<1x128xf32>
    %606 = arith.addf %599, %605 : vector<1x128xf32>
    %c8_244 = arith.constant 8 : index
    %c0_245 = arith.constant 0 : index
    %607 = vector.load %arg14[%c8_244, %c0_245] : memref<26x128xf32, #tpu.memory_space<vmem>>, vector<1x128xf32>
    %c9_246 = arith.constant 9 : index
    %c0_247 = arith.constant 0 : index
    %608 = vector.load %arg14[%c9_246, %c0_247] : memref<26x128xf32, #tpu.memory_space<vmem>>, vector<1x128xf32>
    %609 = arith.maximumf %607, %608 : vector<1x128xf32>
    %c4_248 = arith.constant 4 : index
    %c0_249 = arith.constant 0 : index
    %c0_250 = arith.constant 0 : index
    %610 = vector.load %arg6[%c4_248, %c0_249, %c0_250] : memref<13x128x128xf32, #tpu.memory_space<vmem>>, vector<1x128x128xf32>
    %611 = vector.shape_cast %610 : vector<1x128x128xf32> to vector<128x128xf32>
    %cst_251 = arith.constant dense<0.000000e+00> : vector<1x128xf32>
    %612 = tpu.matmul %609, %611, %cst_251 {dimension_numbers = #tpu.dot_dimension_numbers<[1], [0], [0], [1], [0, 0, 1, 1], [], []>} : vector<1x128xf32>, vector<128x128xf32>, vector<1x128xf32> -> vector<1x128xf32>
    %613 = arith.addf %606, %612 : vector<1x128xf32>
    %c10_252 = arith.constant 10 : index
    %c0_253 = arith.constant 0 : index
    %614 = vector.load %arg14[%c10_252, %c0_253] : memref<26x128xf32, #tpu.memory_space<vmem>>, vector<1x128xf32>
    %c11_254 = arith.constant 11 : index
    %c0_255 = arith.constant 0 : index
    %615 = vector.load %arg14[%c11_254, %c0_255] : memref<26x128xf32, #tpu.memory_space<vmem>>, vector<1x128xf32>
    %616 = arith.maximumf %614, %615 : vector<1x128xf32>
    %c5_256 = arith.constant 5 : index
    %c0_257 = arith.constant 0 : index
    %c0_258 = arith.constant 0 : index
    %617 = vector.load %arg6[%c5_256, %c0_257, %c0_258] : memref<13x128x128xf32, #tpu.memory_space<vmem>>, vector<1x128x128xf32>
    %618 = vector.shape_cast %617 : vector<1x128x128xf32> to vector<128x128xf32>
    %cst_259 = arith.constant dense<0.000000e+00> : vector<1x128xf32>
    %619 = tpu.matmul %616, %618, %cst_259 {dimension_numbers = #tpu.dot_dimension_numbers<[1], [0], [0], [1], [0, 0, 1, 1], [], []>} : vector<1x128xf32>, vector<128x128xf32>, vector<1x128xf32> -> vector<1x128xf32>
    %620 = arith.addf %613, %619 : vector<1x128xf32>
    %c12 = arith.constant 12 : index
    %c0_260 = arith.constant 0 : index
    %621 = vector.load %arg14[%c12, %c0_260] : memref<26x128xf32, #tpu.memory_space<vmem>>, vector<1x128xf32>
    %c13 = arith.constant 13 : index
    %c0_261 = arith.constant 0 : index
    %622 = vector.load %arg14[%c13, %c0_261] : memref<26x128xf32, #tpu.memory_space<vmem>>, vector<1x128xf32>
    %623 = arith.maximumf %621, %622 : vector<1x128xf32>
    %c6_262 = arith.constant 6 : index
    %c0_263 = arith.constant 0 : index
    %c0_264 = arith.constant 0 : index
    %624 = vector.load %arg6[%c6_262, %c0_263, %c0_264] : memref<13x128x128xf32, #tpu.memory_space<vmem>>, vector<1x128x128xf32>
    %625 = vector.shape_cast %624 : vector<1x128x128xf32> to vector<128x128xf32>
    %cst_265 = arith.constant dense<0.000000e+00> : vector<1x128xf32>
    %626 = tpu.matmul %623, %625, %cst_265 {dimension_numbers = #tpu.dot_dimension_numbers<[1], [0], [0], [1], [0, 0, 1, 1], [], []>} : vector<1x128xf32>, vector<128x128xf32>, vector<1x128xf32> -> vector<1x128xf32>
    %627 = arith.addf %620, %626 : vector<1x128xf32>
    %c14 = arith.constant 14 : index
    %c0_266 = arith.constant 0 : index
    %628 = vector.load %arg14[%c14, %c0_266] : memref<26x128xf32, #tpu.memory_space<vmem>>, vector<1x128xf32>
    %c15 = arith.constant 15 : index
    %c0_267 = arith.constant 0 : index
    %629 = vector.load %arg14[%c15, %c0_267] : memref<26x128xf32, #tpu.memory_space<vmem>>, vector<1x128xf32>
    %630 = arith.maximumf %628, %629 : vector<1x128xf32>
    %c7_268 = arith.constant 7 : index
    %c0_269 = arith.constant 0 : index
    %c0_270 = arith.constant 0 : index
    %631 = vector.load %arg6[%c7_268, %c0_269, %c0_270] : memref<13x128x128xf32, #tpu.memory_space<vmem>>, vector<1x128x128xf32>
    %632 = vector.shape_cast %631 : vector<1x128x128xf32> to vector<128x128xf32>
    %cst_271 = arith.constant dense<0.000000e+00> : vector<1x128xf32>
    %633 = tpu.matmul %630, %632, %cst_271 {dimension_numbers = #tpu.dot_dimension_numbers<[1], [0], [0], [1], [0, 0, 1, 1], [], []>} : vector<1x128xf32>, vector<128x128xf32>, vector<1x128xf32> -> vector<1x128xf32>
    %634 = arith.addf %627, %633 : vector<1x128xf32>
    %c16_272 = arith.constant 16 : index
    %c0_273 = arith.constant 0 : index
    %635 = vector.load %arg14[%c16_272, %c0_273] : memref<26x128xf32, #tpu.memory_space<vmem>>, vector<1x128xf32>
    %c17 = arith.constant 17 : index
    %c0_274 = arith.constant 0 : index
    %636 = vector.load %arg14[%c17, %c0_274] : memref<26x128xf32, #tpu.memory_space<vmem>>, vector<1x128xf32>
    %637 = arith.maximumf %635, %636 : vector<1x128xf32>
    %c8_275 = arith.constant 8 : index
    %c0_276 = arith.constant 0 : index
    %c0_277 = arith.constant 0 : index
    %638 = vector.load %arg6[%c8_275, %c0_276, %c0_277] : memref<13x128x128xf32, #tpu.memory_space<vmem>>, vector<1x128x128xf32>
    %639 = vector.shape_cast %638 : vector<1x128x128xf32> to vector<128x128xf32>
    %cst_278 = arith.constant dense<0.000000e+00> : vector<1x128xf32>
    %640 = tpu.matmul %637, %639, %cst_278 {dimension_numbers = #tpu.dot_dimension_numbers<[1], [0], [0], [1], [0, 0, 1, 1], [], []>} : vector<1x128xf32>, vector<128x128xf32>, vector<1x128xf32> -> vector<1x128xf32>
    %641 = arith.addf %634, %640 : vector<1x128xf32>
    %c18 = arith.constant 18 : index
    %c0_279 = arith.constant 0 : index
    %642 = vector.load %arg14[%c18, %c0_279] : memref<26x128xf32, #tpu.memory_space<vmem>>, vector<1x128xf32>
    %c19 = arith.constant 19 : index
    %c0_280 = arith.constant 0 : index
    %643 = vector.load %arg14[%c19, %c0_280] : memref<26x128xf32, #tpu.memory_space<vmem>>, vector<1x128xf32>
    %644 = arith.maximumf %642, %643 : vector<1x128xf32>
    %c9_281 = arith.constant 9 : index
    %c0_282 = arith.constant 0 : index
    %c0_283 = arith.constant 0 : index
    %645 = vector.load %arg6[%c9_281, %c0_282, %c0_283] : memref<13x128x128xf32, #tpu.memory_space<vmem>>, vector<1x128x128xf32>
    %646 = vector.shape_cast %645 : vector<1x128x128xf32> to vector<128x128xf32>
    %cst_284 = arith.constant dense<0.000000e+00> : vector<1x128xf32>
    %647 = tpu.matmul %644, %646, %cst_284 {dimension_numbers = #tpu.dot_dimension_numbers<[1], [0], [0], [1], [0, 0, 1, 1], [], []>} : vector<1x128xf32>, vector<128x128xf32>, vector<1x128xf32> -> vector<1x128xf32>
    %648 = arith.addf %641, %647 : vector<1x128xf32>
    %c20 = arith.constant 20 : index
    %c0_285 = arith.constant 0 : index
    %649 = vector.load %arg14[%c20, %c0_285] : memref<26x128xf32, #tpu.memory_space<vmem>>, vector<1x128xf32>
    %c21 = arith.constant 21 : index
    %c0_286 = arith.constant 0 : index
    %650 = vector.load %arg14[%c21, %c0_286] : memref<26x128xf32, #tpu.memory_space<vmem>>, vector<1x128xf32>
    %651 = arith.maximumf %649, %650 : vector<1x128xf32>
    %c10_287 = arith.constant 10 : index
    %c0_288 = arith.constant 0 : index
    %c0_289 = arith.constant 0 : index
    %652 = vector.load %arg6[%c10_287, %c0_288, %c0_289] : memref<13x128x128xf32, #tpu.memory_space<vmem>>, vector<1x128x128xf32>
    %653 = vector.shape_cast %652 : vector<1x128x128xf32> to vector<128x128xf32>
    %cst_290 = arith.constant dense<0.000000e+00> : vector<1x128xf32>
    %654 = tpu.matmul %651, %653, %cst_290 {dimension_numbers = #tpu.dot_dimension_numbers<[1], [0], [0], [1], [0, 0, 1, 1], [], []>} : vector<1x128xf32>, vector<128x128xf32>, vector<1x128xf32> -> vector<1x128xf32>
    %655 = arith.addf %648, %654 : vector<1x128xf32>
    %c22 = arith.constant 22 : index
    %c0_291 = arith.constant 0 : index
    %656 = vector.load %arg14[%c22, %c0_291] : memref<26x128xf32, #tpu.memory_space<vmem>>, vector<1x128xf32>
    %c23 = arith.constant 23 : index
    %c0_292 = arith.constant 0 : index
    %657 = vector.load %arg14[%c23, %c0_292] : memref<26x128xf32, #tpu.memory_space<vmem>>, vector<1x128xf32>
    %658 = arith.maximumf %656, %657 : vector<1x128xf32>
    %c11_293 = arith.constant 11 : index
    %c0_294 = arith.constant 0 : index
    %c0_295 = arith.constant 0 : index
    %659 = vector.load %arg6[%c11_293, %c0_294, %c0_295] : memref<13x128x128xf32, #tpu.memory_space<vmem>>, vector<1x128x128xf32>
    %660 = vector.shape_cast %659 : vector<1x128x128xf32> to vector<128x128xf32>
    %cst_296 = arith.constant dense<0.000000e+00> : vector<1x128xf32>
    %661 = tpu.matmul %658, %660, %cst_296 {dimension_numbers = #tpu.dot_dimension_numbers<[1], [0], [0], [1], [0, 0, 1, 1], [], []>} : vector<1x128xf32>, vector<128x128xf32>, vector<1x128xf32> -> vector<1x128xf32>
    %662 = arith.addf %655, %661 : vector<1x128xf32>
    %c24 = arith.constant 24 : index
    %c0_297 = arith.constant 0 : index
    %663 = vector.load %arg14[%c24, %c0_297] : memref<26x128xf32, #tpu.memory_space<vmem>>, vector<1x128xf32>
    %c25 = arith.constant 25 : index
    %c0_298 = arith.constant 0 : index
    %664 = vector.load %arg14[%c25, %c0_298] : memref<26x128xf32, #tpu.memory_space<vmem>>, vector<1x128xf32>
    %665 = arith.maximumf %663, %664 : vector<1x128xf32>
    %c12_299 = arith.constant 12 : index
    %c0_300 = arith.constant 0 : index
    %c0_301 = arith.constant 0 : index
    %666 = vector.load %arg6[%c12_299, %c0_300, %c0_301] : memref<13x128x128xf32, #tpu.memory_space<vmem>>, vector<1x128x128xf32>
    %667 = vector.shape_cast %666 : vector<1x128x128xf32> to vector<128x128xf32>
    %cst_302 = arith.constant dense<0.000000e+00> : vector<1x128xf32>
    %668 = tpu.matmul %665, %667, %cst_302 {dimension_numbers = #tpu.dot_dimension_numbers<[1], [0], [0], [1], [0, 0, 1, 1], [], []>} : vector<1x128xf32>, vector<128x128xf32>, vector<1x128xf32> -> vector<1x128xf32>
    %669 = arith.addf %662, %668 : vector<1x128xf32>
    %cst_303 = arith.constant 0.000000e+00 : f32
    %670 = vector.broadcast %cst_303 : f32 to vector<1x128xf32>
    %671 = arith.maximumf %669, %670 : vector<1x128xf32>
    %c0_304 = arith.constant 0 : index
    %c0_305 = arith.constant 0 : index
    %672 = vector.load %arg8[%c0_304, %c0_305] : memref<128x64xf32, #tpu.memory_space<vmem>>, vector<128x64xf32>
    %cst_306 = arith.constant dense<0.000000e+00> : vector<1x64xf32>
    %673 = tpu.matmul %671, %672, %cst_306 {dimension_numbers = #tpu.dot_dimension_numbers<[1], [0], [0], [1], [0, 0, 1, 1], [], []>} : vector<1x128xf32>, vector<128x64xf32>, vector<1x64xf32> -> vector<1x64xf32>
    %c0_307 = arith.constant 0 : index
    %c0_308 = arith.constant 0 : index
    %674 = vector.load %arg9[%c0_307, %c0_308] : memref<1x64xf32, #tpu.memory_space<vmem>>, vector<1x64xf32>
    %675 = arith.addf %673, %674 : vector<1x64xf32>
    %cst_309 = arith.constant 0.000000e+00 : f32
    %676 = vector.broadcast %cst_309 : f32 to vector<1x64xf32>
    %677 = arith.maximumf %675, %676 : vector<1x64xf32>
    %c0_310 = arith.constant 0 : index
    %c0_311 = arith.constant 0 : index
    %678 = vector.load %arg10[%c0_310, %c0_311] : memref<64x2xf32, #tpu.memory_space<vmem>>, vector<64x2xf32>
    %cst_312 = arith.constant dense<0.000000e+00> : vector<1x2xf32>
    %679 = tpu.matmul %677, %678, %cst_312 {dimension_numbers = #tpu.dot_dimension_numbers<[1], [0], [0], [1], [0, 0, 1, 1], [], []>} : vector<1x64xf32>, vector<64x2xf32>, vector<1x2xf32> -> vector<1x2xf32>
    %c0_313 = arith.constant 0 : index
    %c0_314 = arith.constant 0 : index
    %680 = vector.load %arg11[%c0_313, %c0_314] : memref<1x2xf32, #tpu.memory_space<vmem>>, vector<1x2xf32>
    %681 = arith.addf %679, %680 : vector<1x2xf32>
    %c0_315 = arith.constant 0 : index
    %c0_316 = arith.constant 0 : index
    %c0_317 = arith.constant 0 : index
    %682 = vector.load %arg12[%c0_315, %c0_316, %c0_317] : memref<1x1x2xf32, #tpu.memory_space<vmem>>, vector<1x1x2xf32>
    %683 = vector.shape_cast %682 : vector<1x1x2xf32> to vector<1x2xf32>
    %684 = vector.shape_cast %681 : vector<1x2xf32> to vector<1x1x2xf32>
    tpu.vector_store %arg12[%c0_315, %c0_316, %c0_317], %684 {strides = array<i32>} : memref<1x1x2xf32, #tpu.memory_space<vmem>>, vector<1x1x2xf32>,
    return
  }
  func.func @transform_0(%arg0: i32) -> (i32, i32, i32, i32) {
    %c0_i32 = arith.constant 0 : i32
    %c0_i32_0 = arith.constant 0 : i32
    %c0_i32_1 = arith.constant 0 : i32
    %c0_i32_2 = arith.constant 0 : i32
    return %arg0, %c0_i32, %c0_i32_0, %c0_i32_1 : i32, i32, i32, i32
  }
  func.func @transform_1(%arg0: i32) -> (i32, i32) {
    %c0_i32 = arith.constant 0 : i32
    %c0_i32_0 = arith.constant 0 : i32
    %c0_i32_1 = arith.constant 0 : i32
    return %c0_i32, %c0_i32_0 : i32, i32
  }
  func.func @transform_2(%arg0: i32) -> (i32, i32) {
    %c0_i32 = arith.constant 0 : i32
    %c0_i32_0 = arith.constant 0 : i32
    %c0_i32_1 = arith.constant 0 : i32
    return %c0_i32, %c0_i32_0 : i32, i32
  }
  func.func @transform_3(%arg0: i32) -> (i32, i32) {
    %c0_i32 = arith.constant 0 : i32
    %c0_i32_0 = arith.constant 0 : i32
    %c0_i32_1 = arith.constant 0 : i32
    return %c0_i32, %c0_i32_0 : i32, i32
  }
  func.func @transform_4(%arg0: i32) -> (i32, i32) {
    %c0_i32 = arith.constant 0 : i32
    %c0_i32_0 = arith.constant 0 : i32
    %c0_i32_1 = arith.constant 0 : i32
    return %c0_i32, %c0_i32_0 : i32, i32
  }
  func.func @transform_5(%arg0: i32) -> (i32, i32, i32) {
    %c0_i32 = arith.constant 0 : i32
    %c0_i32_0 = arith.constant 0 : i32
    %c0_i32_1 = arith.constant 0 : i32
    %c0_i32_2 = arith.constant 0 : i32
    return %c0_i32, %c0_i32_0, %c0_i32_1 : i32, i32, i32
  }
  func.func @transform_6(%arg0: i32) -> (i32, i32) {
    %c0_i32 = arith.constant 0 : i32
    %c0_i32_0 = arith.constant 0 : i32
    %c0_i32_1 = arith.constant 0 : i32
    return %c0_i32, %c0_i32_0 : i32, i32
  }
  func.func @transform_7(%arg0: i32) -> (i32, i32) {
    %c0_i32 = arith.constant 0 : i32
    %c0_i32_0 = arith.constant 0 : i32
    %c0_i32_1 = arith.constant 0 : i32
    return %c0_i32, %c0_i32_0 : i32, i32
  }
  func.func @transform_8(%arg0: i32) -> (i32, i32) {
    %c0_i32 = arith.constant 0 : i32
    %c0_i32_0 = arith.constant 0 : i32
    %c0_i32_1 = arith.constant 0 : i32
    return %c0_i32, %c0_i32_0 : i32, i32
  }
  func.func @transform_9(%arg0: i32) -> (i32, i32) {
    %c0_i32 = arith.constant 0 : i32
    %c0_i32_0 = arith.constant 0 : i32
    %c0_i32_1 = arith.constant 0 : i32
    return %c0_i32, %c0_i32_0 : i32, i32
  }
  func.func @transform_10(%arg0: i32) -> (i32, i32) {
    %c0_i32 = arith.constant 0 : i32
    %c0_i32_0 = arith.constant 0 : i32
    %c0_i32_1 = arith.constant 0 : i32
    return %c0_i32, %c0_i32_0 : i32, i32
  }
  func.func @transform_11(%arg0: i32) -> (i32, i32, i32) {
    %c0_i32 = arith.constant 0 : i32
    %c0_i32_0 = arith.constant 0 : i32
    %c0_i32_1 = arith.constant 0 : i32
    return %arg0, %c0_i32, %c0_i32_0 : i32, i32, i32
  }
}

</mosaic_0001>

<bundles_post_ra>
// kernel: cnn_forward.1
= control target key start
LH: loop header
LB: loop body
LE: loop exit
PB: predicated region body
PF: predicated region fallthrough
CT: control target
= control target key end

     0   :  { %16 = vsyncpa [#allocation5], 0  ;;  %s11810_s0 = inlined_call_operand.vmem [shape: f32[2,12,30,1], index: 0, kind: input, shape index: {}]   ;;  %s11811_s1 = inlined_call_operand.vmem [shape: f32[9,16], index: 1, kind: input, shape index: {}]   ;;  %s11812_s2 = inlined_call_operand.vmem [shape: f32[1,16], index: 2, kind: input, shape index: {}]   ;;  %s11813_s3 = inlined_call_operand.vmem [shape: f32[144,32], index: 3, kind: input, shape index: {}]   ;;  %s11814_s4 = inlined_call_operand.vmem [shape: f32[1,32], index: 4, kind: input, shape index: {}]   ;;  %s11815_s5 = inlined_call_operand.hbm [shape: f32[13,128,128], index: 5, kind: input, shape index: {}]   ;;  %s11816_s6 = inlined_call_operand.vmem [shape: f32[1,128], index: 6, kind: input, shape index: {}]   ;;  %s11817_s7 = inlined_call_operand.vmem [shape: f32[128,64], index: 7, kind: input, shape index: {}]   ;;  %s11818_s8 = inlined_call_operand.vmem [shape: f32[1,64], index: 8, kind: input, shape index: {}]   ;;  %s11819_s9 = inlined_call_operand.vmem [shape: f32[64,2], index: 9, kind: input, shape index: {}]   ;;  %s11820_s10 = inlined_call_operand.vmem [shape: f32[1,2], index: 10, kind: input, shape index: {}]   ;;  %s11821_s11 = inlined_call_operand.hbm [shape: f32[2,1,2], index: 11, kind: output, shape index: {}]  }
   0x1   :  { %17 = vsyncpa [#allocation6], 0 }
   0x2   :  { %19 = vsyncpa [#allocation6 + $0x1], 0  ;;  %s7340_s17 = smov 0   ;;  %s7342_s18 = smov 0  }
   0x3   :  { %s7344_s19 = smov 0   ;;  %s7346_s20 = smov 0  }
   0x4 LB: > { %s7361_s21 = sadd.s32 4294967295, %s7263_s20   ;;  %s5834_s22 = sadd.s32 4294967294, %s7263_s20   ;;  %s7263_s20 = sphi %s7346_s20, %s12640_s20   ;;  %s7259_s19 = sphi %s7344_s19, %s12639_s19   ;;  %s7255_s18 = sphi %s7342_s18, %s12638_s18   ;;  %s7251_s17 = sphi %s7340_s17, %s12637_s17  }
   0x5   : > { %s7365_s23 = sadd.s32 1, %s7263_s20   ;;  %s268_s24 = sadd.s32 1, %s7259_s19 }
   0x6   : > { %s265_s25 = ssub.s32 %s7263_s20, %s7365_s23  ;;  %p278_p0 = scmp.ne.s32.totalorder %s7259_s19, %s7255_s18 }
   0x7   : > { %p266_p1 = scmp.eq.s32.totalorder %s265_s25, 0  ;;  %p279_p2 = scmp.eq.s32.totalorder %s7361_s21, 1 }
   0x8   : > { %p284_p3 = scmp.ne.s32.totalorder %s7255_s18, %s7251_s17  ;;  %p285_p4 = scmp.eq.s32.totalorder %s5834_s22, 1 }
   0x9   : > { %s7376_s26 = scalar_select %p266_p1, %s7259_s19, %s268_s24  }
   0xa   : > { %p7378_p5 = por %p279_p2, %p278_p0  ;;  %p7382_p6 = por %p285_p4, %p284_p3 }
   0xb   : > { %12039 = sst [smem:[#allocation10_spill]] %s7376_s26  ;;  %p5835_p7 = scmp.ge.s32.totalorder %s7263_s20, 1 }
   0xc   : > { %s12040_s27 = scalar_select %p7378_p5, 1, 0 }
   0xd   : > { %s12041_s28 = scalar_select %p7382_p6, 1, 0 }
   0xe   : > { %p292_p8 = scmp.lt.s32.totalorder %s7263_s20, 3  ;;  %p11822_p9 = scmp.eq.s32.totalorder %s7361_s21, 0 }
   0xf   : > { %s7265_s30 = smov [#allocation4]   ;;  %s7169_s16 = scalar_lea.hbm %s11815_s5, 26624 }
  0x10   : > { %p7389_p10 = pnand %p5835_p7, %p292_p8  ;;  %s316_s12 = sshll.u32 %s7265_s30, 4  ;;  %s317_s12 = int_to_ptr.vmem [resolvable:$true] %s316_s12 }
  0x11   : > { %p7170_p13 = scmp.ne.s32.totalorder %s11815_s5, %s7169_s16  ;;  %p7176_p3 = scmp.lt.u32.totalorder %s7169_s16, %s11815_s5 }
  0x12   : > { %s12042_s29 = scalar_select %p7389_p10, 1, 0 }
  0x13   : > { %p7088_p11 = pneg %p7389_p10 }
  0x15   : > { %p7397_p12 = pnand %p11822_p9, %p7088_p11 }
  0x17   : > { %p7171_p0 = pneg %p7397_p12 }
  0x19   : > { %p7172_p1 = pnand %p7171_p0, %p7170_p13 }
  0x1b   : > { %p7173_p2 = pneg %p7172_p1 }
  0x1d   : > { %p7178_p4 = pnand %p7176_p3, %p7173_p2 }
  0x1f   : > { %7181 = shalt.err (!%p7178_p4)
}
  0x20   : > { %s7182_s26 = scalar_lea.vmem %s317_s12, 26624  ;;  %p7190_p9 = scmp.lt.s32.totalorder %s317_s12, %s317_s12 }
  0x21   : > { %p7183_p7 = scmp.ne.s32.totalorder %s317_s12, %s7182_s26  ;;  %p7191_p6 = scmp.lt.s32.totalorder %s7182_s26, %s7182_s26 }
  0x23   : > { %p7185_p8 = pnand %p7183_p7, %p7171_p0  ;;  %p7192_p5 = por %p7191_p6, %p7190_p9 }
  0x25   : > { %p7186_p11 = pneg %p7185_p8 }
  0x27   : > { %p7193_p10 = pnand %p7192_p5, %p7186_p11 }
  0x29   : > { %7196 = shalt.err (!%p7193_p10)
}
  0x2a   : > { %s7266_s14 = smov 128   ;;  %s7267_s15 = smov 8  }
  0x2b   : > { %7091 = dma.hbm_to_vmem [thread:$0]  (!%p7397_p12), %s11815_s5, 26624, %s317_s12, [#allocation5], %s7266_s14, %s7266_s14, %s7267_s15  }
  0x2c   : > { %p12044_p13 = scmp.ne.s32.totalorder %s12042_s29, 0 }
  0x2e   : > { %355 = sbr.rel (%p12044_p13) target bundleno = 2265 (0x8d9), region = 64 }
  0x35   : > { %p12045_p1 = scmp.eq.s32.totalorder %s7361_s21, 0 }
  0x37   : > { %7242 = dma.done.wait (%p12045_p1), [#allocation5], 26624   ;;  %p12046_p0 = pmov %p12045_p1 }
  0x38   : > { %p394_p5 = scmp.lt.s32.totalorder %s7361_s21, 1  ;;  %v7268_v0 = vmov 0   ;;  %v7482_v52 = vld [vmem:[%s11811_s1 + $0x1] ss:$0 sm:$0xff]  ;;  %v7490_v56 = vld [vmem:[%s11811_s1 + $0x2] ss:$0 sm:$0xff] }
  0x39   : > { %7244 = vsyncadd (%p12046_p0), [#allocation5], 4294940672  ;;  %7146 = vset.pattern.permute.xlu1 %v7268_v0  ;;  %7145 = vset.pattern.permute.xlu0 %v7268_v0  ;;  %v7504_v60 = vld [vmem:[%s11811_s1] ss:$0 sm:$0xff]  ;;  %vm515_vm0 = vcmask 1046528   ;;  %vm12017_vm1 = vcmask 1045504  }
  0x3a   : > { %s395_s26 = scalar_select %p394_p5, %s7361_s21, 1  ;;  %vm2413_vm2 = vcmask 130048   ;;  %vm2417_vm3 = vcmask 123904   ;;  %vm2625_vm4 = vcmask 1040384   ;;  %vm12010_vm5 = vcmask 1043456  }
  0x3b   : > { %s11885_s29 = smov 48   ;;  %s11930_s30 = smov 96   ;;  %vm12013_vm6 = vcmask 1042432   ;;  %vm2619_vm7 = vcmask 130050   ;;  %vm2607_vm8 = vcmask 1041408   ;;  %vm3010_vm9 = vcmask 1044480  }
  0x3c   : > { %s7081_s13 = smul.u32 384, %s395_s26  ;;  %s7271_s26 = smov 32   ;;  %vm11999_vm10 = vcmask 255104   ;;  %vm11993_vm11 = vcmask 386304   ;;  %vm11987_vm12 = vcmask 517504   ;;  %vm11982_vm13 = vcmask 648704  }
  0x3d   : > { %s7273_s16 = smov 64   ;;  %s7275_s15 = smov 112   ;;  %vm11976_vm14 = vcmask 779904   ;;  %vm2623_vm15 = vcmask 125952  }
  0x3e   : > { %s7428_s12 = scalar_lea.vmem %s11810_s0, %s7081_s13  ;;  %s7272_s13 = smov 80  }
  0x3f   : > { %v418_v1 = vld [vmem:[%s7428_s12 + $0x10] sm:$0xff]  ;;  %v416_v2 = vld [vmem:[%s7428_s12] sm:$0xff]  ;;  %v417_v4 = vld [vmem:[%s7428_s12 + $0x8] sm:$0xff]  ;;  %s12284_s25 = smov 48   ;;  %s12377_s24 = smov 96  }
  0x40   : > { %487 = vperm.xlu1 %7146, %v418_v1   ;;  %477 = vperm.xlu0 %7145, %v416_v2   ;;  %v5842_v3 = vld [vmem:[%s7428_s12 + $0x20] sm:$0xff]  ;;  %v5844_v5 = vld [vmem:[%s7428_s12 + $0x30] sm:$0xff]  ;;  %v5843_v6 = vld [vmem:[%s7428_s12 + $0x28] sm:$0xff]  ;;  %p12634_p9 = scmp.ne.s32.totalorder %s12040_s27, 0 }
  0x41   : > { %v5846_v7 = vld [vmem:[%s7428_s12 + $0x40] sm:$0xff]  ;;  %v419_v8 = vld [vmem:[%s7428_s12 + $0x18] sm:$0x3f]  ;;  %v5848_v9 = vld [vmem:[%s7428_s12 + $0x50] sm:$0xff] }
  0x42   : > { %v5847_v10 = vld [vmem:[%s7428_s12 + $0x48] sm:$0xff]  ;;  %v5849_v11 = vld [vmem:[%s7428_s12 + $0x58] sm:$0x3f]  ;;  %v5850_v14 = vld [vmem:[%s7428_s12 + $0x60] sm:$0xff] }
  0x43   : > { %v5845_v12 = vld [vmem:[%s7428_s12 + $0x38] sm:$0x3f]  ;;  %v5851_v13 = vld [vmem:[%s7428_s12 + $0x68] sm:$0xff]  ;;  %v5852_v16 = vld [vmem:[%s7428_s12 + $0x70] sm:$0xff] }
  0x44   : > { %561 = vperm.xlu1 %7146, %v5842_v3   ;;  %482 = vperm.xlu0 %7145, %v417_v4   ;;  %v5853_v15 = vld [vmem:[%s7428_s12 + $0x78] sm:$0x3f]  ;;  %v5855_v17 = vld [vmem:[%s7428_s12 + $0x88] sm:$0xff]  ;;  %v5854_v18 = vld [vmem:[%s7428_s12 + $0x80] sm:$0xff] }
  0x45   : > { %v5857_v19 = vld [vmem:[%s7428_s12 + $0x98] sm:$0x3f]  ;;  %v5856_v20 = vld [vmem:[%s7428_s12 + $0x90] sm:$0xff]  ;;  %v5859_v21 = vld [vmem:[%s7428_s12 + $0xa8] sm:$0xff] }
  0x46   : > { %v5858_v22 = vld [vmem:[%s7428_s12 + $0xa0] sm:$0xff]  ;;  %v5861_v23 = vld [vmem:[%s7428_s12 + $0xb8] sm:$0x3f]  ;;  %v5860_v24 = vld [vmem:[%s7428_s12 + $0xb0] sm:$0xff] }
  0x47   : > { %v5863_v25 = vld [vmem:[%s7428_s12 + $0xc8] sm:$0xff]  ;;  %v5862_v26 = vld [vmem:[%s7428_s12 + $0xc0] sm:$0xff]  ;;  %v5865_v27 = vld [vmem:[%s7428_s12 + $0xd8] sm:$0x3f] }
  0x48   : > { %571 = vperm.xlu1 %7146, %v5844_v5   ;;  %566 = vperm.xlu0 %7145, %v5843_v6   ;;  %v5864_v28 = vld [vmem:[%s7428_s12 + $0xd0] sm:$0xff]  ;;  %v5867_v29 = vld [vmem:[%s7428_s12 + $0xe8] sm:$0xff]  ;;  %v5866_v30 = vld [vmem:[%s7428_s12 + $0xe0] sm:$0xff] }
  0x49   : > { %v5869_v31 = vld [vmem:[%s7428_s12 + $0xf8] sm:$0x3f]  ;;  %v5868_v32 = vld [vmem:[%s7428_s12 + $0xf0] sm:$0xff]  ;;  %v5871_v33 = vld [vmem:[%s7428_s12 + $0x108] sm:$0xff] }
  0x4a   : > { %v5870_v34 = vld [vmem:[%s7428_s12 + $0x100] sm:$0xff]  ;;  %v5873_v35 = vld [vmem:[%s7428_s12 + $0x118] sm:$0x3f]  ;;  %v5872_v36 = vld [vmem:[%s7428_s12 + $0x110] sm:$0xff] }
  0x4b   : > { %v5875_v37 = vld [vmem:[%s7428_s12 + $0x128] sm:$0xff]  ;;  %v5874_v38 = vld [vmem:[%s7428_s12 + $0x120] sm:$0xff]  ;;  %v5877_v39 = vld [vmem:[%s7428_s12 + $0x138] sm:$0x3f] }
  0x4c   : > { %647 = vperm.xlu1 %7146, %v5846_v7   ;;  %492 = vperm.xlu0 %7145, %v419_v8   ;;  %v5876_v40 = vld [vmem:[%s7428_s12 + $0x130] sm:$0xff]  ;;  %v5878_v41 = vld [vmem:[%s7428_s12 + $0x140] sm:$0xff]  ;;  %v5879_v42 = vld [vmem:[%s7428_s12 + $0x148] sm:$0xff] }
  0x4d   : > { %v5882_v43 = vld [vmem:[%s7428_s12 + $0x160] sm:$0xff]  ;;  %v5880_v44 = vld [vmem:[%s7428_s12 + $0x150] sm:$0xff]  ;;  %v5881_v46 = vld [vmem:[%s7428_s12 + $0x158] sm:$0x3f] }
  0x4e   : > { %v5884_v45 = vld [vmem:[%s7428_s12 + $0x170] sm:$0xff]  ;;  %v5883_v47 = vld [vmem:[%s7428_s12 + $0x168] sm:$0xff] }
  0x50   : > { %657 = vperm.xlu1 %7146, %v5848_v9   ;;  %652 = vperm.xlu0 %7145, %v5847_v10  }
  0x54   : > { %662 = vperm.xlu1 %7146, %v5849_v11   ;;  %576 = vperm.xlu0 %7145, %v5845_v12  }
  0x58   : > { %850 = vperm.xlu1 %7146, %v5851_v13   ;;  %845 = vperm.xlu0 %7145, %v5850_v14  }
  0x5c   : > { %860 = vperm.xlu1 %7146, %v5853_v15   ;;  %855 = vperm.xlu0 %7145, %v5852_v16   ;;  %v7530_v15 = vld [vmem:[%s11811_s1 + $0x4] ss:$0 sm:$0xff]  ;;  %v7535_v16 = vld [vmem:[%s11811_s1 + $0x5] ss:$0 sm:$0xff] }
  0x60   : > { %1036 = vperm.xlu1 %7146, %v5855_v17   ;;  %1031 = vperm.xlu0 %7145, %v5854_v18  }
  0x64   : > { %1046 = vperm.xlu1 %7146, %v5857_v19   ;;  %1041 = vperm.xlu0 %7145, %v5856_v20   ;;  %v7543_v20 = vld [vmem:[%s11811_s1 + $0x3] ss:$0 sm:$0xff] }
  0x68   : > { %1222 = vperm.xlu1 %7146, %v5859_v21   ;;  %1217 = vperm.xlu0 %7145, %v5858_v22  }
  0x6c   : > { %1232 = vperm.xlu1 %7146, %v5861_v23   ;;  %1227 = vperm.xlu0 %7145, %v5860_v24  }
  0x70   : > { %1408 = vperm.xlu1 %7146, %v5863_v25   ;;  %1403 = vperm.xlu0 %7145, %v5862_v26  }
  0x74   : > { %1418 = vperm.xlu1 %7146, %v5865_v27   ;;  %1413 = vperm.xlu0 %7145, %v5864_v28  }
  0x78   : > { %1594 = vperm.xlu1 %7146, %v5867_v29   ;;  %1589 = vperm.xlu0 %7145, %v5866_v30  }
  0x7c   : > { %1604 = vperm.xlu1 %7146, %v5869_v31   ;;  %1599 = vperm.xlu0 %7145, %v5868_v32  }
  0x80   : > { %1780 = vperm.xlu1 %7146, %v5871_v33   ;;  %1775 = vperm.xlu0 %7145, %v5870_v34  }
  0x84   : > { %1790 = vperm.xlu1 %7146, %v5873_v35   ;;  %1785 = vperm.xlu0 %7145, %v5872_v36  }
  0x88   : > { %1966 = vperm.xlu1 %7146, %v5875_v37   ;;  %1961 = vperm.xlu0 %7145, %v5874_v38  }
  0x8c   : > { %1976 = vperm.xlu1 %7146, %v5877_v39   ;;  %1971 = vperm.xlu0 %7145, %v5876_v40  }
  0x90   : > { %2147 = vperm.xlu1 %7146, %v5878_v41   ;;  %2152 = vperm.xlu0 %7145, %v5879_v42  }
  0x94   : > { %2333 = vperm.xlu1 %7146, %v5882_v43   ;;  %2157 = vperm.xlu0 %7145, %v5880_v44  }
  0x98   : > { %2343 = vperm.xlu1 %7146, %v5884_v45   ;;  %2162 = vperm.xlu0 %7145, %v5881_v46  }
  0x9c   : > { %2338 = vperm.xlu0 %7145, %v5883_v47  }
  0xbf   : > { %v478_v48 = vpop.permute.xlu0 %477  ;;  %v488_v50 = vpop.permute.xlu1 %487 }
  0xc0   : > { %v509_v55 = vmul.f32 %v7482_v52, %v488_v50  ;;  %v537_v57 = vmul.f32 %v7490_v56, %v488_v50  ;;  %v501_v63 = vmul.f32 %v7504_v60, %v488_v50  ;;  %v507_v8 = vmul.f32 %v7482_v52, %v478_v48 }
  0xc1   : > { %v535_v14 = vmul.f32 %v7490_v56, %v478_v48  ;;  %v499_v18 = vmul.f32 %v7504_v60, %v478_v48 }
  0xc2   : > { %v519_v61 = vrot.slane %v509_v55, 1  ;;  %v547_v2 = vrot.slane %v537_v57, 2  ;;  %v516_v13 = vrot.slane %v507_v8, 1 }
  0xc3   : > { %v483_v49 = vpop.permute.xlu0 %482  ;;  %v562_v53 = vpop.permute.xlu1 %561  ;;  %v544_v30 = vrot.slane %v535_v14, 2 }
  0xc4   : > { %v508_v3 = vmul.f32 %v7482_v52, %v483_v49  ;;  %v536_v11 = vmul.f32 %v7490_v56, %v483_v49  ;;  %v500_v19 = vmul.f32 %v7504_v60, %v483_v49  ;;  %v595_v25 = vmul.f32 %v7530_v15, %v562_v53 }
  0xc5   : > { %v7554_v26 = vmul.f32 %v7535_v16, %v562_v53  ;;  %v743_v27 = vmul.f32 %v7482_v52, %v562_v53  ;;  %v766_v31 = vmul.f32 %v7490_v56, %v562_v53  ;;  %v583_v32 = vmul.f32 %v7543_v20, %v562_v53 }
  0xc6   : > { %v517_v9 = vrot.slane %v508_v3, 1  ;;  %v545_v22 = vrot.slane %v536_v11, 2  ;;  %v739_v33 = vmul.f32 %v7504_v60, %v562_v53  ;;  %v603_v41 = vrot.slane %v595_v25, 1 }
  0xc7   : > { %v7477_v51 = vpop.permute.xlu0 %566  ;;  %v7508_v0 = vpop.permute.xlu1 %571  ;;  %12049 = vst [vmem:[#allocation13_spill] sm:$0xff] %v7554_v26  ;;  %v751_v43 = vrot.slane %v743_v27, 1  ;;  %v774_v45 = vrot.slane %v766_v31, 2 }
  0xc8   : > { %v520_v17 = vsel %vm515_vm0, %v517_v9, %v519_v61  ;;  %v518_v21 = vsel %vm515_vm0, %v516_v13, %v517_v9  ;;  %v7548_v23 = vmul.f32 %v7482_v52, %v7508_v0  ;;  %v744_v24 = vmul.f32 %v7482_v52, %v7477_v51 }
  0xc9   : > { %v528_v28 = vadd.f32 %v520_v17, %v500_v19  ;;  %v527_v34 = vadd.f32 %v518_v21, %v499_v18  ;;  %v7564_v35 = vmul.f32 %v7530_v15, %v7508_v0  ;;  %v548_v37 = vsel %vm12017_vm1, %v545_v22, %v547_v2 }
  0xca   : > { %v754_v38 = vrot.slane %v7548_v23, 1  ;;  %v596_v39 = vmul.f32 %v7530_v15, %v7477_v51  ;;  %v752_v40 = vrot.slane %v744_v24, 1  ;;  %v546_v46 = vsel %vm12017_vm1, %v544_v30, %v545_v22 }
  0xcb   : > { %v7484_v54 = vpop.permute.xlu0 %492  ;;  %v7521_v10 = vpop.permute.xlu1 %647  ;;  %v556_v44 = vadd.f32 %v548_v37, %v528_v28  ;;  %v7576_v47 = vmul.f32 %v7490_v56, %v7508_v0  ;;  %v767_v48 = vmul.f32 %v7490_v56, %v7477_v51  ;;  %v555_v49 = vadd.f32 %v546_v46, %v527_v34 }
  0xcc   : > { %v7495_v58 = vmul.f32 %v7482_v52, %v7484_v54  ;;  %v7499_v59 = vmul.f32 %v7490_v56, %v7484_v54  ;;  %12047 = vst [vmem:[#allocation11_spill] sm:$0xff] %v7521_v10  ;;  %v11825_v50 = vrot.slane %v7564_v35, 1  ;;  %v7583_v53 = vmul.f32 %v7535_v16, %v7508_v0 }
  0xcd   : > { %v584_v55 = vmul.f32 %v7543_v20, %v7477_v51  ;;  %v755_v3 = vsel %vm515_vm0, %v752_v40, %v754_v38  ;;  %v7605_v8 = vmul.f32 %v7530_v15, %v7521_v10  ;;  %v7611_v11 = vmul.f32 %v7504_v60, %v7508_v0 }
  0xce   : > { %v521_v62 = vrot.slane %v7495_v58, 1  ;;  %v549_v1 = vrot.slane %v7499_v59, 2  ;;  %12051 = vst [vmem:[#allocation15_spill] sm:$0xff] %v7583_v53  ;;  %v11826_v13 = vrot.slane %v7576_v47, 2  ;;  %v775_v14 = vrot.slane %v767_v48, 2 }
  0xcf   : > { %v7524_v12 = vpop.permute.xlu0 %652  ;;  %v7557_v29 = vpop.permute.xlu1 %657  ;;  %v7616_v17 = vmul.f32 %v7535_v16, %v7521_v10  ;;  %v7618_v18 = vadd.f32 %v583_v32, %v555_v49  ;;  %v7630_v25 = vmul.f32 %v7543_v20, %v7521_v10  ;;  %v7637_v30 = vmul.f32 %v7482_v52, %v7521_v10 }
  0xd0   : > { %v522_v4 = vsel %vm515_vm0, %v519_v61, %v521_v62  ;;  %v550_v6 = vsel %vm12017_vm1, %v547_v2, %v549_v1  ;;  %12048 = vst [vmem:[#allocation12_spill] sm:$0xff] %v7524_v12  ;;  %12050 = vst [vmem:[#allocation14_spill] sm:$0xff] %v7557_v29  ;;  %v604_v61 = vrot.slane %v596_v39, 1  ;;  %v753_v2 = vsel %vm515_vm0, %v751_v43, %v752_v40 }
  0xd1   : > { %v529_v5 = vadd.f32 %v522_v4, %v501_v63  ;;  %v7591_v63 = vmul.f32 %v7535_v16, %v7477_v51  ;;  %v7599_v4 = vmul.f32 %v7543_v20, %v7508_v0  ;;  %12054 = vst [vmem:[#allocation18_spill] sm:$0xff] %v7618_v18  ;;  %v762_v19 = vadd.f32 %v753_v2, %v739_v33 }
  0xd2   : > { %v7622_v22 = vsel %vm515_vm0, %v603_v41, %v604_v61  ;;  %v607_v0 = vsel %vm515_vm0, %v604_v61, %v11825_v50  ;;  %v7641_v31 = vmul.f32 %v7490_v56, %v7521_v10  ;;  %v776_v33 = vsel %vm12017_vm1, %v774_v45, %v775_v14 }
  0xd3   : > { %v7518_v7 = vadd.f32 %v550_v6, %v529_v5  ;;  %v7566_v36 = vpop.permute.xlu0 %576  ;;  %v7587_v57 = vpop.permute.xlu1 %662  ;;  %12053 = vst [vmem:[#allocation17_spill] sm:$0xff] %v7591_v63  ;;  %v588_v5 = vadd.f32 %v584_v55, %v556_v44  ;;  %v740_v6 = vmul.f32 %v7504_v60, %v7477_v51  ;;  %12055 = vst [vmem:[#allocation19_spill] sm:$0xff] %v7622_v22  ;;  %v937_v61 = vrot.slane %v7637_v30, 1 }
  0xd4   : > { %12052 = vst [vmem:[#allocation16_spill] sm:$0xff] %v7587_v57  ;;  %v778_v34 = vsel %vm12017_vm1, %v775_v14, %v11826_v13  ;;  %v7652_v39 = vmul.f32 %v7504_v60, %v7521_v10  ;;  %v7654_v40 = vadd.f32 %v776_v33, %v762_v19  ;;  %v7660_v43 = vmul.f32 %v7530_v15, %v7557_v29 }
  0xd5   : > { %v763_v21 = vadd.f32 %v755_v3, %v740_v6  ;;  %v7632_v27 = vadd.f32 %v607_v0, %v588_v5  ;;  %v746_v44 = vmul.f32 %v7482_v52, %v7566_v36  ;;  %v502_v46 = vmul.f32 %v7504_v60, %v7484_v54 }
  0xd6   : > { %12058 = vst [vmem:[#allocation22_spill] sm:$0xff] %v7660_v43  ;;  %v7670_v48 = vmul.f32 %v7535_v16, %v7557_v29  ;;  %v7674_v49 = vmul.f32 %v7482_v52, %v7557_v29  ;;  %v7684_v3 = vmul.f32 %v7504_v60, %v7557_v29  ;;  %v7688_v54 = vmul.f32 %v7490_v56, %v7557_v29 }
  0xd7   : > { %v7607_v9 = vpop.permute.xlu0 %845  ;;  %12056 = vst [vmem:[#allocation20_spill] sm:$0xff] %v7632_v27  ;;  %v7643_v32 = vpop.permute.xlu1 %850  ;;  %v7656_v41 = vadd.f32 %v778_v34, %v763_v21  ;;  %v930_v5 = vmul.f32 %v7482_v52, %v7524_v12  ;;  %v530_v21 = vadd.f32 %v521_v62, %v502_v46  ;;  %v7709_v30 = vmul.f32 %v7543_v20, %v7524_v12 }
  0xd8   : > { %12060 = vst [vmem:[#allocation24_spill] sm:$0xff] %v7670_v48  ;;  %v7678_v55 = vmul.f32 %v7482_v52, %v7643_v32  ;;  %v7694_v6 = vmul.f32 %v7490_v56, %v7643_v32  ;;  %v756_v33 = vrot.slane %v746_v44, 1  ;;  %v940_v51 = vrot.slane %v7674_v49, 1 }
  0xd9   : > { %12057 = vst [vmem:[#allocation21_spill] sm:$0xff] %v7656_v41  ;;  %12061 = vst [vmem:[#allocation25_spill] sm:$0xff] %v7709_v30  ;;  %v742_v37 = vmul.f32 %v7504_v60, %v7566_v36  ;;  %v769_v58 = vmul.f32 %v7490_v56, %v7566_v36  ;;  %v1112_v62 = vmul.f32 %v7504_v60, %v7643_v32  ;;  %v938_v34 = vrot.slane %v930_v5, 1 }
  0xda   : > { %v11828_v42 = vrot.slane %v7678_v55, 1  ;;  %v11832_v49 = vrot.slane %v7694_v6, 2  ;;  %v7731_v0 = vmul.f32 %v7530_v15, %v7524_v12  ;;  %v932_v2 = vmul.f32 %v7482_v52, %v7587_v57 }
  0xdb   : > { %v7664_v45 = vpop.permute.xlu0 %855  ;;  %v765_v50 = vadd.f32 %v756_v33, %v742_v37  ;;  %v7737_v5 = vmul.f32 %v7535_v16, %v7524_v12  ;;  %v953_v44 = vmul.f32 %v7490_v56, %v7524_v12  ;;  %v926_v37 = vmul.f32 %v7504_v60, %v7524_v12 }
  0xdc   : > { %12059 = vst [vmem:[#allocation23_spill] sm:$0xff] %v7664_v45  ;;  %v7698_v14 = vmul.f32 %v7482_v52, %v7664_v45  ;;  %v7702_v19 = vmul.f32 %v7490_v56, %v7664_v45  ;;  %v941_v27 = vsel %vm515_vm0, %v938_v34, %v940_v51  ;;  %v7758_v23 = vmul.f32 %v7490_v56, %v7587_v57 }
  0xdd   : > { %v939_v12 = vsel %vm515_vm0, %v937_v61, %v938_v34  ;;  %v949_v53 = vadd.f32 %v941_v27, %v926_v37  ;;  %v792_v59 = vmul.f32 %v7543_v20, %v7587_v57  ;;  %v791_v37 = vmul.f32 %v7543_v20, %v7557_v29 }
  0xde   : > { %v11827_v24 = vrot.slane %v7698_v14, 1  ;;  %v11831_v46 = vrot.slane %v7702_v19, 2  ;;  %v7870_v29 = vmul.f32 %v7535_v16, %v7664_v45 }
  0xe0   : > { %v1127_v28 = vsel %vm515_vm0, %v11828_v42, %v11827_v24  ;;  %v757_v24 = vsel %vm515_vm0, %v754_v38, %v756_v33  ;;  %v1150_v42 = vsel %vm12017_vm1, %v11832_v49, %v11831_v46  ;;  %v586_v38 = vmul.f32 %v7543_v20, %v7566_v36 }
  0xe1   : > { %v1135_v13 = vadd.f32 %v1127_v28, %v1112_v62  ;;  %v558_v28 = vadd.f32 %v549_v1, %v530_v21  ;;  %v779_v62 = vrot.slane %v769_v58, 2  ;;  %v598_v33 = vmul.f32 %v7530_v15, %v7566_v36 }
  0xe2   : > { %v942_v1 = vrot.slane %v932_v2, 1  ;;  %v764_v21 = vadd.f32 %v757_v24, %v7611_v11  ;;  %v961_v46 = vrot.slane %v953_v44, 2  ;;  %v928_v49 = vmul.f32 %v7504_v60, %v7587_v57 }
  0xe3   : > { %v7753_v10 = vadd.f32 %v1150_v42, %v1135_v13  ;;  %v788_v58 = vadd.f32 %v779_v62, %v765_v50  ;;  %v7768_v42 = vadd.f32 %v7599_v4, %v7518_v7  ;;  %v800_v11 = vmul.f32 %v7530_v15, %v7587_v57 }
  0xe4   : > { %v965_v50 = vrot.slane %v7758_v23, 2  ;;  %v590_v24 = vadd.f32 %v586_v38, %v558_v28  ;;  %v608_v7 = vrot.slane %v598_v33, 1  ;;  %v12063_v4 = vrot.slane %v7576_v47, 2  ;;  %v7801_v33 = vpop.permute.xlu0 %1031 }
  0xe5   : > { %12062 = vst [vmem:[#allocation26_spill] sm:$0xff] %v7768_v42  ;;  %v951_v44 = vadd.f32 %v942_v1, %v928_v49  ;;  %v7784_v13 = vmul.f32 %v7535_v16, %v7566_v36  ;;  %v796_v61 = vadd.f32 %v792_v59, %v788_v58  ;;  %v943_v34 = vsel %vm515_vm0, %v940_v51, %v942_v1  ;;  %v7796_v49 = vpop.permute.xlu1 %860 }
  0xe6   : > { %v780_v2 = vsel %vm12017_vm1, %v12063_v4, %v779_v62  ;;  %v7791_v28 = vmul.f32 %v7535_v16, %v7587_v57  ;;  %v12066_v47 = vrot.slane %v7688_v54, 2  ;;  %v810_v23 = vrot.slane %v800_v11, 1 }
  0xe7   : > { %12064 = vst [vmem:[#allocation27_spill] sm:$0xff] %v7784_v13  ;;  %v787_v27 = vadd.f32 %v780_v2, %v764_v21  ;;  %v976_v38 = vmul.f32 %v7543_v20, %v7643_v32  ;;  %v948_v51 = vadd.f32 %v939_v12, %v7652_v39  ;;  %v12067_v59 = vrot.slane %v7564_v35, 1 }
  0xe8   : > { %12065 = vst [vmem:[#allocation28_spill] sm:$0xff] %v7791_v28  ;;  %v964_v62 = vsel %vm12017_vm1, %v961_v46, %v12066_v47  ;;  %v7808_v21 = vadd.f32 %v608_v7, %v590_v24  ;;  %v984_v58 = vmul.f32 %v7530_v15, %v7643_v32  ;;  %v974_v11 = vadd.f32 %v965_v50, %v951_v44 }
  0xe9   : > { %v972_v36 = vadd.f32 %v964_v62, %v949_v53  ;;  %v7806_v1 = vsel %vm515_vm0, %v12067_v59, %v608_v7  ;;  %v7814_v53 = vmul.f32 %v7535_v16, %v7643_v32  ;;  %v795_v12 = vadd.f32 %v791_v37, %v787_v27  ;;  %v7839_v4 = vpop.permute.xlu1 %1036 }
  0xea   : > { %12068 = vst [vmem:[#allocation29_spill] sm:$0xff] %v7806_v1  ;;  %12069 = vst [vmem:[#allocation30_spill] sm:$0xff] %v7808_v21  ;;  %v819_v39 = vadd.f32 %v810_v23, %v796_v61  ;;  %v11837_v2 = vrot.slane %v7791_v28, 2  ;;  %v12070_v35 = vrot.slane %v7641_v31, 2  ;;  %v983_v24 = vmul.f32 %v7530_v15, %v7607_v9 }
  0xeb   : > { %v7825_v7 = vmul.f32 %v7530_v15, %v7664_v45  ;;  %v980_v62 = vadd.f32 %v976_v38, %v972_v36  ;;  %v975_v44 = vmul.f32 %v7543_v20, %v7607_v9  ;;  %v7831_v27 = vmul.f32 %v7535_v16, %v7607_v9 }
  0xec   : > { %v962_v47 = vsel %vm12017_vm1, %v12070_v35, %v961_v46  ;;  %v12071_v31 = vrot.slane %v7660_v43, 1  ;;  %v992_v61 = vrot.slane %v984_v58, 1  ;;  %v1115_v35 = vmul.f32 %v7482_v52, %v7607_v9  ;;  %v7851_v58 = vpop.permute.xlu0 %1041 }
  0xed   : > { %v971_v59 = vadd.f32 %v962_v47, %v948_v51  ;;  %v7845_v38 = vadd.f32 %v11837_v2, %v819_v39  ;;  %v1111_v51 = vmul.f32 %v7504_v60, %v7607_v9  ;;  %v991_v47 = vrot.slane %v983_v24, 1  ;;  %v1047_v28 = vpop.permute.xlu1 %1046 }
  0xee   : > { %v811_v46 = vsel %vm515_vm0, %v12071_v31, %v810_v23  ;;  %v978_v23 = vmul.f32 %v7543_v20, %v7796_v49  ;;  %v7855_v31 = vmul.f32 %v7490_v56, %v7607_v9  ;;  %v1014_v2 = vrot.slane %v7831_v27, 2 }
  0xef   : > { %v7841_v36 = vadd.f32 %v811_v46, %v795_v12  ;;  %v986_v12 = vmul.f32 %v7530_v15, %v7796_v49  ;;  %v994_v46 = vrot.slane %v7825_v7, 1  ;;  %v979_v39 = vadd.f32 %v975_v44, %v971_v59 }
  0xf0   : > { %v1118_v37 = vmul.f32 %v7482_v52, %v7796_v49  ;;  %v7865_v1 = vmul.f32 %v7530_v15, %v7839_v4  ;;  %v1123_v24 = vrot.slane %v1115_v35, 1  ;;  %v950_v42 = vadd.f32 %v943_v34, %v7684_v3 }
  0xf1   : > { %12072 = vst [vmem:[#allocation31_spill] sm:$0xff] %v7841_v36  ;;  %v7874_v7 = vmul.f32 %v7530_v15, %v7851_v58  ;;  %v982_v59 = vadd.f32 %v978_v23, %v974_v11  ;;  %v7878_v44 = vmul.f32 %v7535_v16, %v7796_v49  ;;  %v7882_v27 = vmul.f32 %v7535_v16, %v7839_v4  ;;  %v7921_v36 = vld [vmem:[%s11811_s1 + $0x7] ss:$0 sm:$0xff] }
  0xf2   : > { %v7886_v3 = vmul.f32 %v7535_v16, %v7851_v58  ;;  %v996_v34 = vrot.slane %v986_v12, 1  ;;  %v12074_v35 = vrot.slane %v7688_v54, 2  ;;  %v995_v63 = vsel %vm515_vm0, %v992_v61, %v994_v46 }
  0xf3   : > { %v1162_v11 = vmul.f32 %v7543_v20, %v7839_v4  ;;  %v1128_v23 = vrot.slane %v1118_v37, 1  ;;  %v11848_v22 = vrot.slane %v7865_v1, 1  ;;  %v11847_v18 = vrot.slane %v7874_v7, 1 }
  0xf4   : > { %12073 = vst [vmem:[#allocation32_spill] sm:$0xff] %v7886_v3  ;;  %v966_v26 = vsel %vm12017_vm1, %v12074_v35, %v965_v50  ;;  %v977_v12 = vmul.f32 %v7543_v20, %v7664_v45  ;;  %v1114_v35 = vmul.f32 %v7504_v60, %v7796_v49  ;;  %v1003_v21 = vadd.f32 %v995_v63, %v980_v62 }
  0xf5   : > { %v973_v13 = vadd.f32 %v966_v26, %v950_v42  ;;  %v1166_v50 = vadd.f32 %v1162_v11, %v7753_v10  ;;  %v1181_v57 = vsel %vm515_vm0, %v11848_v22, %v11847_v18  ;;  %v993_v26 = vsel %vm515_vm0, %v991_v47, %v992_v61 }
  0xf6   : > { %v12075_v42 = vrot.slane %v7678_v55, 1  ;;  %v7915_v10 = vmul.f32 %v7490_v56, %v7796_v49  ;;  %v1005_v63 = vadd.f32 %v996_v34, %v982_v59  ;;  %v1137_v37 = vadd.f32 %v1128_v23, %v1114_v35 }
  0xf7   : > { %v1189_v11 = vadd.f32 %v1181_v57, %v1166_v50  ;;  %v12076_v61 = vrot.slane %v7886_v3, 2  ;;  %v12077_v55 = vrot.slane %v7882_v27, 2  ;;  %v7931_v57 = vld [vmem:[%s11811_s1 + $0x8] ss:$0 sm:$0xff]  ;;  %v12078_v59 = vrot.slane %v7870_v29, 2 }
  0xf8   : > { %v1125_v54 = vsel %vm515_vm0, %v1123_v24, %v12075_v42  ;;  %v981_v24 = vadd.f32 %v977_v12, %v973_v13  ;;  %v12079_v50 = vrot.slane %v7814_v53, 2  ;;  %v7940_v42 = vmul.f32 %v7921_v36, %v7839_v4 }
  0xf9   : > { %v1204_v47 = vsel %vm12017_vm1, %v12077_v55, %v12076_v61  ;;  %v997_v61 = vsel %vm515_vm0, %v994_v46, %v996_v34  ;;  %v12080_v13 = vrot.slane %v7698_v14, 1  ;;  %v7950_v22 = vmul.f32 %v7931_v57, %v7839_v4  ;;  %v7959_v46 = vld [vmem:[%s11811_s1 + $0x6] ss:$0 sm:$0xff] }
  0xfa   : > { %v1018_v35 = vsel %vm12017_vm1, %v12079_v50, %v12078_v59  ;;  %v7942_v18 = vadd.f32 %v1204_v47, %v1189_v11  ;;  %v1002_v62 = vadd.f32 %v993_v26, %v979_v39  ;;  %v1146_v59 = vrot.slane %v7855_v31, 2 }
  0xfb   : > { %v1129_v12 = vsel %vm515_vm0, %v12080_v13, %v1128_v23  ;;  %v1026_v55 = vadd.f32 %v1018_v35, %v1003_v21  ;;  %v11852_v50 = vrot.slane %v7915_v10, 2  ;;  %v1113_v11 = vmul.f32 %v7504_v60, %v7664_v45 }
  0xfc   : > { %v1134_v14 = vadd.f32 %v1125_v54, %v1111_v51  ;;  %v12081_v21 = vrot.slane %v7878_v44, 2  ;;  %v1050_v23 = vmul.f32 %v7959_v46, %v7839_v4  ;;  %v1057_v31 = vmul.f32 %v7921_v36, %v7801_v33 }
  0xfd   : > { %v1160_v39 = vadd.f32 %v11852_v50, %v1137_v37  ;;  %v1004_v26 = vadd.f32 %v997_v61, %v981_v24  ;;  %v1136_v47 = vadd.f32 %v1129_v12, %v1113_v11  ;;  %v11857_v35 = vrot.slane %v7940_v42, 1 }
  0xfe   : > { %v1028_v34 = vadd.f32 %v12081_v21, %v1005_v63  ;;  %v7970_v13 = vadd.f32 %v1050_v23, %v1026_v55  ;;  %v12082_v54 = vrot.slane %v7814_v53, 2  ;;  %v1080_v21 = vmul.f32 %v7931_v57, %v7801_v33 }
  0xff   : > { %v7980_v48 = vmul.f32 %v7482_v52, %v7839_v4  ;;  %v7984_v37 = vmul.f32 %v7490_v56, %v7839_v4  ;;  %v1049_v61 = vmul.f32 %v7959_v46, %v7801_v33  ;;  %v1065_v12 = vrot.slane %v1057_v31, 1 }
 0x100   : > { %v1016_v63 = vsel %vm12017_vm1, %v1014_v2, %v12082_v54  ;;  %v12083_v53 = vrot.slane %v7694_v6, 2  ;;  %v1169_v55 = vmul.f32 %v7530_v15, %v7801_v33  ;;  %v1301_v11 = vmul.f32 %v7482_v52, %v7801_v33 }
 0x101   : > { %v1025_v24 = vadd.f32 %v1016_v63, %v1002_v62  ;;  %v1161_v54 = vmul.f32 %v7543_v20, %v7801_v33  ;;  %v1052_v62 = vmul.f32 %v7959_v46, %v1047_v28  ;;  %v1060_v63 = vmul.f32 %v7921_v36, %v1047_v28 }
 0x102   : > { %v1148_v2 = vsel %vm12017_vm1, %v1146_v59, %v12083_v53  ;;  %v8001_v31 = vmul.f32 %v7504_v60, %v7839_v4  ;;  %v1088_v6 = vrot.slane %v1080_v21, 2  ;;  %v1164_v59 = vmul.f32 %v7543_v20, %v1047_v28 }
 0x103   : > { %v1157_v23 = vadd.f32 %v1148_v2, %v1134_v14  ;;  %v8005_v53 = vmul.f32 %v7530_v15, %v1047_v28  ;;  %v1310_v50 = vrot.slane %v7980_v48, 1  ;;  %v1053_v2 = vadd.f32 %v1049_v61, %v1025_v24 }
 0x104   : > { %v8011_v51 = vmul.f32 %v7535_v16, %v7801_v33  ;;  %v1067_v4 = vsel %vm515_vm0, %v1065_v12, %v11857_v35  ;;  %v1177_v45 = vrot.slane %v1169_v55, 1  ;;  %v1309_v21 = vrot.slane %v1301_v11, 1 }
 0x105   : > { %v8018_v43 = vmul.f32 %v7490_v56, %v7801_v33  ;;  %v1165_v30 = vadd.f32 %v1161_v54, %v1157_v23  ;;  %v1297_v48 = vmul.f32 %v7504_v60, %v7801_v33  ;;  %v1056_v14 = vadd.f32 %v1052_v62, %v1028_v34 }
 0x106   : > { %v1070_v24 = vrot.slane %v1060_v63, 1  ;;  %v12084_v61 = vrot.slane %v7950_v22, 2  ;;  %v1168_v3 = vadd.f32 %v1164_v59, %v1160_v39  ;;  %v1182_v12 = vrot.slane %v8005_v53, 1 }
 0x107   : > { %v8029_v55 = vmul.f32 %v7482_v52, %v1047_v28  ;;  %v8031_v11 = vadd.f32 %v1067_v4, %v1053_v2  ;;  %v1083_v54 = vmul.f32 %v7931_v57, %v1047_v28  ;;  %v1059_v33 = vmul.f32 %v7921_v36, %v7851_v58 }
 0x108   : > { %v8025_v41 = vsel %vm12017_vm1, %v1088_v6, %v12084_v61  ;;  %v12087_v34 = vrot.slane %v7865_v1, 1  ;;  %v1311_v39 = vsel %vm515_vm0, %v1309_v21, %v1310_v50  ;;  %v8043_v6 = vmul.f32 %v7535_v16, %v1047_v28 }
 0x109   : > { %12085 = vst [vmem:[#allocation33_spill] sm:$0xff] %v8025_v41  ;;  %12086 = vst [vmem:[#allocation34_spill] sm:$0xff] %v8031_v11  ;;  %v1079_v59 = vadd.f32 %v1070_v24, %v1056_v14  ;;  %v8046_v53 = vmul.f32 %v7490_v56, %v1047_v28  ;;  %v12088_v2 = vrot.slane %v7878_v44, 2  ;;  %v12089_v4 = vrot.slane %v7870_v29, 2 }
 0x10a   : > { %v1179_v62 = vsel %vm515_vm0, %v1177_v45, %v12087_v34  ;;  %v1303_v45 = vmul.f32 %v7482_v52, %v7851_v58  ;;  %v1191_v1 = vadd.f32 %v1182_v12, %v1168_v3  ;;  %v1314_v21 = vrot.slane %v8029_v55, 1 }
 0x10b   : > { %v1020_v61 = vsel %vm12017_vm1, %v12089_v4, %v12088_v2  ;;  %v1051_v63 = vmul.f32 %v7959_v46, %v7851_v58  ;;  %v1093_v14 = vrot.slane %v1083_v54, 2  ;;  %v1300_v23 = vmul.f32 %v7504_v60, %v1047_v28 }
 0x10c   : > { %v1027_v34 = vadd.f32 %v1020_v61, %v1004_v26  ;;  %v1068_v35 = vrot.slane %v1059_v33, 1  ;;  %v12090_v44 = vrot.slane %v7915_v10, 2  ;;  %v12091_v29 = vrot.slane %v7702_v19, 2 }
 0x10d   : > { %v11862_v4 = vrot.slane %v8043_v6, 2  ;;  %v1082_v3 = vmul.f32 %v7931_v57, %v7851_v58  ;;  %v1163_v26 = vmul.f32 %v7543_v20, %v7851_v58  ;;  %v1188_v61 = vadd.f32 %v1179_v62, %v1165_v30 }
 0x10e   : > { %v1152_v2 = vsel %vm12017_vm1, %v12091_v29, %v12090_v44  ;;  %v1320_v54 = vadd.f32 %v1311_v39, %v1297_v48  ;;  %v8069_v41 = vadd.f32 %v1093_v14, %v1079_v59  ;;  %v1312_v28 = vrot.slane %v1303_v45, 1  ;;  %v1223_v29 = vpop.permute.xlu1 %1222 }
 0x10f   : > { %v1159_v55 = vadd.f32 %v1152_v2, %v1136_v47  ;;  %v8073_v10 = vadd.f32 %v11862_v4, %v1191_v1  ;;  %v1323_v19 = vadd.f32 %v1314_v21, %v1300_v23  ;;  %v11861_v33 = vrot.slane %v8046_v53, 2 }
 0x110   : > { %v1055_v44 = vadd.f32 %v1051_v63, %v1027_v34  ;;  %v12092_v11 = vrot.slane %v7940_v42, 1  ;;  %v8081_v30 = vmul.f32 %v7490_v56, %v7851_v58  ;;  %v866_v48 = vmul.f32 %v7959_v46, %v7796_v49 }
 0x111   : > { %v8087_v62 = vmul.f32 %v7921_v36, %v7796_v49  ;;  %v1071_v23 = vsel %vm515_vm0, %v1068_v35, %v1070_v24  ;;  %v1091_v39 = vrot.slane %v1082_v3, 2  ;;  %v1167_v63 = vadd.f32 %v1163_v26, %v1159_v55 }
 0x112   : > { %v1069_v47 = vsel %vm515_vm0, %v12092_v11, %v1068_v35  ;;  %v8092_v42 = vmul.f32 %v7931_v57, %v7796_v49  ;;  %v1313_v11 = vsel %vm515_vm0, %v1310_v50, %v1312_v28  ;;  %v8096_v59 = vmul.f32 %v7921_v36, %v1223_v29 }
 0x113   : > { %v870_v45 = vadd.f32 %v866_v48, %v7845_v38  ;;  %v11859_v1 = vrot.slane %v8087_v62, 1  ;;  %v8102_v34 = vadd.f32 %v11861_v33, %v1323_v19  ;;  %v8105_v35 = vadd.f32 %v1069_v47, %v7970_v13 }
 0x114   : > { %12093 = vst [vmem:[#allocation35_spill] sm:$0xff] %v8096_v59  ;;  %v12094_v24 = vrot.slane %v7874_v7, 1  ;;  %v8111_v50 = vmul.f32 %v7931_v57, %v1223_v29  ;;  %v8113_v2 = vadd.f32 %v1071_v23, %v1055_v44  ;;  %v11860_v38 = vrot.slane %v8081_v30, 2  ;;  %v1218_v23 = vpop.permute.xlu0 %1217 }
 0x115   : > { %v893_v3 = vadd.f32 %v11859_v1, %v870_v45  ;;  %v11858_v55 = vrot.slane %v8092_v42, 2  ;;  %v12096_v26 = vrot.slane %v7950_v22, 2  ;;  %v8125_v7 = vsel %vm12017_vm1, %v1091_v39, %v1093_v14 }
 0x116   : > { %v1183_v49 = vsel %vm515_vm0, %v12094_v24, %v1182_v12  ;;  %12095 = vst [vmem:[#allocation36_spill] sm:$0xff] %v8111_v50  ;;  %12097 = vst [vmem:[#allocation37_spill] sm:$0xff] %v8125_v7  ;;  %v1299_v12 = vmul.f32 %v7504_v60, %v7851_v58  ;;  %v1321_v19 = vadd.f32 %v1313_v11, %v8001_v31  ;;  %v8145_v31 = vld [vmem:[%s11812_s2] ss:$0 sm:$0xff]  ;;  %v12100_v14 = vrot.slane %v8011_v51, 2 }
 0x117   : > { %v8122_v13 = vsel %vm12017_vm1, %v12096_v26, %v1091_v39  ;;  %v8130_v44 = vadd.f32 %v1183_v49, %v1167_v63  ;;  %v1236_v47 = vmul.f32 %v7959_v46, %v1223_v29  ;;  %v916_v22 = vadd.f32 %v11858_v55, %v893_v3 }
 0x118   : > { %v1315_v45 = vsel %vm515_vm0, %v1312_v28, %v1314_v21  ;;  %v1348_v39 = vmul.f32 %v7543_v20, %v1223_v29  ;;  %v8140_v58 = vmul.f32 %v7530_v15, %v1223_v29  ;;  %v12098_v63 = vrot.slane %v7984_v37, 2 }
 0x119   : > { %v8153_v21 = vmul.f32 %v7535_v16, %v1223_v29  ;;  %v8156_v28 = vmul.f32 %v7482_v52, %v1223_v29  ;;  %v920_v24 = vadd.f32 %v8145_v31, %v916_v22  ;;  %v8160_v3 = vmul.f32 %v7490_v56, %v1223_v29 }
 0x11a   : > { %v1336_v11 = vsel %vm12017_vm1, %v12098_v63, %v11860_v38  ;;  %v12099_v26 = vrot.slane %v7882_v27, 2  ;;  %v1235_v63 = vmul.f32 %v7959_v46, %v1218_v23  ;;  %v8169_v48 = vmul.f32 %v7921_v36, %v1218_v23 }
 0x11b   : > { %v1344_v49 = vadd.f32 %v1336_v11, %v1321_v19  ;;  %v1355_v38 = vmul.f32 %v7530_v15, %v1218_v23  ;;  %v8172_v33 = vmax.f32 %v920_v24, 0.0  ;;  %v8174_v19 = vadd.f32 %v1315_v45, %v1299_v12 }
 0x11c   : > { %v1202_v55 = vsel %vm12017_vm1, %v12100_v14, %v12099_v26  ;;  %12101 = vst [vmem:[#allocation38_spill] sm:$0xff] %v8169_v48  ;;  %v11863_v22 = vrot.slane %v8140_v58, 1  ;;  %v8178_v27 = vmul.f32 %v7931_v57, %v1218_v23  ;;  %v12104_v51 = vrot.slane %v7984_v37, 2 }
 0x11d   : > { %v1211_v1 = vadd.f32 %v1202_v55, %v1188_v61  ;;  %12102 = vst [vmem:[#allocation39_spill] sm:$0xff] %v8172_v33  ;;  %v12105_v14 = vrot.slane %v8018_v43, 2  ;;  %v8186_v55 = vadd.f32 %v1236_v47, %v7942_v18  ;;  %v8189_v11 = vmul.f32 %v7504_v60, %v1223_v29  ;;  %2483 = vrot.lane.b32.xlu0 %v8172_v33, %s11885_s29  ;;  %v1233_v18 = vpop.permute.xlu1 %1232 }
 0x11e   : > { %12103 = vst [vmem:[#allocation40_spill] sm:$0xff] %v8178_v27  ;;  %v1347_v12 = vmul.f32 %v7543_v20, %v1218_v23  ;;  %v1487_v26 = vmul.f32 %v7482_v52, %v1218_v23  ;;  %v8198_v47 = vadd.f32 %v1348_v39, %v1344_v49  ;;  %v8208_v45 = vmul.f32 %v7504_v60, %v1218_v23 }
 0x11f   : > { %v1334_v61 = vsel %vm12017_vm1, %v12105_v14, %v12104_v51  ;;  %12106 = vst [vmem:[#allocation41_spill] sm:$0xff] %v8186_v55  ;;  %v8200_v29 = vadd.f32 %v1235_v63, %v1211_v1  ;;  %v1363_v51 = vrot.slane %v1355_v38, 1  ;;  %v1106_v43 = vadd.f32 %v8145_v31, %v8069_v41 }
 0x120   : > { %v1343_v24 = vadd.f32 %v1334_v61, %v1320_v54  ;;  %v8205_v61 = vmul.f32 %v7535_v16, %v1218_v23  ;;  %v8213_v39 = vmul.f32 %v7490_v56, %v1218_v23  ;;  %v1238_v1 = vmul.f32 %v7959_v46, %v1233_v18 }
 0x121   : > { %12107 = vst [vmem:[#allocation42_spill] sm:$0xff] %v8200_v29  ;;  %v793_v38 = vadd.f32 %v7630_v25, %v7654_v40  ;;  %v1495_v49 = vrot.slane %v1487_v26, 1  ;;  %v8219_v63 = vmul.f32 %v7921_v36, %v1233_v18  ;;  %v8221_v14 = vmax.f32 %v1106_v43, 0.0 }
 0x122   : > { %v1351_v4 = vadd.f32 %v1347_v12, %v1343_v24  ;;  %v12109_v54 = vrot.slane %v7731_v0, 1  ;;  %v12110_v37 = vrot.slane %v7605_v8, 1  ;;  %v1365_v23 = vsel %vm515_vm0, %v1363_v51, %v11863_v22 }
 0x123   : > { %12108 = vst [vmem:[#allocation43_spill] sm:$0xff] %v8221_v14  ;;  %v12111_v12 = vrot.slane %v7737_v5, 2  ;;  %v12112_v25 = vrot.slane %v7616_v17, 2  ;;  %v863_v43 = vmul.f32 %v7959_v46, %v7607_v9  ;;  %2555 = vrot.lane.b32.xlu1 %v8221_v14, %s11930_s30  ;;  %v871_v8 = vmul.f32 %v7921_v36, %v7607_v9 }
 0x124   : > { %v807_v41 = vsel %vm515_vm0, %v12110_v37, %v12109_v54  ;;  %v8244_v37 = vmul.f32 %v7921_v36, %v7643_v32  ;;  %v894_v26 = vmul.f32 %v7931_v57, %v7607_v9  ;;  %v8250_v17 = vmul.f32 %v7931_v57, %v7643_v32 }
 0x125   : > { %v816_v24 = vadd.f32 %v807_v41, %v793_v38  ;;  %v830_v40 = vsel %vm12017_vm1, %v12112_v25, %v12111_v12  ;;  %v1350_v54 = vmul.f32 %v7543_v20, %v1233_v18  ;;  %v8254_v51 = vmul.f32 %v7530_v15, %v1233_v18  ;;  %v1228_v12 = vpop.permute.xlu0 %1227 }
 0x126   : > { %v8257_v38 = vmul.f32 %v7482_v52, %v1233_v18  ;;  %v879_v25 = vrot.slane %v871_v8, 1  ;;  %v11873_v22 = vrot.slane %v8244_v37, 1  ;;  %v902_v55 = vrot.slane %v894_v26, 2 }
 0x127   : > { %v839_v41 = vadd.f32 %v830_v40, %v816_v24  ;;  %v11872_v9 = vrot.slane %v8250_v17, 2  ;;  %v1242_v27 = vadd.f32 %v1238_v1, %v8073_v10  ;;  %v1256_v50 = vrot.slane %v8219_v63, 1 }
 0x128   : > { %v8264_v48 = vadd.f32 %v1365_v23, %v1351_v4  ;;  %v1269_v24 = vmul.f32 %v7931_v57, %v1233_v18  ;;  %v881_v40 = vsel %vm515_vm0, %v879_v25, %v11873_v22  ;;  %v12113_v8 = vrot.slane %v8156_v28, 1 }
 0x129   : > { %v867_v29 = vadd.f32 %v863_v43, %v839_v41  ;;  %v1354_v14 = vadd.f32 %v1350_v54, %v8102_v34  ;;  %v1357_v10 = vmul.f32 %v7530_v15, %v1228_v12  ;;  %v1368_v4 = vrot.slane %v8254_v51, 1  ;;  %v12115_v51 = vld [vmem:[#allocation32_spill] sm:$0xff] }
 0x12a   : > { %v1497_v26 = vsel %vm515_vm0, %v1495_v49, %v12113_v8  ;;  %v8278_v63 = vmul.f32 %v7535_v16, %v1233_v18  ;;  %v1500_v23 = vrot.slane %v8257_v38, 1  ;;  %v904_v43 = vsel %vm12017_vm1, %v902_v55, %v11872_v9 }
 0x12b   : > { %v890_v1 = vadd.f32 %v881_v40, %v867_v29  ;;  %v1265_v41 = vadd.f32 %v1256_v50, %v1242_v27  ;;  %v1486_v25 = vmul.f32 %v7504_v60, %v1233_v18  ;;  %v1245_v49 = vmul.f32 %v7921_v36, %v1228_v12 }
 0x12c   : > { %v8287_v54 = vmul.f32 %v7490_v56, %v1233_v18  ;;  %v12114_v29 = vrot.slane %v8043_v6, 2  ;;  %v12116_v40 = vrot.slane %v12115_v51, 2  ;;  %v1237_v38 = vmul.f32 %v7959_v46, %v1228_v12 }
 0x12d   : > { %v913_v34 = vadd.f32 %v904_v43, %v890_v1  ;;  %v8296_v33 = vmul.f32 %v7931_v57, %v1228_v12  ;;  %v12118_v27 = vrot.slane %v8046_v53, 2  ;;  %v12119_v55 = vrot.slane %v8081_v30, 2 }
 0x12e   : > { %v1206_v8 = vsel %vm12017_vm1, %v12116_v40, %v12114_v29  ;;  %v1366_v43 = vrot.slane %v1357_v10, 1  ;;  %v8304_v18 = vmul.f32 %v7535_v16, %v1228_v12  ;;  %v1377_v51 = vadd.f32 %v1368_v4, %v1354_v14 }
 0x12f   : > { %12117 = vst [vmem:[#allocation32_spill] sm:$0xff] %v8296_v33  ;;  %v1338_v1 = vsel %vm12017_vm1, %v12119_v55, %v12118_v27  ;;  %v917_v6 = vadd.f32 %v8145_v31, %v913_v34  ;;  %v1509_v9 = vadd.f32 %v1500_v23, %v1486_v25  ;;  %v1213_v29 = vadd.f32 %v1206_v8, %v8130_v44  ;;  %v12126_v25 = vld [vmem:[#allocation22_spill] sm:$0xff] }
 0x130   : > { %v1345_v40 = vadd.f32 %v1338_v1, %v8174_v19  ;;  %v1254_v22 = vrot.slane %v1245_v49, 1  ;;  %v1349_v7 = vmul.f32 %v7543_v20, %v1228_v12  ;;  %v1489_v53 = vmul.f32 %v7482_v52, %v1228_v12 }
 0x131   : > { %v8311_v30 = vmax.f32 %v917_v6, 0.0  ;;  %v8314_v10 = vadd.f32 %v1497_v26, %v8208_v45  ;;  %v1279_v27 = vrot.slane %v1269_v24, 2  ;;  %v11874_v55 = vrot.slane %v8278_v63, 2 }
 0x132   : > { %v11875_v14 = vrot.slane %v8287_v54, 2  ;;  %v12120_v44 = vrot.slane %v8140_v58, 1  ;;  %v8324_v52 = vmul.f32 %v7490_v56, %v1228_v12  ;;  %v1241_v58 = vadd.f32 %v1237_v38, %v1213_v29 }
 0x133   : > { %2477 = vrot.lane.b32.xlu0 %v8311_v30, %s11885_s29  ;;  %v8328_v45 = vadd.f32 %v1279_v27, %v1265_v41  ;;  %v8332_v24 = vadd.f32 %v11874_v55, %v1377_v51  ;;  %v12122_v34 = vrot.slane %v8096_v59, 1  ;;  %v1353_v56 = vadd.f32 %v1349_v7, %v1345_v40  ;;  %v12124_v51 = vld [vmem:[#allocation21_spill] sm:$0xff] }
 0x134   : > { %v1367_v19 = vsel %vm515_vm0, %v12120_v44, %v1366_v43  ;;  %v8336_v26 = vadd.f32 %v11875_v14, %v1509_v9  ;;  %v1485_v1 = vmul.f32 %v7504_v60, %v1228_v12  ;;  %v1498_v6 = vrot.slane %v1489_v53, 1  ;;  %v12125_v55 = vld [vmem:[#allocation25_spill] sm:$0xff] }
 0x135   : > { %12121 = vst [vmem:[#allocation44_spill] sm:$0xff] %v8328_v45  ;;  %v8341_v8 = vsel %vm515_vm0, %v12122_v34, %v1254_v22  ;;  %v1257_v41 = vsel %vm515_vm0, %v1254_v22, %v1256_v50  ;;  %v1375_v44 = vadd.f32 %v1367_v19, %v8198_v47  ;;  %v794_v49 = vadd.f32 %v12125_v55, %v12124_v51  ;;  %v1409_v22 = vpop.permute.xlu1 %1408  ;;  %v12133_v55 = vld [vmem:[#allocation23_spill] sm:$0xff]  ;;  %v12135_v51 = vld [vmem:[#allocation24_spill] sm:$0xff] }
 0x136   : > { %12123 = vst [vmem:[#allocation45_spill] sm:$0xff] %v8341_v8  ;;  %v12127_v9 = vrot.slane %v12126_v25, 1  ;;  %v12128_v38 = vrot.slane %v7731_v0, 1  ;;  %v12129_v34 = vrot.slane %v8296_v33, 2  ;;  %v1369_v60 = vsel %vm515_vm0, %v1366_v43, %v1368_v4  ;;  %v12151_v45 = vld [vmem:[#allocation28_spill] sm:$0xff] }
 0x137   : > { %v12131_v47 = vrot.slane %v8304_v18, 2  ;;  %v12132_v12 = vrot.slane %v8153_v21, 2  ;;  %v864_v0 = vmul.f32 %v7959_v46, %v7643_v32  ;;  %v8369_v25 = vmul.f32 %v7921_v36, %v12133_v55 }
 0x138   : > { %v809_v29 = vsel %vm515_vm0, %v12128_v38, %v12127_v9  ;;  %v8356_v7 = vsel %vm12017_vm1, %v12129_v34, %v1279_v27  ;;  %v8373_v4 = vmul.f32 %v7931_v57, %v12133_v55  ;;  %v12134_v43 = vrot.slane %v8156_v28, 1  ;;  %v12138_v38 = vld [vmem:[#allocation34_spill] sm:$0xff] }
 0x139   : > { %12130 = vst [vmem:[#allocation21_spill] sm:$0xff] %v8356_v7  ;;  %v1390_v40 = vsel %vm12017_vm1, %v12132_v12, %v12131_v47  ;;  %v817_v53 = vadd.f32 %v809_v29, %v794_v49  ;;  %v1501_v19 = vsel %vm515_vm0, %v1498_v6, %v1500_v23  ;;  %v12136_v9 = vrot.slane %v12135_v51, 2  ;;  %v12139_v29 = vld [vmem:[#allocation33_spill] sm:$0xff] }
 0x13a   : > { %v1499_v27 = vsel %vm515_vm0, %v12134_v43, %v1498_v6  ;;  %v12137_v49 = vrot.slane %v7737_v5, 2  ;;  %v1099_v34 = vadd.f32 %v12139_v29, %v12138_v38  ;;  %v1398_v47 = vadd.f32 %v1390_v40, %v1375_v44  ;;  %v1404_v44 = vpop.permute.xlu0 %1403 }
 0x13b   : > { %v8387_v12 = vmul.f32 %v7921_v36, %v1409_v22  ;;  %v11877_v28 = vrot.slane %v8369_v25, 1  ;;  %v8390_v50 = vadd.f32 %v1257_v41, %v1241_v58  ;;  %v8393_v23 = vmul.f32 %v7931_v57, %v1409_v22 }
 0x13c   : > { %v832_v32 = vsel %vm12017_vm1, %v12137_v49, %v12136_v9  ;;  %v11876_v6 = vrot.slane %v8373_v4, 2  ;;  %v1103_v5 = vadd.f32 %v8145_v31, %v1099_v34  ;;  %v1422_v43 = vmul.f32 %v7959_v46, %v1409_v22 }
 0x13d   : > { %v840_v14 = vadd.f32 %v832_v32, %v817_v53  ;;  %12140 = vst [vmem:[#allocation25_spill] sm:$0xff] %v8390_v50  ;;  %v1507_v9 = vadd.f32 %v1499_v27, %v8189_v11  ;;  %v12141_v53 = vrot.slane %v8244_v37, 1  ;;  %v8404_v41 = vadd.f32 %v1369_v60, %v1353_v56 }
 0x13e   : > { %v8406_v49 = vadd.f32 %v1501_v19, %v1485_v1  ;;  %v12142_v32 = vrot.slane %v8324_v52, 2  ;;  %v12143_v38 = vrot.slane %v8160_v3, 2  ;;  %v8413_v34 = vmax.f32 %v1103_v5, 0.0 }
 0x13f   : > { %v868_v40 = vadd.f32 %v864_v0, %v840_v14  ;;  %v883_v58 = vsel %vm515_vm0, %v12141_v53, %v11877_v28  ;;  %v8415_v11 = vadd.f32 %v1422_v43, %v1398_v47  ;;  %v1534_v37 = vmul.f32 %v7543_v20, %v1409_v22  ;;  %v8438_v53 = vld [vmem:[%s11811_s1 + $0x1] ss:$0 sm:$0xff] }
 0x140   : > { %v1522_v29 = vsel %vm12017_vm1, %v12143_v38, %v12142_v32  ;;  %v8421_v1 = vmul.f32 %v7530_v15, %v1409_v22  ;;  %v1429_v60 = vmul.f32 %v7921_v36, %v1404_v44  ;;  %v12144_v27 = vrot.slane %v8250_v17, 2  ;;  %2549 = vrot.lane.b32.xlu0 %v8413_v34, %s11930_s30  ;;  %v8446_v17 = vld [vmem:[%s11811_s1 + $0x2] ss:$0 sm:$0xff] }
 0x141   : > { %v891_v0 = vadd.f32 %v883_v58, %v868_v40  ;;  %v1530_v47 = vadd.f32 %v1522_v29, %v1507_v9  ;;  %v8432_v5 = vmul.f32 %v7535_v16, %v1409_v22  ;;  %v1541_v43 = vmul.f32 %v7530_v15, %v1404_v44 }
 0x142   : > { %v906_v19 = vsel %vm12017_vm1, %v12144_v27, %v11876_v6  ;;  %v8441_v58 = vmul.f32 %v8438_v53, %v1409_v22  ;;  %v8449_v9 = vmul.f32 %v8446_v17, %v1409_v22  ;;  %v12145_v16 = vrot.slane %v8153_v21, 2 }
 0x143   : > { %v914_v40 = vadd.f32 %v906_v19, %v891_v0  ;;  %v12146_v15 = vrot.slane %v8205_v61, 2  ;;  %v1421_v38 = vmul.f32 %v7959_v46, %v1404_v44  ;;  %v1452_v0 = vmul.f32 %v7931_v57, %v1404_v44 }
 0x144   : > { %v12147_v27 = vrot.slane %v8160_v3, 2  ;;  %v12148_v19 = vrot.slane %v8213_v39, 2  ;;  %v1437_v56 = vrot.slane %v1429_v60, 1  ;;  %v1533_v61 = vmul.f32 %v7543_v20, %v1404_v44  ;;  %v8479_v39 = vld [vmem:[%s11811_s1] ss:$0 sm:$0xff] }
 0x145   : > { %v1388_v32 = vsel %vm12017_vm1, %v12146_v15, %v12145_v16  ;;  %v918_v28 = vadd.f32 %v8145_v31, %v914_v40  ;;  %v8470_v16 = vld [vmem:[%s11811_s1 + $0x5] ss:$0 sm:$0xff]  ;;  %v8482_v60 = vmul.f32 %v8479_v39, %v1409_v22  ;;  %v1460_v3 = vrot.slane %v1452_v0, 2  ;;  %v8511_v15 = vpop.permute.xlu0 %1413 }
 0x146   : > { %v1397_v29 = vadd.f32 %v1388_v32, %v8264_v48  ;;  %v1520_v6 = vsel %vm12017_vm1, %v12148_v19, %v12147_v27  ;;  %v8473_v48 = vmul.f32 %v8470_v16, %v1404_v44  ;;  %v1419_v27 = vpop.permute.xlu1 %1418  ;;  %v8492_v14 = vmul.f32 %v8479_v39, %v1404_v44 }
 0x147   : > { %v1529_v21 = vadd.f32 %v1520_v6, %v8314_v10  ;;  %v1549_v10 = vrot.slane %v1541_v43, 1  ;;  %v8484_v20 = vmax.f32 %v918_v28, 0.0  ;;  %v8486_v6 = vadd.f32 %v1534_v37, %v1530_v47 }
 0x148   : > { %v1425_v19 = vadd.f32 %v1421_v38, %v1397_v29  ;;  %v1673_v22 = vmul.f32 %v8438_v53, %v1404_v44  ;;  %v12149_v28 = vrot.slane %v8387_v12, 1  ;;  %v8502_v32 = vmul.f32 %v8446_v17, %v1404_v44  ;;  %v8521_v44 = vld [vmem:[%s11811_s1 + $0x3] ss:$0 sm:$0xff] }
 0x149   : > { %2479 = vrot.lane.b32.xlu1 %v8484_v20, %s11885_s29  ;;  %v1537_v47 = vadd.f32 %v1533_v61, %v1529_v21  ;;  %v12150_v38 = vrot.slane %v8421_v1, 1  ;;  %v1424_v0 = vmul.f32 %v7959_v46, %v1419_v27  ;;  %v8509_v40 = vmul.f32 %v7921_v36, %v1419_v27 }
 0x14a   : > { %v1439_v37 = vsel %vm515_vm0, %v1437_v56, %v12149_v28  ;;  %v12152_v7 = vrot.slane %v12151_v45, 2  ;;  %v12153_v56 = vrot.slane %v12135_v51, 2  ;;  %v1536_v61 = vmul.f32 %v8521_v44, %v1419_v27  ;;  %v12154_v45 = vld [vmem:[#allocation31_spill] sm:$0xff] }
 0x14b   : > { %v1551_v29 = vsel %vm515_vm0, %v1549_v10, %v12150_v38  ;;  %v8527_v10 = vld [vmem:[%s11811_s1 + $0x4] ss:$0 sm:$0xff]  ;;  %v8535_v51 = vadd.f32 %v1439_v37, %v1425_v19  ;;  %v1681_v50 = vrot.slane %v1673_v22, 1  ;;  %v8543_v33 = vmul.f32 %v7931_v57, %v1419_v27 }
 0x14c   : > { %v834_v21 = vsel %vm12017_vm1, %v12153_v56, %v12152_v7  ;;  %v8530_v28 = vmul.f32 %v8527_v10, %v1419_v27  ;;  %v865_v7 = vmul.f32 %v7959_v46, %v12133_v55  ;;  %v12156_v56 = vrot.slane %v8393_v23, 2 }
 0x14d   : > { %v841_v38 = vadd.f32 %v834_v21, %v12154_v45  ;;  %12155 = vst [vmem:[#allocation22_spill] sm:$0xff] %v8535_v51  ;;  %v1543_v59 = vmul.f32 %v8527_v10, %v8511_v15  ;;  %v1100_v55 = vadd.f32 %v8122_v13, %v8105_v35  ;;  %v8550_v19 = vadd.f32 %v1551_v29, %v1537_v47 }
 0x14e   : > { %v8540_v43 = vsel %vm12017_vm1, %v1460_v3, %v12156_v56  ;;  %v1428_v37 = vadd.f32 %v1424_v0, %v8332_v24  ;;  %v1442_v3 = vrot.slane %v8509_v40, 1  ;;  %v12158_v22 = vrot.slane %v8087_v62, 1 }
 0x14f   : > { %12157 = vst [vmem:[#allocation23_spill] sm:$0xff] %v8540_v43  ;;  %v869_v21 = vadd.f32 %v865_v7, %v841_v38  ;;  %v12159_v45 = vrot.slane %v8369_v25, 1  ;;  %v1540_v8 = vadd.f32 %v1536_v61, %v8336_v26  ;;  %v1554_v43 = vrot.slane %v8530_v28, 1 }
 0x150   : > { %v1104_v7 = vadd.f32 %v8145_v31, %v1100_v55  ;;  %v12160_v35 = vrot.slane %v8441_v58, 1  ;;  %v1465_v24 = vrot.slane %v8543_v33, 2  ;;  %v1676_v40 = vmul.f32 %v8438_v53, %v1419_v27 }
 0x151   : > { %v885_v56 = vsel %vm515_vm0, %v12159_v45, %v12158_v22  ;;  %v12161_v62 = vrot.slane %v8092_v42, 2  ;;  %v12162_v25 = vrot.slane %v8373_v4, 2  ;;  %v1552_v26 = vrot.slane %v1543_v59, 1 }
 0x152   : > { %v892_v38 = vadd.f32 %v885_v56, %v869_v21  ;;  %v1683_v13 = vsel %vm515_vm0, %v1681_v50, %v12160_v35  ;;  %v1675_v29 = vmul.f32 %v8438_v53, %v8511_v15  ;;  %v8574_v61 = vmax.f32 %v1104_v7, 0.0 }
 0x153   : > { %v908_v47 = vsel %vm12017_vm1, %v12162_v25, %v12161_v62  ;;  %v1451_v28 = vadd.f32 %v1442_v3, %v1428_v37  ;;  %v8577_v50 = vmul.f32 %v8470_v16, %v1419_v27  ;;  %v8580_v33 = vmul.f32 %v8446_v17, %v1419_v27 }
 0x154   : > { %v915_v0 = vadd.f32 %v908_v47, %v892_v38  ;;  %12163 = vst [vmem:[#allocation24_spill] sm:$0xff] %v8574_v61  ;;  %v1431_v42 = vmul.f32 %v7921_v36, %v8511_v15  ;;  %v1563_v4 = vadd.f32 %v1554_v43, %v1540_v8  ;;  %v12164_v21 = vrot.slane %v8278_v63, 2  ;;  %2551 = vrot.lane.b32.xlu0 %v8574_v61, %s11930_s30 }
 0x155   : > { %v12165_v59 = vrot.slane %v8304_v18, 2  ;;  %v8591_v22 = vmul.f32 %v8470_v16, %v8511_v15  ;;  %v1686_v45 = vrot.slane %v1676_v40, 1  ;;  %v1423_v8 = vmul.f32 %v7959_v46, %v8511_v15 }
 0x156   : > { %v919_v37 = vadd.f32 %v8145_v31, %v915_v0  ;;  %v1454_v63 = vmul.f32 %v7931_v57, %v8511_v15  ;;  %v12166_v18 = vrot.slane %v8287_v54, 2  ;;  %v12167_v38 = vrot.slane %v8324_v52, 2 }
 0x157   : > { %v1392_v55 = vsel %vm12017_vm1, %v12165_v59, %v12164_v21  ;;  %v12168_v35 = vrot.slane %v8421_v1, 1  ;;  %v1684_v25 = vrot.slane %v1675_v29, 1  ;;  %v1440_v47 = vrot.slane %v1431_v42, 1  ;;  %v1595_v59 = vpop.permute.xlu1 %1594 }
 0x158   : > { %v1399_v56 = vadd.f32 %v1392_v55, %v8404_v41  ;;  %v1524_v7 = vsel %vm12017_vm1, %v12167_v38, %v12166_v18  ;;  %v8609_v40 = vmax.f32 %v919_v37, 0.0  ;;  %v1672_v41 = vmul.f32 %v8479_v39, %v1419_v27 }
 0x159   : > { %v1553_v62 = vsel %vm515_vm0, %v12168_v35, %v1552_v26  ;;  %v1531_v0 = vadd.f32 %v1524_v7, %v8406_v49  ;;  %v1535_v21 = vmul.f32 %v8521_v44, %v8511_v15  ;;  %v8616_v54 = vadd.f32 %v1683_v13, %v8492_v14 }
 0x15a   : > { %12169 = vst [vmem:[#allocation34_spill] sm:$0xff] %v8609_v40  ;;  %v1577_v52 = vrot.slane %v8577_v50, 2  ;;  %v1575_v1 = vrot.slane %v8591_v22, 2  ;;  %v8622_v29 = vmul.f32 %v8446_v17, %v8511_v15  ;;  %2481 = vrot.lane.b32.xlu1 %v8609_v40, %s11885_s29  ;;  %v8626_v27 = vadd.f32 %v1465_v24, %v1451_v28  ;;  %v12188_v22 = vld [vmem:[#allocation27_spill] sm:$0xff]  ;;  %s7274_s29 = smov 16  }
 0x15b   : > { %v1695_v49 = vadd.f32 %v1686_v45, %v1672_v41  ;;  %v1561_v14 = vadd.f32 %v1553_v62, %v8486_v6  ;;  %v1427_v55 = vadd.f32 %v1423_v8, %v1399_v56  ;;  %v1463_v37 = vrot.slane %v1454_v63, 2 }
 0x15c   : > { %12170 = vst [vmem:[#allocation33_spill] sm:$0xff] %v8626_v27  ;;  %v8632_v13 = vadd.f32 %v1577_v52, %v1563_v4  ;;  %v12171_v18 = vrot.slane %v8441_v58, 1  ;;  %v12172_v7 = vrot.slane %v8387_v12, 1  ;;  %v1443_v35 = vsel %vm515_vm0, %v1440_v47, %v1442_v3  ;;  %v12187_v27 = vld [vmem:[#allocation30_spill] sm:$0xff] }
 0x15d   : > { %v1539_v41 = vadd.f32 %v1535_v21, %v1531_v0  ;;  %v8642_v42 = vmul.f32 %v7921_v36, %v1595_v59  ;;  %v1555_v6 = vsel %vm515_vm0, %v1552_v26, %v1554_v43  ;;  %v1687_v4 = vsel %vm515_vm0, %v1684_v25, %v1686_v45  ;;  %v1590_v21 = vpop.permute.xlu0 %1589 }
 0x15e   : > { %v1685_v38 = vsel %vm515_vm0, %v12171_v18, %v1684_v25  ;;  %v1441_v28 = vsel %vm515_vm0, %v12172_v7, %v1440_v47  ;;  %v11881_v56 = vrot.slane %v8622_v29, 2  ;;  %v12173_v58 = vrot.slane %v8432_v5, 2  ;;  %2651 = vrot.lane.b32.xlu1 %v8311_v30, %s7271_s26 }
 0x15f   : > { %v12174_v3 = vrot.slane %v8580_v33, 2  ;;  %v1671_v43 = vmul.f32 %v8479_v39, %v8511_v15  ;;  %v1693_v45 = vadd.f32 %v1685_v38, %v8482_v60  ;;  %v8662_v63 = vadd.f32 %v1441_v28, %v8415_v11 }
 0x160   : > { %v1576_v12 = vsel %vm12017_vm1, %v12173_v58, %v1575_v1  ;;  %v8664_v62 = vadd.f32 %v1443_v35, %v1427_v55  ;;  %v12177_v25 = vrot.slane %v8393_v23, 2  ;;  %v8672_v0 = vsel %vm12017_vm1, %v1463_v37, %v1465_v24 }
 0x161   : > { %v8656_v8 = vadd.f32 %v12174_v3, %v1695_v49  ;;  %v1584_v26 = vadd.f32 %v1576_v12, %v1561_v14  ;;  %12175 = vst [vmem:[#allocation28_spill] sm:$0xff] %v8662_v63  ;;  %12179 = vst [vmem:[#allocation47_spill] sm:$0xff] %v8672_v0  ;;  %v8674_v49 = vadd.f32 %v1555_v6, %v1539_v41  ;;  %v11882_v11 = vrot.slane %v8642_v42, 1  ;;  %v12233_v63 = vld [vmem:[#allocation11_spill] sm:$0xff] }
 0x162   : > { %12176 = vst [vmem:[#allocation31_spill] sm:$0xff] %v8664_v62  ;;  %v8669_v47 = vsel %vm12017_vm1, %v12177_v25, %v1463_v37  ;;  %v8676_v15 = vadd.f32 %v1687_v4, %v1671_v43  ;;  %v1608_v60 = vmul.f32 %v7959_v46, %v1595_v59  ;;  %v12180_v14 = vrot.slane %v8449_v9, 2  ;;  %v12181_v37 = vld [vmem:[#allocation37_spill] sm:$0xff] }
 0x163   : > { %12178 = vst [vmem:[#allocation46_spill] sm:$0xff] %v8669_v47  ;;  %v2592_v55 = vrot.slane %v8413_v34, 2  ;;  %v11880_v24 = vrot.slane %v8574_v61, 2  ;;  %v1101_v18 = vadd.f32 %v12181_v37, %v8113_v2  ;;  %v8692_v7 = vmul.f32 %v7931_v57, %v1595_v59 }
 0x164   : > { %v1708_v23 = vsel %vm12017_vm1, %v12180_v14, %v11881_v56  ;;  %v8689_v38 = vadd.f32 %v1608_v60, %v1584_v26  ;;  %v1615_v35 = vmul.f32 %v7921_v36, %v1590_v21  ;;  %v8696_v41 = vmul.f32 %v8527_v10, %v1595_v59 }
 0x165   : > { %v1716_v28 = vadd.f32 %v1708_v23, %v1693_v45  ;;  %v2594_v6 = vsel %vm12017_vm1, %v2592_v55, %v11880_v24  ;;  %v1105_v4 = vadd.f32 %v8145_v31, %v1101_v18  ;;  %v8703_v2 = vmul.f32 %v8470_v16, %v1595_v59 }
 0x166   : > { %v8706_v58 = vmul.f32 %v8438_v53, %v1595_v59  ;;  %v12182_v12 = vrot.slane %v8432_v5, 2  ;;  %v12183_v3 = vrot.slane %v8473_v48, 2  ;;  %v1638_v26 = vmul.f32 %v7931_v57, %v1590_v21  ;;  %2603 = vst.msk [vmem:[#allocation2 + $0x8] sm:$0xff] %vm2413_vm2, %v2594_v6 }
 0x167   : > { %v1607_v25 = vmul.f32 %v7959_v46, %v1590_v21  ;;  %v1727_v60 = vmul.f32 %v8527_v10, %v1590_v21  ;;  %v8718_v14 = vmax.f32 %v1105_v4, 0.0  ;;  %v11883_v23 = vrot.slane %v8692_v7, 2 }
 0x168   : > { %v1574_v43 = vsel %vm12017_vm1, %v12183_v3, %v12182_v12  ;;  %v1720_v5 = vmul.f32 %v8521_v44, %v1595_v59  ;;  %v1623_v55 = vrot.slane %v1615_v35, 1  ;;  %v12185_v48 = vrot.slane %v8449_v9, 2  ;;  %v8735_v3 = vpop.permute.xlu1 %1604 }
 0x169   : > { %v1583_v45 = vadd.f32 %v1574_v43, %v8550_v19  ;;  %12184 = vst [vmem:[#allocation37_spill] sm:$0xff] %v8718_v14  ;;  %v12186_v37 = vrot.slane %v8502_v32, 2  ;;  %v8728_v6 = vmul.f32 %v8479_v39, %v1595_v59  ;;  %v8731_v19 = vmul.f32 %v8446_v17, %v1595_v59  ;;  %v8737_v43 = vpop.permute.xlu0 %1599  ;;  %2553 = vrot.lane.b32.xlu0 %v8718_v14, %s11930_s30 }
 0x16a   : > { %v1719_v12 = vmul.f32 %v8521_v44, %v1590_v21  ;;  %v8741_v9 = vadd.f32 %v1720_v5, %v1716_v28  ;;  %v11884_v32 = vrot.slane %v8696_v41, 1  ;;  %v1646_v35 = vrot.slane %v1638_v26, 2 }
 0x16b   : > { %v1706_v18 = vsel %vm12017_vm1, %v12186_v37, %v12185_v48  ;;  %v8745_v48 = vmul.f32 %v8470_v16, %v1590_v21  ;;  %v1611_v37 = vadd.f32 %v1607_v25, %v1583_v45  ;;  %v1625_v24 = vsel %vm515_vm0, %v1623_v55, %v11882_v11 }
 0x16c   : > { %v1715_v4 = vadd.f32 %v1706_v18, %v8616_v54  ;;  %v1735_v18 = vrot.slane %v1727_v60, 1  ;;  %v1610_v28 = vmul.f32 %v7959_v46, %v8735_v3  ;;  %v1618_v5 = vmul.f32 %v7921_v36, %v8735_v3 }
 0x16d   : > { %v1617_v26 = vmul.f32 %v7921_v36, %v8737_v43  ;;  %v8760_v54 = vmul.f32 %v8479_v39, %v1590_v21  ;;  %v1859_v45 = vmul.f32 %v8438_v53, %v1590_v21  ;;  %v3873_v25 = vld [vmem:[#allocation2 + $0x8] sm:$0xff]  ;;  %2719 = vrot.lane.b32.xlu0 %v8413_v34, %s7272_s13  ;;  %v1648_v60 = vsel %vm12017_vm1, %v1646_v35, %v11883_v23 }
 0x16e   : > { %v1723_v59 = vadd.f32 %v1719_v12, %v1715_v4  ;;  %v8770_v11 = vmul.f32 %v8446_v17, %v1590_v21  ;;  %v1578_v4 = vsel %vm12017_vm1, %v1575_v1, %v1577_v52  ;;  %5896 = vmatprep.mubr.msk.f32.mxu0 %vm2413_vm2, %v3873_v25  ;;  %v1634_v12 = vadd.f32 %v1625_v24, %v1611_v37  ;;  %v12190_v25 = vld [vmem:[#allocation16_spill] sm:$0xff] }
 0x16f   : > { %v1737_v56 = vsel %vm515_vm0, %v1735_v18, %v11884_v32  ;;  %v1585_v35 = vadd.f32 %v1578_v4, %v8674_v49  ;;  %v1609_v55 = vmul.f32 %v7959_v46, %v8737_v43  ;;  %v1614_v21 = vadd.f32 %v1610_v28, %v8632_v13 }
 0x170   : > { %v1628_v23 = vrot.slane %v1618_v5, 1  ;;  %v1626_v50 = vrot.slane %v1617_v26, 1  ;;  %v12189_v0 = vrot.slane %v12188_v22, 2  ;;  %v1867_v1 = vrot.slane %v1859_v45, 1 }
 0x171   : > { %v672_v24 = vmul.f32 %v7959_v46, %v12190_v25  ;;  %v8792_v37 = vmul.f32 %v7921_v36, %v12190_v25  ;;  %v8796_v49 = vmul.f32 %v7931_v57, %v12190_v25  ;;  %2653 = vrot.lane.b32.xlu0 %v8484_v20, %s7271_s26  ;;  %v8800_v13 = vadd.f32 %v1737_v56, %v1723_v59 }
 0x172   : > { %v644_v52 = vadd.f32 %v12189_v0, %v12187_v27  ;;  %v1641_v27 = vmul.f32 %v7931_v57, %v8735_v3  ;;  %v1722_v0 = vmul.f32 %v8521_v44, %v8735_v3  ;;  %v1640_v46 = vmul.f32 %v7931_v57, %v8737_v43 }
 0x173   : > { %v1730_v36 = vmul.f32 %v8527_v10, %v8735_v3  ;;  %v1613_v18 = vadd.f32 %v1609_v55, %v1585_v35  ;;  %v11890_v5 = vrot.slane %v8792_v37, 1  ;;  %v1637_v26 = vadd.f32 %v1628_v23, %v1614_v21 }
 0x174   : > { %v676_v28 = vadd.f32 %v672_v24, %v644_v52  ;;  %v1862_v56 = vmul.f32 %v8438_v53, %v8735_v3  ;;  %v12191_v59 = vrot.slane %v8642_v42, 1  ;;  %v1629_v4 = vsel %vm515_vm0, %v1626_v50, %v1628_v23 }
 0x175   : > { %v1729_v57 = vmul.f32 %v8527_v10, %v8737_v43  ;;  %v11889_v35 = vrot.slane %v8796_v49, 2  ;;  %v1657_v21 = vadd.f32 %v1648_v60, %v1634_v12  ;;  %v12192_v52 = vrot.slane %v8706_v58, 1 }
 0x176   : > { %v1627_v45 = vsel %vm515_vm0, %v12191_v59, %v1626_v50  ;;  %v703_v55 = vadd.f32 %v11890_v5, %v676_v28  ;;  %v1651_v42 = vrot.slane %v1641_v27, 2  ;;  %v1649_v32 = vrot.slane %v1640_v46, 2 }
 0x177   : > { %v1869_v24 = vsel %vm515_vm0, %v1867_v1, %v12192_v52  ;;  %v1726_v59 = vadd.f32 %v1722_v0, %v8656_v8  ;;  %v1635_v23 = vadd.f32 %v1627_v45, %v8689_v38  ;;  %v1636_v50 = vadd.f32 %v1629_v4, %v1613_v18 }
 0x178   : > { %v730_v25 = vadd.f32 %v11889_v35, %v703_v55  ;;  %v1660_v62 = vadd.f32 %v1651_v42, %v1637_v26  ;;  %v1740_v47 = vrot.slane %v1730_v36, 1  ;;  %v8832_v28 = vmul.f32 %v8470_v16, %v8735_v3  ;;  %v12210_v35 = vld [vmem:[#allocation38_spill] sm:$0xff] }
 0x179   : > { %v1872_v60 = vrot.slane %v1862_v56, 1  ;;  %v12193_v12 = vrot.slane %v8580_v33, 2  ;;  %v12194_v1 = vrot.slane %v8622_v29, 2  ;;  %v1738_v8 = vrot.slane %v1729_v57, 1 }
 0x17a   : > { %v1861_v38 = vmul.f32 %v8438_v53, %v8737_v43  ;;  %v734_v0 = vadd.f32 %v8145_v31, %v730_v25  ;;  %v12195_v46 = vrot.slane %v8692_v7, 2  ;;  %v1652_v18 = vsel %vm12017_vm1, %v1649_v32, %v1651_v42 }
 0x17b   : > { %v1710_v27 = vsel %vm12017_vm1, %v12194_v1, %v12193_v12  ;;  %v1721_v33 = vmul.f32 %v8521_v44, %v8737_v43  ;;  %v1659_v56 = vadd.f32 %v1652_v18, %v1636_v50  ;;  %v8851_v45 = vmul.f32 %v8470_v16, %v8737_v43  ;;  %v8892_v18 = vpop.permute.xlu1 %1780 }
 0x17c   : > { %v1650_v36 = vsel %vm12017_vm1, %v12195_v46, %v1649_v32  ;;  %v1717_v26 = vadd.f32 %v1710_v27, %v8676_v15  ;;  %v8853_v4 = vmax.f32 %v734_v0, 0.0  ;;  %v1661_v25 = vadd.f32 %v8145_v31, %v1657_v21 }
 0x17d   : > { %v1658_v29 = vadd.f32 %v1650_v36, %v1635_v23  ;;  %v1749_v7 = vadd.f32 %v1740_v47, %v1726_v59  ;;  %v1858_v57 = vmul.f32 %v8479_v39, %v8735_v3  ;;  %v8860_v15 = vmul.f32 %v8446_v17, %v8735_v3 }
 0x17e   : > { %12196 = vst [vmem:[#allocation30_spill] sm:$0xff] %v8853_v4  ;;  %v12197_v32 = vrot.slane %v8696_v41, 1  ;;  %v1870_v52 = vrot.slane %v1861_v38, 1  ;;  %v8867_v42 = vmul.f32 %v8446_v17, %v8737_v43  ;;  %v11888_v23 = vrot.slane %v8853_v4, 2 }
 0x17f   : > { %v8871_v21 = vadd.f32 %v1869_v24, %v8760_v54  ;;  %v1664_v59 = vadd.f32 %v8145_v31, %v1660_v62  ;;  %v11894_v50 = vrot.slane %v8832_v28, 2  ;;  %v1881_v3 = vadd.f32 %v1872_v60, %v1858_v57 }
 0x180   : > { %v1739_v55 = vsel %vm515_vm0, %v12197_v32, %v1738_v8  ;;  %v1662_v12 = vadd.f32 %v8145_v31, %v1658_v29  ;;  %v1663_v41 = vadd.f32 %v8145_v31, %v1659_v56  ;;  %v1725_v1 = vadd.f32 %v1721_v33, %v1717_v26  ;;  %2461 = vrot.lane.b32.xlu1 %v11888_v23, %s7271_s26  ;;  %v8894_v26 = vpop.permute.xlu0 %1775  ;;  %v12199_v33 = vld [vmem:[#allocation39_spill] sm:$0xff] }
 0x181   : > { %v11893_v27 = vrot.slane %v8851_v45, 2  ;;  %v8881_v38 = vmax.f32 %v1661_v25, 0.0  ;;  %v11891_v54 = vrot.slane %v8860_v15, 2  ;;  %v1741_v62 = vsel %vm515_vm0, %v1738_v8, %v1740_v47 }
 0x182   : > { %v1747_v24 = vadd.f32 %v1739_v55, %v8741_v9  ;;  %v8888_v0 = vadd.f32 %v11894_v50, %v1749_v7  ;;  %v1873_v46 = vsel %vm515_vm0, %v1870_v52, %v1872_v60  ;;  %v11892_v36 = vrot.slane %v8867_v42, 2 }
 0x183   : > { %12198 = vst [vmem:[#allocation27_spill] sm:$0xff] %v8881_v38  ;;  %v11887_v29 = vrot.slane %v12199_v33, 1  ;;  %v8897_v56 = vmax.f32 %v1664_v59, 0.0  ;;  %v8901_v47 = vadd.f32 %v11891_v54, %v1881_v3  ;;  %v1857_v9 = vmul.f32 %v8479_v39, %v8737_v43 }
 0x184   : > { %v12201_v8 = vrot.slane %v8706_v58, 1  ;;  %v8908_v25 = vmax.f32 %v1662_v12, 0.0  ;;  %v8910_v7 = vmax.f32 %v1663_v41, 0.0  ;;  %v8912_v57 = vadd.f32 %v1741_v62, %v1725_v1  ;;  %v8938_v12 = vld [vmem:[%s11811_s1 + $0x6] ss:$0 sm:$0xff] }
 0x185   : > { %12200 = vst [vmem:[#allocation16_spill] sm:$0xff] %v8897_v56  ;;  %v12204_v32 = vrot.slane %v8703_v2, 2  ;;  %2508 = vrot.lane.b32.xlu1 %v11887_v29, %s7273_s16  ;;  %v8922_v58 = vadd.f32 %v1873_v46, %v1857_v9  ;;  %v1794_v41 = vmul.f32 %v8938_v12, %v8892_v18  ;;  %v8945_v1 = vld [vmem:[%s11811_s1 + $0x8] ss:$0 sm:$0xff]  ;;  %v12205_v46 = vrot.slane %v8731_v19, 2 }
 0x186   : > { %v1871_v60 = vsel %vm515_vm0, %v12201_v8, %v1870_v52  ;;  %12202 = vst [vmem:[#allocation48_spill] sm:$0xff] %v8908_v25  ;;  %12203 = vst [vmem:[#allocation49_spill] sm:$0xff] %v8910_v7  ;;  %v8927_v52 = vld [vmem:[%s11811_s1 + $0x7] ss:$0 sm:$0xff]  ;;  %v8949_v62 = vmul.f32 %v8945_v1, %v8892_v18  ;;  %v1906_v8 = vmul.f32 %v8521_v44, %v8892_v18  ;;  %v12207_v29 = vrot.slane %v8745_v48, 2  ;;  %v12215_v7 = vld [vmem:[#allocation40_spill] sm:$0xff] }
 0x187   : > { %v1762_v55 = vsel %vm12017_vm1, %v12204_v32, %v11893_v27  ;;  %v8931_v59 = vmul.f32 %v8927_v52, %v8892_v18  ;;  %v1801_v3 = vmul.f32 %v8927_v52, %v8894_v26  ;;  %v1894_v9 = vsel %vm12017_vm1, %v12205_v46, %v11892_v36  ;;  %v12212_v27 = vld [vmem:[#allocation42_spill] sm:$0xff] }
 0x188   : > { %v1770_v43 = vadd.f32 %v1762_v55, %v1747_v24  ;;  %v1879_v24 = vadd.f32 %v1871_v60, %v8728_v6  ;;  %v8961_v32 = vmul.f32 %v8527_v10, %v8892_v18  ;;  %v12206_v55 = vrot.slane %v8703_v2, 2  ;;  %v12208_v6 = vld [vmem:[#allocation35_spill] sm:$0xff] }
 0x189   : > { %v12209_v60 = vrot.slane %v12208_v6, 1  ;;  %v12211_v5 = vrot.slane %v12210_v35, 1  ;;  %v1793_v36 = vmul.f32 %v8938_v12, %v8894_v26  ;;  %v11897_v56 = vrot.slane %v8853_v4, 1 }
 0x18a   : > { %v1760_v23 = vsel %vm12017_vm1, %v12207_v29, %v12206_v55  ;;  %v8978_v2 = vadd.f32 %v1794_v41, %v1770_v43  ;;  %v11898_v48 = vrot.slane %v8931_v59, 1  ;;  %v1809_v29 = vrot.slane %v1801_v3, 1  ;;  %v12213_v55 = vld [vmem:[#allocation36_spill] sm:$0xff] }
 0x18b   : > { %v1253_v54 = vsel %vm515_vm0, %v12211_v5, %v12209_v60  ;;  %v1769_v46 = vadd.f32 %v1760_v23, %v8800_v13  ;;  %v12214_v6 = vrot.slane %v12213_v55, 2  ;;  %v12216_v35 = vrot.slane %v12215_v7, 2  ;;  %2436 = vrot.lane.b32.xlu0 %v11897_v56, %s7274_s29 }
 0x18c   : > { %v1262_v50 = vadd.f32 %v1253_v54, %v12212_v27  ;;  %v1902_v23 = vadd.f32 %v1894_v9, %v1879_v24  ;;  %v8989_v60 = vmul.f32 %v8470_v16, %v8892_v18  ;;  %v8997_v7 = vmul.f32 %v8438_v53, %v8892_v18  ;;  %v12221_v54 = vld [vmem:[#allocation19_spill] sm:$0xff] }
 0x18d   : > { %v1276_v5 = vsel %vm12017_vm1, %v12216_v35, %v12214_v6  ;;  %v9001_v43 = vmul.f32 %v8446_v17, %v8892_v18  ;;  %v1824_v3 = vmul.f32 %v8945_v1, %v8894_v26  ;;  %v1797_v41 = vadd.f32 %v1793_v36, %v1769_v46 }
 0x18e   : > { %v1285_v27 = vadd.f32 %v1276_v5, %v1262_v50  ;;  %v12217_v50 = vrot.slane %v8731_v19, 2  ;;  %v12218_v24 = vrot.slane %v8770_v11, 2  ;;  %v1905_v6 = vmul.f32 %v8521_v44, %v8894_v26  ;;  %v12227_v11 = vld [vmem:[#allocation13_spill] sm:$0xff] }
 0x18f   : > { %v1811_v5 = vsel %vm515_vm0, %v1809_v29, %v11898_v48  ;;  %v1913_v36 = vmul.f32 %v8527_v10, %v8894_v26  ;;  %v11899_v19 = vrot.slane %v12199_v33, 2  ;;  %v9020_v46 = vadd.f32 %v1906_v8, %v1902_v23  ;;  %v12225_v29 = vld [vmem:[#allocation17_spill] sm:$0xff] }
 0x190   : > { %v1892_v9 = vsel %vm12017_vm1, %v12218_v24, %v12217_v50  ;;  %v1289_v35 = vadd.f32 %v8145_v31, %v1285_v27  ;;  %v12220_v24 = vld [vmem:[#allocation18_spill] sm:$0xff]  ;;  %v1832_v48 = vrot.slane %v1824_v3, 2  ;;  %v9038_v8 = vadd.f32 %v1811_v5, %v1797_v41  ;;  %v12229_v5 = vld [vmem:[#allocation15_spill] sm:$0xff] }
 0x191   : > { %v1901_v56 = vadd.f32 %v1892_v9, %v8871_v21  ;;  %v614_v31 = vadd.f32 %v12221_v54, %v12220_v24  ;;  %v9031_v21 = vmul.f32 %v8470_v16, %v8894_v26  ;;  %v9033_v9 = vpop.permute.xlu1 %1790  ;;  %2533 = vrot.lane.b32.xlu0 %v11899_v19, %s7272_s13  ;;  %v9042_v23 = vmul.f32 %v8438_v53, %v8894_v26 }
 0x192   : > { %v9023_v50 = vmax.f32 %v1289_v35, 0.0  ;;  %12222 = vst [vmem:[#allocation38_spill] sm:$0xff] %v9033_v9  ;;  %12223 = vst [vmem:[#allocation42_spill] sm:$0xff] %v9038_v8  ;;  %v9046_v54 = vmul.f32 %v8446_v17, %v8894_v26  ;;  %v1921_v24 = vrot.slane %v1913_v36, 1  ;;  %v12226_v27 = vrot.slane %v12225_v29, 2 }
 0x193   : > { %v1909_v35 = vadd.f32 %v1905_v6, %v1901_v56  ;;  %v12228_v13 = vrot.slane %v12227_v11, 2  ;;  %v12230_v19 = vrot.slane %v12229_v5, 2  ;;  %v1796_v38 = vmul.f32 %v8938_v12, %v9033_v9  ;;  %v12232_v6 = vld [vmem:[#allocation20_spill] sm:$0xff] }
 0x194   : > { %12219 = vst [vmem:[#allocation35_spill] sm:$0xff] %v9023_v50  ;;  %v9049_v3 = vrot.slane %v9023_v50, 6  ;;  %v12231_v8 = vmov %v12226_v27  ;;  %v669_v11 = vmul.f32 %v8938_v12, %v12233_v63  ;;  %v12236_v4 = vrot.slane %v8949_v62, 2 }
 0x195   : > { %v632_v41 = vsel %vm12017_vm1, %v12228_v13, %v12226_v27  ;;  %v634_v25 = vsel %vm12017_vm1, %v12231_v8, %v12230_v19  ;;  %v9070_v13 = vmul.f32 %v8927_v52, %v9033_v9  ;;  %v12234_v27 = vld [vmem:[#allocation12_spill] sm:$0xff]  ;;  %v681_v19 = vmul.f32 %v8927_v52, %v12233_v63 }
 0x196   : > { %12224 = vst [vmem:[#allocation40_spill] sm:$0xff] %v9049_v3  ;;  %2748 = vrot.lane.b32.xlu1 %v9049_v3, %s11930_s30  ;;  %v641_v56 = vadd.f32 %v632_v41, %v614_v31  ;;  %v642_v36 = vadd.f32 %v634_v25, %v12232_v6  ;;  %v670_v29 = vmul.f32 %v8938_v12, %v12234_v27  ;;  %v12235_v31 = vld [vmem:[#allocation14_spill] sm:$0xff]  ;;  %s392_s30 = sand.u32 1, %s7255_s18  }
 0x197   : > { %v682_v8 = vmul.f32 %v8927_v52, %v12234_v27  ;;  %v9080_v25 = vmul.f32 %v8927_v52, %v12235_v31  ;;  %v708_v41 = vmul.f32 %v8945_v1, %v12233_v63  ;;  %v709_v6 = vmul.f32 %v8945_v1, %v12234_v27 }
 0x198   : > { %v673_v3 = vadd.f32 %v669_v11, %v641_v56  ;;  %v674_v50 = vadd.f32 %v670_v29, %v642_v36  ;;  %v689_v33 = vrot.slane %v681_v19, 1  ;;  %v9088_v14 = vmul.f32 %v8945_v1, %v12235_v31 }
 0x199   : > { %v690_v51 = vrot.slane %v682_v8, 1  ;;  %v9093_v56 = vsel %vm12017_vm1, %v1832_v48, %v12236_v4  ;;  %v11915_v55 = vrot.slane %v9080_v25, 1  ;;  %v717_v63 = vrot.slane %v709_v6, 2  ;;  %v9104_v4 = vpop.permute.xlu0 %1785 }
 0x19a   : > { %12237 = vst [vmem:[#allocation18_spill] sm:$0xff] %v9093_v56  ;;  %v716_v27 = vrot.slane %v708_v41, 2  ;;  %v12238_v19 = vrot.slane %v8961_v32, 1  ;;  %v1800_v61 = vadd.f32 %v1796_v38, %v8888_v0  ;;  %v9114_v29 = vmul.f32 %v8945_v1, %v9033_v9 }
 0x19b   : > { %v691_v36 = vsel %vm515_vm0, %v689_v33, %v690_v51  ;;  %v693_v48 = vsel %vm515_vm0, %v690_v51, %v11915_v55  ;;  %v1814_v33 = vrot.slane %v9070_v13, 1  ;;  %v9123_v38 = vmul.f32 %v8527_v10, %v9033_v9 }
 0x19c   : > { %v1923_v8 = vsel %vm515_vm0, %v1921_v24, %v12238_v19  ;;  %v700_v6 = vadd.f32 %v691_v36, %v673_v3  ;;  %v701_v41 = vadd.f32 %v693_v48, %v674_v50  ;;  %v718_v11 = vsel %vm12017_vm1, %v716_v27, %v717_v63  ;;  %v9143_v27 = vld [vmem:[%s11812_s2] ss:$0 sm:$0xff] }
 0x19d   : > { %v1908_v24 = vmul.f32 %v8521_v44, %v9033_v9  ;;  %v12239_v19 = vrot.slane %v9088_v14, 2  ;;  %v1932_v3 = vadd.f32 %v1923_v8, %v1909_v35  ;;  %v1803_v0 = vmul.f32 %v8927_v52, %v9104_v4 }
 0x19e   : > { %v727_v51 = vadd.f32 %v718_v11, %v700_v6  ;;  %v9129_v13 = vmul.f32 %v8470_v16, %v9033_v9  ;;  %v9133_v36 = vmul.f32 %v8438_v53, %v9033_v9  ;;  %v12242_v35 = vrot.slane %v8851_v45, 2 }
 0x19f   : > { %v720_v40 = vsel %vm12017_vm1, %v717_v63, %v12239_v19  ;;  %v12241_v63 = vrot.slane %v8832_v28, 2  ;;  %v1823_v8 = vadd.f32 %v1814_v33, %v1800_v61  ;;  %v1795_v6 = vmul.f32 %v8938_v12, %v9104_v4 }
 0x1a0   : > { %v728_v50 = vadd.f32 %v720_v40, %v701_v41  ;;  %12240 = vst [vmem:[#allocation19_spill] sm:$0xff] %v9133_v36  ;;  %v731_v40 = vadd.f32 %v9143_v27, %v727_v51  ;;  %v1837_v28 = vrot.slane %v9114_v29, 2  ;;  %v1912_v45 = vadd.f32 %v1908_v24, %v8901_v47 }
 0x1a1   : > { %v1764_v11 = vsel %vm12017_vm1, %v12242_v35, %v12241_v63  ;;  %v1826_v19 = vmul.f32 %v8945_v1, %v9104_v4  ;;  %v1926_v35 = vrot.slane %v9123_v38, 1  ;;  %v1812_v51 = vrot.slane %v1803_v0, 1 }
 0x1a2   : > { %v1771_v48 = vadd.f32 %v1764_v11, %v8912_v57  ;;  %v732_v41 = vadd.f32 %v9143_v27, %v728_v50  ;;  %v9154_v63 = vmax.f32 %v731_v40, 0.0  ;;  %v1915_v61 = vmul.f32 %v8527_v10, %v9104_v4  ;;  %v9159_v57 = vpop.permute.xlu1 %1966  ;;  %v9161_v11 = vpop.permute.xlu0 %1961 }
 0x1a3   : > { %v9169_v24 = vmul.f32 %v8446_v17, %v9033_v9  ;;  %v1846_v0 = vadd.f32 %v1837_v28, %v1823_v8  ;;  %v12245_v55 = vrot.slane %v8860_v15, 2  ;;  %v1835_v47 = vrot.slane %v1826_v19, 2 }
 0x1a4   : > { %12243 = vst [vmem:[#allocation17_spill] sm:$0xff] %v9154_v63  ;;  %v9163_v50 = vmax.f32 %v732_v41, 0.0  ;;  %v2448_v38 = vrot.slane %v9154_v63, 2  ;;  %2414 = vst.msk [vmem:[#allocation2] sm:$0xff] %vm2413_vm2, %v9154_v63  ;;  %v1799_v40 = vadd.f32 %v1795_v6, %v1771_v48  ;;  %v12246_v41 = vrot.slane %v8867_v42, 2 }
 0x1a5   : > { %v9185_v36 = vmul.f32 %v8927_v52, %v9159_v57  ;;  %v1987_v8 = vmul.f32 %v8927_v52, %v9161_v11  ;;  %v12247_v15 = vrot.slane %v8931_v59, 1  ;;  %v1924_v48 = vrot.slane %v1915_v61, 1 }
 0x1a6   : > { %12244 = vst [vmem:[#allocation13_spill] sm:$0xff] %v9163_v50  ;;  %v1896_v56 = vsel %vm12017_vm1, %v12246_v41, %v12245_v55  ;;  %v11922_v29 = vrot.slane %v9163_v50, 2  ;;  %2415 = vst.msk [vmem:[#allocation2 + $0x10] sm:$0xff] %vm2413_vm2, %v9163_v50  ;;  %v1907_v55 = vmul.f32 %v8521_v44, %v9104_v4  ;;  %v1815_v19 = vsel %vm515_vm0, %v1812_v51, %v1814_v33 }
 0x1a7   : > { %v1903_v9 = vadd.f32 %v1896_v56, %v8922_v58  ;;  %v1813_v42 = vsel %vm515_vm0, %v12247_v15, %v1812_v51  ;;  %v1935_v58 = vadd.f32 %v1926_v35, %v1912_v45  ;;  %v12248_v41 = vrot.slane %v8989_v60, 2 }
 0x1a8   : > { %v2450_v6 = vsel %vm12017_vm1, %v2448_v38, %v11922_v29  ;;  %v12249_v63 = vrot.slane %v9031_v21, 2  ;;  %v1850_v15 = vadd.f32 %v9143_v27, %v1846_v0  ;;  %v1938_v61 = vmul.f32 %v8470_v16, %v9104_v4  ;;  %v9218_v29 = vpop.permute.xlu1 %1976 }
 0x1a9   : > { %2455 = vrot.lane.b32.xlu1 %v2450_v6, %s7271_s26  ;;  %v1979_v45 = vmul.f32 %v8938_v12, %v9161_v11  ;;  %v1821_v38 = vadd.f32 %v1813_v42, %v8978_v2  ;;  %v12250_v33 = vrot.slane %v8949_v62, 2  ;;  %v11924_v21 = vrot.slane %v9185_v36, 1  ;;  %12252 = vst [vmem:[#allocation15_spill] sm:$0xff] %v9218_v29 }
 0x1aa   : > { %v1946_v59 = vsel %vm12017_vm1, %v12249_v63, %v12248_v41  ;;  %v1995_v63 = vrot.slane %v1987_v8, 1  ;;  %v1822_v41 = vadd.f32 %v1815_v19, %v1799_v40  ;;  %v1911_v6 = vadd.f32 %v1907_v55, %v1903_v9 }
 0x1ab   : > { %v1955_v50 = vadd.f32 %v1946_v59, %v1932_v3  ;;  %v1836_v51 = vsel %vm12017_vm1, %v12250_v33, %v1835_v47  ;;  %v12251_v0 = vrot.slane %v8961_v32, 1  ;;  %v12253_v3 = vld [vmem:[#allocation43_spill] sm:$0xff]  ;;  %v9223_v2 = vmul.f32 %v8945_v1, %v9159_v57 }
 0x1ac   : > { %v11923_v59 = vrot.slane %v12253_v3, 1  ;;  %v2010_v62 = vmul.f32 %v8945_v1, %v9161_v11  ;;  %v2495_v42 = vrot.slane %v8311_v30, 1  ;;  %v11926_v40 = vrot.slane %v8484_v20, 1 }
 0x1ad   : > { %v1925_v56 = vsel %vm515_vm0, %v12251_v0, %v1924_v48  ;;  %v1838_v9 = vsel %vm12017_vm1, %v1835_v47, %v1837_v28  ;;  %v1927_v32 = vsel %vm515_vm0, %v1924_v48, %v1926_v35  ;;  %v1947_v8 = vrot.slane %v1938_v61, 2 }
 0x1ae   : > { %v1983_v55 = vadd.f32 %v1979_v45, %v1955_v50  ;;  %2580 = vrot.lane.b32.xlu0 %v11923_v59, %s7275_s15  ;;  %v1997_v19 = vsel %vm515_vm0, %v1995_v63, %v11924_v21  ;;  %v1982_v33 = vmul.f32 %v8938_v12, %v9218_v29  ;;  %v1990_v0 = vmul.f32 %v8927_v52, %v9218_v29  ;;  %v9247_v45 = vpop.permute.xlu0 %1971 }
 0x1af   : > { %v2497_v28 = vsel %vm515_vm0, %v2495_v42, %v11926_v40  ;;  %v12254_v35 = vrot.slane %v9129_v13, 2  ;;  %v1844_v47 = vadd.f32 %v1836_v51, %v1821_v38  ;;  %v1845_v48 = vadd.f32 %v1838_v9, %v1822_v41  ;;  %v12268_v40 = vld [vmem:[#allocation26_spill] sm:$0xff] }
 0x1b0   : > { %v1933_v61 = vadd.f32 %v1925_v56, %v9020_v46  ;;  %2502 = vrot.lane.b32.xlu1 %v2497_v28, %s7273_s16  ;;  %v9250_v63 = vmax.f32 %v1850_v15, 0.0  ;;  %v1934_v59 = vadd.f32 %v1927_v32, %v1911_v6  ;;  %v2019_v21 = vrot.slane %v9223_v2, 2 }
 0x1b1   : > { %v1958_v50 = vadd.f32 %v12254_v35, %v1935_v58  ;;  %v2018_v3 = vrot.slane %v2010_v62, 2  ;;  %v9255_v42 = vmul.f32 %v8438_v53, %v9104_v4  ;;  %v9259_v58 = vmul.f32 %v8446_v17, %v9104_v4 }
 0x1b2   : > { %12255 = vst [vmem:[#allocation20_spill] sm:$0xff] %v9250_v63  ;;  %v1980_v46 = vmul.f32 %v8938_v12, %v9159_v57  ;;  %v2006_v56 = vadd.f32 %v1997_v19, %v1983_v55  ;;  %v12256_v38 = vrot.slane %v8989_v60, 2  ;;  %v2000_v41 = vrot.slane %v1990_v0, 1 }
 0x1b3   : > { %v1986_v51 = vadd.f32 %v1982_v33, %v1958_v50  ;;  %v1989_v6 = vmul.f32 %v8927_v52, %v9247_v45  ;;  %v1848_v2 = vadd.f32 %v9143_v27, %v1844_v47  ;;  %v1849_v62 = vadd.f32 %v9143_v27, %v1845_v48 }
 0x1b4   : > { %v1948_v15 = vsel %vm12017_vm1, %v12256_v38, %v1947_v8  ;;  %v12257_v32 = vmov %v12254_v35  ;;  %v2020_v55 = vsel %vm12017_vm1, %v2018_v3, %v2019_v21  ;;  %v2013_v60 = vmul.f32 %v8945_v1, %v9218_v29 }
 0x1b5   : > { %v1956_v9 = vadd.f32 %v1948_v15, %v1933_v61  ;;  %v1950_v28 = vsel %vm12017_vm1, %v1947_v8, %v12257_v32  ;;  %v12258_v33 = vrot.slane %v8997_v7, 1  ;;  %v12259_v0 = vrot.slane %v9042_v23, 1  ;;  %v2148_v8 = vpop.permute.xlu1 %2147 }
 0x1b6   : > { %v1957_v19 = vadd.f32 %v1950_v28, %v1934_v59  ;;  %v2029_v50 = vadd.f32 %v2020_v55, %v2006_v56  ;;  %v1981_v47 = vmul.f32 %v8938_v12, %v9247_v45  ;;  %v2012_v13 = vmul.f32 %v8945_v1, %v9247_v45  ;;  %v12269_v59 = vld [vmem:[#allocation29_spill] sm:$0xff] }
 0x1b7   : > { %v2055_v35 = vsel %vm515_vm0, %v12259_v0, %v12258_v33  ;;  %v2041_v3 = vmul.f32 %v8479_v39, %v8894_v26  ;;  %v2009_v48 = vadd.f32 %v2000_v41, %v1986_v51  ;;  %v1998_v61 = vrot.slane %v1989_v6, 1 }
 0x1b8   : > { %v9289_v38 = vmax.f32 %v1848_v2, 0.0  ;;  %v9291_v23 = vmax.f32 %v1849_v62, 0.0  ;;  %v1984_v56 = vadd.f32 %v1980_v46, %v1956_v9  ;;  %v2023_v32 = vrot.slane %v2013_v60, 2 }
 0x1b9   : > { %v2064_v15 = vadd.f32 %v2055_v35, %v2041_v3  ;;  %v2099_v28 = vmul.f32 %v8527_v10, %v9161_v11  ;;  %v9297_v55 = vmul.f32 %v8527_v10, %v9159_v57  ;;  %v9301_v26 = vmul.f32 %v8438_v53, %v9247_v45 }
 0x1ba   : > { %12260 = vst [vmem:[#allocation11_spill] sm:$0xff] %v9291_v23  ;;  %v2033_v51 = vadd.f32 %v9143_v27, %v2029_v50  ;;  %v1985_v6 = vadd.f32 %v1981_v47, %v1957_v19  ;;  %v2021_v2 = vrot.slane %v2012_v13, 2  ;;  %v9306_v46 = vmul.f32 %v8438_v53, %v9218_v29 }
 0x1bb   : > { %v2032_v62 = vadd.f32 %v2023_v32, %v2009_v48  ;;  %v12262_v9 = vrot.slane %v9185_v36, 1  ;;  %v12263_v33 = vrot.slane %v9001_v43, 2  ;;  %v12264_v0 = vrot.slane %v9046_v54, 2 }
 0x1bc   : > { %12261 = vst [vmem:[#allocation12_spill] sm:$0xff] %v9306_v46  ;;  %v11928_v3 = vrot.slane %v9301_v26, 1  ;;  %v2091_v19 = vmul.f32 %v8521_v44, %v9161_v11  ;;  %v11927_v53 = vrot.slane %v9306_v46, 1  ;;  %v9322_v47 = vmul.f32 %v8446_v17, %v9247_v45 }
 0x1bd   : > { %v1999_v60 = vsel %vm515_vm0, %v12262_v9, %v1998_v61  ;;  %v2078_v35 = vsel %vm12017_vm1, %v12264_v0, %v12263_v33  ;;  %v2107_v36 = vrot.slane %v2099_v28, 1  ;;  %v11929_v13 = vrot.slane %v9297_v55, 1 }
 0x1be   : > { %v2087_v50 = vadd.f32 %v2078_v35, %v2064_v15  ;;  %12265 = vst [vmem:[#allocation14_spill] sm:$0xff] %v9322_v47  ;;  %v2229_v54 = vmul.f32 %v8479_v39, %v9247_v45  ;;  %v9329_v48 = vmul.f32 %v8446_v17, %v9218_v29  ;;  %v2001_v15 = vsel %vm515_vm0, %v1998_v61, %v2000_v41 }
 0x1bf   : > { %v9333_v9 = vsel %vm12017_vm1, %v2019_v21, %v2021_v2  ;;  %v2245_v28 = vsel %vm515_vm0, %v11928_v3, %v11927_v53  ;;  %v2122_v39 = vmul.f32 %v8470_v16, %v9161_v11  ;;  %v9345_v17 = vmul.f32 %v8470_v16, %v9159_v57  ;;  %v9357_v16 = vpop.permute.xlu0 %2152 }
 0x1c0   : > { %12266 = vst [vmem:[#allocation50_spill] sm:$0xff] %v9329_v48  ;;  %12267 = vst [vmem:[#allocation51_spill] sm:$0xff] %v9333_v9  ;;  %v2252_v0 = vadd.f32 %v2245_v28, %v2229_v54  ;;  %v11932_v41 = vrot.slane %v9329_v48, 2  ;;  %v2036_v21 = vadd.f32 %v9143_v27, %v2032_v62  ;;  %v2095_v61 = vadd.f32 %v2091_v19, %v2087_v50  ;;  %v12292_v48 = vld [vmem:[#allocation19_spill] sm:$0xff] }
 0x1c1   : > { %v11933_v35 = vrot.slane %v8311_v30, 7  ;;  %v616_v53 = vadd.f32 %v12269_v59, %v12268_v40  ;;  %v9352_v3 = vmax.f32 %v2033_v51, 0.0  ;;  %v2109_v33 = vsel %vm515_vm0, %v2107_v36, %v11929_v13 }
 0x1c2   : > { %v12271_v54 = vrot.slane %v9322_v47, 2  ;;  %v12272_v50 = vrot.slane %v12188_v22, 2  ;;  %v12273_v19 = vrot.slane %v12229_v5, 2  ;;  %v9369_v59 = vadd.f32 %v1999_v60, %v1984_v56 }
 0x1c3   : > { %12270 = vst [vmem:[#allocation26_spill] sm:$0xff] %v9352_v3  ;;  %2633 = vrot.lane.b32.xlu0 %v11933_v35, %s7274_s29  ;;  %v671_v28 = vmul.f32 %v8938_v12, %v12235_v31  ;;  %v9378_v13 = vadd.f32 %v2001_v15, %v1985_v6  ;;  %v9381_v22 = vsel %vm12017_vm1, %v2021_v2, %v2023_v32  ;;  %v2130_v5 = vrot.slane %v2122_v39, 2 }
 0x1c4   : > { %v2268_v62 = vsel %vm12017_vm1, %v12271_v54, %v11932_v41  ;;  %v636_v40 = vsel %vm12017_vm1, %v12273_v19, %v12272_v50  ;;  %12274 = vst [vmem:[#allocation29_spill] sm:$0xff] %v9369_v59  ;;  %12276 = vst [vmem:[#allocation53_spill] sm:$0xff] %v9381_v22  ;;  %v11934_v54 = vrot.slane %v9345_v17, 2  ;;  %v9384_v56 = vmax.f32 %v2036_v21, 0.0 }
 0x1c5   : > { %v9371_v51 = vadd.f32 %v2268_v62, %v2252_v0  ;;  %v643_v36 = vadd.f32 %v636_v40, %v616_v53  ;;  %12275 = vst [vmem:[#allocation52_spill] sm:$0xff] %v9378_v13  ;;  %v2118_v60 = vadd.f32 %v2109_v33, %v2095_v61  ;;  %v2173_v0 = vmul.f32 %v8927_v52, %v2148_v8 }
 0x1c6   : > { %v2165_v50 = vmul.f32 %v8938_v12, %v2148_v8  ;;  %v9389_v53 = vmul.f32 %v8945_v1, %v2148_v8  ;;  %v9392_v31 = vmul.f32 %v8527_v10, %v2148_v8  ;;  %v12277_v32 = vrot.slane %v8792_v37, 1  ;;  %3506 = vst.msk [vmem:[#allocation2 + $0x108] sm:$0xfc] %vm2619_vm7, %v9352_v3 }
 0x1c7   : > { %v675_v62 = vadd.f32 %v671_v28, %v643_v36  ;;  %v12278_v6 = vrot.slane %v9080_v25, 1  ;;  %v12279_v15 = vrot.slane %v9255_v42, 1  ;;  %v12280_v33 = vrot.slane %v8997_v7, 1  ;;  %v9420_v7 = vld [vmem:[%s11811_s1] ss:$0 sm:$0xff]  ;;  %v9424_v36 = vpop.permute.xlu0 %2157 }
 0x1c8   : > { %v9406_v21 = vmul.f32 %v8927_v52, %v9357_v16  ;;  %v9409_v19 = vrot.slane %v8413_v34, 6  ;;  %v2132_v37 = vsel %vm12017_vm1, %v2130_v5, %v11934_v54  ;;  %v9415_v25 = vmul.f32 %v8521_v44, %v2148_v8  ;;  %3509 = vst.msk [vmem:[#allocation2 + $0x138] sm:$0xf] %vm2623_vm15, %v9384_v56 }
 0x1c9   : > { %v695_v2 = vsel %vm515_vm0, %v12278_v6, %v12277_v32  ;;  %v2057_v39 = vsel %vm515_vm0, %v12280_v33, %v12279_v15  ;;  %v2042_v40 = vmul.f32 %v9420_v7, %v8892_v18  ;;  %v12282_v28 = vrot.slane %v8796_v49, 2 }
 0x1ca   : > { %12281 = vst [vmem:[#allocation54_spill] sm:$0xff] %v9406_v21  ;;  %v702_v61 = vadd.f32 %v695_v2, %v675_v62  ;;  %v12283_v62 = vrot.slane %v9088_v14, 2  ;;  %v2141_v5 = vadd.f32 %v2132_v37, %v2118_v60  ;;  %v2181_v6 = vrot.slane %v2173_v0, 1  ;;  %2676 = vrot.lane.b32.xlu0 %v9409_v19, %s12284_s25  ;;  %v9442_v14 = vld [vmem:[%s11811_s1 + $0x5] ss:$0 sm:$0xff] }
 0x1cb   : > { %v9433_v44 = vmul.f32 %v8527_v10, %v9247_v45  ;;  %v2204_v18 = vrot.slane %v9389_v53, 2  ;;  %v2065_v33 = vadd.f32 %v2057_v39, %v2042_v40  ;;  %v9446_v49 = vmul.f32 %v9442_v14, %v9247_v45  ;;  %v9461_v37 = vld [vmem:[%s11811_s1 + $0x3] ss:$0 sm:$0xff] }
 0x1cc   : > { %v722_v32 = vsel %vm12017_vm1, %v12283_v62, %v12282_v28  ;;  %v9449_v10 = vmul.f32 %v9442_v14, %v2148_v8  ;;  %v12286_v60 = vrot.slane %v9259_v58, 2  ;;  %v12287_v0 = vrot.slane %v9001_v43, 2  ;;  %v7160_v43 = vld [vmem:[%s11811_s1 + $0x1] ss:$0 sm:$0xff] }
 0x1cd   : > { %v729_v2 = vadd.f32 %v722_v32, %v702_v61  ;;  %v11935_v39 = vrot.slane %v9406_v21, 1  ;;  %v2092_v40 = vmul.f32 %v9461_v37, %v9159_v57  ;;  %v9467_v8 = vmul.f32 %v8945_v1, %v9357_v16 }
 0x1ce   : > { %12285 = vst [vmem:[#allocation55_spill] sm:$0xff] %v9449_v10  ;;  %v2080_v53 = vsel %vm12017_vm1, %v12287_v0, %v12286_v60  ;;  %v2231_v28 = vmul.f32 %v7160_v43, %v9161_v11  ;;  %v9474_v62 = vmul.f32 %v7160_v43, %v9159_v57  ;;  %v2169_v32 = vadd.f32 %v2165_v50, %v2141_v5  ;;  %v9489_v43 = vpop.permute.xlu0 %2162  ;;  %v9497_v5 = vld [vmem:[%s11811_s1 + $0x4] ss:$0 sm:$0xff]  ;;  %v12320_v10 = vld [vmem:[#allocation36_spill] sm:$0xff] }
 0x1cf   : > { %v733_v61 = vadd.f32 %v9143_v27, %v729_v2  ;;  %12288 = vst [vmem:[#allocation56_spill] sm:$0xff] %v9467_v8  ;;  %v11938_v0 = vrot.slane %v8413_v34, 7  ;;  %v2088_v41 = vadd.f32 %v2080_v53, %v2065_v33  ;;  %v9483_v15 = vmul.f32 %v8938_v12, %v9357_v16  ;;  %v12291_v53 = vld [vmem:[#allocation13_spill] sm:$0xff] }
 0x1d0   : > { %v9487_v54 = vmul.f32 %v9461_v37, %v9357_v16  ;;  %v2183_v50 = vsel %vm515_vm0, %v2181_v6, %v11935_v39  ;;  %v9501_v33 = vmul.f32 %v9497_v5, %v9357_v16  ;;  %v2239_v39 = vrot.slane %v2231_v28, 1 }
 0x1d1   : > { %v9477_v60 = vmax.f32 %v733_v61, 0.0  ;;  %v2424_v61 = vrot.slane %v12291_v53, 1  ;;  %2701 = vrot.lane.b32.xlu0 %v11938_v0, %s7273_s16  ;;  %v12293_v46 = vrot.slane %v12292_v48, 1  ;;  %v12294_v22 = vrot.slane %v9255_v42, 1 }
 0x1d2   : > { %12289 = vst [vmem:[#allocation57_spill] sm:$0xff] %v9487_v54  ;;  %12290 = vst [vmem:[#allocation58_spill] sm:$0xff] %v9501_v33  ;;  %v12295_v35 = vrot.slane %v9433_v44, 1  ;;  %v12296_v9 = vrot.slane %v9297_v55, 1  ;;  %v2043_v0 = vmul.f32 %v9420_v7, %v9104_v4  ;;  %v2096_v21 = vadd.f32 %v2092_v40, %v2088_v41  ;;  %v7162_v55 = vld [vmem:[%s11811_s1 + $0x2] ss:$0 sm:$0xff]  ;;  %v9552_v4 = vpop.permute.xlu0 %2338 }
 0x1d3   : > { %2416 = vst.msk [vmem:[#allocation2 + $0x20] sm:$0xff] %vm2413_vm2, %v9477_v60  ;;  %v2059_v13 = vsel %vm515_vm0, %v12294_v22, %v12293_v46  ;;  %v12297_v6 = vrot.slane %v9477_v60, 1  ;;  %v11943_v2 = vrot.slane %v9477_v60, 2  ;;  %v2192_v54 = vadd.f32 %v2183_v50, %v2169_v32  ;;  %v12300_v41 = vld [vmem:[#allocation17_spill] sm:$0xff] }
 0x1d4   : > { %v2111_v59 = vsel %vm515_vm0, %v12296_v9, %v12295_v35  ;;  %v9530_v42 = vmul.f32 %v9442_v14, %v9357_v16  ;;  %v2254_v46 = vmul.f32 %v7162_v55, %v9161_v11  ;;  %v9539_v9 = vmul.f32 %v7162_v55, %v9159_v57  ;;  %12303 = vst [vmem:[#allocation17_spill] sm:$0xff] %v9552_v4 }
 0x1d5   : > { %v2427_v28 = vsel %vm515_vm0, %v2424_v61, %v12297_v6  ;;  %v2066_v35 = vadd.f32 %v2059_v13, %v2043_v0  ;;  %v2423_v22 = vrot.slane %v12300_v41, 1  ;;  %v2119_v40 = vadd.f32 %v2111_v59, %v2096_v21  ;;  %v12305_v21 = vld [vmem:[#allocation34_spill] sm:$0xff] }
 0x1d6   : > { %12298 = vst [vmem:[#allocation13_spill] sm:$0xff] %v9530_v42  ;;  %2432 = vrot.lane.b32.xlu1 %v2427_v28, %s7274_s29  ;;  %12299 = vst [vmem:[#allocation19_spill] sm:$0xff] %v9539_v9  ;;  %v12301_v16 = vrot.slane %v9467_v8, 2  ;;  %v12302_v50 = vrot.slane %v9474_v62, 1  ;;  %v9550_v28 = vmul.f32 %v9497_v5, %v9218_v29  ;;  %v12304_v13 = vrot.slane %v12291_v53, 2 }
 0x1d7   : > { %v11942_v0 = vrot.slane %v12305_v21, 1  ;;  %v2521_v55 = vrot.slane %v8484_v20, 2  ;;  %v12307_v8 = vrot.slane %v9259_v58, 2  ;;  %v11946_v53 = vrot.slane %v9539_v9, 2 }
 0x1d8   : > { %v2206_v32 = vsel %vm12017_vm1, %v2204_v18, %v12301_v16  ;;  %v2241_v6 = vsel %vm515_vm0, %v2239_v39, %v12302_v50  ;;  %v2452_v59 = vsel %vm12017_vm1, %v12304_v13, %v11943_v2  ;;  %v2425_v18 = vsel %vm515_vm0, %v2423_v22, %v2424_v61  ;;  %v12318_v2 = vld [vmem:[#allocation32_spill] sm:$0xff] }
 0x1d9   : > { %v2215_v41 = vadd.f32 %v2206_v32, %v2192_v54  ;;  %v2227_v39 = vmul.f32 %v9420_v7, %v9161_v11  ;;  %v2262_v16 = vrot.slane %v2254_v46, 2  ;;  %v12306_v50 = vrot.slane %v9169_v24, 2  ;;  %2430 = vrot.lane.b32.xlu0 %v2425_v18, %s7274_s29 }
 0x1da   : > { %2457 = vrot.lane.b32.xlu1 %v2452_v59, %s7271_s26  ;;  %v2093_v54 = vmul.f32 %v9461_v37, %v9247_v45  ;;  %v2520_v22 = vrot.slane %v8311_v30, 2  ;;  %v12308_v11 = vrot.slane %v9446_v49, 2  ;;  %v12309_v46 = vrot.slane %v9345_v17, 2 }
 0x1db   : > { %v2082_v4 = vsel %vm12017_vm1, %v12307_v8, %v12306_v50  ;;  %v2250_v32 = vadd.f32 %v2241_v6, %v2227_v39  ;;  %v12310_v8 = vrot.slane %v9501_v33, 1  ;;  %v12311_v13 = vrot.slane %v9392_v31, 1  ;;  %v12313_v39 = vld [vmem:[#allocation24_spill] sm:$0xff] }
 0x1dc   : > { %v2089_v61 = vadd.f32 %v2082_v4, %v2066_v35  ;;  %v2134_v58 = vsel %vm12017_vm1, %v12309_v46, %v12308_v11  ;;  %v11947_v4 = vrot.slane %v9550_v28, 1  ;;  %v9588_v35 = vpop.permute.xlu0 %2483  ;;  %v12312_v18 = vrot.slane %v8484_v20, 1 }
 0x1dd   : > { %v9585_v59 = vsel %vm515_vm0, %v12311_v13, %v12310_v8  ;;  %v2142_v45 = vadd.f32 %v2134_v58, %v2119_v40  ;;  %v2522_v6 = vsel %vm12017_vm1, %v2520_v22, %v2521_v55  ;;  %v2568_v50 = vrot.slane %v12313_v39, 1  ;;  %v12315_v13 = vld [vmem:[#allocation45_spill] sm:$0xff] }
 0x1de   : > { %v2499_v17 = vsel %vm515_vm0, %v12312_v18, %v11942_v0  ;;  %v2219_v31 = vadd.f32 %v9143_v27, %v2215_v41  ;;  %v9602_v8 = vmul.f32 %v9442_v14, %v9218_v29  ;;  %2527 = vrot.lane.b32.xlu0 %v2522_v6, %s7272_s13  ;;  %v2264_v40 = vsel %vm12017_vm1, %v2262_v16, %v11946_v53  ;;  %v12314_v41 = vld [vmem:[#allocation41_spill] sm:$0xff]  ;;  %v12322_v53 = vld [vmem:[#allocation30_spill] sm:$0xff] }
 0x1df   : > { %2504 = vrot.lane.b32.xlu1 %v2499_v17, %s7273_s16  ;;  %v2097_v22 = vadd.f32 %v2093_v54, %v2089_v61  ;;  %v2567_v58 = vrot.slane %v8413_v34, 1  ;;  %v1263_v18 = vadd.f32 %v12315_v13, %v12314_v41  ;;  %v2273_v11 = vadd.f32 %v2264_v40, %v2250_v32  ;;  %v12317_v17 = vld [vmem:[#allocation38_spill] sm:$0xff]  ;;  %v9624_v54 = vpop.permute.xlu1 %2333  ;;  %2418 = vst.msk [vmem:[#allocation2 + $0x30] sm:$0x3] %vm2417_vm3, %v12322_v53 }
 0x1e0   : > { %v12316_v46 = vrot.slane %v9433_v44, 1  ;;  %v2044_v6 = vmul.f32 %v9420_v7, %v12317_v17  ;;  %v12319_v33 = vrot.slane %v12318_v2, 2  ;;  %v12321_v16 = vrot.slane %v12320_v10, 2  ;;  %v12332_v17 = vld [vmem:[#allocation22_spill] sm:$0xff] }
 0x1e1   : > { %v12323_v41 = vrot.slane %v12322_v53, 1  ;;  %v12324_v32 = vrot.slane %v9477_v60, 1  ;;  %v2569_v44 = vsel %vm515_vm0, %v2567_v58, %v2568_v50  ;;  %v2167_v10 = vmul.f32 %v8938_v12, %v9424_v36 }
 0x1e2   : > { %v2113_v0 = vsel %vm515_vm0, %v12316_v46, %v11947_v4  ;;  %v1278_v61 = vsel %vm12017_vm1, %v12321_v16, %v12319_v33  ;;  %v2523_v46 = vrot.slane %v12305_v21, 2  ;;  %v12325_v2 = vrot.slane %v12292_v48, 1  ;;  %2574 = vrot.lane.b32.xlu0 %v2569_v44, %s7275_s15  ;;  %v12326_v16 = vld [vmem:[#allocation25_spill] sm:$0xff] }
 0x1e3   : > { %v2429_v40 = vsel %vm515_vm0, %v12324_v32, %v12323_v41  ;;  %v1286_v13 = vadd.f32 %v1278_v61, %v1263_v18  ;;  %v12327_v4 = vld [vmem:[#allocation21_spill] sm:$0xff]  ;;  %v9642_v32 = vpop.permute.xlu0 %2477  ;;  %v2120_v58 = vadd.f32 %v2113_v0, %v2097_v22  ;;  %v9646_v18 = vmul.f32 %v8927_v52, %v9424_v36 }
 0x1e4   : > { %v2067_v33 = vadd.f32 %v12325_v2, %v2044_v6  ;;  %2434 = vrot.lane.b32.xlu1 %v2429_v40, %s7274_s29  ;;  %v1287_v41 = vadd.f32 %v12327_v4, %v12326_v16  ;;  %12328 = vst [vmem:[#allocation34_spill] sm:$0xff] %v9642_v32  ;;  %v9650_v61 = vmul.f32 %v8927_v52, %v9489_v43  ;;  %v12329_v40 = vrot.slane %v12322_v53, 2  ;;  %v12331_v2 = vld [vmem:[#allocation37_spill] sm:$0xff]  ;;  %v12333_v32 = vld [vmem:[#allocation23_spill] sm:$0xff] }
 0x1e5   : > { %v1290_v48 = vadd.f32 %v9143_v27, %v1286_v13  ;;  %v9655_v6 = vmul.f32 %v8945_v1, %v9424_v36  ;;  %v2094_v4 = vmul.f32 %v9461_v37, %v9218_v29  ;;  %v12330_v0 = vrot.slane %v9477_v60, 2  ;;  %v3925_v53 = vld [vmem:[%s11813_s3 + $0x8] sm:$0xff] }
 0x1e6   : > { %v1291_v44 = vadd.f32 %v9143_v27, %v1287_v41  ;;  %v2524_v52 = vsel %vm12017_vm1, %v2521_v55, %v2523_v46  ;;  %v11956_v16 = vrot.slane %v12331_v2, 1  ;;  %v1471_v42 = vadd.f32 %v12333_v32, %v12332_v17  ;;  %v9686_v32 = vpop.permute.xlu1 %2343 }
 0x1e7   : > { %v2454_v22 = vsel %vm12017_vm1, %v12330_v0, %v12329_v40  ;;  %v9667_v13 = vmax.f32 %v1290_v48, 0.0  ;;  %v12334_v9 = vrot.slane %v9602_v8, 2  ;;  %v12335_v29 = vrot.slane %v9446_v49, 2  ;;  %2529 = vrot.lane.b32.xlu0 %v2524_v52, %s7272_s13  ;;  %v9706_v40 = vpop.permute.xlu0 %2549  ;;  %v12338_v0 = vld [vmem:[#allocation39_spill] sm:$0xff] }
 0x1e8   : > { %v9678_v60 = vmul.f32 %v9497_v5, %v9424_v36  ;;  %v12336_v41 = vrot.slane %v9169_v24, 2  ;;  %2459 = vrot.lane.b32.xlu1 %v2454_v22, %s7271_s26  ;;  %v9684_v48 = vmax.f32 %v1291_v44, 0.0  ;;  %v11954_v49 = vrot.slane %v9650_v61, 1  ;;  %12337 = vst [vmem:[#allocation24_spill] sm:$0xff] %v9706_v40 }
 0x1e9   : > { %v2136_v47 = vsel %vm12017_vm1, %v12335_v29, %v12334_v9  ;;  %v9691_v29 = vmul.f32 %v8945_v1, %v9489_v43  ;;  %2792 = vst.msk [vmem:[#allocation2 + $0x48] sm:$0xff] %vm2413_vm2, %v9667_v13  ;;  %v1475_v24 = vadd.f32 %v9143_v27, %v1471_v42  ;;  %v9697_v9 = vadd.f32 %v9483_v15, %v2142_v45 }
 0x1ea   : > { %v2090_v55 = vadd.f32 %v12336_v41, %v2067_v33  ;;  %v2143_v17 = vadd.f32 %v2136_v47, %v2120_v58  ;;  %v9699_v33 = vmax.f32 %v2219_v31, 0.0  ;;  %v9702_v47 = vadd.f32 %v9415_v25, %v2273_v11  ;;  %2793 = vst.msk [vmem:[#allocation2 + $0x58] sm:$0xff] %vm2413_vm2, %v9684_v48  ;;  %v9745_v41 = vpop.permute.xlu1 %2555 }
 0x1eb   : > { %v11953_v1 = vrot.slane %v9646_v18, 1  ;;  %v12339_v22 = vrot.slane %v12338_v0, 1  ;;  %v12340_v42 = vrot.slane %v12305_v21, 1  ;;  %v2571_v45 = vsel %vm515_vm0, %v2568_v50, %v11956_v16 }
 0x1ec   : > { %v2098_v58 = vadd.f32 %v2094_v4, %v2090_v55  ;;  %v9717_v25 = vmax.f32 %v1475_v24, 0.0  ;;  %v9722_v11 = vmul.f32 %v9461_v37, %v9424_v36  ;;  %v9727_v44 = vmul.f32 %v9442_v14, %v9424_v36  ;;  %2576 = vrot.lane.b32.xlu0 %v2571_v45, %s7275_s15  ;;  %v12343_v24 = vld [vmem:[#allocation28_spill] sm:$0xff]  ;;  %v12346_v4 = vld [vmem:[#allocation43_spill] sm:$0xff] }
 0x1ed   : > { %v2501_v15 = vsel %vm515_vm0, %v12340_v42, %v12339_v22  ;;  %v9731_v52 = vadd.f32 %v2167_v10, %v2143_v17  ;;  %v9735_v50 = vmul.f32 %v8938_v12, %v9489_v43  ;;  %v9742_v37 = vsel %vm515_vm0, %v11953_v1, %v11954_v49  ;;  %v12342_v17 = vld [vmem:[#allocation35_spill] sm:$0xff]  ;;  %v12344_v22 = vld [vmem:[#allocation46_spill] sm:$0xff] }
 0x1ee   : > { %2506 = vrot.lane.b32.xlu1 %v2501_v15, %s7273_s16  ;;  %3184 = vst.msk [vmem:[#allocation2 + $0xd0] sm:$0xff] %vm2413_vm2, %v9717_v25  ;;  %v12341_v10 = vrot.slane %v9550_v28, 1  ;;  %v11955_v12 = vrot.slane %v12342_v17, 7  ;;  %v1472_v42 = vadd.f32 %v12344_v22, %v12343_v24  ;;  %v12345_v15 = vrot.slane %v12338_v0, 2  ;;  %v9766_v28 = vpop.permute.xlu0 %2551  ;;  %v3924_v24 = vld [vmem:[%s11813_s3] sm:$0xff] }
 0x1ef   : > { %v2595_v1 = vrot.slane %v12331_v2, 2  ;;  %v2597_v49 = vrot.slane %v12346_v4, 2  ;;  %v11957_v31 = vrot.slane %v9289_v38, 2  ;;  %12347 = vst [vmem:[#allocation41_spill] sm:$0xff] %v9766_v28  ;;  %v12358_v40 = vmov 0.0|0.0  }
 0x1f0   : > { %v2121_v55 = vadd.f32 %v12341_v10, %v2098_v58  ;;  %v2526_v45 = vsel %vm12017_vm1, %v2523_v46, %v12345_v15  ;;  %2773 = vrot.lane.b32.xlu0 %v11955_v12, %s7275_s15  ;;  %v1476_v46 = vadd.f32 %v9143_v27, %v1472_v42  ;;  %v3328_v58 = vrot.slane %v9291_v23, 2  ;;  %v5885_v15 = vld [vmem:[%s7428_s12 + $0x178] sm:$0x3f]  ;;  %2791 = vst.msk [vmem:[#allocation2 + $0x38] sm:$0xfc] %vm2619_vm7, %v12342_v17 }
 0x1f1   : > { %v3330_v10 = vrot.slane %v9250_v63, 2  ;;  %v12348_v12 = vrot.slane %v12313_v39, 2  ;;  %v2598_v36 = vsel %vm12017_vm1, %v2595_v1, %v2597_v49  ;;  %2606 = vst.msk [vmem:[#allocation2 + $0x38] sm:$0x3] %vm2417_vm3, %v2597_v49  ;;  %v3927_v49 = vld [vmem:[%s11813_s3 + $0x18] sm:$0xff]  ;;  %v12382_v63 = vrot.slane %v9667_v13, 7 }
 0x1f2   : > { %2531 = vrot.lane.b32.xlu1 %v2526_v45, %s7272_s13  ;;  %v9785_v16 = vmax.f32 %v1476_v46, 0.0  ;;  %2605 = vst.msk [vmem:[#allocation2 + $0x28] sm:$0xff] %vm2413_vm2, %v2598_v36  ;;  %v3329_v28 = vsel %vm12017_vm1, %v11957_v31, %v3328_v58  ;;  %v12349_v36 = vrot.slane %v12346_v4, 1  ;;  %v9805_v31 = vpop.permute.xlu1 %2479  ;;  %v11960_v45 = vrot.slane %v9684_v48, 4 }
 0x1f3   : > { %v2596_v42 = vsel %vm12017_vm1, %v12348_v12, %v2595_v1  ;;  %v3331_v22 = vsel %vm12017_vm1, %v3328_v58, %v3330_v10  ;;  %3339 = vst.msk [vmem:[#allocation2 + $0x108] sm:$0x3] %vm2417_vm3, %v3330_v10  ;;  %v3926_v1 = vld [vmem:[%s11813_s3 + $0x10] sm:$0xff]  ;;  %v12350_v12 = vrot.slane %v12331_v2, 1  ;;  %12351 = vst [vmem:[#allocation45_spill] sm:$0xff] %v9805_v31  ;;  %v11958_v10 = vmov 0.0|0.0  }
 0x1f4   : > { %2604 = vst.msk [vmem:[#allocation2 + $0x18] sm:$0xff] %vm2413_vm2, %v2596_v42  ;;  %3338 = vst.msk [vmem:[#allocation2 + $0xf8] sm:$0xff] %vm2413_vm2, %v3331_v22  ;;  %6682 = vmatprep.subr.bf16.mxu0 %v11958_v10  ;;  %v6683_v42 = vpack.c.bf16 %v3925_v53, %v3924_v24  ;;  %6805 = vmatprep.subr.bf16.mxu1 %v11958_v10  ;;  %v11961_v58 = vrot.slane %v9717_v25, 5  ;;  %v12353_v24 = vrot.slane %v9667_v13, 4  ;;  %v9830_v10 = vpop.permute.xlu0 %2553  ;;  %v12383_v23 = vrot.slane %v12342_v17, 7 }
 0x1f5   : > { %v2573_v46 = vsel %vm515_vm0, %v12350_v12, %v12349_v36  ;;  %3337 = vst.msk [vmem:[#allocation2 + $0xe8] sm:$0xff] %vm2413_vm2, %v3329_v28  ;;  %2348 = vperm.xlu0 %7145, %v5885_v15   ;;  %v12352_v36 = vld [vmem:[#allocation44_spill] sm:$0xff]  ;;  %3185 = vst.msk [vmem:[#allocation2 + $0xe0] sm:$0xff] %vm2413_vm2, %v9785_v16  ;;  %v11962_v28 = vrot.slane %v9785_v16, 5  ;;  %v6686_v22 = vpack.c.bf16 %v3927_v49, %v3926_v1  ;;  %v2885_v15 = vrot.slane %v9684_v48, 5  ;;  %v3928_v1 = vld [vmem:[%s11813_s3 + $0x20] sm:$0xff] }
 0x1f6   : > { %2578 = vrot.lane.b32.xlu1 %v2573_v46, %s7275_s15  ;;  %v1292_v12 = vadd.f32 %v9143_v27, %v12352_v36  ;;  %6684 = vmatpush1.bf16.msra.mxu0 %v6683_v42  ;;  %v9825_v53 = vsel %vm12010_vm5, %v12353_v24, %v11960_v45  ;;  %v12355_v46 = vrot.slane %v9602_v8, 2  ;;  %12356 = vst [vmem:[#allocation32_spill] sm:$0xff] %v9830_v10  ;;  %v3929_v8 = vld [vmem:[%s11813_s3 + $0x28] sm:$0xff]  ;;  %v12360_v49 = vrot.slane %v8311_v30, 7 }
 0x1f7   : > { %12354 = vst [vmem:[#allocation38_spill] sm:$0xff] %v9825_v53  ;;  %v9837_v42 = vsel %vm12013_vm6, %v11961_v58, %v11962_v28  ;;  %6685 = vmatprep.subr.bf16.mxu0 %v12358_v40  ;;  %v12361_v28 = vrot.slane %v9667_v13, 5  ;;  %v9865_v10 = vadd.f32 %v9722_v11, %v9371_v51  ;;  %v12364_v58 = vld [vmem:[#allocation31_spill] sm:$0xff]  ;;  %v12367_v51 = vrot.slane %v9474_v62, 1 }
 0x1f8   : > { %v2144_v36 = vadd.f32 %v12355_v46, %v2121_v55  ;;  %12357 = vst [vmem:[#allocation36_spill] sm:$0xff] %v9837_v42  ;;  %v12359_v55 = vrot.slane %v8484_v20, 7  ;;  %v12365_v45 = vld [vmem:[#allocation47_spill] sm:$0xff]  ;;  %v2631_v53 = vrot.slane %v12338_v0, 7  ;;  %v2768_v42 = vsel %vm2625_vm4, %v12383_v23, %v12382_v63  ;;  %v12386_v63 = vld [vmem:[#allocation33_spill] sm:$0xff] }
 0x1f9   : > { %v9857_v24 = vsel %vm12013_vm6, %v12361_v28, %v2885_v15  ;;  %2721 = vrot.lane.b32.xlu0 %v12313_v39, %s7272_s13  ;;  %v12363_v28 = vrot.slane %v8311_v30, 6  ;;  %v1473_v31 = vadd.f32 %v12365_v45, %v12364_v58  ;;  %v3930_v45 = vld [vmem:[%s11813_s3 + $0x30] sm:$0xff]  ;;  %v3931_v58 = vld [vmem:[%s11813_s3 + $0x38] sm:$0xff]  ;;  %v1478_v23 = vadd.f32 %v9143_v27, %v12386_v63 }
 0x1fa   : > { %v2628_v46 = vsel %vm2625_vm4, %v12360_v49, %v12359_v55  ;;  %12362 = vst [vmem:[#allocation30_spill] sm:$0xff] %v9857_v24  ;;  %v2172_v55 = vadd.f32 %v9735_v50, %v2144_v36  ;;  %v9871_v49 = vmax.f32 %v1292_v12, 0.0  ;;  %v12366_v24 = vrot.slane %v9301_v26, 1  ;;  %v9887_v12 = vpop.permute.xlu1 %2481  ;;  %6687 = vmatpush1.bf16.msra.mxu0 %v6686_v22 }
 0x1fb   : > { %2635 = vrot.lane.b32.xlu1 %v2628_v46, %s7274_s29  ;;  %2620 = vst.msk [vmem:[#allocation2 + $0x30] sm:$0xfc] %vm2619_vm7, %v12363_v28  ;;  %v2629_v36 = vrot.slane %v12305_v21, 7  ;;  %12368 = vst [vmem:[#allocation25_spill] sm:$0xff] %v9887_v12  ;;  %v6689_v46 = vpack.c.bf16 %v3929_v8, %v3928_v1  ;;  %v9891_v28 = vadd.f32 %v9742_v37, %v9731_v52  ;;  %6688 = vmatprep.subr.bf16.mxu0 %v12358_v40 }
 0x1fc   : > { %v9883_v11 = vsel %vm515_vm0, %v12367_v51, %v12366_v24  ;;  %v1477_v62 = vadd.f32 %v9143_v27, %v1473_v31  ;;  %v12369_v22 = vrot.slane %v9691_v29, 2  ;;  %v12370_v52 = vrot.slane %v9655_v6, 2  ;;  %v12374_v51 = vld [vmem:[#allocation40_spill] sm:$0xff]  ;;  %2794 = vst.msk [vmem:[#allocation2 + $0x68] sm:$0xf] %vm2623_vm15, %v9871_v49 }
 0x1fd   : > { %v12371_v1 = vrot.slane %v12313_v39, 6  ;;  %v12373_v8 = vrot.slane %v9667_v13, 6  ;;  %v12376_v50 = vrot.slane %v9650_v61, 1  ;;  %v3933_v61 = vld [vmem:[%s11813_s3 + $0x48] sm:$0xff]  ;;  %v12380_v24 = vrot.slane %v8413_v34, 7 }
 0x1fe   : > { %v9907_v37 = vsel %vm12017_vm1, %v12370_v52, %v12369_v22  ;;  %v9931_v52 = vpop.permute.xlu0 %2719  ;;  %6690 = vmatpush1.bf16.msra.mxu0 %v6689_v46  ;;  %v6692_v3 = vpack.c.bf16 %v3931_v58, %v3930_v45  ;;  %v9964_v46 = vpop.permute.xlu1 %2651  ;;  %v11972_v58 = vrot.slane %v9717_v25, 2  ;;  %v9981_v27 = vmax.f32 %v1478_v23, 0.0 }
 0x1ff   : > { %v9914_v31 = vsel %vm2607_vm8, %v9409_v19, %v12371_v1  ;;  %v9920_v26 = vsel %vm2607_vm8, %v12374_v51, %v12373_v8  ;;  %v9924_v12 = vadd.f32 %v12376_v50, %v2172_v55  ;;  %12378 = vst [vmem:[#allocation22_spill] sm:$0xff] %v9931_v52  ;;  %v9933_v1 = vmax.f32 %v1477_v62, 0.0  ;;  %v3932_v8 = vld [vmem:[%s11813_s3 + $0x40] sm:$0xff]  ;;  %6691 = vmatprep.subr.bf16.mxu0 %v12358_v40 }
 0x200   : > { %12372 = vst [vmem:[#allocation21_spill] sm:$0xff] %v9914_v31  ;;  %12375 = vst [vmem:[#allocation37_spill] sm:$0xff] %v9920_v26  ;;  %2678 = vrot.lane.b32.xlu1 %v9914_v31, %s12284_s25  ;;  %2750 = vrot.lane.b32.xlu0 %v9920_v26, %s12377_s24  ;;  %v2887_v55 = vrot.slane %v9871_v49, 5  ;;  %v12379_v50 = vrot.slane %v12313_v39, 7  ;;  %v12381_v52 = vrot.slane %v8484_v20, 7  ;;  %v6695_v45 = vpack.c.bf16 %v3933_v61, %v3932_v8 }
 0x201   : > { %3186 = vst.msk [vmem:[#allocation2 + $0xf0] sm:$0xff] %vm2413_vm2, %v9933_v1  ;;  %12385 = vst [vmem:[#allocation39_spill] sm:$0xff] %v9964_v46  ;;  %v12387_v26 = vrot.slane %v9785_v16, 5  ;;  %v3053_v8 = vrot.slane %v9785_v16, 2  ;;  %v2609_v61 = vrot.slane %v8484_v20, 6  ;;  %v12390_v63 = vrot.slane %v12313_v39, 6 }
 0x202   : > { %v2696_v22 = vsel %vm2625_vm4, %v12380_v24, %v12379_v50  ;;  %v2630_v62 = vsel %vm2625_vm4, %v12381_v52, %v2629_v36  ;;  %v2957_v24 = vrot.slane %v9933_v1, 5  ;;  %v9962_v52 = vsel %vm12013_vm6, %v2885_v15, %v2887_v55  ;;  %6693 = vmatpush1.bf16.msra.mxu0 %v6692_v3  ;;  %v9991_v15 = vpop.permute.xlu0 %2653  ;;  %v3934_v20 = vld [vmem:[%s11813_s3 + $0x50] sm:$0xff]  ;;  %v3935_v3 = vld [vmem:[%s11813_s3 + $0x58] sm:$0xff]  ;;  %3187 = vst.msk [vmem:[#allocation2 + $0x100] sm:$0x3] %vm2417_vm3, %v9981_v27 }
 0x203   : > { %12384 = vst [vmem:[#allocation23_spill] sm:$0xff] %v9962_v52  ;;  %12391 = vst [vmem:[#allocation28_spill] sm:$0xff] %v9991_v15  ;;  %6694 = vmatprep.subr.bf16.mxu0 %v12358_v40  ;;  %v10003_v23 = vsel %vm12017_vm1, %v11972_v58, %v3053_v8  ;;  %v3014_v55 = vrot.slane %v9684_v48, 3  ;;  %v2632_v50 = vsel %vm2625_vm4, %v2629_v36, %v2631_v53  ;;  %v2934_v15 = vrot.slane %v9981_v27, 4 }
 0x204   : > { %2703 = vrot.lane.b32.xlu1 %v2696_v22, %s7273_s16  ;;  %2775 = vrot.lane.b32.xlu0 %v2768_v42, %s7275_s15  ;;  %v9975_v31 = vsel %vm12013_vm6, %v12387_v26, %v2957_v24  ;;  %v3077_v22 = vrot.slane %v9785_v16, 3  ;;  %v12389_v42 = vrot.slane %v12331_v2, 6  ;;  %12392 = vst [vmem:[#allocation46_spill] sm:$0xff] %v10003_v23  ;;  %v2959_v52 = vrot.slane %v9981_v27, 5 }
 0x205   : > { %12388 = vst [vmem:[#allocation35_spill] sm:$0xff] %v9975_v31  ;;  %v12394_v58 = vrot.slane %v9717_v25, 3  ;;  %v12395_v36 = vrot.slane %v9667_v13, 3  ;;  %v2462_v31 = vpop.permute.xlu1 %2461  ;;  %v6698_v46 = vpack.c.bf16 %v3935_v3, %v3934_v20  ;;  %v10052_v3 = vmul.f32 %v9442_v14, %v9489_v43 }
 0x206   : > { %v9989_v26 = vsel %vm2607_vm8, %v12390_v63, %v12389_v42  ;;  %v12393_v42 = vrot.slane %v8311_v30, 6  ;;  %v11974_v30 = vrot.slane %v8413_v34, 5  ;;  %6696 = vmatpush1.bf16.msra.mxu0 %v6695_v45  ;;  %v10046_v45 = vmul.f32 %v9497_v5, %v9489_v43 }
 0x207   : > { %v10018_v23 = vsel %vm3010_vm9, %v12394_v58, %v3077_v22  ;;  %v3937_v58 = vld [vmem:[%s11813_s3 + $0x68] sm:$0xff]  ;;  %6697 = vmatprep.subr.bf16.mxu0 %v12358_v40  ;;  %v3079_v5 = vrot.slane %v9933_v1, 3  ;;  %vm11981_vm3 = vcmask 911104  }
 0x208   : > { %v2610_v63 = vsel %vm2607_vm8, %v12393_v42, %v2609_v61  ;;  %2637 = vrot.lane.b32.xlu1 %v2630_v62, %s7274_s29  ;;  %2639 = vrot.lane.b32.xlu0 %v2632_v50, %s7274_s29  ;;  %v10027_v42 = vsel %vm3010_vm9, %v12395_v36, %v3014_v55  ;;  %v3936_v62 = vld [vmem:[%s11813_s3 + $0x60] sm:$0xff]  ;;  %v12397_v50 = vrot.slane %v9933_v1, 4  ;;  %v10042_v36 = vsel %vm12013_vm6, %v2957_v24, %v2959_v52 }
 0x209   : > { %2621 = vst.msk [vmem:[#allocation2 + $0x40] sm:$0xff] %vm2413_vm2, %v2610_v63  ;;  %12396 = vst [vmem:[#allocation43_spill] sm:$0xff] %v10027_v42  ;;  %v2611_v63 = vrot.slane %v12305_v21, 6  ;;  %v3016_v52 = vrot.slane %v9871_v49, 3  ;;  %v6701_v14 = vpack.c.bf16 %v3937_v58, %v3936_v62  ;;  %v12400_v62 = vrot.slane %v9933_v1, 2 }
 0x20a   : > { %v10039_v53 = vsel %vm12010_vm5, %v12397_v50, %v2934_v15  ;;  %12398 = vst [vmem:[#allocation44_spill] sm:$0xff] %v10046_v45  ;;  %v11977_v15 = vrot.slane %v10046_v45, 1  ;;  %6699 = vmatpush1.bf16.msra.mxu0 %v6698_v46  ;;  %v12404_v50 = vrot.slane %v9684_v48, 6  ;;  %v12405_v42 = vrot.slane %v9667_v13, 6 }
 0x20b   : > { %v2612_v20 = vsel %vm2607_vm8, %v2609_v61, %v2611_v63  ;;  %v2437_v61 = vpop.permute.xlu0 %2436  ;;  %v10080_v58 = vsel %vm12017_vm1, %v3053_v8, %v12400_v62  ;;  %v10083_v46 = vsel %vm3010_vm9, %v3014_v55, %v3016_v52  ;;  %6700 = vmatprep.subr.bf16.mxu0 %v12358_v40  ;;  %v2509_v55 = vpop.permute.xlu1 %2508  ;;  %v12407_v52 = vrot.slane %v9727_v44, 2 }
 0x20c   : > { %2622 = vst.msk [vmem:[#allocation2 + $0x50] sm:$0xff] %vm2413_vm2, %v2612_v20  ;;  %2655 = vrot.lane.b32.xlu1 %v12305_v21, %s7271_s26  ;;  %2821 = vrot.lane.b32.xlu0 %v11974_v30, %s7274_s29  ;;  %v3938_v20 = vld [vmem:[%s11813_s3 + $0x70] sm:$0xff]  ;;  %v3939_v21 = vld [vmem:[%s11813_s3 + $0x78] sm:$0xff]  ;;  %v12399_v30 = vrot.slane %v9678_v60, 1  ;;  %12401 = vst [vmem:[#allocation31_spill] sm:$0xff] %v10080_v58  ;;  %v10093_v45 = vsel %vm2607_vm8, %v12405_v42, %v12404_v50  ;;  %v3081_v50 = vrot.slane %v9981_v27, 3 }
 0x20d   : > { %2447 = vst.msk [vmem:[#allocation2 + $0x30] sm:$0x3] %vm11999_vm10, %v2437_v61  ;;  %12402 = vst [vmem:[#allocation47_spill] sm:$0xff] %v10083_v46  ;;  %v10086_v61 = vsel %vm3010_vm9, %v3077_v22, %v3079_v5  ;;  %v12406_v22 = vrot.slane %v10052_v3, 2  ;;  %v2613_v62 = vrot.slane %v12338_v0, 6  ;;  %v12428_v46 = vld [vmem:[#allocation57_spill] sm:$0xff] }
 0x20e   : > { %v2299_v24 = vsel %vm515_vm0, %v12399_v30, %v11977_v15  ;;  %12403 = vst [vmem:[#allocation40_spill] sm:$0xff] %v10086_v61  ;;  %v2674_v30 = vrot.slane %v12346_v4, 6  ;;  %2472 = vst.msk [vmem:[#allocation2 + $0x30] sm:$0x3] %vm11993_vm11, %v2462_v31  ;;  %v2217_v31 = vadd.f32 %v9907_v37, %v9891_v28  ;;  %6702 = vmatpush1.bf16.msra.mxu0 %v6701_v14  ;;  %v12412_v14 = vrot.slane %v12313_v39, 7 }
 0x20f   : > { %v2306_v8 = vadd.f32 %v2299_v24, %v9865_v10  ;;  %2494 = vst.msk [vmem:[#allocation2 + $0x30] sm:$0x3] %vm11987_vm12, %v9588_v35  ;;  %v2322_v42 = vsel %vm12017_vm1, %v12407_v52, %v12406_v22  ;;  %v6704_v35 = vpack.c.bf16 %v3939_v21, %v3938_v20  ;;  %v2534_v24 = vpop.permute.xlu0 %2533  ;;  %v10122_v28 = vsel %vm3010_vm9, %v3079_v5, %v3081_v50 }
 0x210   : > { %2680 = vrot.lane.b32.xlu1 %v9989_v26, %s12284_s25  ;;  %2752 = vrot.lane.b32.xlu0 %v10093_v45, %s12377_s24  ;;  %2519 = vst.msk [vmem:[#allocation2 + $0x30] sm:$0x3] %vm11982_vm13, %v2509_v55  ;;  %12409 = vst [vmem:[#allocation59_spill] sm:$0xff] %v10122_v28  ;;  %v2614_v37 = vsel %vm2607_vm8, %v2611_v63, %v2613_v62  ;;  %v3188_v22 = vrot.slane %v9717_v25, 1  ;;  %v3189_v55 = vrot.slane %v9785_v16, 1  ;;  %v12410_v20 = vrot.slane %v9691_v29, 2 }
 0x211   : > { %v10115_v10 = vadd.f32 %v2322_v42, %v2306_v8  ;;  %v2228_v8 = vmul.f32 %v9420_v7, %v9159_v57  ;;  %v12411_v52 = vrot.slane %v12331_v2, 7  ;;  %2544 = vst.msk [vmem:[#allocation2 + $0x30] sm:$0x3] %vm11976_vm14, %v2534_v24  ;;  %6703 = vmatprep.subr.bf16.mxu0 %v12358_v40  ;;  %v3940_v63 = vld [vmem:[%s11813_s3 + $0x80] sm:$0xff]  ;;  %v3941_v29 = vld [vmem:[%s11813_s3 + $0x88] sm:$0xff]  ;;  %v2796_v57 = vrot.slane %v8413_v34, 4 }
 0x212   : > { %v2218_v21 = vadd.f32 %v12410_v20, %v9924_v12  ;;  %2624 = vst.msk [vmem:[#allocation2 + $0x60] sm:$0xf] %vm2623_vm15, %v2614_v37  ;;  %v12413_v7 = vrot.slane %v12331_v2, 6  ;;  %v10155_v42 = vsel %vm515_vm0, %v3188_v22, %v3189_v55  ;;  %vm2807_vm14 = vcmask 130052   ;;  %v10161_v62 = vld [vmem:[%s11811_s1 + $0x7] ss:$0 sm:$0xff]  ;;  %6705 = vmatpush1.bf16.msra.mxu0 %v6704_v35 }
 0x213   : > { %12408 = vst [vmem:[#allocation33_spill] sm:$0xff] %v10115_v10  ;;  %v2698_v5 = vsel %vm2625_vm4, %v12412_v14, %v12411_v52  ;;  %2566 = vst.msk [vmem:[#allocation2 + $0x30] sm:$0x3] %vm11981_vm3, %v9745_v41  ;;  %v2979_v50 = vrot.slane %v9717_v25, 6  ;;  %v10165_v24 = vmul.f32 %v10161_v62, %v9624_v54  ;;  %v2980_v41 = vrot.slane %v9785_v16, 6  ;;  %6706 = vmatprep.subr.bf16.mxu0 %v12358_v40  ;;  %v12420_v10 = vld [vmem:[#allocation17_spill] sm:$0xff] }
 0x214   : > { %v10150_v12 = vsel %vm2607_vm8, %v12413_v7, %v2674_v30  ;;  %12414 = vst [vmem:[#allocation60_spill] sm:$0xff] %v10155_v42  ;;  %v2251_v30 = vadd.f32 %v9883_v11, %v2228_v8  ;;  %2705 = vrot.lane.b32.xlu1 %v2698_v5, %s7273_s16  ;;  %2808 = vst.msk [vmem:[#allocation2 + $0x60] sm:$0xf0] %vm2807_vm14, %v2796_v57  ;;  %v11979_v37 = vrot.slane %v9699_v33, 6  ;;  %v10177_v22 = vld [vmem:[%s11812_s2] ss:$0 sm:$0xff] }
 0x215   : > { %2682 = vrot.lane.b32.xlu0 %v10150_v12, %s12284_s25  ;;  %v2221_v20 = vadd.f32 %v10177_v22, %v2217_v31  ;;  %v6707_v11 = vpack.c.bf16 %v3941_v29, %v3940_v63  ;;  %2990 = vst.msk [vmem:[#allocation2 + $0x68] sm:$0xf0] %vm2807_vm14, %v2979_v50  ;;  %v3191_v8 = vrot.slane %v9933_v1, 1  ;;  %v2797_v52 = vrot.slane %v12313_v39, 4  ;;  %v10186_v14 = vld [vmem:[%s11811_s1 + $0x6] ss:$0 sm:$0xff] }
 0x216   : > { %v10190_v5 = vmul.f32 %v10186_v14, %v9624_v54  ;;  %v2222_v7 = vadd.f32 %v10177_v22, %v2218_v21  ;;  %v10194_v31 = vrot.slane %v12342_v17, 4  ;;  %v2981_v35 = vsel %vm2607_vm8, %v2979_v50, %v2980_v41  ;;  %3687 = vst.msk [vmem:[#allocation2 + $0x138] sm:$0xf0] %vm2807_vm14, %v11979_v37  ;;  %v12415_v29 = vld [vmem:[#allocation14_spill] sm:$0xff]  ;;  %v12417_v42 = vld [vmem:[#allocation19_spill] sm:$0xff] }
 0x217   : > { %v2304_v63 = vadd.f32 %v9585_v59, %v9702_v47  ;;  %v12416_v15 = vrot.slane %v12415_v29, 2  ;;  %v12418_v28 = vrot.slane %v12417_v42, 2  ;;  %2991 = vst.msk [vmem:[#allocation2 + $0x78] sm:$0xff] %vm2413_vm2, %v2981_v35  ;;  %v10210_v61 = vsel %vm515_vm0, %v3189_v55, %v3191_v8  ;;  %v12423_v55 = vld [vmem:[#allocation55_spill] sm:$0xff]  ;;  %6708 = vmatpush1.bf16.msra.mxu0 %v6707_v11 }
 0x218   : > { %12419 = vst [vmem:[#allocation14_spill] sm:$0xff] %v10210_v61  ;;  %v2798_v50 = vsel %vm12010_vm5, %v2796_v57, %v2797_v52  ;;  %v10215_v37 = vmul.f32 %v10161_v62, %v12420_v10  ;;  %2723 = vrot.lane.b32.xlu1 %v12331_v2, %s7272_s13  ;;  %v11980_v59 = vrot.slane %v9981_v27, 1  ;;  %v2799_v47 = vrot.slane %v12331_v2, 4  ;;  %v10233_v35 = vld [vmem:[%s11811_s1 + $0x8] ss:$0 sm:$0xff]  ;;  %6709 = vmatprep.subr.bf16.mxu0 %v12358_v40  ;;  %v12426_v61 = vld [vmem:[#allocation58_spill] sm:$0xff] }
 0x219   : > { %v2266_v21 = vsel %vm12017_vm1, %v12418_v28, %v12416_v15  ;;  %2864 = vrot.lane.b32.xlu0 %v10194_v31, %s12284_s25  ;;  %2809 = vst.msk [vmem:[#allocation2 + $0x70] sm:$0xff] %vm2413_vm2, %v2798_v50  ;;  %v12421_v15 = vld [vmem:[#allocation13_spill] sm:$0xff]  ;;  %v12424_v57 = vrot.slane %v12423_v55, 2  ;;  %v10237_v29 = vmul.f32 %v10233_v35, %v9624_v54  ;;  %v10241_v50 = vmax.f32 %v2222_v7, 0.0 }
 0x21a   : > { %v2274_v58 = vadd.f32 %v2266_v21, %v2251_v30  ;;  %v12422_v28 = vrot.slane %v12421_v15, 2  ;;  %v2367_v30 = vrot.slane %v10165_v24, 1  ;;  %v10239_v21 = vmax.f32 %v2221_v20, 0.0 }
 0x21b   : > { %v10248_v24 = vsel %vm515_vm0, %v3191_v8, %v11980_v59  ;;  %v12425_v54 = vrot.slane %v9678_v60, 1  ;;  %v12427_v20 = vrot.slane %v12426_v61, 1  ;;  %v2800_v7 = vsel %vm12010_vm5, %v2797_v52, %v2799_v47 }
 0x21c   : > { %v2318_v42 = vsel %vm12017_vm1, %v12424_v57, %v12422_v28  ;;  %v2801_v55 = vrot.slane %v12346_v4, 4  ;;  %v10260_v28 = vmul.f32 %v10161_v62, %v9686_v32  ;;  %v2282_v8 = vadd.f32 %v12428_v46, %v2274_v58  ;;  %2657 = vrot.lane.b32.xlu1 %v12338_v0, %s7271_s26  ;;  %2810 = vst.msk [vmem:[#allocation2 + $0x80] sm:$0xff] %vm2413_vm2, %v2800_v7 }
 0x21d   : > { %v2327_v57 = vadd.f32 %v2318_v42, %v2304_v63  ;;  %v2297_v11 = vsel %vm515_vm0, %v12427_v20, %v12425_v54  ;;  %v2368_v59 = vrot.slane %v10215_v37, 1  ;;  %v12429_v60 = vrot.slane %v12342_v17, 5 }
 0x21e   : > { %vm2811_vm3 = vcmask 128000   ;;  %v2802_v61 = vsel %vm12010_vm5, %v2799_v47, %v2801_v55  ;;  %v2982_v52 = vrot.slane %v9933_v1, 6  ;;  %v2984_v63 = vrot.slane %v9981_v27, 6 }
 0x21f   : > { %2889 = vrot.lane.b32.xlu0 %v12429_v60, %s7273_s16  ;;  %v11983_v58 = vrot.slane %v10239_v21, 6  ;;  %v2305_v46 = vadd.f32 %v2297_v11, %v2282_v8  ;;  %v12430_v37 = vrot.slane %v12313_v39, 5  ;;  %v12431_v0 = vrot.slane %v8413_v34, 5  ;;  %2812 = vst.msk [vmem:[#allocation2 + $0x90] sm:$0x3f] %vm2811_vm3, %v2802_v61  ;;  %v12432_v8 = vld [vmem:[#allocation27_spill] sm:$0xff] }
 0x220   : > { %v3681_v54 = vrot.slane %v10241_v50, 6  ;;  %v2994_v20 = vrot.slane %v12342_v17, 2  ;;  %v11984_v47 = vrot.slane %v9684_v48, 7  ;;  %v2746_v55 = vrot.slane %v9871_v49, 6  ;;  %2839 = vrot.lane.b32.xlu1 %v9409_v19, %s7271_s26  ;;  %v12433_v61 = vld [vmem:[#allocation48_spill] sm:$0xff] }
 0x221   : > { %v2816_v42 = vsel %vm12013_vm6, %v12431_v0, %v12430_v37  ;;  %v2983_v7 = vsel %vm2607_vm8, %v2980_v41, %v2982_v52  ;;  %v2985_v11 = vsel %vm2607_vm8, %v2982_v52, %v2984_v63  ;;  %vm3005_vm13 = vcmask 130054   ;;  %v12435_v63 = vld [vmem:[#allocation54_spill] sm:$0xff] }
 0x222   : > { %2992 = vst.msk [vmem:[#allocation2 + $0x88] sm:$0xff] %vm2413_vm2, %v2983_v7  ;;  %v3682_v34 = vsel %vm2607_vm8, %v11983_v58, %v3681_v54  ;;  %v3169_v60 = vrot.slane %v12432_v8, 4  ;;  %v3170_v41 = vrot.slane %v12433_v61, 4  ;;  %v12434_v52 = vrot.slane %v9646_v18, 1 }
 0x223   : > { %2823 = vrot.lane.b32.xlu0 %v2816_v42, %s7274_s29  ;;  %2993 = vst.msk [vmem:[#allocation2 + $0x98] sm:$0x3f] %vm2811_vm3, %v2985_v11  ;;  %v12436_v37 = vrot.slane %v12435_v63, 1  ;;  %v12437_v0 = vrot.slane %v9727_v44, 2  ;;  %v12438_v42 = vrot.slane %v12421_v15, 2  ;;  %v2352_v54 = vmul.f32 %v10186_v14, %v12420_v10  ;;  %v12439_v11 = vld [vmem:[#allocation49_spill] sm:$0xff] }
 0x224   : > { %3690 = vst.msk [vmem:[#allocation2 + $0x168] sm:$0x3f] %vm2811_vm3, %v3682_v34  ;;  %v11985_v58 = vrot.slane %v12439_v11, 4  ;;  %v2383_v63 = vmul.f32 %v10233_v35, %v12420_v10  ;;  %v3171_v44 = vsel %vm12010_vm5, %v3169_v60, %v3170_v41  ;;  %v12440_v15 = vrot.slane %v9667_v13, 7 }
 0x225   : > { %v2185_v19 = vsel %vm515_vm0, %v12436_v37, %v12434_v52  ;;  %v2320_v7 = vsel %vm12017_vm1, %v12438_v42, %v12437_v0  ;;  %3006 = vst.msk [vmem:[#allocation2 + $0x90] sm:$0xc0] %vm3005_vm13, %v2994_v20  ;;  %v2699_v52 = vrot.slane %v12346_v4, 7  ;;  %3180 = vst.msk [vmem:[#allocation2 + $0x98] sm:$0xc0] %vm3005_vm13, %v3169_v60  ;;  %v12441_v37 = vrot.slane %v9684_v48, 6 }
 0x226   : > { %v2328_v18 = vadd.f32 %v2320_v7, %v2305_v46  ;;  %v2770_v34 = vsel %vm2625_vm4, %v12440_v15, %v11984_v47  ;;  %v3173_v10 = vsel %vm12010_vm5, %v3170_v41, %v11985_v58  ;;  %3181 = vst.msk [vmem:[#allocation2 + $0xa8] sm:$0xff] %vm2413_vm2, %v3171_v44  ;;  %v2995_v46 = vrot.slane %v9667_v13, 2  ;;  %v12443_v41 = vld [vmem:[#allocation18_spill] sm:$0xff]  ;;  %v12444_v47 = vld [vmem:[#allocation29_spill] sm:$0xff] }
 0x227   : > { %v10324_v0 = vsel %vm2607_vm8, %v12441_v37, %v2746_v55  ;;  %v2355_v60 = vadd.f32 %v10190_v5, %v2327_v57  ;;  %v2193_v42 = vadd.f32 %v2185_v19, %v9697_v9  ;;  %v11991_v7 = vrot.slane %v10260_v28, 1  ;;  %2777 = vrot.lane.b32.xlu1 %v2770_v34, %s7275_s15  ;;  %3182 = vst.msk [vmem:[#allocation2 + $0xb8] sm:$0xff] %vm2413_vm2, %v3173_v10  ;;  %v12442_v55 = vld [vmem:[#allocation42_spill] sm:$0xff]  ;;  %v12445_v5 = vld [vmem:[#allocation51_spill] sm:$0xff] }
 0x228   : > { %v2369_v15 = vsel %vm515_vm0, %v2367_v30, %v2368_v59  ;;  %2754 = vrot.lane.b32.xlu0 %v10324_v0, %s12377_s24  ;;  %v1843_v44 = vadd.f32 %v12443_v41, %v12442_v55  ;;  %v2996_v37 = vsel %vm12017_vm1, %v2994_v20, %v2995_v46  ;;  %v2030_v57 = vadd.f32 %v12445_v5, %v12444_v47 }
 0x229   : > { %v2997_v9 = vrot.slane %v9684_v48, 2  ;;  %v10347_v30 = vmul.f32 %v10233_v35, %v9686_v32  ;;  %v2356_v19 = vadd.f32 %v2352_v54, %v2328_v18  ;;  %v2391_v34 = vrot.slane %v2383_v63, 2  ;;  %3007 = vst.msk [vmem:[#allocation2 + $0xa0] sm:$0xff] %vm2413_vm2, %v2996_v37  ;;  %v12448_v63 = vld [vmem:[#allocation56_spill] sm:$0xff] }
 0x22a   : > { %v10350_v58 = vrot.slane %v9717_v25, 4  ;;  %v2371_v20 = vsel %vm515_vm0, %v2368_v59, %v11991_v7  ;;  %v12446_v10 = vrot.slane %v12331_v2, 7  ;;  %v2034_v55 = vadd.f32 %v10177_v22, %v2030_v57  ;;  %v12450_v59 = vld [vmem:[#allocation52_spill] sm:$0xff] }
 0x22b   : > { %v2998_v41 = vsel %vm12017_vm1, %v2995_v46, %v2997_v9  ;;  %v2390_v54 = vrot.slane %v10237_v29, 2  ;;  %v12447_v18 = vrot.slane %v9655_v6, 2  ;;  %v12449_v5 = vrot.slane %v12448_v63, 2 }
 0x22c   : > { %v2700_v47 = vsel %vm2625_vm4, %v12446_v10, %v2699_v52  ;;  %v2378_v40 = vadd.f32 %v2369_v15, %v2355_v60  ;;  %2936 = vrot.lane.b32.xlu0 %v10350_v58, %s12377_s24  ;;  %3008 = vst.msk [vmem:[#allocation2 + $0xb0] sm:$0xff] %vm2413_vm2, %v2998_v41  ;;  %v12451_v52 = vld [vmem:[#allocation53_spill] sm:$0xff]  ;;  %vm11992_vm12 = vcmask 1042304   ;;  %v1847_v29 = vadd.f32 %v10177_v22, %v1843_v44 }
 0x22d   : > { %v2208_v37 = vsel %vm12017_vm1, %v12449_v5, %v12447_v18  ;;  %2707 = vrot.lane.b32.xlu1 %v2700_v47, %s7273_s16  ;;  %v2031_v57 = vadd.f32 %v12451_v52, %v12450_v59  ;;  %v10374_v46 = vmax.f32 %v2034_v55, 0.0  ;;  %v2999_v6 = vrot.slane %v9871_v49, 2  ;;  %v2581_v5 = vpop.permute.xlu0 %2580  ;;  %v12453_v55 = vld [vmem:[#allocation16_spill] sm:$0xff] }
 0x22e   : > { %v2216_v10 = vadd.f32 %v2208_v37, %v2193_v42  ;;  %v2379_v18 = vadd.f32 %v2371_v20, %v2356_v19  ;;  %v11990_v15 = vrot.slane %v10347_v30, 2  ;;  %v2392_v47 = vsel %vm12017_vm1, %v2390_v54, %v2391_v34  ;;  %2591 = vst.msk [vmem:[#allocation2 + $0x30] sm:$0x3] %vm11992_vm12, %v2581_v5 }
 0x22f   : > { %v2035_v60 = vadd.f32 %v10177_v22, %v2031_v57  ;;  %v12452_v41 = vrot.slane %v9667_v13, 4  ;;  %3507 = vst.msk [vmem:[#allocation2 + $0x118] sm:$0xff] %vm2413_vm2, %v10374_v46  ;;  %v3000_v44 = vsel %vm12017_vm1, %v2997_v9, %v2999_v6  ;;  %v11988_v42 = vrot.slane %v10374_v46, 6 }
 0x230   : > { %3009 = vst.msk [vmem:[#allocation2 + $0xc0] sm:$0xff] %vm2413_vm2, %v3000_v44  ;;  %v3465_v20 = vrot.slane %v9384_v56, 6  ;;  %v3174_v54 = vrot.slane %v12453_v55, 4  ;;  %v2394_v9 = vsel %vm12017_vm1, %v2391_v34, %v11990_v15  ;;  %v10403_v37 = vadd.f32 %v2392_v47, %v2378_v40 }
 0x231   : > { %v10384_v63 = vsel %vm12010_vm5, %v10194_v31, %v12452_v41  ;;  %2725 = vrot.lane.b32.xlu1 %v12346_v4, %s7272_s13  ;;  %v10395_v19 = vmax.f32 %v2035_v60, 0.0  ;;  %v10405_v59 = vmax.f32 %v1847_v29, 0.0  ;;  %v11989_v52 = vrot.slane %v10374_v46, 7 }
 0x232   : > { %2866 = vrot.lane.b32.xlu0 %v10384_v63, %s12284_s25  ;;  %v10408_v57 = vadd.f32 %v2394_v9, %v2379_v18  ;;  %v2771_v6 = vrot.slane %v9871_v49, 7  ;;  %v2817_v60 = vrot.slane %v12331_v2, 5  ;;  %v12454_v5 = vrot.slane %v9667_v13, 5 }
 0x233   : > { %v3463_v41 = vrot.slane %v10395_v19, 6  ;;  %3508 = vst.msk [vmem:[#allocation2 + $0x128] sm:$0xff] %vm2413_vm2, %v10395_v19  ;;  %v12455_v40 = vrot.slane %v12342_v17, 5  ;;  %v2819_v29 = vrot.slane %v12346_v4, 5  ;;  %v3486_v18 = vrot.slane %v10395_v19, 7 }
 0x234   : > { %v12456_v47 = vrot.slane %v12439_v11, 4  ;;  %v11994_v2 = vrot.slane %v9785_v16, 4  ;;  %v12462_v7 = vrot.slane %v9289_v38, 2  ;;  %vm12008_vm12 = vcmask 261250  }
 0x235   : > { %v2884_v34 = vsel %vm12013_vm6, %v12455_v40, %v12454_v5  ;;  %2907 = vrot.lane.b32.xlu1 %v12374_v51, %s7272_s13  ;;  %v10432_v9 = vsel %vm2607_vm8, %v11988_v42, %v3463_v41  ;;  %v10435_v4 = vsel %vm2607_vm8, %v3463_v41, %v3465_v20  ;;  %v3488_v5 = vrot.slane %v9384_v56, 7 }
 0x236   : > { %v3175_v44 = vsel %vm12010_vm5, %v12456_v47, %v3174_v54  ;;  %2891 = vrot.lane.b32.xlu0 %v2884_v34, %s7273_s16  ;;  %12457 = vst [vmem:[#allocation19_spill] sm:$0xff] %v10435_v4  ;;  %v10442_v51 = vsel %vm2625_vm4, %v11989_v52, %v3486_v18  ;;  %v3325_v34 = vrot.slane %v10405_v59, 2  ;;  %v12459_v47 = vrot.slane %v9684_v48, 7 }
 0x237   : > { %3183 = vst.msk [vmem:[#allocation2 + $0xc8] sm:$0xff] %vm2413_vm2, %v3175_v44  ;;  %12458 = vst [vmem:[#allocation17_spill] sm:$0xff] %v10442_v51  ;;  %v12460_v41 = vrot.slane %v12313_v39, 5  ;;  %v10456_v42 = vsel %vm2625_vm4, %v3486_v18, %v3488_v5  ;;  %v2220_v52 = vadd.f32 %v10177_v22, %v2216_v10  ;;  %v10460_v15 = vsel %vm12013_vm6, %v2817_v60, %v2819_v29  ;;  %v12463_v39 = vld [vmem:[#allocation21_spill] sm:$0xff] }
 0x238   : > { %v2772_v20 = vsel %vm2625_vm4, %v12459_v47, %v2771_v6  ;;  %12461 = vst [vmem:[#allocation13_spill] sm:$0xff] %v10456_v42  ;;  %v3327_v40 = vsel %vm12017_vm1, %v3325_v34, %v12462_v7  ;;  %v3567_v54 = vrot.slane %v10395_v19, 4  ;;  %v3590_v6 = vrot.slane %v10395_v19, 5  ;;  %v12464_v47 = vld [vmem:[#allocation37_spill] sm:$0xff] }
 0x239   : > { %v10453_v44 = vsel %vm12013_vm6, %v12460_v41, %v2817_v60  ;;  %2841 = vrot.lane.b32.xlu1 %v12463_v39, %s7271_s26  ;;  %v10475_v10 = vsel %vm12010_vm5, %v10350_v58, %v11994_v2  ;;  %v10479_v7 = vrot.slane %v9699_v33, 4  ;;  %3336 = vst.msk [vmem:[#allocation2 + $0xd8] sm:$0xff] %vm2413_vm2, %v3327_v40  ;;  %v10482_v29 = vmax.f32 %v2220_v52, 0.0 }
 0x23a   : > { %2909 = vrot.lane.b32.xlu0 %v12464_v47, %s7272_s13  ;;  %v12466_v18 = vrot.slane %v10374_v46, 4  ;;  %v12468_v34 = vrot.slane %v10374_v46, 5  ;;  %v3633_v39 = vrot.slane %v10239_v21, 4  ;;  %v3569_v47 = vrot.slane %v9384_v56, 4 }
 0x23b   : > { %12465 = vst [vmem:[#allocation55_spill] sm:$0xff] %v10479_v7  ;;  %vm12007_vm11 = vcmask 392450   ;;  %v3631_v52 = vrot.slane %v10482_v29, 4  ;;  %v3677_v2 = vrot.slane %v10482_v29, 6  ;;  %v3654_v60 = vrot.slane %v10482_v29, 5 }
 0x23c   : > { %v10487_v5 = vsel %vm12010_vm5, %v12466_v18, %v3567_v54  ;;  %v10492_v41 = vsel %vm12013_vm6, %v12468_v34, %v3590_v6  ;;  %v10501_v18 = vsel %vm12010_vm5, %v3567_v54, %v3569_v47  ;;  %v3340_v34 = vrot.slane %v12432_v8, 6 }
 0x23d   : > { %12467 = vst [vmem:[#allocation58_spill] sm:$0xff] %v10487_v5  ;;  %12469 = vst [vmem:[#allocation57_spill] sm:$0xff] %v10492_v41  ;;  %v3656_v41 = vrot.slane %v10239_v21, 5  ;;  %2779 = vrot.lane.b32.xlu1 %v2772_v20, %s7275_s15  ;;  %v10511_v40 = vsel %vm12010_vm5, %v10479_v7, %v3631_v52  ;;  %v12472_v42 = vrot.slane %v9699_v33, 6  ;;  %v12473_v47 = vrot.slane %v10239_v21, 6 }
 0x23e   : > { %12470 = vst [vmem:[#allocation27_spill] sm:$0xff] %v10501_v18  ;;  %2938 = vrot.lane.b32.xlu0 %v10475_v10, %s12377_s24  ;;  %12471 = vst [vmem:[#allocation48_spill] sm:$0xff] %v10511_v40  ;;  %v3592_v18 = vrot.slane %v9384_v56, 5  ;;  %v12474_v20 = vrot.slane %v9699_v33, 5  ;;  %v10528_v40 = vsel %vm12010_vm5, %v3631_v52, %v3633_v39  ;;  %vm12003_vm10 = vcmask 523650  }
 0x23f   : > { %v3678_v54 = vsel %vm2607_vm8, %v12472_v42, %v3677_v2  ;;  %v3680_v5 = vsel %vm2607_vm8, %v3677_v2, %v12473_v47  ;;  %12476 = vst [vmem:[#allocation49_spill] sm:$0xff] %v10528_v40  ;;  %3351 = vst.msk [vmem:[#allocation2 + $0x100] sm:$0xfc] %vm2619_vm7, %v3340_v34  ;;  %v10532_v42 = vsel %vm12013_vm6, %v3654_v60, %v3656_v41  ;;  %v3341_v40 = vrot.slane %v12433_v61, 6  ;;  %v12480_v2 = vld [vmem:[#allocation36_spill] sm:$0xff] }
 0x240   : > { %3688 = vst.msk [vmem:[#allocation2 + $0x148] sm:$0xff] %vm2413_vm2, %v3678_v54  ;;  %3689 = vst.msk [vmem:[#allocation2 + $0x158] sm:$0xff] %vm2413_vm2, %v3680_v5  ;;  %v10525_v4 = vsel %vm12013_vm6, %v12474_v20, %v3654_v60  ;;  %v10536_v47 = vsel %vm12013_vm6, %v3590_v6, %v3592_v18  ;;  %v3635_v5 = vrot.slane %v10241_v50, 4  ;;  %v2405_v54 = vadd.f32 %v10177_v22, %v10403_v37  ;;  %v10549_v18 = vpop.permute.xlu1 %2748 }
 0x241   : > { %12475 = vst [vmem:[#allocation54_spill] sm:$0xff] %v10525_v4  ;;  %12477 = vst [vmem:[#allocation42_spill] sm:$0xff] %v10532_v42  ;;  %v3746_v20 = vrot.slane %v10482_v29, 2  ;;  %v3658_v60 = vrot.slane %v10241_v50, 5  ;;  %v3769_v42 = vrot.slane %v10482_v29, 3  ;;  %v12479_v6 = vrot.slane %v9717_v25, 5 }
 0x242   : > { %12478 = vst [vmem:[#allocation18_spill] sm:$0xff] %v10536_v47  ;;  %2963 = vrot.lane.b32.xlu0 %v12480_v2, %s7275_s15  ;;  %v10554_v37 = vsel %vm12010_vm5, %v3633_v39, %v3635_v5  ;;  %v10556_v47 = vmax.f32 %v2405_v54, 0.0  ;;  %v12481_v52 = vrot.slane %v9699_v33, 2  ;;  %v3709_v29 = vrot.slane %v10395_v19, 3 }
 0x243   : > { %2961 = vrot.lane.b32.xlu1 %v12479_v6, %s7275_s15  ;;  %v3342_v7 = vsel %vm2607_vm8, %v3340_v34, %v3341_v40  ;;  %v10566_v6 = vsel %vm12013_vm6, %v3656_v41, %v3658_v60  ;;  %v12484_v51 = vrot.slane %v9699_v33, 3  ;;  %v2406_v39 = vadd.f32 %v10177_v22, %v10408_v57  ;;  %v2634_v60 = vpop.permute.xlu0 %2633 }
 0x244   : > { %v10561_v4 = vsel %vm12017_vm1, %v12481_v52, %v3746_v20  ;;  %12483 = vst [vmem:[#allocation51_spill] sm:$0xff] %v10566_v6  ;;  %v3857_v54 = vrot.slane %v10556_v47, 4  ;;  %3352 = vst.msk [vmem:[#allocation2 + $0x110] sm:$0xff] %vm2413_vm2, %v3342_v7  ;;  %v12486_v34 = vrot.slane %v10374_v46, 3  ;;  %v3748_v57 = vrot.slane %v10239_v21, 2 }
 0x245   : > { %12482 = vst [vmem:[#allocation29_spill] sm:$0xff] %v10561_v4  ;;  %v10571_v2 = vsel %vm3010_vm9, %v12484_v51, %v3769_v42  ;;  %v10584_v6 = vmax.f32 %v2406_v39, 0.0  ;;  %v3343_v51 = vrot.slane %v12439_v11, 6  ;;  %v3771_v5 = vrot.slane %v10239_v21, 3  ;;  %2646 = vst.msk [vmem:[#allocation2 + $0x30] sm:$0xfc] %vm12008_vm12, %v2634_v60 }
 0x246   : > { %12485 = vst [vmem:[#allocation56_spill] sm:$0xff] %v10571_v2  ;;  %v10582_v41 = vsel %vm3010_vm9, %v12486_v34, %v3709_v29  ;;  %2827 = vrot.lane.b32.xlu0 %v10460_v15, %s7274_s29  ;;  %3868 = vst.msk [vmem:[#allocation2 + $0x168] sm:$0xc0] %vm3005_vm13, %v3857_v54  ;;  %v3711_v7 = vrot.slane %v9384_v56, 3  ;;  %v3773_v39 = vrot.slane %v10241_v50, 3  ;;  %v3345_v34 = vrot.slane %v12453_v55, 6  ;;  %v10605_v2 = vpop.permute.xlu1 %2455 }
 0x247   : > { %12487 = vst [vmem:[#allocation52_spill] sm:$0xff] %v10582_v41  ;;  %2825 = vrot.lane.b32.xlu1 %v10453_v44, %s7274_s29  ;;  %v3750_v52 = vrot.slane %v10241_v50, 2  ;;  %v12488_v41 = vld [vmem:[#allocation39_spill] sm:$0xff]  ;;  %v3344_v15 = vsel %vm2607_vm8, %v3341_v40, %v3343_v51  ;;  %v10609_v4 = vsel %vm12017_vm1, %v3746_v20, %v3748_v57  ;;  %v10612_v50 = vsel %vm3010_vm9, %v3769_v42, %v3771_v5 }
 0x248   : > { %2664 = vst.msk [vmem:[#allocation2 + $0x30] sm:$0xfc] %vm12007_vm11, %v12488_v41  ;;  %12489 = vst [vmem:[#allocation53_spill] sm:$0xff] %v10609_v4  ;;  %v10615_v41 = vsel %vm3010_vm9, %v3709_v29, %v3711_v7  ;;  %v10618_v21 = vsel %vm3010_vm9, %v3771_v5, %v3773_v39  ;;  %v12493_v40 = vrot.slane %v10584_v6, 2  ;;  %v12494_v60 = vrot.slane %v10556_v47, 2 }
 0x249   : > { %3353 = vst.msk [vmem:[#allocation2 + $0x120] sm:$0xff] %vm2413_vm2, %v3344_v15  ;;  %12490 = vst [vmem:[#allocation16_spill] sm:$0xff] %v10612_v50  ;;  %v12495_v15 = vrot.slane %v10584_v6, 4  ;;  %v12496_v42 = vrot.slane %v10584_v6, 3  ;;  %v12497_v50 = vrot.slane %v10556_v47, 3  ;;  %v3346_v5 = vsel %vm2607_vm8, %v3343_v51, %v3345_v34  ;;  %v2677_v34 = vpop.permute.xlu0 %2676 }
 0x24a   : > { %12491 = vst [vmem:[#allocation21_spill] sm:$0xff] %v10615_v41  ;;  %12492 = vst [vmem:[#allocation37_spill] sm:$0xff] %v10618_v21  ;;  %v10625_v44 = vsel %vm12017_vm1, %v12494_v60, %v12493_v40  ;;  %v12498_v7 = vrot.slane %v12342_v17, 3  ;;  %v3510_v39 = vrot.slane %v10405_v59, 4  ;;  %v3511_v60 = vrot.slane %v9289_v38, 4  ;;  %v12501_v40 = vld [vmem:[#allocation20_spill] sm:$0xff] }
 0x24b   : > { %v3859_v20 = vsel %vm12010_vm5, %v3857_v54, %v12495_v15  ;;  %v10635_v29 = vsel %vm3010_vm9, %v12497_v50, %v12496_v42  ;;  %2843 = vrot.lane.b32.xlu1 %v9989_v26, %s7271_s26  ;;  %3354 = vst.msk [vmem:[#allocation2 + $0x130] sm:$0xf] %vm2623_vm15, %v3346_v5  ;;  %v10646_v54 = vsel %vm12017_vm1, %v3748_v57, %v3750_v52  ;;  %v12500_v50 = vld [vmem:[#allocation11_spill] sm:$0xff]  ;;  %v3515_v26 = vrot.slane %v12501_v40, 4  ;;  %v12502_v15 = vld [vmem:[#allocation26_spill] sm:$0xff] }
 0x24c   : > { %3018 = vrot.lane.b32.xlu0 %v12498_v7, %s7274_s29  ;;  %3869 = vst.msk [vmem:[#allocation2 + $0x178] sm:$0xff] %vm2413_vm2, %v3859_v20  ;;  %12499 = vst [vmem:[#allocation36_spill] sm:$0xff] %v10646_v54  ;;  %v3513_v51 = vrot.slane %v12500_v50, 4  ;;  %v3691_v42 = vrot.slane %v12502_v15, 2  ;;  %v3692_v7 = vrot.slane %v10374_v46, 2  ;;  %v3694_v20 = vrot.slane %v10395_v19, 2 }
 0x24d   : > { %2689 = vst.msk [vmem:[#allocation2 + $0x30] sm:$0xfc] %vm12003_vm10, %v2677_v34  ;;  %v2862_v52 = vrot.slane %v9871_v49, 4  ;;  %v3512_v57 = vsel %vm12010_vm5, %v3510_v39, %v3511_v60  ;;  %v3696_v54 = vrot.slane %v9384_v56, 2  ;;  %v12503_v41 = vrot.slane %v9933_v1, 4  ;;  %v12505_v56 = vld [vmem:[#allocation38_spill] sm:$0xff] }
 0x24e   : > { %3521 = vst.msk [vmem:[#allocation2 + $0x130] sm:$0xf0] %vm2807_vm14, %v3510_v39  ;;  %v3514_v5 = vsel %vm12010_vm5, %v3511_v60, %v3513_v51  ;;  %v12504_v21 = vrot.slane %v9785_v16, 4  ;;  %v3516_v49 = vsel %vm12010_vm5, %v3513_v51, %v3515_v26  ;;  %v3693_v19 = vsel %vm12017_vm1, %v3691_v42, %v3692_v7  ;;  %v2503_v60 = vpop.permute.xlu1 %2502  ;;  %v2702_v51 = vpop.permute.xlu0 %2701  ;;  %v12507_v34 = vld [vmem:[#allocation30_spill] sm:$0xff] }
 0x24f   : > { %3522 = vst.msk [vmem:[#allocation2 + $0x140] sm:$0xff] %vm2413_vm2, %v3512_v57  ;;  %3523 = vst.msk [vmem:[#allocation2 + $0x150] sm:$0xff] %vm2413_vm2, %v3514_v5  ;;  %v3695_v39 = vsel %vm12017_vm1, %v3692_v7, %v3694_v20  ;;  %2868 = vrot.lane.b32.xlu1 %v12505_v56, %s12284_s25  ;;  %v3697_v16 = vsel %vm12017_vm1, %v3694_v20, %v3696_v54  ;;  %vm12006_vm7 = vcmask 654850   ;;  %vm12004_vm14 = vcmask 917250   ;;  %v12508_v54 = vld [vmem:[#allocation22_spill] sm:$0xff]  ;;  %v12515_v5 = vld [vmem:[#allocation24_spill] sm:$0xff] }
 0x250   : > { %v10666_v4 = vsel %vm12010_vm5, %v12504_v21, %v12503_v41  ;;  %3702 = vst.msk [vmem:[#allocation2 + $0x160] sm:$0xc0] %vm3005_vm13, %v3691_v42  ;;  %vm12005_vm13 = vcmask 786050   ;;  %v12506_v21 = vrot.slane %v9684_v48, 4  ;;  %vm2442_vm15 = vcmask 261248   ;;  %v12512_v20 = vld [vmem:[#allocation34_spill] sm:$0xff] }
 0x251   : > { %2940 = vrot.lane.b32.xlu0 %v10666_v4, %s12377_s24  ;;  %3524 = vst.msk [vmem:[#allocation2 + $0x160] sm:$0x3f] %vm2811_vm3, %v3516_v49  ;;  %vm2467_vm3 = vcmask 392448   ;;  %v12509_v48 = vrot.slane %v9717_v25, 2  ;;  %vm2489_vm10 = vcmask 523648   ;;  %v12513_v57 = vrot.slane %v9667_v13, 3 }
 0x252   : > { %3703 = vst.msk [vmem:[#allocation2 + $0x170] sm:$0xff] %vm2413_vm2, %v3693_v19  ;;  %3704 = vst.msk [vmem:[#allocation2 + $0x180] sm:$0xff] %vm2413_vm2, %v3695_v39  ;;  %v10686_v41 = vsel %vm12010_vm5, %v12506_v21, %v2862_v52  ;;  %v2433_v26 = vpop.permute.xlu1 %2432  ;;  %v2431_v7 = vpop.permute.xlu0 %2430  ;;  %vm2586_vm11 = vcmask 1048448   ;;  %v12516_v13 = vld [vmem:[#allocation35_spill] sm:$0xff]  ;;  %v3121_v39 = vrot.slane %v12432_v8, 2  ;;  %v12519_v21 = vld [vmem:[#allocation41_spill] sm:$0xff] }
 0x253   : > { %3705 = vst.msk [vmem:[#allocation2 + $0x190] sm:$0xff] %vm2413_vm2, %v3697_v16  ;;  %2893 = vrot.lane.b32.xlu1 %v12507_v34, %s7273_s16  ;;  %v12518_v16 = vld [vmem:[#allocation23_spill] sm:$0xff]  ;;  %vm12009_vm12 = vcmask 1048450   ;;  %vm12016_vm6 = vcmask 519552  }
 0x254   : > { %2714 = vst.msk [vmem:[#allocation2 + $0x30] sm:$0xfc] %vm12006_vm7, %v2702_v51  ;;  %vm2561_vm7 = vcmask 917248  }
 0x255   : > { %2870 = vrot.lane.b32.xlu0 %v10686_v41, %s12284_s25  ;;  %2732 = vst.msk [vmem:[#allocation2 + $0x30] sm:$0xfc] %vm12005_vm13, %v12508_v54  ;;  %vm2539_vm13 = vcmask 786048  }
 0x256   : > { %2761 = vst.msk [vmem:[#allocation2 + $0x30] sm:$0xfc] %vm12004_vm14, %v10549_v18  ;;  %v2458_v42 = vpop.permute.xlu1 %2457  ;;  %v12510_v18 = vld [vmem:[#allocation45_spill] sm:$0xff]  ;;  %vm2514_vm14 = vcmask 654848  }
 0x257   : > { %2444 = vst.msk [vmem:[#allocation2 + $0x10] sm:$0xff] %vm2442_vm15, %v2433_v26  ;;  %2911 = vrot.lane.b32.xlu1 %v10093_v45, %s7272_s13  ;;  %2443 = vst.msk [vmem:[#allocation2] sm:$0xff] %vm2442_vm15, %v2431_v7  ;;  %v12511_v45 = vrot.slane %v9717_v25, 3  ;;  %v12520_v26 = vld [vmem:[#allocation46_spill] sm:$0xff] }
 0x258   : > { %2469 = vst.msk [vmem:[#allocation2 + $0x10] sm:$0xff] %vm2467_vm3, %v2458_v42  ;;  %2468 = vst.msk [vmem:[#allocation2] sm:$0xff] %vm2467_vm3, %v10605_v2  ;;  %v12514_v2 = vrot.slane %v12342_v17, 3 }
 0x259   : > { %3059 = vrot.lane.b32.xlu0 %v12509_v48, %s12284_s25  ;;  %2491 = vst.msk [vmem:[#allocation2 + $0x10] sm:$0xff] %vm2489_vm10, %v12510_v18  ;;  %2490 = vst.msk [vmem:[#allocation2] sm:$0xff] %vm2489_vm10, %v12512_v20  ;;  %v3875_v48 = vld [vmem:[#allocation2 + $0x18] sm:$0xff]  ;;  %v7167_v18 = vld [vmem:[%s11811_s1] ss:$0 sm:$0xff] }
 0x25a   : > { %v2505_v52 = vpop.permute.xlu1 %2504  ;;  %2515 = vst.msk [vmem:[#allocation2] sm:$0xff] %vm2514_vm14, %v2503_v60  ;;  %v3013_v25 = vsel %vm3010_vm9, %v12514_v2, %v12513_v57  ;;  %v12517_v60 = vld [vmem:[#allocation25_spill] sm:$0xff] }
 0x25b   : > { %2845 = vrot.lane.b32.xlu1 %v10150_v12, %s7271_s26  ;;  %v2528_v12 = vpop.permute.xlu0 %2527  ;;  %2516 = vst.msk [vmem:[#allocation2 + $0x10] sm:$0xff] %vm2514_vm14, %v2505_v52  ;;  %v12523_v52 = vld [vmem:[#allocation12_spill] sm:$0xff] }
 0x25c   : > { %2540 = vst.msk [vmem:[#allocation2] sm:$0xff] %vm2539_vm13, %v2528_v12  ;;  %v12524_v12 = vrot.slane %v12523_v52, 1  ;;  %v12531_v52 = vld [vmem:[#allocation43_spill] sm:$0xff] }
 0x25d   : > { %3083 = vrot.lane.b32.xlu0 %v12511_v45, %s7273_s16  ;;  %2562 = vst.msk [vmem:[#allocation2] sm:$0xff] %vm2561_vm7, %v12515_v5  ;;  %v12521_v45 = vld [vmem:[#allocation15_spill] sm:$0xff] }
 0x25e   : > { %v2435_v49 = vpop.permute.xlu1 %2434  ;;  %v2230_v20 = vmul.f32 %v7167_v18, %v12521_v45  ;;  %v7168_v5 = vld [vmem:[%s11811_s1 + $0x3] ss:$0 sm:$0xff]  ;;  %v3881_v18 = vld [vmem:[#allocation2 + $0x48] sm:$0xff]  ;;  %v12530_v45 = vrot.slane %v10052_v3, 2 }
 0x25f   : > { %3035 = vrot.lane.b32.xlu1 %v10194_v31, %s7271_s26  ;;  %v2575_v19 = vpop.permute.xlu0 %2574  ;;  %2445 = vst.msk [vmem:[#allocation2 + $0x20] sm:$0xff] %vm2442_vm15, %v2435_v49  ;;  %v2280_v49 = vmul.f32 %v7168_v5, %v9489_v43  ;;  %v12532_v5 = vld [vmem:[#allocation47_spill] sm:$0xff] }
 0x260   : > { %2587 = vst.msk [vmem:[#allocation2] sm:$0xff] %vm2586_vm11, %v2575_v19  ;;  %v2253_v57 = vadd.f32 %v12524_v12, %v2230_v20  ;;  %v3122_v19 = vrot.slane %v12433_v61, 2 }
 0x261   : > { %3020 = vrot.lane.b32.xlu0 %v3013_v25, %s7274_s29 }
 0x262   : > { %v2460_v17 = vpop.permute.xlu1 %2459  ;;  %v10783_v43 = vsel %vm12017_vm1, %v3121_v39, %v3122_v19 }
 0x263   : > { %2965 = vrot.lane.b32.xlu1 %v12516_v13, %s7275_s15  ;;  %v2530_v31 = vpop.permute.xlu0 %2529  ;;  %2470 = vst.msk [vmem:[#allocation2 + $0x20] sm:$0xff] %vm2467_vm3, %v2460_v17 }
 0x264   : > { %2541 = vst.msk [vmem:[#allocation2 + $0x10] sm:$0xff] %vm2539_vm13, %v2530_v31 }
 0x265   : > { %2942 = vrot.lane.b32.xlu0 %v10039_v53, %s12377_s24  ;;  %2492 = vst.msk [vmem:[#allocation2 + $0x20] sm:$0xff] %vm2489_vm10, %v12517_v60 }
 0x266   : > { %2563 = vst.msk [vmem:[#allocation2 + $0x10] sm:$0xff] %vm2561_vm7, %v12519_v21  ;;  %v2507_v51 = vpop.permute.xlu1 %2506  ;;  %v3145_v21 = vrot.slane %v12432_v8, 3 }
 0x267   : > { %2895 = vrot.lane.b32.xlu1 %v12518_v16, %s7273_s16  ;;  %v2577_v34 = vpop.permute.xlu0 %2576  ;;  %v3872_v54 = vld [vmem:[#allocation2] sm:$0xff]  ;;  %2517 = vst.msk [vmem:[#allocation2 + $0x20] sm:$0xff] %vm2514_vm14, %v2507_v51  ;;  %v12527_v16 = vld [vmem:[#allocation28_spill] sm:$0xff] }
 0x268   : > { %2588 = vst.msk [vmem:[#allocation2 + $0x10] sm:$0xff] %vm2586_vm11, %v2577_v34  ;;  %4091 = vmatmul.mubr.f32.vlgmr.msra.gmra.mrb[0].mxu0 %v3872_v54  ;;  %v12528_v34 = vld [vmem:[#allocation44_spill] sm:$0xff] }
 0x269   : > { %3128 = vrot.lane.b32.xlu0 %v3121_v39, %s12377_s24  ;;  %5897 = vmatprep.mubr.msk.f32.mxu0 %vm2413_vm2, %v3875_v48  ;;  %v3879_v39 = vld [vmem:[#allocation2 + $0x38] sm:$0xff]  ;;  %v12529_v54 = vrot.slane %v12528_v34, 1  ;;  %v12536_v34 = vld [vmem:[#allocation31_spill] sm:$0xff] }
 0x26a   : > { %v2532_v42 = vpop.permute.xlu1 %2531 }
 0x26b   : > { %2913 = vrot.lane.b32.xlu1 %v10324_v0, %s7272_s13  ;;  %v2774_v7 = vpop.permute.xlu0 %2773  ;;  %2542 = vst.msk [vmem:[#allocation2 + $0x20] sm:$0xff] %vm2539_vm13, %v2532_v42  ;;  %v12522_v0 = vld [vmem:[#allocation32_spill] sm:$0xff] }
 0x26c   : > { %2786 = vst.msk [vmem:[#allocation2 + $0x30] sm:$0xfc] %vm12009_vm12, %v2774_v7  ;;  %vm12011_vm12 = vcmask 257152  }
 0x26d   : > { %3061 = vrot.lane.b32.xlu0 %v12520_v26, %s12284_s25  ;;  %2564 = vst.msk [vmem:[#allocation2 + $0x20] sm:$0xff] %vm2561_vm7, %v12522_v0 }
 0x26e   : > { %v2579_v2 = vpop.permute.xlu1 %2578 }
 0x26f   : > { %3100 = vrot.lane.b32.xlu1 %v10350_v58, %s7272_s13  ;;  %v3874_v25 = vld [vmem:[#allocation2 + $0x10] sm:$0xff]  ;;  %2589 = vst.msk [vmem:[#allocation2 + $0x20] sm:$0xff] %vm2586_vm11, %v2579_v2  ;;  %v12525_v58 = vld [vmem:[#allocation50_spill] sm:$0xff] }
 0x270   : > { %4096 = vmatmul.mubr.f32.gmra.mrb[2].mxu0 %v3874_v25  ;;  %v12526_v13 = vrot.slane %v12525_v58, 2  ;;  %v2353_v25 = vmul.f32 %v10186_v14, %v9686_v32 }
 0x271   : > { %3085 = vrot.lane.b32.xlu0 %v10018_v23, %s7273_s16  ;;  %v3877_v23 = vld [vmem:[#allocation2 + $0x28] sm:$0xff] }
 0x272   : > { %5898 = vmatprep.mubr.msk.f32.mxu0 %vm2413_vm2, %v3877_v23  ;;  %v2276_v17 = vadd.f32 %v12526_v13, %v2253_v57  ;;  %v2636_v31 = vpop.permute.xlu1 %2635  ;;  %v12533_v13 = vld [vmem:[#allocation33_spill] sm:$0xff] }
 0x273   : > { %3037 = vrot.lane.b32.xlu1 %v10384_v63, %s7271_s26  ;;  %2647 = vst.msk [vmem:[#allocation2 + $0x40] sm:$0xff] %vm2442_vm15, %v2636_v31  ;;  %v3146_v63 = vrot.slane %v12433_v61, 3  ;;  %v3878_v7 = vld [vmem:[#allocation2 + $0x30] sm:$0xff] }
 0x274   : > { %v2284_v60 = vadd.f32 %v2280_v49, %v2276_v17  ;;  %2665 = vst.msk [vmem:[#allocation2 + $0x40] sm:$0xff] %vm2467_vm3, %v12527_v16  ;;  %v2349_v0 = vpop.permute.xlu0 %2348  ;;  %v2357_v17 = vadd.f32 %v2353_v25, %v12533_v13  ;;  %v12542_v13 = vrot.slane %v10584_v6, 2 }
 0x275   : > { %3102 = vrot.lane.b32.xlu0 %v10475_v10, %s7272_s13  ;;  %v2354_v12 = vmul.f32 %v10186_v14, %v2349_v0  ;;  %v2362_v57 = vmul.f32 %v10161_v62, %v2349_v0  ;;  %v2385_v2 = vmul.f32 %v10233_v35, %v2349_v0  ;;  %v12534_v62 = vrot.slane %v10260_v28, 1  ;;  %v12539_v0 = vld [vmem:[#allocation59_spill] sm:$0xff] }
 0x276   : > { %v2679_v10 = vpop.permute.xlu1 %2678  ;;  %v3876_v51 = vld [vmem:[#allocation2 + $0x20] sm:$0xff]  ;;  %v2307_v48 = vadd.f32 %v12529_v54, %v2284_v60  ;;  %v3057_v14 = vrot.slane %v9981_v27, 2 }
 0x277   : > { %2967 = vrot.lane.b32.xlu1 %v10042_v36, %s7275_s15  ;;  %2690 = vst.msk [vmem:[#allocation2 + $0x40] sm:$0xff] %vm2489_vm10, %v2679_v10  ;;  %4101 = vmatmul.mubr.f32.gmra.mrb[4].mxu0 %v3876_v51  ;;  %v3147_v36 = vsel %vm3010_vm9, %v3145_v21, %v3146_v63  ;;  %v2372_v23 = vrot.slane %v2362_v57, 1  ;;  %v2395_v58 = vrot.slane %v2385_v2, 2  ;;  %v12535_v10 = vrot.slane %v10347_v30, 2 }
 0x278   : > { %5899 = vmatprep.mubr.msk.f32.mxu0 %vm2413_vm2, %v3879_v39  ;;  %v2330_v20 = vadd.f32 %v12530_v45, %v2307_v48  ;;  %v2722_v31 = vpop.permute.xlu0 %2721  ;;  %v12538_v45 = vld [vmem:[#allocation40_spill] sm:$0xff]  ;;  %v3124_v2 = vrot.slane %v12439_v11, 2 }
 0x279   : > { %3130 = vrot.lane.b32.xlu0 %v10783_v43, %s12377_s24  ;;  %v2373_v35 = vsel %vm515_vm0, %v12534_v62, %v2372_v23 }
 0x27a   : > { %v2704_v42 = vpop.permute.xlu1 %2703  ;;  %v2358_v49 = vadd.f32 %v2354_v12, %v2330_v20  ;;  %v2380_v60 = vadd.f32 %v2373_v35, %v2357_v17 }
 0x27b   : > { %3152 = vrot.lane.b32.xlu1 %v3145_v21, %s7275_s15  ;;  %2715 = vst.msk [vmem:[#allocation2 + $0x40] sm:$0xff] %vm2514_vm14, %v2704_v42  ;;  %4106 = vmatmul.mubr.f32.gmra.mrb[6].mxu0 %v3878_v7  ;;  %v2396_v21 = vsel %vm12017_vm1, %v12535_v10, %v2395_v58  ;;  %v3883_v10 = vld [vmem:[#allocation2 + $0x58] sm:$0xff] }
 0x27c   : > { %5900 = vmatprep.mubr.msk.f32.mxu0 %vm2413_vm2, %v3881_v18  ;;  %v2381_v32 = vadd.f32 %v2372_v23, %v2358_v49  ;;  %2733 = vst.msk [vmem:[#allocation2 + $0x40] sm:$0xff] %vm2539_vm13, %v2722_v31  ;;  %v2403_v28 = vadd.f32 %v2396_v21, %v2380_v60  ;;  %v12541_v49 = vrot.slane %v10584_v6, 4 }
 0x27d   : > { %3154 = vrot.lane.b32.xlu0 %v3147_v36, %s7275_s15 }
 0x27e   : > { %v2638_v3 = vpop.permute.xlu1 %2637  ;;  %v2404_v51 = vadd.f32 %v2395_v58, %v2381_v32  ;;  %v2407_v54 = vadd.f32 %v10177_v22, %v2403_v28  ;;  %v3148_v32 = vrot.slane %v12439_v11, 3  ;;  %v3126_v28 = vrot.slane %v12453_v55, 2 }
 0x27f   : > { %3022 = vrot.lane.b32.xlu1 %v12531_v52, %s7274_s29  ;;  %2648 = vst.msk [vmem:[#allocation2 + $0x50] sm:$0xff] %vm2442_vm15, %v2638_v3 }
 0x280   : > { %v2408_v39 = vadd.f32 %v10177_v22, %v2404_v51  ;;  %v2411_v7 = vmax.f32 %v2407_v54, 0.0  ;;  %v3150_v54 = vrot.slane %v12453_v55, 3 }
 0x281   : > { %3024 = vrot.lane.b32.xlu0 %v12532_v5, %s7274_s29  ;;  %v12540_v5 = vrot.slane %v10584_v6, 3  ;;  %v12543_v6 = vld [vmem:[#allocation60_spill] sm:$0xff] }
 0x282   : > { %v2656_v16 = vpop.permute.xlu1 %2655  ;;  %v2412_v48 = vmax.f32 %v2408_v39, 0.0  ;;  %v3837_v52 = vrot.slane %v2411_v7, 3  ;;  %v3860_v22 = vrot.slane %v2411_v7, 4  ;;  %v3814_v12 = vrot.slane %v2411_v7, 2 }
 0x283   : > { %3039 = vrot.lane.b32.xlu1 %v12505_v56, %s7271_s26  ;;  %2666 = vst.msk [vmem:[#allocation2 + $0x50] sm:$0xff] %vm2467_vm3, %v2656_v16  ;;  %v2751_v56 = vpop.permute.xlu0 %2750 }
 0x284   : > { %2762 = vst.msk [vmem:[#allocation2 + $0x40] sm:$0xff] %vm2561_vm7, %v2751_v56  ;;  %v3862_v18 = vrot.slane %v2412_v48, 4  ;;  %v3839_v20 = vrot.slane %v2412_v48, 3  ;;  %v10855_v3 = vsel %vm3010_vm9, %v12540_v5, %v3837_v52  ;;  %v3861_v23 = vsel %vm12010_vm5, %v12541_v49, %v3860_v22 }
 0x285   : > { %3041 = vrot.lane.b32.xlu0 %v10686_v41, %s7271_s26  ;;  %v12537_v41 = vrot.slane %v9933_v1, 2  ;;  %v3816_v1 = vrot.slane %v2412_v48, 2  ;;  %v10864_v17 = vsel %vm12017_vm1, %v12542_v13, %v3814_v12  ;;  %3870 = vst.msk [vmem:[#allocation2 + $0x188] sm:$0xff] %vm2413_vm2, %v3861_v23  ;;  %v3302_v49 = vrot.slane %v10405_v59, 1 }
 0x286   : > { %v2681_v36 = vpop.permute.xlu1 %2680  ;;  %v3863_v58 = vsel %vm12010_vm5, %v3860_v22, %v3862_v18  ;;  %v10875_v62 = vsel %vm3010_vm9, %v3837_v52, %v3839_v20  ;;  %vm12012_vm5 = vcmask 261252   ;;  %v3246_v18 = vrot.slane %v12439_v11, 1 }
 0x287   : > { %3063 = vrot.lane.b32.xlu1 %v12536_v34, %s12284_s25  ;;  %v10839_v30 = vsel %vm12017_vm1, %v12537_v41, %v3057_v14  ;;  %2691 = vst.msk [vmem:[#allocation2 + $0x50] sm:$0xff] %vm2489_vm10, %v2681_v36  ;;  %v2776_v42 = vpop.permute.xlu0 %2775  ;;  %v10872_v31 = vsel %vm12017_vm1, %v3814_v12, %v3816_v1  ;;  %v10911_v41 = vsel %vm12017_vm1, %v3124_v2, %v3126_v28 }
 0x288   : > { %2787 = vst.msk [vmem:[#allocation2 + $0x40] sm:$0xff] %vm2586_vm11, %v2776_v42  ;;  %v3151_v36 = vsel %vm3010_vm9, %v3148_v32, %v3150_v54  ;;  %v3244_v42 = vrot.slane %v12433_v61, 1 }
 0x289   : > { %3065 = vrot.lane.b32.xlu0 %v10839_v30, %s12284_s25  ;;  %3871 = vst.msk [vmem:[#allocation2 + $0x198] sm:$0xff] %vm2413_vm2, %v3863_v58 }
 0x28a   : > { %v2706_v57 = vpop.permute.xlu1 %2705  ;;  %v3247_v22 = vsel %vm515_vm0, %v3244_v42, %v3246_v18 }
 0x28b   : > { %3087 = vrot.lane.b32.xlu1 %v12538_v45, %s7273_s16  ;;  %2716 = vst.msk [vmem:[#allocation2 + $0x50] sm:$0xff] %vm2514_vm14, %v2706_v57  ;;  %v2640_v25 = vpop.permute.xlu0 %2639  ;;  %v3243_v45 = vrot.slane %v12432_v8, 1 }
 0x28c   : > { %2650 = vst.msk [vmem:[#allocation2 + $0x60] sm:$0xf] %vm12011_vm12, %v2640_v25  ;;  %vm12014_vm12 = vcmask 388352   ;;  %v3303_v25 = vrot.slane %v9289_v38, 1 }
 0x28d   : > { %3089 = vrot.lane.b32.xlu0 %v12539_v0, %s7273_s16  ;;  %v3245_v20 = vsel %vm515_vm0, %v3243_v45, %v3244_v42  ;;  %v3885_v0 = vld [vmem:[#allocation2 + $0x68] sm:$0xff]  ;;  %v3417_v42 = vrot.slane %v10405_v59, 7 }
 0x28e   : > { %v2724_v35 = vpop.permute.xlu1 %2723  ;;  %v3304_v58 = vsel %vm515_vm0, %v3302_v49, %v3303_v25 }
 0x28f   : > { %3104 = vrot.lane.b32.xlu1 %v10666_v4, %s7272_s13  ;;  %2734 = vst.msk [vmem:[#allocation2 + $0x50] sm:$0xff] %vm2539_vm13, %v2724_v35  ;;  %v10883_v4 = vsel %vm12017_vm1, %v3122_v19, %v3124_v2  ;;  %v2822_v60 = vpop.permute.xlu0 %2821  ;;  %v3880_v16 = vld [vmem:[#allocation2 + $0x40] sm:$0xff]  ;;  %v3149_v19 = vsel %vm3010_vm9, %v3146_v63, %v3148_v32  ;;  %vm12020_vm1 = vcmask 781952   ;;  %v12545_v32 = vrot.slane %v9981_v27, 1 }
 0x290   : > { %2834 = vst.msk [vmem:[#allocation2 + $0x60] sm:$0xf0] %vm12012_vm5, %v2822_v60  ;;  %4111 = vmatmul.mubr.f32.gmra.mrb[8].mxu0 %v3880_v16  ;;  %vm12015_vm5 = vcmask 392452   ;;  %v12544_v63 = vld [vmem:[#allocation14_spill] sm:$0xff] }
 0x291   : > { %3195 = vrot.lane.b32.xlu0 %v12543_v6, %s7274_s29  ;;  %5901 = vmatprep.mubr.msk.f32.mxu0 %vm2413_vm2, %v3883_v10  ;;  %v3355_v10 = vrot.slane %v12432_v8, 7 }
 0x292   : > { %v2658_v21 = vpop.permute.xlu1 %2657 }
 0x293   : > { %3132 = vrot.lane.b32.xlu1 %v10883_v4, %s12377_s24  ;;  %v2753_v51 = vpop.permute.xlu0 %2752  ;;  %2668 = vst.msk [vmem:[#allocation2 + $0x60] sm:$0xf] %vm12014_vm12, %v2658_v21  ;;  %vm12021_vm12 = vcmask 523652  }
 0x294   : > { %2763 = vst.msk [vmem:[#allocation2 + $0x50] sm:$0xff] %vm2561_vm7, %v2753_v51  ;;  %v3248_v51 = vrot.slane %v12453_v55, 1 }
 0x295   : > { %3211 = vrot.lane.b32.xlu0 %v12520_v26, %s7271_s26 }
 0x296   : > { %v2840_v26 = vpop.permute.xlu1 %2839 }
 0x297   : > { %3156 = vrot.lane.b32.xlu1 %v3149_v19, %s7275_s15  ;;  %v2683_v56 = vpop.permute.xlu0 %2682  ;;  %2852 = vst.msk [vmem:[#allocation2 + $0x60] sm:$0xf0] %vm12015_vm5, %v2840_v26  ;;  %vm12019_vm5 = vcmask 650752   ;;  %v3887_v19 = vld [vmem:[#allocation2 + $0x78] sm:$0xff] }
 0x298   : > { %2693 = vst.msk [vmem:[#allocation2 + $0x60] sm:$0xf] %vm12016_vm6, %v2683_v56  ;;  %vm12018_vm6 = vcmask 654852   ;;  %v3249_v56 = vsel %vm515_vm0, %v3246_v18, %v3248_v51  ;;  %v3356_v18 = vrot.slane %v12433_v61, 7 }
 0x299   : > { %3227 = vrot.lane.b32.xlu0 %v12432_v8, %s12284_s25 }
 0x29a   : > { %v2778_v39 = vpop.permute.xlu1 %2777  ;;  %v3357_v27 = vsel %vm2625_vm4, %v3355_v10, %v3356_v18 }
 0x29b   : > { %3106 = vrot.lane.b32.xlu1 %v10039_v53, %s7272_s13  ;;  %2788 = vst.msk [vmem:[#allocation2 + $0x50] sm:$0xff] %vm2586_vm11, %v2778_v39  ;;  %v2865_v48 = vpop.permute.xlu0 %2864 }
 0x29c   : > { %2877 = vst.msk [vmem:[#allocation2 + $0x60] sm:$0xf0] %vm12021_vm12, %v2865_v48  ;;  %vm12024_vm12 = vcmask 1044352   ;;  %v10991_v48 = vrot.slane %v10405_v59, 6 }
 0x29d   : > { %3197 = vrot.lane.b32.xlu0 %v12544_v63, %s7274_s29 }
 0x29f   : > { %3134 = vrot.lane.b32.xlu1 %v10911_v41, %s12377_s24  ;;  %v2708_v53 = vpop.permute.xlu1 %2707  ;;  %v2890_v7 = vpop.permute.xlu0 %2889 }
 0x2a0   : > { %2718 = vst.msk [vmem:[#allocation2 + $0x60] sm:$0xf] %vm12019_vm5, %v2708_v53  ;;  %vm12022_vm5 = vcmask 913152  }
 0x2a1   : > { %3213 = vrot.lane.b32.xlu0 %v12536_v34, %s7271_s26  ;;  %2902 = vst.msk [vmem:[#allocation2 + $0x60] sm:$0xf0] %vm12018_vm6, %v2890_v7  ;;  %vm2919_vm6 = vcmask 786052  }
 0x2a2   : > { %v3882_v1 = vld [vmem:[#allocation2 + $0x50] sm:$0xff] }
 0x2a3   : > { %3158 = vrot.lane.b32.xlu1 %v3151_v36, %s7275_s15  ;;  %v2726_v34 = vpop.permute.xlu1 %2725  ;;  %4116 = vmatmul.mubr.f32.gmra.mrb[10].mxu0 %v3882_v1  ;;  %v2824_v52 = vpop.permute.xlu0 %2823 }
 0x2a4   : > { %2736 = vst.msk [vmem:[#allocation2 + $0x60] sm:$0xf] %vm12020_vm1, %v2726_v34  ;;  %5902 = vmatprep.mubr.msk.f32.mxu0 %vm2413_vm2, %v3885_v0  ;;  %vm12027_vm1 = vcmask 917252   ;;  %v3307_v34 = vrot.slane %v12501_v40, 1 }
 0x2a5   : > { %3229 = vrot.lane.b32.xlu0 %v12433_v61, %s12284_s25  ;;  %2835 = vst.msk [vmem:[#allocation2 + $0x70] sm:$0xff] %vm2442_vm15, %v2824_v52 }
 0x2a7   : > { %3250 = vrot.lane.b32.xlu1 %v3245_v20, %s7273_s16  ;;  %v2908_v12 = vpop.permute.xlu1 %2907  ;;  %v2755_v57 = vpop.permute.xlu0 %2754 }
 0x2a8   : > { %2920 = vst.msk [vmem:[#allocation2 + $0x60] sm:$0xf0] %vm2919_vm6, %v2908_v12  ;;  %v3395_v12 = vrot.slane %v9289_v38, 6 }
 0x2a9   : > { %3252 = vrot.lane.b32.xlu0 %v3247_v22, %s7273_s16  ;;  %2765 = vst.msk [vmem:[#allocation2 + $0x60] sm:$0xf] %vm12022_vm5, %v2755_v57  ;;  %vm12023_vm5 = vcmask 1048452   ;;  %v11026_v22 = vrot.slane %v12502_v15, 6 }
 0x2ab   : > { %3266 = vrot.lane.b32.xlu1 %v10783_v43, %s7272_s13  ;;  %v2842_v2 = vpop.permute.xlu1 %2841  ;;  %v2937_v5 = vpop.permute.xlu0 %2936  ;;  %v3305_v43 = vrot.slane %v12500_v50, 1 }
 0x2ac   : > { %2853 = vst.msk [vmem:[#allocation2 + $0x70] sm:$0xff] %vm2467_vm3, %v2842_v2 }
 0x2ad   : > { %3268 = vrot.lane.b32.xlu0 %v10883_v4, %s7272_s13  ;;  %2949 = vst.msk [vmem:[#allocation2 + $0x60] sm:$0xf0] %vm12027_vm1, %v2937_v5  ;;  %v3306_v6 = vsel %vm515_vm0, %v3303_v25, %v3305_v43  ;;  %vm12029_vm1 = vcmask 521600   ;;  %v3308_v20 = vsel %vm515_vm0, %v3305_v43, %v3307_v34  ;;  %vm12032_vm0 = vcmask 652800  }
 0x2ae   : > { %v11042_v25 = vsel %vm2607_vm8, %v10991_v48, %v3395_v12  ;;  %v3418_v5 = vrot.slane %v9289_v38, 7 }
 0x2af   : > { %3286 = vrot.lane.b32.xlu1 %v10405_v59, %s12377_s24  ;;  %v2780_v23 = vpop.permute.xlu1 %2779  ;;  %v2867_v13 = vpop.permute.xlu0 %2866 }
 0x2b0   : > { %2790 = vst.msk [vmem:[#allocation2 + $0x60] sm:$0xf] %vm12024_vm12, %v2780_v23  ;;  %vm12026_vm12 = vcmask 261254  }
 0x2b1   : > { %3288 = vrot.lane.b32.xlu0 %v9289_v38, %s12377_s24  ;;  %2878 = vst.msk [vmem:[#allocation2 + $0x70] sm:$0xff] %vm2489_vm10, %v2867_v13 }
 0x2b3   : > { %3309 = vrot.lane.b32.xlu1 %v3304_v58, %s7275_s15  ;;  %v2892_v4 = vpop.permute.xlu0 %2891  ;;  %v3419_v58 = vsel %vm2625_vm4, %v3417_v42, %v3418_v5 }
 0x2b4   : > { %2903 = vst.msk [vmem:[#allocation2 + $0x70] sm:$0xff] %vm2514_vm14, %v2892_v4 }
 0x2b5   : > { %3311 = vrot.lane.b32.xlu0 %v3306_v6, %s7275_s15  ;;  %v2962_v35 = vpop.permute.xlu1 %2961 }
 0x2b6   : > { %2974 = vst.msk [vmem:[#allocation2 + $0x60] sm:$0xf0] %vm12023_vm5, %v2962_v35  ;;  %vm12025_vm5 = vcmask 259200  }
 0x2b7   : > { %3199 = vrot.lane.b32.xlu1 %v10248_v24, %s7274_s29  ;;  %v2910_v16 = vpop.permute.xlu0 %2909 }
 0x2b8   : > { %2921 = vst.msk [vmem:[#allocation2 + $0x70] sm:$0xff] %vm2539_vm13, %v2910_v16 }
 0x2b9   : > { %3201 = vrot.lane.b32.xlu0 %v12545_v32, %s7274_s29  ;;  %v2826_v60 = vpop.permute.xlu1 %2825  ;;  %v12546_v32 = vrot.slane %v10374_v46, 6 }
 0x2ba   : > { %2836 = vst.msk [vmem:[#allocation2 + $0x80] sm:$0xff] %vm2442_vm15, %v2826_v60 }
 0x2bb   : > { %3215 = vrot.lane.b32.xlu1 %v10839_v30, %s7271_s26  ;;  %v2939_v26 = vpop.permute.xlu0 %2938  ;;  %v11069_v60 = vsel %vm2607_vm8, %v11026_v22, %v12546_v32 }
 0x2bc   : > { %2950 = vst.msk [vmem:[#allocation2 + $0x70] sm:$0xff] %vm2561_vm7, %v2939_v26  ;;  %v3360_v26 = vrot.slane %v12453_v55, 7 }
 0x2bd   : > { %3362 = vrot.lane.b32.xlu0 %v3355_v10, %s7274_s29  ;;  %v2844_v24 = vpop.permute.xlu1 %2843  ;;  %v3884_v21 = vld [vmem:[#allocation2 + $0x60] sm:$0xff]  ;;  %v3483_v10 = vrot.slane %v12502_v15, 7 }
 0x2be   : > { %2854 = vst.msk [vmem:[#allocation2 + $0x80] sm:$0xff] %vm2467_vm3, %v2844_v24  ;;  %4121 = vmatmul.mubr.f32.gmra.mrb[12].mxu0 %v3884_v21  ;;  %v3358_v24 = vrot.slane %v12439_v11, 7 }
 0x2bf   : > { %3231 = vrot.lane.b32.xlu1 %v12439_v11, %s12284_s25  ;;  %5903 = vmatprep.mubr.msk.f32.mxu0 %vm2413_vm2, %v3887_v19  ;;  %v2964_v63 = vpop.permute.xlu0 %2963  ;;  %v12547_v19 = vrot.slane %v10374_v46, 7 }
 0x2c0   : > { %2975 = vst.msk [vmem:[#allocation2 + $0x70] sm:$0xff] %vm2586_vm11, %v2964_v63 }
 0x2c1   : > { %3290 = vrot.lane.b32.xlu0 %v12500_v50, %s12377_s24  ;;  %v2869_v30 = vpop.permute.xlu1 %2868 }
 0x2c2   : > { %2879 = vst.msk [vmem:[#allocation2 + $0x80] sm:$0xff] %vm2489_vm10, %v2869_v30 }
 0x2c3   : > { %3254 = vrot.lane.b32.xlu1 %v3249_v56, %s7273_s16  ;;  %v2828_v54 = vpop.permute.xlu0 %2827  ;;  %v3359_v56 = vsel %vm2625_vm4, %v3356_v18, %v3358_v24  ;;  %v3893_v18 = vld [vmem:[#allocation2 + $0xa8] sm:$0xff] }
 0x2c4   : > { %2838 = vst.msk [vmem:[#allocation2 + $0x90] sm:$0x3f] %vm12025_vm5, %v2828_v54  ;;  %vm12028_vm5 = vcmask 390400  }
 0x2c5   : > { %3233 = vrot.lane.b32.xlu0 %v12453_v55, %s12284_s25  ;;  %v2894_v39 = vpop.permute.xlu1 %2893 }
 0x2c6   : > { %2904 = vst.msk [vmem:[#allocation2 + $0x80] sm:$0xff] %vm2514_vm14, %v2894_v39  ;;  %v3361_v39 = vsel %vm2625_vm4, %v3358_v24, %v3360_v26 }
 0x2c7   : > { %3270 = vrot.lane.b32.xlu1 %v10911_v41, %s7272_s13  ;;  %v3019_v36 = vpop.permute.xlu0 %3018  ;;  %v3886_v7 = vld [vmem:[#allocation2 + $0x70] sm:$0xff]  ;;  %v3889_v41 = vld [vmem:[#allocation2 + $0x88] sm:$0xff] }
 0x2c8   : > { %3031 = vst.msk [vmem:[#allocation2 + $0x90] sm:$0xc0] %vm12026_vm12, %v3019_v36  ;;  %4126 = vmatmul.mubr.f32.gmra.mrb[14].mxu0 %v3886_v7  ;;  %vm12030_vm12 = vcmask 392454  }
 0x2c9   : > { %3401 = vrot.lane.b32.xlu0 %v10991_v48, %s12284_s25  ;;  %v2912_v53 = vpop.permute.xlu1 %2911  ;;  %5904 = vmatprep.mubr.msk.f32.mxu0 %vm2413_vm2, %v3889_v41 }
 0x2ca   : > { %2922 = vst.msk [vmem:[#allocation2 + $0x80] sm:$0xff] %vm2539_vm13, %v2912_v53  ;;  %v3397_v53 = vrot.slane %v12500_v50, 6 }
 0x2cb   : > { %3217 = vrot.lane.b32.xlu1 %v3057_v14, %s7271_s26  ;;  %v2941_v1 = vpop.permute.xlu0 %2940 }
 0x2cc   : > { %2951 = vst.msk [vmem:[#allocation2 + $0x80] sm:$0xff] %vm2561_vm7, %v2941_v1  ;;  %v11102_v41 = vsel %vm2607_vm8, %v3395_v12, %v3397_v53 }
 0x2cd   : > { %3424 = vrot.lane.b32.xlu0 %v3417_v42, %s7273_s16  ;;  %v2846_v45 = vpop.permute.xlu1 %2845  ;;  %v3525_v42 = vrot.slane %v10405_v59, 5 }
 0x2ce   : > { %2856 = vst.msk [vmem:[#allocation2 + $0x90] sm:$0x3f] %vm12028_vm5, %v2846_v45  ;;  %vm12034_vm5 = vcmask 523654  }
 0x2cf   : > { %3378 = vrot.lane.b32.xlu1 %v12432_v8, %s7271_s26  ;;  %v2871_v0 = vpop.permute.xlu0 %2870 }
 0x2d0   : > { %2881 = vst.msk [vmem:[#allocation2 + $0x90] sm:$0x3f] %vm12029_vm1, %v2871_v0  ;;  %vm12031_vm1 = vcmask 654854  }
 0x2d1   : > { %3364 = vrot.lane.b32.xlu0 %v3357_v27, %s7274_s29  ;;  %v3036_v14 = vpop.permute.xlu1 %3035 }
 0x2d2   : > { %3048 = vst.msk [vmem:[#allocation2 + $0x90] sm:$0xc0] %vm12030_vm12, %v3036_v14  ;;  %vm12033_vm12 = vcmask 784000  }
 0x2d3   : > { %3313 = vrot.lane.b32.xlu1 %v3308_v20, %s7275_s15  ;;  %v3060_v52 = vpop.permute.xlu0 %3059 }
 0x2d4   : > { %3072 = vst.msk [vmem:[#allocation2 + $0x90] sm:$0xc0] %vm12034_vm5, %v3060_v52  ;;  %vm12037_vm5 = vcmask 1046400  }
 0x2d5   : > { %3292 = vrot.lane.b32.xlu0 %v12501_v40, %s12377_s24  ;;  %v2966_v8 = vpop.permute.xlu1 %2965 }
 0x2d6   : > { %2976 = vst.msk [vmem:[#allocation2 + $0x80] sm:$0xff] %vm2586_vm11, %v2966_v8  ;;  %v11125_v8 = vrot.slane %v12502_v15, 4 }
 0x2d7   : > { %3256 = vrot.lane.b32.xlu1 %v3248_v51, %s7273_s16  ;;  %v3084_v2 = vpop.permute.xlu0 %3083  ;;  %v3485_v51 = vsel %vm2625_vm4, %v3483_v10, %v12547_v19 }
 0x2d8   : > { %3096 = vst.msk [vmem:[#allocation2 + $0x90] sm:$0xc0] %vm12031_vm1, %v3084_v2  ;;  %vm3112_vm1 = vcmask 786054  }
 0x2d9   : > { %3467 = vrot.lane.b32.xlu0 %v11026_v22, %s12377_s24  ;;  %v2896_v57 = vpop.permute.xlu1 %2895 }
 0x2da   : > { %2906 = vst.msk [vmem:[#allocation2 + $0x90] sm:$0x3f] %vm12032_vm0, %v2896_v57  ;;  %vm12038_vm0 = vcmask 915200   ;;  %v3587_v57 = vrot.slane %v12502_v15, 5 }
 0x2db   : > { %3272 = vrot.lane.b32.xlu1 %v3126_v28, %s7272_s13  ;;  %v3891_v28 = vld [vmem:[#allocation2 + $0x98] sm:$0xff]  ;;  %v3021_v23 = vpop.permute.xlu0 %3020 }
 0x2dc   : > { %3032 = vst.msk [vmem:[#allocation2 + $0xa0] sm:$0xff] %vm2442_vm15, %v3021_v23 }
 0x2dd   : > { %3403 = vrot.lane.b32.xlu0 %v11042_v25, %s12284_s25  ;;  %v2914_v43 = vpop.permute.xlu1 %2913  ;;  %v3888_v49 = vld [vmem:[#allocation2 + $0x80] sm:$0xff] }
 0x2de   : > { %2924 = vst.msk [vmem:[#allocation2 + $0x90] sm:$0x3f] %vm12033_vm12, %v2914_v43  ;;  %4131 = vmatmul.mubr.f32.gmra.mrb[16].mxu0 %v3888_v49  ;;  %vm12035_vm12 = vcmask 917254   ;;  %v3526_v43 = vrot.slane %v9289_v38, 5 }
 0x2df   : > { %3440 = vrot.lane.b32.xlu1 %v10405_v59, %s7272_s13  ;;  %5905 = vmatprep.mubr.msk.f32.mxu0 %vm2413_vm2, %v3891_v28  ;;  %v2943_v6 = vpop.permute.xlu0 %2942  ;;  %v3420_v59 = vrot.slane %v12500_v50, 7 }
 0x2e0   : > { %2953 = vst.msk [vmem:[#allocation2 + $0x90] sm:$0x3f] %vm12038_vm0, %v2943_v6  ;;  %v12549_v6 = vld [vmem:[#allocation17_spill] sm:$0xff]  ;;  %vm12605_vm0 = vcmask 781952  }
 0x2e1   : > { %3426 = vrot.lane.b32.xlu0 %v3419_v58, %s7273_s16  ;;  %v3101_v13 = vpop.permute.xlu1 %3100  ;;  %v3421_v1 = vsel %vm2625_vm4, %v3418_v5, %v3420_v59  ;;  %v3895_v5 = vld [vmem:[#allocation2 + $0xb8] sm:$0xff]  ;;  %v3422_v58 = vrot.slane %v12501_v40, 7 }
 0x2e2   : > { %3113 = vst.msk [vmem:[#allocation2 + $0x90] sm:$0xc0] %vm3112_vm1, %v3101_v13 }
 0x2e3   : > { %3380 = vrot.lane.b32.xlu1 %v12433_v61, %s7271_s26  ;;  %v3129_v4 = vpop.permute.xlu0 %3128 }
 0x2e4   : > { %3141 = vst.msk [vmem:[#allocation2 + $0x90] sm:$0xc0] %vm12035_vm12, %v3129_v4  ;;  %vm12036_vm12 = vcmask 1048454   ;;  %v3423_v4 = vsel %vm2625_vm4, %v3420_v59, %v3422_v58  ;;  %vm12553_vm4 = vcmask 1043456   ;;  %v12566_v58 = vrot.slane %v9699_v33, 2 }
 0x2e5   : > { %3442 = vrot.lane.b32.xlu0 %v9289_v38, %s7272_s13  ;;  %v3038_v35 = vpop.permute.xlu1 %3037 }
 0x2e6   : > { %3049 = vst.msk [vmem:[#allocation2 + $0xa0] sm:$0xff] %vm2467_vm3, %v3038_v35 }
 0x2e7   : > { %3315 = vrot.lane.b32.xlu1 %v3307_v34, %s7275_s15  ;;  %v3062_v21 = vpop.permute.xlu0 %3061 }
 0x2e8   : > { %3073 = vst.msk [vmem:[#allocation2 + $0xa0] sm:$0xff] %vm2489_vm10, %v3062_v21  ;;  %v3897_v21 = vld [vmem:[#allocation2 + $0xc8] sm:$0xff] }
 0x2e9   : > { %3469 = vrot.lane.b32.xlu0 %v11069_v60, %s12377_s24  ;;  %v2968_v16 = vpop.permute.xlu1 %2967 }
 0x2ea   : > { %2978 = vst.msk [vmem:[#allocation2 + $0x90] sm:$0x3f] %vm12037_vm5, %v2968_v16  ;;  %v12551_v16 = vld [vmem:[#allocation55_spill] sm:$0xff]  ;;  %vm12603_vm5 = vcmask 650752  }
 0x2eb   : > { %3490 = vrot.lane.b32.xlu1 %v3483_v10, %s7275_s15  ;;  %v3086_v63 = vpop.permute.xlu0 %3085 }
 0x2ec   : > { %3097 = vst.msk [vmem:[#allocation2 + $0xa0] sm:$0xff] %vm2514_vm14, %v3086_v63  ;;  %v12554_v63 = vrot.slane %v10374_v46, 5 }
 0x2ed   : > { %3492 = vrot.lane.b32.xlu0 %v3485_v51, %s7275_s15  ;;  %v3153_v30 = vpop.permute.xlu1 %3152  ;;  %v12552_v51 = vrot.slane %v10374_v46, 4 }
 0x2ee   : > { %3165 = vst.msk [vmem:[#allocation2 + $0x90] sm:$0xc0] %vm12036_vm12, %v3153_v30  ;;  %vm12599_vm12 = vcmask 392452  }
 0x2ef   : > { %3366 = vrot.lane.b32.xlu1 %v3359_v56, %s7274_s29  ;;  %v3103_v36 = vpop.permute.xlu0 %3102  ;;  %v11170_v26 = vsel %vm12553_vm4, %v11125_v8, %v12552_v51 }
 0x2f0   : > { %3114 = vst.msk [vmem:[#allocation2 + $0xa0] sm:$0xff] %vm2539_vm13, %v3103_v36 }
 0x2f1   : > { %3368 = vrot.lane.b32.xlu0 %v3361_v39, %s7274_s29  ;;  %v3023_v54 = vpop.permute.xlu1 %3022 }
 0x2f2   : > { %3033 = vst.msk [vmem:[#allocation2 + $0xb0] sm:$0xff] %vm2442_vm15, %v3023_v54 }
 0x2f3   : > { %3382 = vrot.lane.b32.xlu1 %v12439_v11, %s7271_s26  ;;  %v3131_v45 = vpop.permute.xlu0 %3130  ;;  %v3399_v11 = vrot.slane %v12501_v40, 6 }
 0x2f4   : > { %3142 = vst.msk [vmem:[#allocation2 + $0xa0] sm:$0xff] %vm2561_vm7, %v3131_v45  ;;  %v12557_v45 = vrot.slane %v9699_v33, 5 }
 0x2f5   : > { %3532 = vrot.lane.b32.xlu0 %v3525_v42, %s7274_s29  ;;  %v3040_v61 = vpop.permute.xlu1 %3039  ;;  %v3890_v7 = vld [vmem:[#allocation2 + $0x90] sm:$0xff]  ;;  %v11119_v14 = vsel %vm2607_vm8, %v3397_v53, %v3399_v11  ;;  %vm12548_vm8 = vcmask 1042432   ;;  %v3530_v11 = vrot.slane %v12501_v40, 5 }
 0x2f6   : > { %3050 = vst.msk [vmem:[#allocation2 + $0xb0] sm:$0xff] %vm2467_vm3, %v3040_v61  ;;  %4136 = vmatmul.mubr.f32.gmra.mrb[18].mxu0 %v3890_v7  ;;  %v3589_v39 = vsel %vm12548_vm8, %v3587_v57, %v12554_v63  ;;  %v12555_v7 = vld [vmem:[#allocation13_spill] sm:$0xff]  ;;  %vm12559_vm4 = vmmov %vm12548_vm8 }
 0x2f7   : > { %3405 = vrot.lane.b32.xlu1 %v11102_v41, %s12284_s25  ;;  %5906 = vmatprep.mubr.msk.f32.mxu0 %vm2413_vm2, %v3893_v18  ;;  %v3155_v27 = vpop.permute.xlu0 %3154 }
 0x2f8   : > { %3166 = vst.msk [vmem:[#allocation2 + $0xa0] sm:$0xff] %vm2586_vm11, %v3155_v27 }
 0x2f9   : > { %3471 = vrot.lane.b32.xlu0 %v10432_v9, %s12377_s24  ;;  %v3064_v34 = vpop.permute.xlu1 %3063 }
 0x2fa   : > { %3074 = vst.msk [vmem:[#allocation2 + $0xb0] sm:$0xff] %vm2489_vm10, %v3064_v34  ;;  %v12558_v34 = vld [vmem:[#allocation54_spill] sm:$0xff] }
 0x2fb   : > { %3428 = vrot.lane.b32.xlu1 %v3421_v1, %s7273_s16  ;;  %v3025_v0 = vpop.permute.xlu0 %3024 }
 0x2fc   : > { %3034 = vst.msk [vmem:[#allocation2 + $0xc0] sm:$0xff] %vm2442_vm15, %v3025_v0 }
 0x2fd   : > { %3407 = vrot.lane.b32.xlu0 %v11119_v14, %s12284_s25  ;;  %v3088_v20 = vpop.permute.xlu1 %3087 }
 0x2fe   : > { %3098 = vst.msk [vmem:[#allocation2 + $0xb0] sm:$0xff] %vm2514_vm14, %v3088_v20 }
 0x2ff   : > { %3444 = vrot.lane.b32.xlu1 %v12500_v50, %s7272_s13  ;;  %v3042_v12 = vpop.permute.xlu0 %3041  ;;  %v3892_v2 = vld [vmem:[#allocation2 + $0xa0] sm:$0xff] }
 0x300   : > { %3051 = vst.msk [vmem:[#allocation2 + $0xc0] sm:$0xff] %vm2467_vm3, %v3042_v12  ;;  %4141 = vmatmul.mubr.f32.gmra.mrb[20].mxu0 %v3892_v2 }
 0x301   : > { %3571 = vrot.lane.b32.xlu0 %v11125_v8, %s12284_s25  ;;  %v3105_v52 = vpop.permute.xlu1 %3104  ;;  %5907 = vmatprep.mubr.msk.f32.mxu0 %vm2413_vm2, %v3895_v5  ;;  %v12561_v5 = vld [vmem:[#allocation58_spill] sm:$0xff] }
 0x302   : > { %3115 = vst.msk [vmem:[#allocation2 + $0xb0] sm:$0xff] %vm2539_vm13, %v3105_v52  ;;  %v3706_v52 = vrot.slane %v12502_v15, 3  ;;  %v12562_v15 = vld [vmem:[#allocation49_spill] sm:$0xff] }
 0x303   : > { %3384 = vrot.lane.b32.xlu1 %v12453_v55, %s7271_s26  ;;  %v3066_v28 = vpop.permute.xlu0 %3065  ;;  %v3527_v55 = vsel %vm12548_vm8, %v3525_v42, %v3526_v43  ;;  %v3899_v42 = vld [vmem:[#allocation2 + $0xd8] sm:$0xff]  ;;  %vm12560_vm8 = vmmov %vm12559_vm4 }
 0x304   : > { %3075 = vst.msk [vmem:[#allocation2 + $0xc0] sm:$0xff] %vm2489_vm10, %v3066_v28  ;;  %v12564_v28 = vld [vmem:[#allocation27_spill] sm:$0xff] }
 0x305   : > { %3594 = vrot.lane.b32.xlu0 %v3587_v57, %s7273_s16  ;;  %v3133_v49 = vpop.permute.xlu1 %3132  ;;  %v3901_v57 = vld [vmem:[#allocation2 + $0xe8] sm:$0xff] }
 0x306   : > { %3143 = vst.msk [vmem:[#allocation2 + $0xb0] sm:$0xff] %vm2561_vm7, %v3133_v49  ;;  %v12563_v49 = vld [vmem:[#allocation57_spill] sm:$0xff] }
 0x307   : > { %3548 = vrot.lane.b32.xlu1 %v10991_v48, %s7271_s26  ;;  %v3090_v13 = vpop.permute.xlu0 %3089  ;;  %v12550_v48 = vld [vmem:[#allocation19_spill] sm:$0xff] }
 0x308   : > { %3099 = vst.msk [vmem:[#allocation2 + $0xc0] sm:$0xff] %vm2514_vm14, %v3090_v13 }
 0x309   : > { %3534 = vrot.lane.b32.xlu0 %v3527_v55, %s7274_s29  ;;  %v3157_v23 = vpop.permute.xlu1 %3156 }
 0x30a   : > { %3167 = vst.msk [vmem:[#allocation2 + $0xb0] sm:$0xff] %vm2586_vm11, %v3157_v23 }
 0x30b   : > { %3494 = vrot.lane.b32.xlu1 %v12549_v6, %s7275_s15  ;;  %v3196_v32 = vpop.permute.xlu0 %3195 }
 0x30c   : > { %3207 = vst.msk [vmem:[#allocation2 + $0xd0] sm:$0xff] %vm2442_vm15, %v3196_v32 }
 0x30d   : > { %3473 = vrot.lane.b32.xlu0 %v12550_v48, %s12377_s24  ;;  %v3107_v35 = vpop.permute.xlu1 %3106 }
 0x30e   : > { %3116 = vst.msk [vmem:[#allocation2 + $0xc0] sm:$0xff] %vm2539_vm13, %v3107_v35 }
 0x30f   : > { %3430 = vrot.lane.b32.xlu1 %v3423_v4, %s7273_s16  ;;  %v3212_v19 = vpop.permute.xlu0 %3211  ;;  %v3903_v4 = vld [vmem:[#allocation2 + $0xf8] sm:$0xff] }
 0x310   : > { %3223 = vst.msk [vmem:[#allocation2 + $0xd0] sm:$0xff] %vm2467_vm3, %v3212_v19 }
 0x311   : > { %3637 = vrot.lane.b32.xlu0 %v12551_v16, %s12377_s24  ;;  %v3135_v10 = vpop.permute.xlu1 %3134  ;;  %v3894_v24 = vld [vmem:[#allocation2 + $0xb0] sm:$0xff] }
 0x312   : > { %3144 = vst.msk [vmem:[#allocation2 + $0xc0] sm:$0xff] %vm2561_vm7, %v3135_v10  ;;  %4146 = vmatmul.mubr.f32.gmra.mrb[22].mxu0 %v3894_v24 }
 0x313   : > { %3446 = vrot.lane.b32.xlu1 %v12501_v40, %s7272_s13  ;;  %5908 = vmatprep.mubr.msk.f32.mxu0 %vm2413_vm2, %v3897_v21  ;;  %v3228_v56 = vpop.permute.xlu0 %3227 }
 0x314   : > { %3239 = vst.msk [vmem:[#allocation2 + $0xd0] sm:$0xff] %vm2489_vm10, %v3228_v56 }
 0x315   : > { %3573 = vrot.lane.b32.xlu0 %v11170_v26, %s12284_s25  ;;  %v3159_v30 = vpop.permute.xlu1 %3158 }
 0x316   : > { %3168 = vst.msk [vmem:[#allocation2 + $0xc0] sm:$0xff] %vm2586_vm11, %v3159_v30  ;;  %v12572_v30 = vld [vmem:[#allocation42_spill] sm:$0xff] }
 0x317   : > { %3610 = vrot.lane.b32.xlu1 %v11026_v22, %s7272_s13  ;;  %v3198_v53 = vpop.permute.xlu0 %3197 }
 0x318   : > { %3208 = vst.msk [vmem:[#allocation2 + $0xe0] sm:$0xff] %vm2442_vm15, %v3198_v53 }
 0x319   : > { %3596 = vrot.lane.b32.xlu0 %v3589_v39, %s7273_s16  ;;  %v3251_v54 = vpop.permute.xlu1 %3250  ;;  %v12574_v39 = vld [vmem:[#allocation18_spill] sm:$0xff] }
 0x31a   : > { %3262 = vst.msk [vmem:[#allocation2 + $0xd0] sm:$0xff] %vm2514_vm14, %v3251_v54  ;;  %v12576_v54 = vrot.slane %v10556_v47, 2 }
 0x31b   : > { %3550 = vrot.lane.b32.xlu1 %v11042_v25, %s7271_s26  ;;  %v3214_v61 = vpop.permute.xlu0 %3213  ;;  %v12556_v25 = vld [vmem:[#allocation48_spill] sm:$0xff] }
 0x31c   : > { %3224 = vst.msk [vmem:[#allocation2 + $0xe0] sm:$0xff] %vm2467_vm3, %v3214_v61 }
 0x31d   : > { %3612 = vrot.lane.b32.xlu0 %v11069_v60, %s7272_s13  ;;  %v3267_v22 = vpop.permute.xlu1 %3266  ;;  %v3896_v36 = vld [vmem:[#allocation2 + $0xc0] sm:$0xff]  ;;  %v3528_v60 = vrot.slane %v12500_v50, 5 }
 0x31e   : > { %3278 = vst.msk [vmem:[#allocation2 + $0xd0] sm:$0xff] %vm2539_vm13, %v3267_v22  ;;  %4151 = vmatmul.mubr.f32.gmra.mrb[24].mxu0 %v3896_v36  ;;  %v12579_v36 = vld [vmem:[#allocation29_spill] sm:$0xff] }
 0x31f   : > { %3496 = vrot.lane.b32.xlu1 %v12555_v7, %s7275_s15  ;;  %5909 = vmatprep.mubr.msk.f32.mxu0 %vm2413_vm2, %v3899_v42  ;;  %v3230_v59 = vpop.permute.xlu0 %3229  ;;  %v3529_v27 = vsel %vm12559_vm4, %v3526_v43, %v3528_v60  ;;  %v3531_v20 = vsel %vm12560_vm8, %v3528_v60, %v3530_v11  ;;  %vm12565_vm4 = vcmask 255104   ;;  %vm12567_vm8 = vcmask 261250  }
 0x320   : > { %3240 = vst.msk [vmem:[#allocation2 + $0xe0] sm:$0xff] %vm2489_vm10, %v3230_v59 }
 0x321   : > { %3639 = vrot.lane.b32.xlu0 %v12556_v25, %s12377_s24  ;;  %v3287_v18 = vpop.permute.xlu1 %3286 }
 0x322   : > { %3298 = vst.msk [vmem:[#allocation2 + $0xd0] sm:$0xff] %vm2561_vm7, %v3287_v18  ;;  %v3905_v18 = vld [vmem:[#allocation2 + $0x108] sm:$0xff] }
 0x323   : > { %3660 = vrot.lane.b32.xlu1 %v12557_v45, %s7275_s15  ;;  %v3253_v50 = vpop.permute.xlu0 %3252 }
 0x324   : > { %3263 = vst.msk [vmem:[#allocation2 + $0xe0] sm:$0xff] %vm2514_vm14, %v3253_v50  ;;  %v12584_v50 = vld [vmem:[#allocation51_spill] sm:$0xff] }
 0x325   : > { %3662 = vrot.lane.b32.xlu0 %v12558_v34, %s7275_s15  ;;  %v3310_v1 = vpop.permute.xlu1 %3309 }
 0x326   : > { %3321 = vst.msk [vmem:[#allocation2 + $0xd0] sm:$0xff] %vm2586_vm11, %v3310_v1 }
 0x327   : > { %3536 = vrot.lane.b32.xlu1 %v3529_v27, %s7274_s29  ;;  %v3269_v0 = vpop.permute.xlu0 %3268 }
 0x328   : > { %3279 = vst.msk [vmem:[#allocation2 + $0xe0] sm:$0xff] %vm2539_vm13, %v3269_v0 }
 0x329   : > { %3538 = vrot.lane.b32.xlu0 %v3531_v20, %s7274_s29  ;;  %v3200_v40 = vpop.permute.xlu1 %3199 }
 0x32a   : > { %3209 = vst.msk [vmem:[#allocation2 + $0xf0] sm:$0xff] %vm2442_vm15, %v3200_v40  ;;  %v12587_v40 = vrot.slane %v10556_v47, 3  ;;  %v11314_v47 = vld [vmem:[%s11814_s4] ss:$0 sm:$0xff] }
 0x32b   : > { %3552 = vrot.lane.b32.xlu1 %v11102_v41, %s7271_s26  ;;  %v3289_v2 = vpop.permute.xlu0 %3288 }
 0x32c   : > { %3299 = vst.msk [vmem:[#allocation2 + $0xe0] sm:$0xff] %vm2561_vm7, %v3289_v2  ;;  %v3907_v2 = vld [vmem:[#allocation2 + $0x118] sm:$0xff] }
 0x32d   : > { %3713 = vrot.lane.b32.xlu0 %v3706_v52, %s7274_s29  ;;  %v3216_v38 = vpop.permute.xlu1 %3215  ;;  %v3898_v12 = vld [vmem:[#allocation2 + $0xd0] sm:$0xff] }
 0x32e   : > { %3225 = vst.msk [vmem:[#allocation2 + $0xf0] sm:$0xff] %vm2467_vm3, %v3216_v38  ;;  %4156 = vmatmul.mubr.f32.gmra.mrb[26].mxu0 %v3898_v12 }
 0x32f   : > { %3575 = vrot.lane.b32.xlu1 %v12561_v5, %s12284_s25  ;;  %5910 = vmatprep.mubr.msk.f32.mxu0 %vm2413_vm2, %v3901_v57  ;;  %v3312_v43 = vpop.permute.xlu0 %3311 }
 0x330   : > { %3322 = vst.msk [vmem:[#allocation2 + $0xe0] sm:$0xff] %vm2586_vm11, %v3312_v43 }
 0x331   : > { %3641 = vrot.lane.b32.xlu0 %v12562_v15, %s12377_s24  ;;  %v3232_v41 = vpop.permute.xlu1 %3231 }
 0x332   : > { %3241 = vst.msk [vmem:[#allocation2 + $0xf0] sm:$0xff] %vm2489_vm10, %v3232_v41 }
 0x333   : > { %3598 = vrot.lane.b32.xlu1 %v12563_v49, %s7273_s16  ;;  %v3202_v23 = vpop.permute.xlu0 %3201  ;;  %v12590_v49 = vld [vmem:[#allocation53_spill] sm:$0xff] }
 0x334   : > { %3210 = vst.msk [vmem:[#allocation2 + $0x100] sm:$0x3] %vm12565_vm4, %v3202_v23  ;;  %vm12569_vm4 = vcmask 386304  }
 0x335   : > { %3577 = vrot.lane.b32.xlu0 %v12564_v28, %s12284_s25  ;;  %v3255_v55 = vpop.permute.xlu1 %3254 }
 0x336   : > { %3264 = vst.msk [vmem:[#allocation2 + $0xf0] sm:$0xff] %vm2514_vm14, %v3255_v55 }
 0x337   : > { %3614 = vrot.lane.b32.xlu1 %v10432_v9, %s7272_s13  ;;  %v3363_v6 = vpop.permute.xlu0 %3362  ;;  %v3900_v35 = vld [vmem:[#allocation2 + $0xe0] sm:$0xff]  ;;  %v12568_v9 = vrot.slane %v9699_v33, 3 }
 0x338   : > { %3374 = vst.msk [vmem:[#allocation2 + $0x100] sm:$0xfc] %vm12567_vm8, %v3363_v6  ;;  %4161 = vmatmul.mubr.f32.gmra.mrb[28].mxu0 %v3900_v35  ;;  %vm12571_vm8 = vcmask 392450   ;;  %v12591_v35 = vld [vmem:[#allocation16_spill] sm:$0xff] }
 0x339   : > { %3752 = vrot.lane.b32.xlu0 %v12566_v58, %s12284_s25  ;;  %v3271_v13 = vpop.permute.xlu1 %3270  ;;  %5911 = vmatprep.mubr.msk.f32.mxu0 %vm2413_vm2, %v3903_v4 }
 0x33a   : > { %3280 = vst.msk [vmem:[#allocation2 + $0xf0] sm:$0xff] %vm2539_vm13, %v3271_v13 }
 0x33b   : > { %3554 = vrot.lane.b32.xlu1 %v11119_v14, %s7271_s26  ;;  %v11246_v10 = vpop.f32.mrb[0].mxu0  ;;  %v3291_v24 = vpop.permute.xlu0 %3290  ;;  %v12570_v14 = vrot.slane %v10374_v46, 3 }
 0x33c   : > { %v4094_v21 = vpop.f32.mrb[1].mxu0  ;;  %3300 = vst.msk [vmem:[#allocation2 + $0xf0] sm:$0xff] %vm2561_vm7, %v3291_v24  ;;  %v4093_v55 = vadd.f32 %v11314_v47, %v11246_v10 }
 0x33d   : > { %3775 = vrot.lane.b32.xlu0 %v12568_v9, %s7273_s16  ;;  %v3218_v32 = vpop.permute.xlu1 %3217  ;;  %v3708_v19 = vsel %vm3010_vm9, %v3706_v52, %v12570_v14  ;;  %vm12575_vm9 = vcmask 523650   ;;  %v12589_v52 = vld [vmem:[#allocation52_spill] sm:$0xff] }
 0x33e   : > { %3226 = vst.msk [vmem:[#allocation2 + $0x100] sm:$0x3] %vm12569_vm4, %v3218_v32  ;;  %vm12573_vm4 = vcmask 517504   ;;  %v4221_v9 = vmax.f32 %v4093_v55, 0.0  ;;  %v12592_v32 = vld [vmem:[#allocation37_spill] sm:$0xff] }
 0x33f   : > { %3729 = vrot.lane.b32.xlu1 %v11125_v8, %s7271_s26  ;;  %v3234_v51 = vpop.permute.xlu0 %3233 }
 0x340   : > { %3242 = vst.msk [vmem:[#allocation2 + $0x100] sm:$0x3] %vm12573_vm4, %v3234_v51  ;;  %vm12578_vm4 = vcmask 654850   ;;  %v12595_v51 = vld [vmem:[#allocation21_spill] sm:$0xff] }
 0x341   : > { %3715 = vrot.lane.b32.xlu0 %v3708_v19, %s7274_s29  ;;  %v3379_v33 = vpop.permute.xlu1 %3378 }
 0x342   : > { %3390 = vst.msk [vmem:[#allocation2 + $0x100] sm:$0xfc] %vm12571_vm8, %v3379_v33  ;;  %vm12577_vm8 = vcmask 648704  }
 0x343   : > { %3664 = vrot.lane.b32.xlu1 %v12572_v30, %s7275_s15  ;;  %v11262_v56 = vpop.f32.mrb[2].mxu0  ;;  %v3402_v46 = vpop.permute.xlu0 %3401  ;;  %v3909_v30 = vld [vmem:[#allocation2 + $0x128] sm:$0xff] }
 0x344   : > { %v4099_v63 = vpop.f32.mrb[3].mxu0  ;;  %3413 = vst.msk [vmem:[#allocation2 + $0x100] sm:$0xfc] %vm12575_vm9, %v3402_v46  ;;  %vm12580_vm9 = vcmask 779904  }
 0x345   : > { %3643 = vrot.lane.b32.xlu0 %v10554_v37, %s12377_s24  ;;  %v3314_v8 = vpop.permute.xlu1 %3313 }
 0x346   : > { %3323 = vst.msk [vmem:[#allocation2 + $0xf0] sm:$0xff] %vm2586_vm11, %v3314_v8  ;;  %v12598_v8 = vld [vmem:[#allocation36_spill] sm:$0xff] }
 0x347   : > { %3600 = vrot.lane.b32.xlu1 %v12574_v39, %s7273_s16  ;;  %v3425_v22 = vpop.permute.xlu0 %3424 }
 0x348   : > { %3436 = vst.msk [vmem:[#allocation2 + $0x100] sm:$0xfc] %vm12578_vm4, %v3425_v22  ;;  %vm12583_vm4 = vcmask 911104   ;;  %v4098_v22 = vadd.f32 %v11314_v47, %v11262_v56 }
 0x349   : > { %3818 = vrot.lane.b32.xlu0 %v12576_v54, %s12377_s24  ;;  %v3257_v53 = vpop.permute.xlu1 %3256 }
 0x34a   : > { %3265 = vst.msk [vmem:[#allocation2 + $0x100] sm:$0x3] %vm12577_vm8, %v3257_v53  ;;  %v11277_v7 = vpop.f32.mrb[4].mxu0  ;;  %vm12582_vm8 = vcmask 786050  }
 0x34b   : > { %3616 = vrot.lane.b32.xlu1 %v12550_v48, %s7272_s13  ;;  %v4104_v60 = vpop.f32.mrb[5].mxu0  ;;  %v3365_v59 = vpop.permute.xlu0 %3364  ;;  %v12581_v48 = vld [vmem:[#allocation56_spill] sm:$0xff] }
 0x34c   : > { %3375 = vst.msk [vmem:[#allocation2 + $0x110] sm:$0xff] %vm2442_vm15, %v3365_v59  ;;  %v4222_v60 = vmax.f32 %v4098_v22, 0.0 }
 0x34d   : > { %3754 = vrot.lane.b32.xlu0 %v12579_v36, %s12284_s25  ;;  %v3273_v42 = vpop.permute.xlu1 %3272  ;;  %v3902_v61 = vld [vmem:[#allocation2 + $0xf0] sm:$0xff] }
 0x34e   : > { %3281 = vst.msk [vmem:[#allocation2 + $0x100] sm:$0x3] %vm12580_vm9, %v3273_v42  ;;  %4166 = vmatmul.mubr.f32.gmra.mrb[30].mxu0 %v3902_v61  ;;  %v4107_v11 = vpop.f32.mrb[6].mxu0  ;;  %vm12585_vm9 = vcmask 917250  }
 0x34f   : > { %3791 = vrot.lane.b32.xlu1 %v12551_v16, %s7272_s13  ;;  %5912 = vmatprep.mubr.msk.f32.mxu0 %vm2413_vm2, %v3905_v18  ;;  %v4109_v34 = vpop.f32.mrb[7].mxu0  ;;  %v3293_v1 = vpop.permute.xlu0 %3292  ;;  %v11318_v38 = vadd.f32 %v11314_v47, %v4107_v11 }
 0x350   : > { %3301 = vst.msk [vmem:[#allocation2 + $0x100] sm:$0x3] %vm12583_vm4, %v3293_v1  ;;  %vm12588_vm4 = vcmask 1048450   ;;  %v3911_v34 = vld [vmem:[#allocation2 + $0x138] sm:$0xff] }
 0x351   : > { %3777 = vrot.lane.b32.xlu0 %v12581_v48, %s7273_s16  ;;  %v3441_v45 = vpop.permute.xlu1 %3440  ;;  %v4224_v43 = vmax.f32 %v11318_v38, 0.0 }
 0x352   : > { %3452 = vst.msk [vmem:[#allocation2 + $0x100] sm:$0xfc] %vm12582_vm8, %v3441_v45  ;;  %vm12586_vm8 = vcmask 1042304  }
 0x353   : > { %3731 = vrot.lane.b32.xlu1 %v11170_v26, %s7271_s26  ;;  %v3468_v27 = vpop.permute.xlu0 %3467  ;;  %v4251_v6 = vrot.slane %v4224_v43, 2 }
 0x354   : > { %3479 = vst.msk [vmem:[#allocation2 + $0x100] sm:$0xfc] %vm12585_vm9, %v3468_v27  ;;  %vm12593_vm9 = vcmask 1045504  }
 0x355   : > { %3793 = vrot.lane.b32.xlu0 %v12556_v25, %s7272_s13  ;;  %v3381_v16 = vpop.permute.xlu1 %3380 }
 0x356   : > { %3391 = vst.msk [vmem:[#allocation2 + $0x110] sm:$0xff] %vm2467_vm3, %v3381_v16 }
 0x357   : > { %3666 = vrot.lane.b32.xlu1 %v12584_v50, %s7275_s15  ;;  %v3404_v26 = vpop.permute.xlu0 %3403 }
 0x358   : > { %3414 = vst.msk [vmem:[#allocation2 + $0x110] sm:$0xff] %vm2489_vm10, %v3404_v26 }
 0x359   : > { %3820 = vrot.lane.b32.xlu0 %v10625_v44, %s12377_s24  ;;  %v3316_v20 = vpop.permute.xlu1 %3315 }
 0x35a   : > { %3324 = vst.msk [vmem:[#allocation2 + $0x100] sm:$0x3] %vm12586_vm8, %v3316_v20  ;;  %vm4266_vm8 = vcmask 261120  }
 0x35b   : > { %3841 = vrot.lane.b32.xlu1 %v12587_v40, %s7275_s15  ;;  %v3427_v0 = vpop.permute.xlu0 %3426 }
 0x35c   : > { %3437 = vst.msk [vmem:[#allocation2 + $0x110] sm:$0xff] %vm2514_vm14, %v3427_v0 }
 0x35d   : > { %3843 = vrot.lane.b32.xlu0 %v10635_v29, %s7275_s15  ;;  %v3491_v25 = vpop.permute.xlu1 %3490 }
 0x35e   : > { %3502 = vst.msk [vmem:[#allocation2 + $0x100] sm:$0xfc] %vm12588_vm4, %v3491_v25  ;;  %vm12594_vm4 = vcmask 257152  }
 0x35f   : > { %3717 = vrot.lane.b32.xlu1 %v12589_v52, %s7274_s29  ;;  %v3443_v29 = vpop.permute.xlu0 %3442  ;;  %v4103_v52 = vadd.f32 %v11314_v47, %v11277_v7 }
 0x360   : > { %3453 = vst.msk [vmem:[#allocation2 + $0x110] sm:$0xff] %vm2539_vm13, %v3443_v29 }
 0x361   : > { %3795 = vrot.lane.b32.xlu0 %v12562_v15, %s7272_s13  ;;  %v3367_v44 = vpop.permute.xlu1 %3366 }
 0x362   : > { %3376 = vst.msk [vmem:[#allocation2 + $0x120] sm:$0xff] %vm2442_vm15, %v3367_v44 }
 0x363   : > { %3733 = vrot.lane.b32.xlu1 %v12561_v5, %s7271_s26  ;;  %v3470_v15 = vpop.permute.xlu0 %3469  ;;  %v4112_v41 = vpop.f32.mrb[8].mxu0 }
 0x364   : > { %3480 = vst.msk [vmem:[#allocation2 + $0x110] sm:$0xff] %vm2561_vm7, %v3470_v15  ;;  %v4113_v5 = vadd.f32 %v11314_v47, %v4112_v41 }
 0x365   : > { %3845 = vrot.lane.b32.xlu0 %v10855_v3, %s7275_s15  ;;  %v3383_v12 = vpop.permute.xlu1 %3382  ;;  %v3904_v57 = vld [vmem:[#allocation2 + $0x100] sm:$0xff]  ;;  %v4114_v3 = vpop.f32.mrb[9].mxu0 }
 0x366   : > { %3392 = vst.msk [vmem:[#allocation2 + $0x120] sm:$0xff] %vm2467_vm3, %v3383_v12  ;;  %4171 = vmatmul.mubr.f32.gmra.mrb[32].mxu0 %v3904_v57  ;;  %v4225_v58 = vmax.f32 %v4113_v5, 0.0 }
 0x367   : > { %3756 = vrot.lane.b32.xlu1 %v12590_v49, %s12284_s25  ;;  %5913 = vmatprep.mubr.msk.f32.mxu0 %vm2413_vm2, %v3907_v2  ;;  %v3493_v13 = vpop.permute.xlu0 %3492  ;;  %v4223_v2 = vmax.f32 %v4103_v52, 0.0 }
 0x368   : > { %v4252_v4 = vrot.slane %v4225_v58, 2  ;;  %3503 = vst.msk [vmem:[#allocation2 + $0x110] sm:$0xff] %vm2586_vm11, %v3493_v13 }
 0x369   : > { %3735 = vrot.lane.b32.xlu0 %v12564_v28, %s7271_s26  ;;  %v3406_v23 = vpop.permute.xlu1 %3405 }
 0x36a   : > { %3415 = vst.msk [vmem:[#allocation2 + $0x120] sm:$0xff] %vm2489_vm10, %v3406_v23  ;;  %v4253_v28 = vsel %vm12593_vm9, %v4251_v6, %v4252_v4  ;;  %vm12596_vm9 = vcmask 261252   ;;  %v3913_v23 = vld [vmem:[#allocation2 + $0x148] sm:$0xff] }
 0x36b   : > { %3779 = vrot.lane.b32.xlu1 %v12591_v35, %s7273_s16  ;;  %v4262_v24 = vmax.f32 %v4221_v9, %v4253_v28  ;;  %v3369_v21 = vpop.permute.xlu0 %3368  ;;  %v3915_v28 = vld [vmem:[#allocation2 + $0x158] sm:$0xff] }
 0x36c   : > { %3377 = vst.msk [vmem:[#allocation2 + $0x130] sm:$0xf] %vm12594_vm4, %v3369_v21  ;;  %vm12597_vm4 = vcmask 388352  }
 0x36d   : > { %3781 = vrot.lane.b32.xlu0 %v12592_v32, %s7273_s16  ;;  %v3429_v10 = vpop.permute.xlu1 %3428  ;;  %4267 = vst.msk [vmem:[#allocation3] sm:$0xff] %vm4266_vm8, %v4262_v24 }
 0x36e   : > { %3438 = vst.msk [vmem:[#allocation2 + $0x120] sm:$0xff] %vm2514_vm14, %v3429_v10 }
 0x36f   : > { %3822 = vrot.lane.b32.xlu1 %v10864_v17, %s12377_s24  ;;  %v3533_v19 = vpop.permute.xlu0 %3532  ;;  %v3906_v33 = vld [vmem:[#allocation2 + $0x110] sm:$0xff] }
 0x370   : > { %3544 = vst.msk [vmem:[#allocation2 + $0x130] sm:$0xf0] %vm12596_vm9, %v3533_v19  ;;  %4176 = vmatmul.mubr.f32.gmra.mrb[34].mxu0 %v3906_v33  ;;  %vm12600_vm9 = vcmask 519552  }
 0x371   : > { %3824 = vrot.lane.b32.xlu0 %v10872_v31, %s12377_s24  ;;  %v3445_v14 = vpop.permute.xlu1 %3444  ;;  %5914 = vmatprep.mubr.msk.f32.mxu0 %vm2413_vm2, %v3909_v30 }
 0x372   : > { %3454 = vst.msk [vmem:[#allocation2 + $0x120] sm:$0xff] %vm2539_vm13, %v3445_v14 }
 0x373   : > { %3719 = vrot.lane.b32.xlu1 %v12595_v51, %s7274_s29  ;;  %v3472_v31 = vpop.permute.xlu0 %3471 }
 0x374   : > { %3481 = vst.msk [vmem:[#allocation2 + $0x120] sm:$0xff] %vm2561_vm7, %v3472_v31 }
 0x375   : > { %v3385_v17 = vpop.permute.xlu1 %3384 }
 0x376   : > { %3393 = vst.msk [vmem:[#allocation2 + $0x130] sm:$0xf] %vm12597_vm4, %v3385_v17  ;;  %v4117_v63 = vpop.f32.mrb[10].mxu0  ;;  %vm12602_vm4 = vcmask 1045504  }
 0x377   : > { %3758 = vrot.lane.b32.xlu1 %v12598_v8, %s12284_s25  ;;  %v4118_v39 = vadd.f32 %v11314_v47, %v4117_v63  ;;  %v4119_v54 = vpop.f32.mrb[11].mxu0  ;;  %v3408_v53 = vpop.permute.xlu0 %3407 }
 0x378   : > { %3416 = vst.msk [vmem:[#allocation2 + $0x130] sm:$0xf] %vm12600_vm9, %v3408_v53  ;;  %vm12604_vm9 = vcmask 654852  }
 0x379   : > { %v3549_v46 = vpop.permute.xlu1 %3548  ;;  %v4226_v36 = vmax.f32 %v4118_v39, 0.0  ;;  %v3917_v39 = vld [vmem:[#allocation2 + $0x168] sm:$0xff] }
 0x37a   : > { %3560 = vst.msk [vmem:[#allocation2 + $0x130] sm:$0xf0] %vm12599_vm12, %v3549_v46  ;;  %vm12601_vm12 = vcmask 523652  }
 0x37b   : > { %3797 = vrot.lane.b32.xlu1 %v10554_v37, %s7272_s13  ;;  %v4254_v61 = vrot.slane %v4226_v36, 2  ;;  %v3572_v18 = vpop.permute.xlu0 %3571  ;;  %s393_s13 = scalar_lea.vmem [#allocation7], %s392_s30 }
 0x37c   : > { %3583 = vst.msk [vmem:[#allocation2 + $0x130] sm:$0xf0] %vm12601_vm12, %v3572_v18  ;;  %vm12607_vm12 = vcmask 917252  }
 0x37d   : > { %v3495_v42 = vpop.permute.xlu1 %3494  ;;  %v4255_v59 = vsel %vm12602_vm4, %v4252_v4, %v4254_v61  ;;  %vm4270_vm4 = vcmask 254976  }
 0x37e   : > { %3504 = vst.msk [vmem:[#allocation2 + $0x120] sm:$0xff] %vm2586_vm11, %v3495_v42  ;;  %v4263_v56 = vmax.f32 %v4222_v60, %v4255_v59 }
 0x37f   : > { %3847 = vrot.lane.b32.xlu1 %v10875_v62, %s7275_s15  ;;  %v3595_v37 = vpop.permute.xlu0 %3594 }
 0x380   : > { %3606 = vst.msk [vmem:[#allocation2 + $0x130] sm:$0xf0] %vm12604_vm9, %v3595_v37  ;;  %vm12610_vm9 = vcmask 1045504  }
 0x381   : > { %v3431_v48 = vpop.permute.xlu1 %3430  ;;  %4268 = vst.msk [vmem:[#allocation3 + $0x8] sm:$0xff] %vm4266_vm8, %v4263_v56 }
 0x382   : > { %3439 = vst.msk [vmem:[#allocation2 + $0x130] sm:$0xf] %vm12603_vm5, %v3431_v48  ;;  %vm12606_vm5 = vcmask 913152  }
 0x383   : > { %v3535_v62 = vpop.permute.xlu0 %3534 }
 0x384   : > { %3545 = vst.msk [vmem:[#allocation2 + $0x140] sm:$0xff] %vm2442_vm15, %v3535_v62 }
 0x385   : > { %v3447_v45 = vpop.permute.xlu1 %3446  ;;  %v3908_v11 = vld [vmem:[#allocation2 + $0x120] sm:$0xff] }
 0x386   : > { %3455 = vst.msk [vmem:[#allocation2 + $0x130] sm:$0xf] %vm12605_vm0, %v3447_v45  ;;  %4181 = vmatmul.mubr.f32.gmra.mrb[36].mxu0 %v3908_v11  ;;  %vm12608_vm0 = vcmask 1044352  }
 0x387   : > { %5915 = vmatprep.mubr.msk.f32.mxu0 %vm2413_vm2, %v3911_v34  ;;  %v3474_v16 = vpop.permute.xlu0 %3473 }
 0x388   : > { %3482 = vst.msk [vmem:[#allocation2 + $0x130] sm:$0xf] %vm12606_vm5, %v3474_v16  ;;  %vm12612_vm5 = vcmask 261254  }
 0x389   : > { %v3611_v1 = vpop.permute.xlu1 %3610 }
 0x38a   : > { %3622 = vst.msk [vmem:[#allocation2 + $0x130] sm:$0xf0] %vm2919_vm6, %v3611_v1  ;;  %vm12609_vm6 = vcmask 1048452   ;;  %v3919_v1 = vld [vmem:[#allocation2 + $0x178] sm:$0xff] }
 0x38b   : > { %v3638_v50 = vpop.permute.xlu0 %3637 }
 0x38c   : > { %3649 = vst.msk [vmem:[#allocation2 + $0x130] sm:$0xf0] %vm12607_vm12, %v3638_v50  ;;  %vm12613_vm12 = vcmask 390400  }
 0x38d   : > { %v3551_v27 = vpop.permute.xlu1 %3550 }
 0x38e   : > { %3561 = vst.msk [vmem:[#allocation2 + $0x140] sm:$0xff] %vm2467_vm3, %v3551_v27 }
 0x38f   : > { %v3574_v0 = vpop.permute.xlu0 %3573 }
 0x390   : > { %3584 = vst.msk [vmem:[#allocation2 + $0x140] sm:$0xff] %vm2489_vm10, %v3574_v0 }
 0x391   : > { %v3497_v20 = vpop.permute.xlu1 %3496  ;;  %v4122_v26 = vpop.f32.mrb[12].mxu0 }
 0x392   : > { %3505 = vst.msk [vmem:[#allocation2 + $0x130] sm:$0xf] %vm12608_vm0, %v3497_v20  ;;  %v11385_v40 = vadd.f32 %v11314_v47, %v4122_v26  ;;  %v4124_v25 = vpop.f32.mrb[13].mxu0  ;;  %vm12614_vm0 = vcmask 392454  }
 0x393   : > { %v3597_v57 = vpop.permute.xlu0 %3596 }
 0x394   : > { %v4227_v44 = vmax.f32 %v11385_v40, 0.0  ;;  %3607 = vst.msk [vmem:[#allocation2 + $0x140] sm:$0xff] %vm2514_vm14, %v3597_v57 }
 0x395   : > { %v3661_v29 = vpop.permute.xlu1 %3660 }
 0x396   : > { %v4256_v12 = vrot.slane %v4227_v44, 2  ;;  %3672 = vst.msk [vmem:[#allocation2 + $0x130] sm:$0xf0] %vm12609_vm6, %v3661_v29  ;;  %vm12615_vm6 = vcmask 521600  }
 0x397   : > { %v3613_v5 = vpop.permute.xlu0 %3612 }
 0x398   : > { %v4257_v15 = vsel %vm12610_vm9, %v4254_v61, %v4256_v12  ;;  %v4265_v7 = vmax.f32 %v4224_v43, %v4256_v12  ;;  %3623 = vst.msk [vmem:[#allocation2 + $0x140] sm:$0xff] %vm2539_vm13, %v3613_v5  ;;  %vm12617_vm9 = vcmask 652800  }
 0x399   : > { %v4264_v41 = vmax.f32 %v4223_v2, %v4257_v15  ;;  %v3537_v49 = vpop.permute.xlu1 %3536 }
 0x39a   : > { %4271 = vst.msk [vmem:[#allocation3 + $0x18] sm:$0x3] %vm4270_vm4, %v4265_v7  ;;  %vm12616_vm4 = vcmask 523654  }
 0x39b   : > { %3546 = vst.msk [vmem:[#allocation2 + $0x150] sm:$0xff] %vm2442_vm15, %v3537_v49  ;;  %v3640_v58 = vpop.permute.xlu0 %3639  ;;  %v11402_v13 = vpop.f32.mrb[14].mxu0 }
 0x39c   : > { %4269 = vst.msk [vmem:[#allocation3 + $0x10] sm:$0xff] %vm4266_vm8, %v4264_v41  ;;  %v4129_v38 = vpop.f32.mrb[15].mxu0  ;;  %vm12611_vm8 = vcmask 259200  }
 0x39d   : > { %v3553_v3 = vpop.permute.xlu1 %3552  ;;  %v3910_v55 = vld [vmem:[#allocation2 + $0x130] sm:$0xff]  ;;  %3650 = vst.msk [vmem:[#allocation2 + $0x140] sm:$0xff] %vm2561_vm7, %v3640_v58  ;;  %v4128_v38 = vadd.f32 %v11314_v47, %v11402_v13 }
 0x39e   : > { %3562 = vst.msk [vmem:[#allocation2 + $0x150] sm:$0xff] %vm2467_vm3, %v3553_v3  ;;  %4186 = vmatmul.mubr.f32.gmra.mrb[38].mxu0 %v3910_v55  ;;  %v3921_v3 = vld [vmem:[#allocation2 + $0x188] sm:$0xff] }
 0x39f   : > { %5916 = vmatprep.mubr.msk.f32.mxu0 %vm2413_vm2, %v3913_v23  ;;  %v3663_v6 = vpop.permute.xlu0 %3662 }
 0x3a0   : > { %3673 = vst.msk [vmem:[#allocation2 + $0x140] sm:$0xff] %vm2586_vm11, %v3663_v6 }
 0x3a1   : > { %v3576_v43 = vpop.permute.xlu1 %3575 }
 0x3a2   : > { %3585 = vst.msk [vmem:[#allocation2 + $0x150] sm:$0xff] %vm2489_vm10, %v3576_v43 }
 0x3a3   : > { %v3539_v4 = vpop.permute.xlu0 %3538 }
 0x3a4   : > { %3547 = vst.msk [vmem:[#allocation2 + $0x160] sm:$0x3f] %vm12611_vm8, %v3539_v4  ;;  %vm12618_vm8 = vcmask 654854  }
 0x3a5   : > { %v3599_v35 = vpop.permute.xlu1 %3598 }
 0x3a6   : > { %3608 = vst.msk [vmem:[#allocation2 + $0x150] sm:$0xff] %vm2514_vm14, %v3599_v35 }
 0x3a7   : > { %v3714_v32 = vpop.permute.xlu0 %3713  ;;  %v3912_v10 = vld [vmem:[#allocation2 + $0x140] sm:$0xff] }
 0x3a8   : > { %3725 = vst.msk [vmem:[#allocation2 + $0x160] sm:$0xc0] %vm12612_vm5, %v3714_v32  ;;  %4191 = vmatmul.mubr.f32.gmra.mrb[40].mxu0 %v3912_v10  ;;  %vm12619_vm5 = vcmask 784000   ;;  %v4228_v32 = vmax.f32 %v4128_v38, 0.0  ;;  %v3923_v10 = vld [vmem:[#allocation2 + $0x198] sm:$0xff]  ;;  %v12628_v38 = vmov 0.0|0.0  }
 0x3a9   : > { %v3615_v9 = vpop.permute.xlu1 %3614  ;;  %5917 = vmatprep.mubr.msk.f32.mxu0 %vm2413_vm2, %v3915_v28 }
 0x3aa   : > { %3624 = vst.msk [vmem:[#allocation2 + $0x150] sm:$0xff] %vm2539_vm13, %v3615_v9 }
 0x3ab   : > { %v3642_v21 = vpop.permute.xlu0 %3641 }
 0x3ac   : > { %3651 = vst.msk [vmem:[#allocation2 + $0x150] sm:$0xff] %vm2561_vm7, %v3642_v21 }
 0x3ad   : > { %v3555_v24 = vpop.permute.xlu1 %3554 }
 0x3ae   : > { %3563 = vst.msk [vmem:[#allocation2 + $0x160] sm:$0x3f] %vm12613_vm12, %v3555_v24  ;;  %vm12620_vm12 = vcmask 915200  }
 0x3af   : > { %v3578_v51 = vpop.permute.xlu0 %3577 }
 0x3b0   : > { %3586 = vst.msk [vmem:[#allocation2 + $0x160] sm:$0x3f] %vm12615_vm6, %v3578_v51  ;;  %vm12622_vm6 = vcmask 1046400  }
 0x3b1   : > { %v3730_v14 = vpop.permute.xlu1 %3729  ;;  %v11415_v19 = vpop.f32.mrb[16].mxu0 }
 0x3b2   : > { %3741 = vst.msk [vmem:[#allocation2 + $0x160] sm:$0xc0] %vm12614_vm0, %v3730_v14  ;;  %v4134_v33 = vpop.f32.mrb[17].mxu0  ;;  %vm12621_vm0 = vcmask 917254  }
 0x3b3   : > { %v3753_v17 = vpop.permute.xlu0 %3752 }
 0x3b4   : > { %3764 = vst.msk [vmem:[#allocation2 + $0x160] sm:$0xc0] %vm12616_vm4, %v3753_v17  ;;  %vm12623_vm4 = vcmask 1048454   ;;  %v4133_v17 = vadd.f32 %v11314_v47, %v11415_v19 }
 0x3b5   : > { %v3665_v30 = vpop.permute.xlu1 %3664 }
 0x3b6   : > { %3674 = vst.msk [vmem:[#allocation2 + $0x150] sm:$0xff] %vm2586_vm11, %v3665_v30 }
 0x3b7   : > { %v3776_v8 = vpop.permute.xlu0 %3775 }
 0x3b8   : > { %3787 = vst.msk [vmem:[#allocation2 + $0x160] sm:$0xc0] %vm12618_vm8, %v3776_v8  ;;  %vm7277_vm8 = vmmov 0  }
 0x3b9   : > { %v3601_v31 = vpop.permute.xlu1 %3600 }
 0x3ba   : > { %3609 = vst.msk [vmem:[#allocation2 + $0x160] sm:$0x3f] %vm12617_vm9, %v3601_v31  ;;  %vm4349_vm9 = vcmask 785920  }
 0x3bb   : > { %v3716_v54 = vpop.permute.xlu0 %3715 }
 0x3bc   : > { %3726 = vst.msk [vmem:[#allocation2 + $0x170] sm:$0xff] %vm2442_vm15, %v3716_v54 }
 0x3bd   : > { %v3617_v46 = vpop.permute.xlu1 %3616  ;;  %v3914_v63 = vld [vmem:[#allocation2 + $0x150] sm:$0xff] }
 0x3be   : > { %3625 = vst.msk [vmem:[#allocation2 + $0x160] sm:$0x3f] %vm12619_vm5, %v3617_v46  ;;  %4196 = vmatmul.mubr.f32.gmra.mrb[42].mxu0 %v3914_v63  ;;  %v4229_v46 = vmax.f32 %v4133_v17, 0.0  ;;  %v4773_v17 = vld [vmem:[#allocation4 + $0x240] sm:$0xff] }
 0x3bf   : > { %5918 = vmatprep.mubr.msk.f32.mxu0 %vm2413_vm2, %v3917_v39  ;;  %v3644_v22 = vpop.permute.xlu0 %3643 }
 0x3c0   : > { %3652 = vst.msk [vmem:[#allocation2 + $0x160] sm:$0x3f] %vm12620_vm12, %v3644_v22 }
 0x3c1   : > { %v3792_v53 = vpop.permute.xlu1 %3791 }
 0x3c2   : > { %3803 = vst.msk [vmem:[#allocation2 + $0x160] sm:$0xc0] %vm3112_vm1, %v3792_v53  ;;  %vm12624_vm1 = vcmask 1045504  }
 0x3c3   : > { %v3819_v42 = vpop.permute.xlu0 %3818  ;;  %vm12632_vm5 = vmmov %vm12624_vm1 }
 0x3c4   : > { %3830 = vst.msk [vmem:[#allocation2 + $0x160] sm:$0xc0] %vm12621_vm0, %v3819_v42  ;;  %vm12633_vm12 = vmmov %vm12624_vm1  ;;  %vm4312_vm0 = vcmask 521472  }
 0x3c5   : > { %v3732_v36 = vpop.permute.xlu1 %3731 }
 0x3c6   : > { %3742 = vst.msk [vmem:[#allocation2 + $0x170] sm:$0xff] %vm2467_vm3, %v3732_v36 }
 0x3c7   : > { %v3755_v59 = vpop.permute.xlu0 %3754 }
 0x3c8   : > { %3765 = vst.msk [vmem:[#allocation2 + $0x170] sm:$0xff] %vm2489_vm10, %v3755_v59 }
 0x3c9   : > { %v3667_v61 = vpop.permute.xlu1 %3666  ;;  %v4137_v18 = vpop.f32.mrb[18].mxu0 }
 0x3ca   : > { %3675 = vst.msk [vmem:[#allocation2 + $0x160] sm:$0x3f] %vm12622_vm6, %v3667_v61  ;;  %v4139_v60 = vpop.f32.mrb[19].mxu0  ;;  %v11436_v11 = vadd.f32 %v11314_v47, %v4137_v18  ;;  %vm4392_vm6 = vcmask 1048320  }
 0x3cb   : > { %v3778_v48 = vpop.permute.xlu0 %3777 }
 0x3cc   : > { %3788 = vst.msk [vmem:[#allocation2 + $0x170] sm:$0xff] %vm2514_vm14, %v3778_v48  ;;  %v4230_v50 = vmax.f32 %v11436_v11, 0.0 }
 0x3cd   : > { %v3842_v56 = vpop.permute.xlu1 %3841 }
 0x3ce   : > { %3853 = vst.msk [vmem:[#allocation2 + $0x160] sm:$0xc0] %vm12623_vm4, %v3842_v56  ;;  %v4276_v29 = vrot.slane %v4230_v50, 2  ;;  %vm4390_vm4 = vcmask 1048324  }
 0x3cf   : > { %v3794_v45 = vpop.permute.xlu0 %3793 }
 0x3d0   : > { %3804 = vst.msk [vmem:[#allocation2 + $0x170] sm:$0xff] %vm2539_vm13, %v3794_v45 }
 0x3d1   : > { %v3718_v37 = vpop.permute.xlu1 %3717 }
 0x3d2   : > { %3727 = vst.msk [vmem:[#allocation2 + $0x180] sm:$0xff] %vm2442_vm15, %v3718_v37 }
 0x3d3   : > { %v3821_v16 = vpop.permute.xlu0 %3820  ;;  %v4142_v27 = vpop.f32.mrb[20].mxu0 }
 0x3d4   : > { %3831 = vst.msk [vmem:[#allocation2 + $0x170] sm:$0xff] %vm2561_vm7, %v3821_v16  ;;  %v4143_v20 = vadd.f32 %v11314_v47, %v4142_v27  ;;  %v4144_v26 = vpop.f32.mrb[21].mxu0 }
 0x3d5   : > { %v3734_v34 = vpop.permute.xlu1 %3733  ;;  %v3916_v62 = vld [vmem:[#allocation2 + $0x160] sm:$0xff] }
 0x3d6   : > { %3743 = vst.msk [vmem:[#allocation2 + $0x180] sm:$0xff] %vm2467_vm3, %v3734_v34  ;;  %4201 = vmatmul.mubr.f32.gmra.mrb[44].mxu0 %v3916_v62  ;;  %v4231_v0 = vmax.f32 %v4143_v20, 0.0 }
 0x3d7   : > { %5919 = vmatprep.mubr.msk.f32.mxu0 %vm2413_vm2, %v3919_v1  ;;  %v3844_v52 = vpop.permute.xlu0 %3843 }
 0x3d8   : > { %v4277_v12 = vrot.slane %v4231_v0, 2  ;;  %3854 = vst.msk [vmem:[#allocation2 + $0x170] sm:$0xff] %vm2586_vm11, %v3844_v52 }
 0x3d9   : > { %v3757_v25 = vpop.permute.xlu1 %3756 }
 0x3da   : > { %3766 = vst.msk [vmem:[#allocation2 + $0x180] sm:$0xff] %vm2489_vm10, %v3757_v25  ;;  %v4278_v2 = vsel %vm12624_vm1, %v4276_v29, %v4277_v12 }
 0x3db   : > { %v4287_v15 = vmax.f32 %v4227_v44, %v4278_v2  ;;  %v3796_v7 = vpop.permute.xlu0 %3795  ;;  %v4767_v2 = vld [vmem:[#allocation4 + $0x210] sm:$0xff] }
 0x3dd   : > { %v3780_v57 = vpop.permute.xlu1 %3779  ;;  %4295 = vrot.lane.b32.xlu0 %v4287_v15, %s7271_s26 }
 0x3de   : > { %3789 = vst.msk [vmem:[#allocation2 + $0x180] sm:$0xff] %vm2514_vm14, %v3780_v57  ;;  %v4766_v57 = vld [vmem:[#allocation4 + $0x208] sm:$0xff] }
 0x3df   : > { %3805 = vst.msk [vmem:[#allocation2 + $0x180] sm:$0xff] %vm2539_vm13, %v3796_v7  ;;  %v3846_v49 = vpop.permute.xlu0 %3845  ;;  %v3918_v5 = vld [vmem:[#allocation2 + $0x170] sm:$0xff] }
 0x3e0   : > { %4206 = vmatmul.mubr.f32.gmra.mrb[46].mxu0 %v3918_v5  ;;  %v4402_v5 = vld [vmem:[#allocation4 + $0x8] sm:$0xff] }
 0x3e1   : > { %v3823_v41 = vpop.permute.xlu1 %3822  ;;  %5920 = vmatprep.mubr.msk.f32.mxu0 %vm2413_vm2, %v3921_v3 }
 0x3e2   : > { %3832 = vst.msk [vmem:[#allocation2 + $0x180] sm:$0xff] %vm2561_vm7, %v3823_v41  ;;  %v4768_v41 = vld [vmem:[#allocation4 + $0x218] sm:$0xff] }
 0x3e3   : > { %3855 = vst.msk [vmem:[#allocation2 + $0x180] sm:$0xff] %vm2586_vm11, %v3846_v49  ;;  %v3736_v58 = vpop.permute.xlu0 %3735  ;;  %v4401_v49 = vld [vmem:[#allocation4] sm:$0xff] }
 0x3e4   : > { %v6710_v3 = vpack.c.bf16 %v4402_v5, %v4401_v49 }
 0x3e5   : > { %v3720_v55 = vpop.permute.xlu1 %3719  ;;  %v4147_v23 = vpop.f32.mrb[22].mxu0 }
 0x3e6   : > { %3728 = vst.msk [vmem:[#allocation2 + $0x190] sm:$0xff] %vm2442_vm15, %v3720_v55  ;;  %v4148_v40 = vadd.f32 %v11314_v47, %v4147_v23  ;;  %v4149_v44 = vpop.f32.mrb[23].mxu0  ;;  %vm12625_vm15 = vmmov %vm12624_vm1  ;;  %v4403_v55 = vld [vmem:[#allocation4 + $0x10] sm:$0xff]  ;;  %6711 = vmatpush3.bf16.msra.mxu0 %v6710_v3 }
 0x3e7   : > { %3744 = vst.msk [vmem:[#allocation2 + $0x190] sm:$0xff] %vm2467_vm3, %v3736_v58  ;;  %v3782_v4 = vpop.permute.xlu0 %3781  ;;  %v4404_v44 = vld [vmem:[#allocation4 + $0x18] sm:$0xff]  ;;  %6712 = vmatprep.subr.bf16.mxu0 %v12628_v38  ;;  %vm12631_vm3 = vmmov %vm12624_vm1 }
 0x3e8   : > { %v4232_v43 = vmax.f32 %v4148_v40, 0.0  ;;  %v6809_v40 = vpack.c.bf16 %v4768_v41, %v4767_v2 }
 0x3e9   : > { %v3759_v6 = vpop.permute.xlu1 %3758 }
 0x3ea   : > { %v4279_v35 = vrot.slane %v4232_v43, 2  ;;  %3767 = vst.msk [vmem:[#allocation2 + $0x190] sm:$0xff] %vm2489_vm10, %v3759_v6  ;;  %v3920_v9 = vld [vmem:[#allocation2 + $0x180] sm:$0xff]  ;;  %vm12627_vm10 = vmmov %vm12624_vm1  ;;  %v4770_v6 = vld [vmem:[#allocation4 + $0x228] sm:$0xff] }
 0x3eb   : > { %3790 = vst.msk [vmem:[#allocation2 + $0x190] sm:$0xff] %vm2514_vm14, %v3782_v4  ;;  %4211 = vmatmul.mubr.f32.gmra.mrb[48].mxu0 %v3920_v9  ;;  %v3825_v21 = vpop.permute.xlu0 %3824  ;;  %v4769_v43 = vld [vmem:[#allocation4 + $0x220] sm:$0xff]  ;;  %v6713_v4 = vpack.c.bf16 %v4404_v44, %v4403_v55  ;;  %vm12630_vm14 = vmmov %vm12624_vm1  ;;  %v4779_v44 = vld [vmem:[#allocation4 + $0x270] sm:$0xff] }
 0x3ec   : > { %v4280_v28 = vsel %vm12625_vm15, %v4277_v12, %v4279_v35  ;;  %5921 = vmatprep.mubr.msk.f32.mxu0 %vm2413_vm2, %v3923_v10  ;;  %vm12626_vm2 = vmmov %vm12624_vm1  ;;  %v4765_v12 = vld [vmem:[#allocation4 + $0x200] sm:$0xff]  ;;  %vm4395_vm15 = vcmask 1046272  }
 0x3ed   : > { %v4288_v24 = vmax.f32 %v4228_v32, %v4280_v28  ;;  %v3798_v13 = vpop.permute.xlu1 %3797  ;;  %v6806_v7 = vpack.c.bf16 %v4766_v57, %v4765_v12  ;;  %v4405_v10 = vld [vmem:[#allocation4 + $0x20] sm:$0xff]  ;;  %v4406_v28 = vld [vmem:[#allocation4 + $0x28] sm:$0xff]  ;;  %6714 = vmatpush3.bf16.msra.mxu0 %v6713_v4 }
 0x3ee   : > { %3806 = vst.msk [vmem:[#allocation2 + $0x190] sm:$0xff] %vm2539_vm13, %v3798_v13  ;;  %vm12629_vm13 = vmmov %vm12624_vm1  ;;  %v4771_v13 = vld [vmem:[#allocation4 + $0x230] sm:$0xff]  ;;  %6715 = vmatprep.subr.bf16.mxu0 %v12628_v38  ;;  %v4410_v12 = vld [vmem:[#allocation4 + $0x48] sm:$0xff]  ;;  %vm4353_vm1 = vcmask 779776  }
 0x3ef   : > { %4297 = vrot.lane.b32.xlu1 %v4288_v24, %s7271_s26  ;;  %3833 = vst.msk [vmem:[#allocation2 + $0x190] sm:$0xff] %vm2561_vm7, %v3825_v21  ;;  %6807 = vmatpush3.bf16.msra.mxu1 %v6806_v7  ;;  %vm4309_vm7 = vcmask 523520   ;;  %v6812_v24 = vpack.c.bf16 %v4770_v6, %v4769_v43  ;;  %v4772_v21 = vld [vmem:[#allocation4 + $0x238] sm:$0xff]  ;;  %v4777_v57 = vld [vmem:[#allocation4 + $0x260] sm:$0xff] }
 0x3f0   : > { %6808 = vmatprep.subr.bf16.mxu1 %v12628_v38  ;;  %v4780_v6 = vld [vmem:[#allocation4 + $0x278] sm:$0xff] }
 0x3f1   : > { %v3848_v14 = vpop.permute.xlu1 %3847  ;;  %v4152_v33 = vpop.f32.mrb[24].mxu0  ;;  %v6827_v4 = vpack.c.bf16 %v4780_v6, %v4779_v44  ;;  %v4865_v44 = vld [vmem:[#allocation4 + $0x2c8] sm:$0xff]  ;;  %v4498_v6 = vld [vmem:[#allocation4 + $0xb0] sm:$0xff] }
 0x3f2   : > { %v4153_v51 = vadd.f32 %v11314_v47, %v4152_v33  ;;  %v4154_v30 = vpop.f32.mrb[25].mxu0  ;;  %3856 = vst.msk [vmem:[#allocation2 + $0x190] sm:$0xff] %vm2586_vm11, %v3848_v14  ;;  %vm4307_vm11 = vcmask 523524   ;;  %v6716_v14 = vpack.c.bf16 %v4406_v28, %v4405_v10  ;;  %v4407_v33 = vld [vmem:[#allocation4 + $0x30] sm:$0xff]  ;;  %v4413_v10 = vld [vmem:[#allocation4 + $0x60] sm:$0xff]  ;;  %v4414_v28 = vld [vmem:[#allocation4 + $0x68] sm:$0xff] }
 0x3f3   : > { %6810 = vmatpush3.bf16.msra.mxu1 %v6809_v40  ;;  %v6815_v30 = vpack.c.bf16 %v4772_v21, %v4771_v13  ;;  %v4412_v40 = vld [vmem:[#allocation4 + $0x58] sm:$0xff]  ;;  %v7278_v13 = vmov 0.0   ;;  %v6728_v21 = vpack.c.bf16 %v4414_v28, %v4413_v10  ;;  %v4500_v28 = vld [vmem:[#allocation4 + $0xc0] sm:$0xff] }
 0x3f4   : > { %v4233_v31 = vmax.f32 %v4153_v51, 0.0  ;;  %6811 = vmatprep.subr.bf16.mxu1 %v12628_v38  ;;  %v4408_v51 = vld [vmem:[#allocation4 + $0x38] sm:$0xff]  ;;  %6717 = vmatpush3.bf16.msra.mxu0 %v6716_v14 }
 0x3f5   : > { %6718 = vmatprep.subr.bf16.mxu0 %v12628_v38  ;;  %6345 = vmatprep.mubr.msk.f32.mxu1 %vm7277_vm8, %v7278_v13 }
 0x3f6   : > { %v4281_v8 = vrot.slane %v4233_v31, 2  ;;  %v4774_v31 = vld [vmem:[#allocation4 + $0x248] sm:$0xff] }
 0x3f7   : > { %6813 = vmatpush3.bf16.msra.mxu1 %v6812_v24 }
 0x3f8   : > { %v4282_v63 = vsel %vm12626_vm2, %v4279_v35, %v4281_v8  ;;  %v11476_v39 = vmax.f32 %v4230_v50, %v4281_v8  ;;  %6814 = vmatprep.subr.bf16.mxu1 %v12628_v38  ;;  %v6719_v8 = vpack.c.bf16 %v4408_v51, %v4407_v33  ;;  %v4415_v51 = vld [vmem:[#allocation4 + $0x70] sm:$0xff]  ;;  %vm5678_vm2 = vcmask 523264  }
 0x3f9   : > { %v4289_v54 = vmax.f32 %v4229_v46, %v4282_v63  ;;  %v3922_v53 = vld [vmem:[#allocation2 + $0x190] sm:$0xff]  ;;  %v6818_v46 = vpack.c.bf16 %v4774_v31, %v4773_v17 }
 0x3fa   : > { %4216 = vmatmul.mubr.f32.gmra.mrb[50].mxu0 %v3922_v53  ;;  %v4775_v63 = vld [vmem:[#allocation4 + $0x250] sm:$0xff] }
 0x3fb   : > { %4299 = vrot.lane.b32.xlu0 %v4289_v54, %s7271_s26  ;;  %6816 = vmatpush3.bf16.msra.mxu1 %v6815_v30  ;;  %v4776_v54 = vld [vmem:[#allocation4 + $0x258] sm:$0xff] }
 0x3fc   : > { %6817 = vmatprep.subr.bf16.mxu1 %v12628_v38  ;;  %6720 = vmatpush3.bf16.msra.mxu0 %v6719_v8  ;;  %v4416_v30 = vld [vmem:[#allocation4 + $0x78] sm:$0xff] }
 0x3fd   : > { %6721 = vmatprep.subr.bf16.mxu0 %v12628_v38  ;;  %6205 = vmatprep.mubr.msk.f32.mxu0 %vm7277_vm8, %v7278_v13  ;;  %v6731_v17 = vpack.c.bf16 %v4416_v30, %v4415_v51  ;;  %v4502_v30 = vld [vmem:[#allocation4 + $0xd0] sm:$0xff] }
 0x3ff   : > { %6819 = vmatpush3.bf16.msra.mxu1 %v6818_v46 }
 0x400   : > { %6820 = vmatprep.subr.bf16.mxu1 %v12628_v38 }
 0x401   : > { %v4157_v22 = vpop.f32.mrb[26].mxu0 }
 0x402   : > { %v4159_v36 = vpop.f32.mrb[27].mxu0  ;;  %v4158_v34 = vadd.f32 %v11314_v47, %v4157_v22 }
 0x404   : > { %v4234_v27 = vmax.f32 %v4158_v34, 0.0 }
 0x40b   : > { %v4162_v42 = vpop.f32.mrb[28].mxu0 }
 0x40c   : > { %v4164_v61 = vpop.f32.mrb[29].mxu0  ;;  %v4163_v29 = vadd.f32 %v11314_v47, %v4162_v42 }
 0x40e   : > { %v4235_v58 = vmax.f32 %v4163_v29, 0.0  ;;  %v4409_v29 = vld [vmem:[#allocation4 + $0x40] sm:$0xff] }
 0x40f   : > { %v6722_v2 = vpack.c.bf16 %v4410_v12, %v4409_v29  ;;  %v4494_v12 = vld [vmem:[#allocation4 + $0x90] sm:$0xff] }
 0x411   : > { %6723 = vmatpush3.bf16.msra.mxu0 %v6722_v2  ;;  %v4495_v2 = vld [vmem:[#allocation4 + $0x98] sm:$0xff] }
 0x412   : > { %6724 = vmatprep.subr.bf16.mxu0 %v12628_v38 }
 0x421   : > { %v11479_v18 = vpop.f32.mrb[30].mxu0 }
 0x422   : > { %v4169_v19 = vpop.f32.mrb[31].mxu0  ;;  %v4168_v61 = vadd.f32 %v11314_v47, %v11479_v18 }
 0x439   : > { %v4172_v60 = vpop.f32.mrb[32].mxu0 }
 0x43a   : > { %v4174_v59 = vpop.f32.mrb[33].mxu0  ;;  %v11482_v56 = vadd.f32 %v11314_v47, %v4172_v60 }
 0x43b   : > { %v4236_v59 = vmax.f32 %v4168_v61, 0.0 }
 0x43c   : > { %v4237_v37 = vmax.f32 %v11482_v56, 0.0 }
 0x43e   : > { %v4318_v1 = vrot.slane %v4237_v37, 2 }
 0x443   : > { %v4177_v48 = vpop.f32.mrb[34].mxu0 }
 0x444   : > { %v4178_v45 = vadd.f32 %v11314_v47, %v4177_v48  ;;  %v4179_v11 = vpop.f32.mrb[35].mxu0 }
 0x446   : > { %v4238_v62 = vmax.f32 %v4178_v45, 0.0 }
 0x448   : > { %v4319_v16 = vrot.slane %v4238_v62, 2 }
 0x44a   : > { %v4320_v50 = vsel %vm12627_vm10, %v4318_v1, %v4319_v16  ;;  %vm5752_vm10 = vcmask 8192  }
 0x44b   : > { %v4329_v20 = vmax.f32 %v4234_v27, %v4320_v50 }
 0x44d   : > { %4337 = vrot.lane.b32.xlu1 %v4329_v20, %s7273_s16 }
 0x44f   : > { %v4296_v26 = vpop.permute.xlu0 %4295 }
 0x450   : > { %4308 = vst.msk [vmem:[#allocation3 - $0x4] sm:$0xf0] %vm4307_vm11, %v4296_v26 }
 0x459   : > { %v4182_v25 = vpop.f32.mrb[36].mxu0 }
 0x45a   : > { %v4183_v0 = vadd.f32 %v11314_v47, %v4182_v25  ;;  %v4184_v52 = vpop.f32.mrb[37].mxu0 }
 0x45c   : > { %v4239_v15 = vmax.f32 %v4183_v0, 0.0 }
 0x45e   : > { %v4321_v23 = vrot.slane %v4239_v15, 2  ;;  %v4778_v15 = vld [vmem:[#allocation4 + $0x268] sm:$0xff] }
 0x45f   : > { %v6824_v41 = vpack.c.bf16 %v4778_v15, %v4777_v57  ;;  %v4862_v15 = vld [vmem:[#allocation4 + $0x2b0] sm:$0xff] }
 0x460   : > { %v4322_v35 = vsel %vm12629_vm13, %v4319_v16, %v4321_v23 }
 0x461   : > { %v4330_v9 = vmax.f32 %v4235_v58, %v4322_v35  ;;  %v4298_v32 = vpop.permute.xlu1 %4297 }
 0x462   : > { %4310 = vst.msk [vmem:[#allocation3 + $0x4] sm:$0xff] %vm4309_vm7, %v4298_v32 }
 0x463   : > { %4339 = vrot.lane.b32.xlu0 %v4330_v9, %s7273_s16 }
 0x467   : > { %4301 = vrot.lane.b32.xlu0 %v11476_v39, %s7271_s26  ;;  %v6821_v39 = vpack.c.bf16 %v4776_v54, %v4775_v63  ;;  %s5923_s26 = sshll.u32 %s7361_s21, 4  ;;  %s7279_s21 = smov [#allocation7]  }
 0x468   : > { %s11768_s25 = scalar_lea.hbm %s11821_s11, %s5923_s26  ;;  %s7201_s14 = sshll.u32 %s7279_s21, 4  ;;  %s7202_s14 = int_to_ptr.vmem [resolvable:$false] %s7201_s14 }
 0x469   : > { %6822 = vmatpush3.bf16.msra.mxu1 %v6821_v39  ;;  %s7203_s22 = scalar_lea.vmem %s7202_s14, 32 }
 0x46a   : > { %6823 = vmatprep.subr.bf16.mxu1 %v12628_v38 }
 0x46d   : > { %v4300_v53 = vpop.permute.xlu0 %4299  ;;  %6825 = vmatpush3.bf16.msra.mxu1 %v6824_v41 }
 0x46e   : > { %4311 = vst.msk [vmem:[#allocation3 + $0xc] sm:$0xff] %vm4309_vm7, %v4300_v53  ;;  %6826 = vmatprep.subr.bf16.mxu1 %v12628_v38 }
 0x471   : > { %v4187_v22 = vpop.f32.mrb[38].mxu0  ;;  %6828 = vmatpush3.bf16.msra.mxu1 %v6827_v4  ;;  %v4866_v4 = vld [vmem:[#allocation4 + $0x2d0] sm:$0xff] }
 0x472   : > { %v4188_v36 = vadd.f32 %v11314_v47, %v4187_v22  ;;  %v4189_v42 = vpop.f32.mrb[39].mxu0  ;;  %6829 = vmatprep.subr.bf16.mxu1 %v12628_v38 }
 0x474   : > { %v4240_v19 = vmax.f32 %v4188_v36, 0.0 }
 0x476   : > { %v4323_v60 = vrot.slane %v4240_v19, 2 }
 0x478   : > { %v4324_v48 = vsel %vm12630_vm14, %v4321_v23, %v4323_v60  ;;  %v11515_v45 = vmax.f32 %v4237_v37, %v4323_v60  ;;  %v4411_v23 = vld [vmem:[#allocation4 + $0x50] sm:$0xff] }
 0x479   : > { %v4331_v11 = vmax.f32 %v4236_v59, %v4324_v48  ;;  %v6725_v43 = vpack.c.bf16 %v4412_v40, %v4411_v23  ;;  %v4856_v59 = vld [vmem:[#allocation4 + $0x280] sm:$0xff]  ;;  %v4857_v48 = vld [vmem:[#allocation4 + $0x288] sm:$0xff] }
 0x47a   : > { %v4497_v23 = vld [vmem:[#allocation4 + $0xa8] sm:$0xff]  ;;  %v4864_v40 = vld [vmem:[#allocation4 + $0x2c0] sm:$0xff] }
 0x47b   : > { %v4192_v34 = vpop.f32.mrb[40].mxu0  ;;  %6726 = vmatpush3.bf16.msra.mxu0 %v6725_v43  ;;  %v6842_v43 = vpack.c.bf16 %v4865_v44, %v4864_v40 }
 0x47c   : > { %v4194_v62 = vpop.f32.mrb[41].mxu0  ;;  %v4193_v58 = vadd.f32 %v11314_v47, %v4192_v34  ;;  %6727 = vmatprep.subr.bf16.mxu0 %v12628_v38 }
 0x47e   : > { %v4241_v24 = vmax.f32 %v4193_v58, 0.0 }
 0x47f   : > { %6729 = vmatpush3.bf16.msra.mxu0 %v6728_v21  ;;  %v4868_v21 = vld [vmem:[#allocation4 + $0x2e0] sm:$0xff] }
 0x480   : > { %6730 = vmatprep.subr.bf16.mxu0 %v12628_v38 }
 0x483   : > { %6732 = vmatpush3.bf16.msra.mxu0 %v6731_v17  ;;  %v4503_v17 = vld [vmem:[#allocation4 + $0xd8] sm:$0xff] }
 0x484   : > { %6733 = vmatprep.subr.bf16.mxu0 %v12628_v38 }
 0x491   : > { %v11517_v1 = vpop.f32.mrb[42].mxu0 }
 0x492   : > { %v4199_v16 = vpop.f32.mrb[43].mxu0  ;;  %v4198_v63 = vadd.f32 %v11314_v47, %v11517_v1  ;;  %v6830_v1 = vpack.c.bf16 %v4857_v48, %v4856_v59  ;;  %v4507_v59 = vld [vmem:[#allocation4 + $0xf8] sm:$0xff]  ;;  %v4949_v48 = vld [vmem:[#allocation4 + $0x310] sm:$0xff] }
 0x494   : > { %v4242_v39 = vmax.f32 %v4198_v63, 0.0 }
 0x4a9   : > { %v4202_v27 = vpop.f32.mrb[44].mxu0 }
 0x4aa   : > { %v4204_v50 = vpop.f32.mrb[45].mxu0  ;;  %v11520_v18 = vadd.f32 %v11314_v47, %v4202_v27  ;;  %v4858_v27 = vld [vmem:[#allocation4 + $0x290] sm:$0xff] }
 0x4ab   : > { %v4859_v50 = vld [vmem:[#allocation4 + $0x298] sm:$0xff] }
 0x4ac   : > { %v4243_v26 = vmax.f32 %v11520_v18, 0.0  ;;  %v4492_v18 = vld [vmem:[#allocation4 + $0x80] sm:$0xff] }
 0x4ae   : > { %v4359_v37 = vrot.slane %v4243_v26, 2 }
 0x4b3   : > { %v4207_v20 = vpop.f32.mrb[46].mxu0 }
 0x4b4   : > { %v4208_v25 = vadd.f32 %v11314_v47, %v4207_v20  ;;  %v4209_v0 = vpop.f32.mrb[47].mxu0  ;;  %v4493_v20 = vld [vmem:[#allocation4 + $0x88] sm:$0xff] }
 0x4b6   : > { %v4244_v56 = vmax.f32 %v4208_v25, 0.0  ;;  %v4861_v25 = vld [vmem:[#allocation4 + $0x2a8] sm:$0xff] }
 0x4b8   : > { %v4360_v52 = vrot.slane %v4244_v56, 2 }
 0x4ba   : > { %v4361_v7 = vsel %vm12631_vm3, %v4359_v37, %v4360_v52 }
 0x4bb   : > { %v4370_v49 = vmax.f32 %v4240_v19, %v4361_v7  ;;  %v4863_v7 = vld [vmem:[#allocation4 + $0x2b8] sm:$0xff] }
 0x4be   : > { %v4212_v5 = vpop.f32.mrb[48].mxu0 }
 0x4bf   : > { %v4213_v3 = vadd.f32 %v11314_v47, %v4212_v5  ;;  %v4214_v55 = vpop.f32.mrb[49].mxu0  ;;  %v4338_v9 = vpop.permute.xlu1 %4337  ;;  %v6737_v5 = vpack.c.bf16 %v4495_v2, %v4494_v12  ;;  %v4588_v2 = vld [vmem:[#allocation4 + $0x128] sm:$0xff] }
 0x4c0   : > { %4350 = vst.msk [vmem:[#allocation3] sm:$0xff] %vm4349_vm9, %v4338_v9  ;;  %v4496_v55 = vld [vmem:[#allocation4 + $0xa0] sm:$0xff]  ;;  %v4867_v9 = vld [vmem:[#allocation4 + $0x2d8] sm:$0xff] }
 0x4c1   : > { %v4245_v35 = vmax.f32 %v4213_v3, 0.0  ;;  %v6839_v3 = vpack.c.bf16 %v4863_v7, %v4862_v15  ;;  %v6740_v58 = vpack.c.bf16 %v4497_v23, %v4496_v55  ;;  %v6845_v10 = vpack.c.bf16 %v4867_v9, %v4866_v4  ;;  %v4955_v15 = vld [vmem:[#allocation4 + $0x340] sm:$0xff]  ;;  %v4956_v7 = vld [vmem:[#allocation4 + $0x348] sm:$0xff]  ;;  %v4957_v55 = vld [vmem:[#allocation4 + $0x350] sm:$0xff] }
 0x4c2   : > { %v4958_v23 = vld [vmem:[#allocation4 + $0x358] sm:$0xff] }
 0x4c3   : > { %v4362_v32 = vrot.slane %v4245_v35, 2  ;;  %v4499_v35 = vld [vmem:[#allocation4 + $0xb8] sm:$0xff]  ;;  %v6869_v44 = vpack.c.bf16 %v4958_v23, %v4957_v55 }
 0x4c5   : > { %v4363_v14 = vsel %vm12632_vm5, %v4360_v52, %v4362_v32  ;;  %v6734_v52 = vpack.c.bf16 %v4493_v20, %v4492_v18 }
 0x4c6   : > { %v4371_v33 = vmax.f32 %v4241_v24, %v4363_v14  ;;  %v4501_v24 = vld [vmem:[#allocation4 + $0xc8] sm:$0xff] }
 0x4c7   : > { %v4869_v14 = vld [vmem:[#allocation4 + $0x2e8] sm:$0xff] }
 0x4c8   : > { %4380 = vrot.lane.b32.xlu1 %v4371_v33, %s12377_s24  ;;  %v6746_v33 = vpack.c.bf16 %v4501_v24, %v4500_v28  ;;  %v6848_v51 = vpack.c.bf16 %v4869_v14, %v4868_v21  ;;  %v4961_v28 = vld [vmem:[#allocation4 + $0x370] sm:$0xff]  ;;  %v4962_v24 = vld [vmem:[#allocation4 + $0x378] sm:$0xff] }
 0x4c9   : > { %v6875_v14 = vpack.c.bf16 %v4962_v24, %v4961_v28 }
 0x4cc   : > { %4341 = vrot.lane.b32.xlu1 %v4331_v11, %s7273_s16 }
 0x4cd   : > { %v4217_v31 = vpop.f32.mrb[50].mxu0 }
 0x4ce   : > { %v4218_v8 = vadd.f32 %v11314_v47, %v4217_v31  ;;  %v4219_v46 = vpop.f32.mrb[51].mxu0  ;;  %v4870_v31 = vld [vmem:[#allocation4 + $0x2f0] sm:$0xff] }
 0x4cf   : > { %v6749_v46 = vpack.c.bf16 %v4503_v17, %v4502_v30  ;;  %v5038_v30 = vld [vmem:[#allocation4 + $0x380] sm:$0xff]  ;;  %v5039_v17 = vld [vmem:[#allocation4 + $0x388] sm:$0xff] }
 0x4d0   : > { %v4246_v54 = vmax.f32 %v4218_v8, 0.0  ;;  %4378 = vrot.lane.b32.xlu1 %v4370_v49, %s12377_s24  ;;  %v4871_v8 = vld [vmem:[#allocation4 + $0x2f8] sm:$0xff] }
 0x4d1   : > { %v6851_v63 = vpack.c.bf16 %v4871_v8, %v4870_v31 }
 0x4d2   : > { %v4364_v53 = vrot.slane %v4246_v54, 2  ;;  %v4504_v54 = vld [vmem:[#allocation4 + $0xe0] sm:$0xff] }
 0x4d4   : > { %v4365_v22 = vsel %vm12633_vm12, %v4362_v32, %v4364_v53  ;;  %v4373_v36 = vmax.f32 %v4243_v26, %v4364_v53  ;;  %v4860_v26 = vld [vmem:[#allocation4 + $0x2a0] sm:$0xff]  ;;  %v6743_v32 = vpack.c.bf16 %v4499_v35, %v4498_v6  ;;  %v4505_v53 = vld [vmem:[#allocation4 + $0xe8] sm:$0xff] }
 0x4d5   : > { %v4372_v42 = vmax.f32 %v4242_v39, %v4365_v22  ;;  %v4340_v61 = vpop.permute.xlu0 %4339  ;;  %v6836_v29 = vpack.c.bf16 %v4861_v25, %v4860_v26  ;;  %v4947_v39 = vld [vmem:[#allocation4 + $0x300] sm:$0xff]  ;;  %v4948_v22 = vld [vmem:[#allocation4 + $0x308] sm:$0xff]  ;;  %v4585_v25 = vld [vmem:[#allocation4 + $0x110] sm:$0xff] }
 0x4d6   : > { %4351 = vst.msk [vmem:[#allocation3 + $0x8] sm:$0xff] %vm4349_vm9, %v4340_v61  ;;  %4384 = vrot.lane.b32.xlu1 %v4373_v36, %s12377_s24  ;;  %v6752_v61 = vpack.c.bf16 %v4505_v53, %v4504_v54  ;;  %v4959_v6 = vld [vmem:[#allocation4 + $0x360] sm:$0xff]  ;;  %v4960_v35 = vld [vmem:[#allocation4 + $0x368] sm:$0xff]  ;;  %v4597_v54 = vld [vmem:[#allocation4 + $0x170] sm:$0xff] }
 0x4d7   : > { %4382 = vrot.lane.b32.xlu0 %v4372_v42, %s12377_s24  ;;  %v6872_v9 = vpack.c.bf16 %v4960_v35, %v4959_v6  ;;  %s5755_s24 = scalar_lea.sflag [#allocation6], %s392_s30 }
 0x4d9   : > { %v4302_v47 = vpop.permute.xlu0 %4301 }
 0x4da   : > { %4313 = vst.msk [vmem:[#allocation3 + $0x14] sm:$0x3f] %vm4312_vm0, %v4302_v47  ;;  %v6854_v47 = vpack.c.bf16 %v4948_v22, %v4947_v39  ;;  %v4598_v39 = vld [vmem:[#allocation4 + $0x178] sm:$0xff]  ;;  %v5040_v22 = vld [vmem:[#allocation4 + $0x390] sm:$0xff] }
 0x4db   : > { %4343 = vrot.lane.b32.xlu0 %v11515_v45, %s7273_s16  ;;  %v6833_v45 = vpack.c.bf16 %v4859_v50, %v4858_v27  ;;  %v4951_v27 = vld [vmem:[#allocation4 + $0x320] sm:$0xff]  ;;  %v4952_v50 = vld [vmem:[#allocation4 + $0x328] sm:$0xff]  ;;  %s5767_s16 = sshll.u32 %s393_s13, 4  ;;  %s11770_s16 = int_to_ptr.vmem [resolvable:$true] %s5767_s16 }
 0x4dc   : > { %v6860_v26 = vpack.c.bf16 %v4952_v50, %v4951_v27  ;;  %v4677_v27 = vld [vmem:[#allocation4 + $0x198] sm:$0xff]  ;;  %v5044_v50 = vld [vmem:[#allocation4 + $0x3b0] sm:$0xff]  ;;  %s7197_s12 = scalar_lea.vmem %s11770_s16, 16  ;;  %p7204_p2 = scmp.lt.s32.totalorder %s11770_s16, %s7202_s14 }
 0x4dd   : > { %p7198_p6 = scmp.ne.s32.totalorder %s11770_s16, %s7197_s12  ;;  %p7205_p3 = scmp.lt.s32.totalorder %s7203_s22, %s7197_s12 }
 0x4df   : > { %p7199_p10 = pnand %p7198_p6, %p12634_p9  ;;  %p7206_p4 = por %p7205_p3, %p7204_p2 }
 0x4e1   : > { %p7200_p12 = pneg %p7199_p10 }
 0x4e3   : > { %p7207_p7 = pnand %p7206_p4, %p7200_p12 }
 0x53a   : > { %v4381_v19 = vpop.permute.xlu1 %4380 }
 0x53b   : > { %4393 = vst.msk [vmem:[#allocation3 + $0x4] sm:$0xff] %vm4392_vm6, %v4381_v19  ;;  %v4506_v19 = vld [vmem:[#allocation4 + $0xf0] sm:$0xff] }
 0x53e   : > { %v4342_v60 = vpop.permute.xlu1 %4341 }
 0x53f   : > { %4352 = vst.msk [vmem:[#allocation3 + $0x10] sm:$0xff] %vm4349_vm9, %v4342_v60 }
 0x542   : > { %v4379_v11 = vpop.permute.xlu1 %4378  ;;  %v4761_v34 = vld [vmem:[#allocation3 + $0x8] sm:$0x1]  ;;  %v4762_v62 = vld [vmem:[#allocation3 + $0x9] sm:$0x1]  ;;  %v4852_v36 = vld [vmem:[#allocation3 + $0xa] sm:$0x1] }
 0x543   : > { %4391 = vst.msk [vmem:[#allocation3 - $0x4] sm:$0xf0] %vm4390_vm4, %v4379_v11  ;;  %v4763_v16 = vmax.f32 %v4761_v34, %v4762_v62  ;;  %v4853_v42 = vld [vmem:[#allocation3 + $0xb] sm:$0x1]  ;;  %v4950_v11 = vld [vmem:[#allocation4 + $0x318] sm:$0xff]  ;;  %v6755_v34 = vpack.c.bf16 %v4507_v59, %v4506_v19 }
 0x544   : > { %v4854_v60 = vmax.f32 %v4852_v36, %v4853_v42  ;;  %v6857_v62 = vpack.c.bf16 %v4950_v11, %v4949_v48  ;;  %v5041_v36 = vld [vmem:[#allocation4 + $0x398] sm:$0xff]  ;;  %v6779_v42 = vpack.c.bf16 %v4598_v39, %v4597_v54  ;;  %v4675_v19 = vld [vmem:[#allocation4 + $0x188] sm:$0xff]  ;;  %v4579_v48 = vld [vmem:[#allocation3 + $0x4] sm:$0x1] }
 0x545   : > { %6346 = vmatmul.mubr.f32.vlgmr.msra.gmra.mrb[0].mxu1 %v4763_v16  ;;  %v4584_v16 = vld [vmem:[#allocation4 + $0x108] sm:$0xff]  ;;  %v4580_v11 = vld [vmem:[#allocation3 + $0x5] sm:$0x1]  ;;  %v4671_v39 = vld [vmem:[#allocation3 + $0x7] sm:$0x1] }
 0x546   : > { %6831 = vmatpush3.bf16.msra.mxu1 %v6830_v1  ;;  %6380 = vmatprep.mubr.msk.f32.mxu1 %vm7277_vm8, %v7278_v13  ;;  %v4583_v1 = vld [vmem:[#allocation4 + $0x100] sm:$0xff]  ;;  %v5043_v59 = vld [vmem:[#allocation4 + $0x3a8] sm:$0xff] }
 0x547   : > { %6832 = vmatprep.subr.bf16.mxu1 %v12628_v38  ;;  %v6758_v20 = vpack.c.bf16 %v4584_v16, %v4583_v1  ;;  %v4676_v1 = vld [vmem:[#allocation4 + $0x190] sm:$0xff]  ;;  %v4581_v16 = vmax.f32 %v4579_v48, %v4580_v11  ;;  %v5134_v54 = vld [vmem:[#allocation4 + $0x428] sm:$0xff]  ;;  %v5140_v11 = vld [vmem:[#allocation4 + $0x458] sm:$0xff] }
 0x548   : > { %v4385_v49 = vpop.permute.xlu1 %4384  ;;  %v5139_v48 = vld [vmem:[#allocation4 + $0x450] sm:$0xff] }
 0x549   : > { %v4383_v0 = vpop.permute.xlu0 %4382 }
 0x54a   : > { %4394 = vst.msk [vmem:[#allocation3 + $0xc] sm:$0xff] %vm4392_vm6, %v4383_v0  ;;  %6834 = vmatpush3.bf16.msra.mxu1 %v6833_v45  ;;  %v4398_v56 = vld [vmem:[#allocation3] sm:$0x1]  ;;  %v4399_v37 = vld [vmem:[#allocation3 + $0x1] sm:$0x1] }
 0x54b   : > { %6835 = vmatprep.subr.bf16.mxu1 %v12628_v38  ;;  %v4400_v57 = vmax.f32 %v4398_v56, %v4399_v37  ;;  %v4488_v45 = vld [vmem:[#allocation3 + $0x2] sm:$0x1]  ;;  %v4489_v18 = vld [vmem:[#allocation3 + $0x3] sm:$0x1]  ;;  %v4586_v56 = vld [vmem:[#allocation4 + $0x118] sm:$0xff] }
 0x54c   : > { %v4490_v0 = vmax.f32 %v4488_v45, %v4489_v18  ;;  %v4953_v37 = vld [vmem:[#allocation4 + $0x330] sm:$0xff]  ;;  %v5045_v45 = vld [vmem:[#allocation4 + $0x3b8] sm:$0xff]  ;;  %v6785_v18 = vpack.c.bf16 %v4677_v27, %v4676_v1  ;;  %v5142_v1 = vld [vmem:[#allocation4 + $0x468] sm:$0xff] }
 0x54d   : > { %v4344_v41 = vpop.permute.xlu0 %4343  ;;  %6206 = vmatmul.mubr.f32.vlgmr.msra.gmra.mrb[52].mxu0 %v4400_v57  ;;  %v4587_v57 = vld [vmem:[#allocation4 + $0x120] sm:$0xff]  ;;  %v5143_v27 = vld [vmem:[#allocation4 + $0x470] sm:$0xff] }
 0x54e   : > { %4354 = vst.msk [vmem:[#allocation3 + $0x18] sm:$0x3] %vm4353_vm1, %v4344_v41  ;;  %6735 = vmatpush3.bf16.msra.mxu0 %v6734_v52  ;;  %6837 = vmatpush3.bf16.msra.mxu1 %v6836_v29  ;;  %v4954_v52 = vld [vmem:[#allocation4 + $0x338] sm:$0xff]  ;;  %v6761_v29 = vpack.c.bf16 %v4586_v56, %v4585_v25  ;;  %v6764_v41 = vpack.c.bf16 %v4588_v2, %v4587_v57  ;;  %v4679_v25 = vld [vmem:[#allocation4 + $0x1a8] sm:$0xff]  ;;  %v5048_v57 = vld [vmem:[#allocation4 + $0x3d0] sm:$0xff] }
 0x54f   : > { %4396 = vst.msk [vmem:[#allocation3 + $0x14] sm:$0x3f] %vm4395_vm15, %v4385_v49  ;;  %6736 = vmatprep.subr.bf16.mxu0 %v12628_v38  ;;  %6838 = vmatprep.subr.bf16.mxu1 %v12628_v38  ;;  %v6863_v12 = vpack.c.bf16 %v4954_v52, %v4953_v37  ;;  %v6866_v49 = vpack.c.bf16 %v4956_v7, %v4955_v15  ;;  %v5047_v56 = vld [vmem:[#allocation4 + $0x3c8] sm:$0xff]  ;;  %v5049_v2 = vld [vmem:[#allocation4 + $0x3d8] sm:$0xff] }
 0x550   : > { %6240 = vmatprep.mubr.msk.f32.mxu0 %vm7277_vm8, %v7278_v13  ;;  %v6893_v7 = vpack.c.bf16 %v5049_v2, %v5048_v57  ;;  %v5225_v57 = vld [vmem:[#allocation4 + $0x4a8] sm:$0xff] }
 0x551   : > { %v4943_v31 = vld [vmem:[#allocation3 + $0xc] sm:$0x1]  ;;  %v4944_v8 = vld [vmem:[#allocation3 + $0xd] sm:$0x1]  ;;  %v5034_v28 = vld [vmem:[#allocation3 + $0xe] sm:$0x1] }
 0x552   : > { %6738 = vmatpush3.bf16.msra.mxu0 %v6737_v5  ;;  %6840 = vmatpush3.bf16.msra.mxu1 %v6839_v3  ;;  %v4589_v5 = vld [vmem:[#allocation4 + $0x130] sm:$0xff]  ;;  %v4590_v3 = vld [vmem:[#allocation4 + $0x138] sm:$0xff]  ;;  %v4945_v53 = vmax.f32 %v4943_v31, %v4944_v8  ;;  %v5035_v24 = vld [vmem:[#allocation3 + $0xf] sm:$0x1] }
 0x553   : > { %6739 = vmatprep.subr.bf16.mxu0 %v12628_v38  ;;  %6841 = vmatprep.subr.bf16.mxu1 %v12628_v38  ;;  %v6767_v40 = vpack.c.bf16 %v4590_v3, %v4589_v5  ;;  %v5050_v5 = vld [vmem:[#allocation4 + $0x3e0] sm:$0xff]  ;;  %v5051_v3 = vld [vmem:[#allocation4 + $0x3e8] sm:$0xff]  ;;  %v5132_v31 = vld [vmem:[#allocation4 + $0x418] sm:$0xff] }
 0x554   : > { %v6896_v23 = vpack.c.bf16 %v5051_v3, %v5050_v5  ;;  %v5229_v5 = vld [vmem:[#allocation4 + $0x4c8] sm:$0xff] }
 0x556   : > { %6741 = vmatpush3.bf16.msra.mxu0 %v6740_v58  ;;  %6843 = vmatpush3.bf16.msra.mxu1 %v6842_v43  ;;  %v4591_v58 = vld [vmem:[#allocation4 + $0x140] sm:$0xff]  ;;  %v4592_v43 = vld [vmem:[#allocation4 + $0x148] sm:$0xff] }
 0x557   : > { %6742 = vmatprep.subr.bf16.mxu0 %v12628_v38  ;;  %6844 = vmatprep.subr.bf16.mxu1 %v12628_v38  ;;  %v6770_v4 = vpack.c.bf16 %v4592_v43, %v4591_v58  ;;  %v5052_v58 = vld [vmem:[#allocation4 + $0x3f0] sm:$0xff]  ;;  %v5053_v43 = vld [vmem:[#allocation4 + $0x3f8] sm:$0xff] }
 0x558   : > { %v6899_v35 = vpack.c.bf16 %v5053_v43, %v5052_v58  ;;  %v5233_v58 = vld [vmem:[#allocation4 + $0x4e8] sm:$0xff] }
 0x55a   : > { %6744 = vmatpush3.bf16.msra.mxu0 %v6743_v32  ;;  %6846 = vmatpush3.bf16.msra.mxu1 %v6845_v10  ;;  %v4593_v32 = vld [vmem:[#allocation4 + $0x150] sm:$0xff]  ;;  %v4594_v10 = vld [vmem:[#allocation4 + $0x158] sm:$0xff] }
 0x55b   : > { %6745 = vmatprep.subr.bf16.mxu0 %v12628_v38  ;;  %6847 = vmatprep.subr.bf16.mxu1 %v12628_v38  ;;  %v6773_v21 = vpack.c.bf16 %v4594_v10, %v4593_v32  ;;  %v5129_v32 = vld [vmem:[#allocation4 + $0x400] sm:$0xff]  ;;  %v5130_v10 = vld [vmem:[#allocation4 + $0x408] sm:$0xff] }
 0x55e   : > { %6747 = vmatpush3.bf16.msra.mxu0 %v6746_v33  ;;  %6849 = vmatpush3.bf16.msra.mxu1 %v6848_v51  ;;  %v4595_v33 = vld [vmem:[#allocation4 + $0x160] sm:$0xff]  ;;  %v4596_v51 = vld [vmem:[#allocation4 + $0x168] sm:$0xff] }
 0x55f   : > { %6748 = vmatprep.subr.bf16.mxu0 %v12628_v38  ;;  %6850 = vmatprep.subr.bf16.mxu1 %v12628_v38 }
 0x562   : > { %6750 = vmatpush3.bf16.msra.mxu0 %v6749_v46  ;;  %6852 = vmatpush3.bf16.msra.mxu1 %v6851_v63  ;;  %v6776_v46 = vpack.c.bf16 %v4596_v51, %v4595_v33  ;;  %v6878_v63 = vpack.c.bf16 %v5039_v17, %v5038_v30  ;;  %v4688_v33 = vld [vmem:[#allocation4 + $0x1f0] sm:$0xff]  ;;  %v5036_v51 = vmax.f32 %v5034_v28, %v5035_v24  ;;  %v4689_v30 = vld [vmem:[#allocation4 + $0x1f8] sm:$0xff] }
 0x563   : > { %6751 = vmatprep.subr.bf16.mxu0 %v12628_v38  ;;  %6853 = vmatprep.subr.bf16.mxu1 %v12628_v38  ;;  %v5131_v17 = vld [vmem:[#allocation4 + $0x410] sm:$0xff]  ;;  %v6803_v8 = vpack.c.bf16 %v4689_v30, %v4688_v33  ;;  %v5314_v33 = vld [vmem:[#allocation4 + $0x518] sm:$0xff]  ;;  %v5315_v30 = vld [vmem:[#allocation4 + $0x520] sm:$0xff] }
 0x564   : > { %v5217_v28 = vld [vmem:[#allocation3 + $0x13] sm:$0x1] }
 0x565   : > { %6381 = vmatmul.mubr.f32.vlgmr.msra.gmra.mrb[0].mxu1 %v4854_v60  ;;  %v5042_v60 = vld [vmem:[#allocation4 + $0x3a0] sm:$0xff] }
 0x566   : > { %6753 = vmatpush3.bf16.msra.mxu0 %v6752_v61  ;;  %6855 = vmatpush3.bf16.msra.mxu1 %v6854_v47  ;;  %v6881_v61 = vpack.c.bf16 %v5041_v36, %v5040_v22  ;;  %v4674_v47 = vld [vmem:[#allocation4 + $0x180] sm:$0xff] }
 0x567   : > { %6754 = vmatprep.subr.bf16.mxu0 %v12628_v38  ;;  %6856 = vmatprep.subr.bf16.mxu1 %v12628_v38 }
 0x568   : > { %6415 = vmatprep.mubr.msk.f32.mxu1 %vm7277_vm8, %v7278_v13 }
 0x56a   : > { %6756 = vmatpush3.bf16.msra.mxu0 %v6755_v34  ;;  %6858 = vmatpush3.bf16.msra.mxu1 %v6857_v62  ;;  %v6782_v34 = vpack.c.bf16 %v4675_v19, %v4674_v47  ;;  %v6884_v62 = vpack.c.bf16 %v5043_v59, %v5042_v60  ;;  %v5137_v19 = vld [vmem:[#allocation4 + $0x440] sm:$0xff]  ;;  %v5138_v60 = vld [vmem:[#allocation4 + $0x448] sm:$0xff] }
 0x56b   : > { %6757 = vmatprep.subr.bf16.mxu0 %v12628_v38  ;;  %6859 = vmatprep.subr.bf16.mxu1 %v12628_v38  ;;  %v6914_v59 = vpack.c.bf16 %v5138_v60, %v5137_v19  ;;  %v5325_v60 = vld [vmem:[#allocation4 + $0x570] sm:$0xff] }
 0x56d   : > { %6241 = vmatmul.mubr.f32.vlgmr.msra.gmra.mrb[52].mxu0 %v4490_v0  ;;  %v5046_v0 = vld [vmem:[#allocation4 + $0x3c0] sm:$0xff] }
 0x56e   : > { %6759 = vmatpush3.bf16.msra.mxu0 %v6758_v20  ;;  %6861 = vmatpush3.bf16.msra.mxu1 %v6860_v26  ;;  %v6887_v20 = vpack.c.bf16 %v5045_v45, %v5044_v50  ;;  %v4678_v26 = vld [vmem:[#allocation4 + $0x1a0] sm:$0xff]  ;;  %v6890_v52 = vpack.c.bf16 %v5047_v56, %v5046_v0  ;;  %v5144_v50 = vld [vmem:[#allocation4 + $0x478] sm:$0xff] }
 0x56f   : > { %6760 = vmatprep.subr.bf16.mxu0 %v12628_v38  ;;  %6862 = vmatprep.subr.bf16.mxu1 %v12628_v38  ;;  %v6788_v37 = vpack.c.bf16 %v4679_v25, %v4678_v26  ;;  %v6923_v45 = vpack.c.bf16 %v5144_v50, %v5143_v27  ;;  %v5125_v26 = vld [vmem:[#allocation3 + $0x10] sm:$0x1]  ;;  %v5126_v25 = vld [vmem:[#allocation3 + $0x11] sm:$0x1]  ;;  %v5582_v27 = vld [vmem:[%s11817_s7 + $0x8] sm:$0xff] }
 0x570   : > { %6275 = vmatprep.mubr.msk.f32.mxu0 %vm7277_vm8, %v7278_v13  ;;  %v5127_v56 = vmax.f32 %v5125_v26, %v5126_v25  ;;  %v5583_v50 = vld [vmem:[%s11817_s7 + $0x10] sm:$0xff] }
 0x571   : > { %v5404_v25 = vld [vmem:[#allocation4 + $0x590] sm:$0xff] }
 0x572   : > { %6762 = vmatpush3.bf16.msra.mxu0 %v6761_v29  ;;  %6864 = vmatpush3.bf16.msra.mxu1 %v6863_v12  ;;  %v4680_v29 = vld [vmem:[#allocation4 + $0x1b0] sm:$0xff]  ;;  %v4681_v12 = vld [vmem:[#allocation4 + $0x1b8] sm:$0xff] }
 0x573   : > { %6763 = vmatprep.subr.bf16.mxu0 %v12628_v38  ;;  %6865 = vmatprep.subr.bf16.mxu1 %v12628_v38  ;;  %v6791_v15 = vpack.c.bf16 %v4681_v12, %v4680_v29  ;;  %v5224_v12 = vld [vmem:[#allocation4 + $0x4a0] sm:$0xff] }
 0x574   : > { %v6932_v2 = vpack.c.bf16 %v5225_v57, %v5224_v12  ;;  %v5406_v12 = vld [vmem:[#allocation4 + $0x5a0] sm:$0xff]  ;;  %v5407_v57 = vld [vmem:[#allocation4 + $0x5a8] sm:$0xff] }
 0x576   : > { %6765 = vmatpush3.bf16.msra.mxu0 %v6764_v41  ;;  %6867 = vmatpush3.bf16.msra.mxu1 %v6866_v49  ;;  %v4682_v41 = vld [vmem:[#allocation4 + $0x1c0] sm:$0xff]  ;;  %v4683_v49 = vld [vmem:[#allocation4 + $0x1c8] sm:$0xff] }
 0x577   : > { %6766 = vmatprep.subr.bf16.mxu0 %v12628_v38  ;;  %6868 = vmatprep.subr.bf16.mxu1 %v12628_v38  ;;  %v6794_v55 = vpack.c.bf16 %v4683_v49, %v4682_v41  ;;  %v5228_v49 = vld [vmem:[#allocation4 + $0x4c0] sm:$0xff] }
 0x578   : > { %v6938_v3 = vpack.c.bf16 %v5229_v5, %v5228_v49  ;;  %v5408_v49 = vld [vmem:[#allocation4 + $0x5b0] sm:$0xff]  ;;  %v5409_v5 = vld [vmem:[#allocation4 + $0x5b8] sm:$0xff] }
 0x57a   : > { %6768 = vmatpush3.bf16.msra.mxu0 %v6767_v40  ;;  %6870 = vmatpush3.bf16.msra.mxu1 %v6869_v44  ;;  %v4684_v40 = vld [vmem:[#allocation4 + $0x1d0] sm:$0xff]  ;;  %v4685_v44 = vld [vmem:[#allocation4 + $0x1d8] sm:$0xff] }
 0x57b   : > { %6769 = vmatprep.subr.bf16.mxu0 %v12628_v38  ;;  %6871 = vmatprep.subr.bf16.mxu1 %v12628_v38  ;;  %v6797_v6 = vpack.c.bf16 %v4685_v44, %v4684_v40  ;;  %v5232_v44 = vld [vmem:[#allocation4 + $0x4e0] sm:$0xff] }
 0x57c   : > { %v6944_v43 = vpack.c.bf16 %v5233_v58, %v5232_v44  ;;  %v5410_v44 = vld [vmem:[#allocation4 + $0x5c0] sm:$0xff]  ;;  %v5411_v58 = vld [vmem:[#allocation4 + $0x5c8] sm:$0xff] }
 0x57e   : > { %6771 = vmatpush3.bf16.msra.mxu0 %v6770_v4  ;;  %6873 = vmatpush3.bf16.msra.mxu1 %v6872_v9  ;;  %v4686_v4 = vld [vmem:[#allocation4 + $0x1e0] sm:$0xff]  ;;  %v4687_v9 = vld [vmem:[#allocation4 + $0x1e8] sm:$0xff] }
 0x57f   : > { %6772 = vmatprep.subr.bf16.mxu0 %v12628_v38  ;;  %6874 = vmatprep.subr.bf16.mxu1 %v12628_v38 }
 0x582   : > { %6774 = vmatpush3.bf16.msra.mxu0 %v6773_v21  ;;  %6876 = vmatpush3.bf16.msra.mxu1 %v6875_v14  ;;  %v6800_v21 = vpack.c.bf16 %v4687_v9, %v4686_v4  ;;  %v6902_v14 = vpack.c.bf16 %v5130_v10, %v5129_v32  ;;  %v5311_v9 = vld [vmem:[#allocation4 + $0x500] sm:$0xff]  ;;  %v5312_v32 = vld [vmem:[#allocation4 + $0x508] sm:$0xff]  ;;  %v5216_v10 = vld [vmem:[#allocation3 + $0x12] sm:$0x1] }
 0x583   : > { %6775 = vmatprep.subr.bf16.mxu0 %v12628_v38  ;;  %6877 = vmatprep.subr.bf16.mxu1 %v12628_v38  ;;  %v6950_v24 = vpack.c.bf16 %v5312_v32, %v5311_v9  ;;  %v5412_v9 = vld [vmem:[#allocation4 + $0x5d0] sm:$0xff]  ;;  %v5413_v32 = vld [vmem:[#allocation4 + $0x5d8] sm:$0xff] }
 0x585   : > { %6416 = vmatmul.mubr.f32.vlgmr.msra.gmra.mrb[0].mxu1 %v4945_v53  ;;  %v4670_v53 = vld [vmem:[#allocation3 + $0x6] sm:$0x1] }
 0x586   : > { %6777 = vmatpush3.bf16.msra.mxu0 %v6776_v46  ;;  %6879 = vmatpush3.bf16.msra.mxu1 %v6878_v63  ;;  %v6905_v46 = vpack.c.bf16 %v5132_v31, %v5131_v17  ;;  %v5133_v63 = vld [vmem:[#allocation4 + $0x420] sm:$0xff]  ;;  %v4672_v36 = vmax.f32 %v4670_v53, %v4671_v39  ;;  %v5316_v17 = vld [vmem:[#allocation4 + $0x528] sm:$0xff] }
 0x587   : > { %6778 = vmatprep.subr.bf16.mxu0 %v12628_v38  ;;  %6880 = vmatprep.subr.bf16.mxu1 %v12628_v38  ;;  %v6908_v22 = vpack.c.bf16 %v5134_v54, %v5133_v63  ;;  %v6956_v31 = vpack.c.bf16 %v5316_v17, %v5315_v30  ;;  %v5319_v54 = vld [vmem:[#allocation4 + $0x540] sm:$0xff]  ;;  %v5320_v53 = vld [vmem:[#allocation4 + $0x548] sm:$0xff]  ;;  %v5416_v17 = vld [vmem:[#allocation4 + $0x5f0] sm:$0xff] }
 0x588   : > { %6450 = vmatprep.mubr.msk.f32.mxu1 %vm7277_vm8, %v7278_v13  ;;  %v6962_v39 = vpack.c.bf16 %v5320_v53, %v5319_v54  ;;  %v5398_v54 = vld [vmem:[#allocation3 + $0x16] sm:$0x1]  ;;  %v5399_v53 = vld [vmem:[#allocation3 + $0x17] sm:$0x1] }
 0x58a   : > { %6780 = vmatpush3.bf16.msra.mxu0 %v6779_v42  ;;  %6882 = vmatpush3.bf16.msra.mxu1 %v6881_v61  ;;  %v5135_v42 = vld [vmem:[#allocation4 + $0x430] sm:$0xff]  ;;  %v5136_v61 = vld [vmem:[#allocation4 + $0x438] sm:$0xff] }
 0x58b   : > { %6781 = vmatprep.subr.bf16.mxu0 %v12628_v38  ;;  %6883 = vmatprep.subr.bf16.mxu1 %v12628_v38  ;;  %v6911_v47 = vpack.c.bf16 %v5136_v61, %v5135_v42  ;;  %v5323_v61 = vld [vmem:[#allocation4 + $0x560] sm:$0xff] }
 0x58d   : > { %6276 = vmatmul.mubr.f32.vlgmr.msra.gmra.mrb[52].mxu0 %v4581_v16 }
 0x58e   : > { %6783 = vmatpush3.bf16.msra.mxu0 %v6782_v34  ;;  %6885 = vmatpush3.bf16.msra.mxu1 %v6884_v62  ;;  %v6917_v34 = vpack.c.bf16 %v5140_v11, %v5139_v48  ;;  %v5141_v62 = vld [vmem:[#allocation4 + $0x460] sm:$0xff] }
 0x58f   : > { %6784 = vmatprep.subr.bf16.mxu0 %v12628_v38  ;;  %6886 = vmatprep.subr.bf16.mxu1 %v12628_v38  ;;  %v6920_v16 = vpack.c.bf16 %v5142_v1, %v5141_v62  ;;  %v5402_v11 = vld [vmem:[#allocation4 + $0x580] sm:$0xff]  ;;  %v5307_v62 = vld [vmem:[#allocation3 + $0x14] sm:$0x1]  ;;  %v5308_v1 = vld [vmem:[#allocation3 + $0x15] sm:$0x1] }
 0x590   : > { %6310 = vmatprep.mubr.msk.f32.mxu0 %vm7277_vm8, %v7278_v13  ;;  %v5309_v26 = vmax.f32 %v5307_v62, %v5308_v1  ;;  %v5502_v62 = vld [vmem:[#allocation4 + $0x648] sm:$0xff] }
 0x592   : > { %6786 = vmatpush3.bf16.msra.mxu0 %v6785_v18  ;;  %6888 = vmatpush3.bf16.msra.mxu1 %v6887_v20  ;;  %v5220_v18 = vld [vmem:[#allocation4 + $0x480] sm:$0xff]  ;;  %v5221_v20 = vld [vmem:[#allocation4 + $0x488] sm:$0xff] }
 0x593   : > { %6787 = vmatprep.subr.bf16.mxu0 %v12628_v38  ;;  %6889 = vmatprep.subr.bf16.mxu1 %v12628_v38  ;;  %v6926_v0 = vpack.c.bf16 %v5221_v20, %v5220_v18  ;;  %v5584_v20 = vld [vmem:[%s11817_s7 + $0x18] sm:$0xff] }
 0x596   : > { %6789 = vmatpush3.bf16.msra.mxu0 %v6788_v37  ;;  %6891 = vmatpush3.bf16.msra.mxu1 %v6890_v52  ;;  %v5222_v37 = vld [vmem:[#allocation4 + $0x490] sm:$0xff]  ;;  %v5223_v52 = vld [vmem:[#allocation4 + $0x498] sm:$0xff] }
 0x597   : > { %6790 = vmatprep.subr.bf16.mxu0 %v12628_v38  ;;  %6892 = vmatprep.subr.bf16.mxu1 %v12628_v38  ;;  %v6929_v29 = vpack.c.bf16 %v5223_v52, %v5222_v37  ;;  %v5585_v37 = vld [vmem:[%s11817_s7 + $0x20] sm:$0xff]  ;;  %v5586_v52 = vld [vmem:[%s11817_s7 + $0x28] sm:$0xff] }
 0x59a   : > { %6792 = vmatpush3.bf16.msra.mxu0 %v6791_v15  ;;  %6894 = vmatpush3.bf16.msra.mxu1 %v6893_v7  ;;  %v5226_v15 = vld [vmem:[#allocation4 + $0x4b0] sm:$0xff]  ;;  %v5227_v7 = vld [vmem:[#allocation4 + $0x4b8] sm:$0xff] }
 0x59b   : > { %6793 = vmatprep.subr.bf16.mxu0 %v12628_v38  ;;  %6895 = vmatprep.subr.bf16.mxu1 %v12628_v38  ;;  %v6935_v41 = vpack.c.bf16 %v5227_v7, %v5226_v15  ;;  %v5587_v15 = vld [vmem:[%s11817_s7 + $0x30] sm:$0xff]  ;;  %v5588_v7 = vld [vmem:[%s11817_s7 + $0x38] sm:$0xff] }
 0x59e   : > { %6795 = vmatpush3.bf16.msra.mxu0 %v6794_v55  ;;  %6897 = vmatpush3.bf16.msra.mxu1 %v6896_v23  ;;  %v5230_v55 = vld [vmem:[#allocation4 + $0x4d0] sm:$0xff]  ;;  %v5231_v23 = vld [vmem:[#allocation4 + $0x4d8] sm:$0xff] }
 0x59f   : > { %6796 = vmatprep.subr.bf16.mxu0 %v12628_v38  ;;  %6898 = vmatprep.subr.bf16.mxu1 %v12628_v38  ;;  %v6941_v40 = vpack.c.bf16 %v5231_v23, %v5230_v55  ;;  %v5589_v55 = vld [vmem:[%s11817_s7 + $0x40] sm:$0xff]  ;;  %v5590_v23 = vld [vmem:[%s11817_s7 + $0x48] sm:$0xff] }
 0x5a2   : > { %6798 = vmatpush3.bf16.msra.mxu0 %v6797_v6  ;;  %6900 = vmatpush3.bf16.msra.mxu1 %v6899_v35  ;;  %v5234_v6 = vld [vmem:[#allocation4 + $0x4f0] sm:$0xff]  ;;  %v5235_v35 = vld [vmem:[#allocation4 + $0x4f8] sm:$0xff] }
 0x5a3   : > { %6799 = vmatprep.subr.bf16.mxu0 %v12628_v38  ;;  %6901 = vmatprep.subr.bf16.mxu1 %v12628_v38  ;;  %v6947_v4 = vpack.c.bf16 %v5235_v35, %v5234_v6  ;;  %v5591_v6 = vld [vmem:[%s11817_s7 + $0x50] sm:$0xff]  ;;  %v5592_v35 = vld [vmem:[%s11817_s7 + $0x58] sm:$0xff] }
 0x5a5   : > { %6451 = vmatmul.mubr.f32.vlgmr.msra.gmra.mrb[0].mxu1 %v5036_v51 }
 0x5a6   : > { %6801 = vmatpush3.bf16.msra.mxu0 %v6800_v21  ;;  %6903 = vmatpush3.bf16.msra.mxu1 %v6902_v14  ;;  %v5218_v21 = vmax.f32 %v5216_v10, %v5217_v28  ;;  %v5313_v14 = vld [vmem:[#allocation4 + $0x510] sm:$0xff]  ;;  %v7037_v10 = vpack.c.bf16 %v5592_v35, %v5591_v6  ;;  %v5593_v28 = vld [vmem:[%s11817_s7 + $0x60] sm:$0xff] }
 0x5a7   : > { %6802 = vmatprep.subr.bf16.mxu0 %v12628_v38  ;;  %6904 = vmatprep.subr.bf16.mxu1 %v12628_v38  ;;  %v6953_v51 = vpack.c.bf16 %v5314_v33, %v5313_v14  ;;  %v5414_v14 = vld [vmem:[#allocation4 + $0x5e0] sm:$0xff]  ;;  %v5415_v33 = vld [vmem:[#allocation4 + $0x5e8] sm:$0xff] }
 0x5a8   : > { %6485 = vmatprep.mubr.msk.f32.mxu1 %vm7277_vm8, %v7278_v13  ;;  %v6992_v30 = vpack.c.bf16 %v5415_v33, %v5414_v14  ;;  %v5673_v35 = vld [vmem:[%s11819_s9 + $0x20] sm:$0xff] }
 0x5aa   : > { %6804 = vmatpush3.bf16.msra.mxu0 %v6803_v8  ;;  %6906 = vmatpush3.bf16.msra.mxu1 %v6905_v46  ;;  %v5317_v8 = vld [vmem:[#allocation4 + $0x530] sm:$0xff]  ;;  %v5318_v46 = vld [vmem:[#allocation4 + $0x538] sm:$0xff] }
 0x5ab   : > { %6907 = vmatprep.subr.bf16.mxu1 %v12628_v38  ;;  %7021 = vmatprep.subr.bf16.mxu0 %v12628_v38  ;;  %v6959_v63 = vpack.c.bf16 %v5318_v46, %v5317_v8  ;;  %v5493_v46 = vld [vmem:[#allocation4 + $0x600] sm:$0xff] }
 0x5ad   : > { %6311 = vmatmul.mubr.f32.vlgmr.msra.gmra.mrb[52].mxu0 %v4672_v36  ;;  %v5322_v36 = vld [vmem:[#allocation4 + $0x558] sm:$0xff] }
 0x5ae   : > { %6909 = vmatpush3.bf16.msra.mxu1 %v6908_v22  ;;  %6660 = vmatprep.mubr.msk.f32.mxu0 %vm7277_vm8, %v7278_v13  ;;  %v5321_v22 = vld [vmem:[#allocation4 + $0x550] sm:$0xff] }
 0x5af   : > { %6910 = vmatprep.subr.bf16.mxu1 %v12628_v38  ;;  %v6965_v42 = vpack.c.bf16 %v5322_v36, %v5321_v22  ;;  %v5400_v22 = vmax.f32 %v5398_v54, %v5399_v53  ;;  %v5495_v36 = vld [vmem:[#allocation4 + $0x610] sm:$0xff] }
 0x5b2   : > { %6912 = vmatpush3.bf16.msra.mxu1 %v6911_v47  ;;  %v5324_v47 = vld [vmem:[#allocation4 + $0x568] sm:$0xff] }
 0x5b3   : > { %6913 = vmatprep.subr.bf16.mxu1 %v12628_v38  ;;  %v6968_v19 = vpack.c.bf16 %v5324_v47, %v5323_v61  ;;  %v5497_v47 = vld [vmem:[#allocation4 + $0x620] sm:$0xff] }
 0x5b6   : > { %6915 = vmatpush3.bf16.msra.mxu1 %v6914_v59  ;;  %v5326_v59 = vld [vmem:[#allocation4 + $0x578] sm:$0xff] }
 0x5b7   : > { %6916 = vmatprep.subr.bf16.mxu1 %v12628_v38  ;;  %v6971_v48 = vpack.c.bf16 %v5326_v59, %v5325_v60  ;;  %v5499_v59 = vld [vmem:[#allocation4 + $0x630] sm:$0xff] }
 0x5ba   : > { %6918 = vmatpush3.bf16.msra.mxu1 %v6917_v34  ;;  %v5403_v34 = vld [vmem:[#allocation4 + $0x588] sm:$0xff] }
 0x5bb   : > { %6919 = vmatprep.subr.bf16.mxu1 %v12628_v38 }
 0x5be   : > { %6921 = vmatpush3.bf16.msra.mxu1 %v6920_v16  ;;  %v5581_v16 = vld [vmem:[%s11817_s7] sm:$0xff] }
 0x5bf   : > { %6922 = vmatprep.subr.bf16.mxu1 %v12628_v38  ;;  %v7022_v18 = vpack.c.bf16 %v5582_v27, %v5581_v16  ;;  %v5503_v16 = vld [vmem:[#allocation4 + $0x650] sm:$0xff]  ;;  %v5504_v27 = vld [vmem:[#allocation4 + $0x658] sm:$0xff] }
 0x5c1   : > { %7023 = vmatpush3.bf16.msra.mxu0 %v7022_v18  ;;  %v5506_v18 = vld [vmem:[#allocation4 + $0x668] sm:$0xff] }
 0x5c2   : > { %6924 = vmatpush3.bf16.msra.mxu1 %v6923_v45  ;;  %v6974_v45 = vpack.c.bf16 %v5403_v34, %v5402_v11  ;;  %7024 = vmatprep.subr.bf16.mxu0 %v12628_v38  ;;  %v5501_v34 = vld [vmem:[#allocation4 + $0x640] sm:$0xff] }
 0x5c3   : > { %6925 = vmatprep.subr.bf16.mxu1 %v12628_v38  ;;  %v7010_v1 = vpack.c.bf16 %v5502_v62, %v5501_v34 }
 0x5c5   : > { %6486 = vmatmul.mubr.f32.vlgmr.msra.gmra.mrb[0].mxu1 %v5127_v56  ;;  %v7025_v56 = vpack.c.bf16 %v5584_v20, %v5583_v50  ;;  %v7013_v50 = vpack.c.bf16 %v5504_v27, %v5503_v16 }
 0x5c6   : > { %6927 = vmatpush3.bf16.msra.mxu1 %v6926_v0  ;;  %6520 = vmatprep.mubr.msk.f32.mxu1 %vm7277_vm8, %v7278_v13  ;;  %v5405_v0 = vld [vmem:[#allocation4 + $0x598] sm:$0xff] }
 0x5c7   : > { %6928 = vmatprep.subr.bf16.mxu1 %v12628_v38  ;;  %7026 = vmatpush3.bf16.msra.mxu0 %v7025_v56  ;;  %v5489_v56 = vld [vmem:[#allocation3 + $0x18] sm:$0x1] }
 0x5c8   : > { %7027 = vmatprep.subr.bf16.mxu0 %v12628_v38 }
 0x5ca   : > { %6930 = vmatpush3.bf16.msra.mxu1 %v6929_v29  ;;  %v6977_v29 = vpack.c.bf16 %v5405_v0, %v5404_v25  ;;  %v5508_v25 = vld [vmem:[#allocation4 + $0x678] sm:$0xff] }
 0x5cb   : > { %6931 = vmatprep.subr.bf16.mxu1 %v12628_v38 }
 0x5ce   : > { %6933 = vmatpush3.bf16.msra.mxu1 %v6932_v2  ;;  %v7028_v2 = vpack.c.bf16 %v5586_v52, %v5585_v37  ;;  %v5490_v37 = vld [vmem:[#allocation3 + $0x19] sm:$0x1] }
 0x5cf   : > { %6934 = vmatprep.subr.bf16.mxu1 %v12628_v38  ;;  %v5491_v52 = vmax.f32 %v5489_v56, %v5490_v37 }
 0x5d0   : > { %7029 = vmatpush3.bf16.msra.mxu0 %v7028_v2  ;;  %v5596_v2 = vld [vmem:[%s11817_s7 + $0x78] sm:$0xff] }
 0x5d1   : > { %7030 = vmatprep.subr.bf16.mxu0 %v12628_v38 }
 0x5d2   : > { %6936 = vmatpush3.bf16.msra.mxu1 %v6935_v41  ;;  %v6980_v41 = vpack.c.bf16 %v5407_v57, %v5406_v12  ;;  %v5595_v57 = vld [vmem:[%s11817_s7 + $0x70] sm:$0xff] }
 0x5d3   : > { %6937 = vmatprep.subr.bf16.mxu1 %v12628_v38 }
 0x5d6   : > { %6939 = vmatpush3.bf16.msra.mxu1 %v6938_v3  ;;  %v7031_v3 = vpack.c.bf16 %v5588_v7, %v5587_v15  ;;  %v7043_v15 = vpack.c.bf16 %v5596_v2, %v5595_v57  ;;  %v4397_v7 = vld [vmem:[%s11816_s6] sm:$0x1] }
 0x5d7   : > { %6940 = vmatprep.subr.bf16.mxu1 %v12628_v38 }
 0x5d8   : > { %7032 = vmatpush3.bf16.msra.mxu0 %v7031_v3 }
 0x5d9   : > { %7033 = vmatprep.subr.bf16.mxu0 %v12628_v38 }
 0x5da   : > { %6942 = vmatpush3.bf16.msra.mxu1 %v6941_v40  ;;  %v6983_v40 = vpack.c.bf16 %v5409_v5, %v5408_v49  ;;  %v5669_v49 = vld [vmem:[%s11819_s9] sm:$0xff]  ;;  %v5670_v5 = vld [vmem:[%s11819_s9 + $0x8] sm:$0xff] }
 0x5db   : > { %6943 = vmatprep.subr.bf16.mxu1 %v12628_v38 }
 0x5de   : > { %6945 = vmatpush3.bf16.msra.mxu1 %v6944_v43  ;;  %v7034_v43 = vpack.c.bf16 %v5590_v23, %v5589_v55 }
 0x5df   : > { %6946 = vmatprep.subr.bf16.mxu1 %v12628_v38 }
 0x5e0   : > { %7035 = vmatpush3.bf16.msra.mxu0 %v7034_v43  ;;  %v5672_v43 = vld [vmem:[%s11819_s9 + $0x18] sm:$0xff] }
 0x5e1   : > { %7036 = vmatprep.subr.bf16.mxu0 %v12628_v38 }
 0x5e2   : > { %6948 = vmatpush3.bf16.msra.mxu1 %v6947_v4  ;;  %v6986_v4 = vpack.c.bf16 %v5411_v58, %v5410_v44  ;;  %v5671_v58 = vld [vmem:[%s11819_s9 + $0x10] sm:$0xff] }
 0x5e3   : > { %6949 = vmatprep.subr.bf16.mxu1 %v12628_v38  ;;  %v7049_v6 = vpack.c.bf16 %v5672_v43, %v5671_v58 }
 0x5e4   : > { %7038 = vmatpush3.bf16.msra.mxu0 %v7037_v10 }
 0x5e5   : > { %6521 = vmatmul.mubr.f32.vlgmr.msra.gmra.mrb[0].mxu1 %v5218_v21  ;;  %v6989_v21 = vpack.c.bf16 %v5413_v32, %v5412_v9  ;;  %7039 = vmatprep.subr.bf16.mxu0 %v12628_v38  ;;  %v5676_v32 = vld [vmem:[%s11819_s9 + $0x38] sm:$0xff] }
 0x5e6   : > { %6951 = vmatpush3.bf16.msra.mxu1 %v6950_v24  ;;  %6555 = vmatprep.mubr.msk.f32.mxu1 %vm7277_vm8, %v7278_v13  ;;  %v5594_v24 = vld [vmem:[%s11817_s7 + $0x68] sm:$0xff] }
 0x5e7   : > { %6952 = vmatprep.subr.bf16.mxu1 %v12628_v38 }
 0x5ea   : > { %6954 = vmatpush3.bf16.msra.mxu1 %v6953_v51  ;;  %v7040_v51 = vpack.c.bf16 %v5594_v24, %v5593_v28  ;;  %v5597_v28 = vld [vmem:[%s11818_s8] sm:$0x1] }
 0x5eb   : > { %6955 = vmatprep.subr.bf16.mxu1 %v12628_v38 }
 0x5ec   : > { %7041 = vmatpush3.bf16.msra.mxu0 %v7040_v51 }
 0x5ed   : > { %7042 = vmatprep.subr.bf16.mxu0 %v12628_v38 }
 0x5ee   : > { %6957 = vmatpush3.bf16.msra.mxu1 %v6956_v31  ;;  %v5417_v31 = vld [vmem:[#allocation4 + $0x5f8] sm:$0xff] }
 0x5ef   : > { %6958 = vmatprep.subr.bf16.mxu1 %v12628_v38  ;;  %v6995_v8 = vpack.c.bf16 %v5417_v31, %v5416_v17 }
 0x5f0   : > { %7044 = vmatpush3.bf16.msra.mxu0 %v7043_v15 }
 0x5f1   : > { %7045 = vmatprep.subr.bf16.mxu0 %v12628_v38 }
 0x5f2   : > { %6960 = vmatpush3.bf16.msra.mxu1 %v6959_v63  ;;  %v5494_v63 = vld [vmem:[#allocation4 + $0x608] sm:$0xff] }
 0x5f3   : > { %6961 = vmatprep.subr.bf16.mxu1 %v12628_v38 }
 0x5f6   : > { %6963 = vmatpush3.bf16.msra.mxu1 %v6962_v39  ;;  %v6998_v39 = vpack.c.bf16 %v5494_v63, %v5493_v46 }
 0x5f7   : > { %6964 = vmatprep.subr.bf16.mxu1 %v12628_v38 }
 0x5fa   : > { %6966 = vmatpush3.bf16.msra.mxu1 %v6965_v42  ;;  %v5496_v42 = vld [vmem:[#allocation4 + $0x618] sm:$0xff] }
 0x5fb   : > { %6967 = vmatprep.subr.bf16.mxu1 %v12628_v38  ;;  %v7001_v61 = vpack.c.bf16 %v5496_v42, %v5495_v36 }
 0x5fe   : > { %6969 = vmatpush3.bf16.msra.mxu1 %v6968_v19  ;;  %v5498_v19 = vld [vmem:[#allocation4 + $0x628] sm:$0xff] }
 0x5ff   : > { %6970 = vmatprep.subr.bf16.mxu1 %v12628_v38  ;;  %v7004_v60 = vpack.c.bf16 %v5498_v19, %v5497_v47 }
 0x602   : > { %6972 = vmatpush3.bf16.msra.mxu1 %v6971_v48  ;;  %v5500_v48 = vld [vmem:[#allocation4 + $0x638] sm:$0xff] }
 0x603   : > { %6973 = vmatprep.subr.bf16.mxu1 %v12628_v38  ;;  %v7007_v11 = vpack.c.bf16 %v5500_v48, %v5499_v59 }
 0x605   : > { %6556 = vmatmul.mubr.f32.vlgmr.msra.gmra.mrb[0].mxu1 %v5309_v26  ;;  %v5507_v26 = vld [vmem:[#allocation4 + $0x670] sm:$0xff] }
 0x606   : > { %6975 = vmatpush3.bf16.msra.mxu1 %v6974_v45  ;;  %6590 = vmatprep.mubr.msk.f32.mxu1 %vm7277_vm8, %v7278_v13  ;;  %v5505_v45 = vld [vmem:[#allocation4 + $0x660] sm:$0xff]  ;;  %v7019_v0 = vpack.c.bf16 %v5508_v25, %v5507_v26 }
 0x607   : > { %6976 = vmatprep.subr.bf16.mxu1 %v12628_v38  ;;  %v7016_v20 = vpack.c.bf16 %v5506_v18, %v5505_v45 }
 0x60a   : > { %6978 = vmatpush3.bf16.msra.mxu1 %v6977_v29 }
 0x60b   : > { %6979 = vmatprep.subr.bf16.mxu1 %v12628_v38 }
 0x60e   : > { %6981 = vmatpush3.bf16.msra.mxu1 %v6980_v41 }
 0x60f   : > { %6982 = vmatprep.subr.bf16.mxu1 %v12628_v38 }
 0x612   : > { %6984 = vmatpush3.bf16.msra.mxu1 %v6983_v40  ;;  %v7046_v40 = vpack.c.bf16 %v5670_v5, %v5669_v49 }
 0x613   : > { %6985 = vmatprep.subr.bf16.mxu1 %v12628_v38 }
 0x616   : > { %6987 = vmatpush3.bf16.msra.mxu1 %v6986_v4  ;;  %v5674_v4 = vld [vmem:[%s11819_s9 + $0x28] sm:$0xff] }
 0x617   : > { %6988 = vmatprep.subr.bf16.mxu1 %v12628_v38  ;;  %v7052_v9 = vpack.c.bf16 %v5674_v4, %v5673_v35 }
 0x61a   : > { %6990 = vmatpush3.bf16.msra.mxu1 %v6989_v21 }
 0x61b   : > { %6991 = vmatprep.subr.bf16.mxu1 %v12628_v38 }
 0x61e   : > { %6993 = vmatpush3.bf16.msra.mxu1 %v6992_v30 }
 0x61f   : > { %6994 = vmatprep.subr.bf16.mxu1 %v12628_v38 }
 0x622   : > { %6996 = vmatpush3.bf16.msra.mxu1 %v6995_v8 }
 0x623   : > { %6997 = vmatprep.subr.bf16.mxu1 %v12628_v38 }
 0x625   : > { %6591 = vmatmul.mubr.f32.vlgmr.msra.gmra.mrb[0].mxu1 %v5400_v22 }
 0x626   : > { %6999 = vmatpush3.bf16.msra.mxu1 %v6998_v39  ;;  %6625 = vmatprep.mubr.msk.f32.mxu1 %vm7277_vm8, %v7278_v13 }
 0x627   : > { %7000 = vmatprep.subr.bf16.mxu1 %v12628_v38 }
 0x62a   : > { %7002 = vmatpush3.bf16.msra.mxu1 %v7001_v61 }
 0x62b   : > { %7003 = vmatprep.subr.bf16.mxu1 %v12628_v38 }
 0x62e   : > { %7005 = vmatpush3.bf16.msra.mxu1 %v7004_v60 }
 0x62f   : > { %7006 = vmatprep.subr.bf16.mxu1 %v12628_v38 }
 0x632   : > { %7008 = vmatpush3.bf16.msra.mxu1 %v7007_v11 }
 0x633   : > { %7009 = vmatprep.subr.bf16.mxu1 %v12628_v38 }
 0x636   : > { %7011 = vmatpush3.bf16.msra.mxu1 %v7010_v1 }
 0x637   : > { %7012 = vmatprep.subr.bf16.mxu1 %v12628_v38 }
 0x63a   : > { %7014 = vmatpush3.bf16.msra.mxu1 %v7013_v50 }
 0x63b   : > { %7015 = vmatprep.subr.bf16.mxu1 %v12628_v38 }
 0x63e   : > { %7017 = vmatpush3.bf16.msra.mxu1 %v7016_v20 }
 0x63f   : > { %7018 = vmatprep.subr.bf16.mxu1 %v12628_v38 }
 0x642   : > { %7020 = vmatpush3.bf16.msra.mxu1 %v7019_v0 }
 0x645   : > { %6626 = vmatmul.mubr.f32.vlgmr.msra.gmra.mrb[0].mxu1 %v5491_v52 }
 0x680   : > { %v4756_v29 = vpop.f32.mrb[52].mxu0 }
 0x681   : > { %v6312_v12 = vpop.f32.mrb[53].mxu0  ;;  %v7057_v41 = vadd.f32 %v4756_v29, %v4397_v7 }
 0x718   : > { %v5575_v3 = vpop.f32.mrb[0].mxu1 }
 0x719   : > { %v7058_v55 = vadd.f32 %v7057_v41, %v5575_v3  ;;  %v6627_v23 = vpop.f32.mrb[1].mxu1 }
 0x71b   : > { %v5580_v44 = vmax.f32 %v7058_v55, 0.0 }
 0x71d   : > { %6661 = vmatmul.mubr.f32.vlgmr.msra.gmra.mrb[54].mxu0 %v5580_v44 }
 0x71e   : > { %7047 = vmatpush3.bf16.msra.mxu0 %v7046_v40  ;;  %6679 = vmatprep.mubr.msk.f32.mxu0 %vm7277_vm8, %v7278_v13  ;;  %v5675_v13 = vld [vmem:[%s11819_s9 + $0x30] sm:$0xff] }
 0x71f   : > { %7048 = vmatprep.subr.bf16.mxu0 %v12628_v38  ;;  %v7055_v10 = vpack.c.bf16 %v5676_v32, %v5675_v13 }
 0x722   : > { %7050 = vmatpush3.bf16.msra.mxu0 %v7049_v6 }
 0x723   : > { %7051 = vmatprep.subr.bf16.mxu0 %v12628_v38 }
 0x726   : > { %7053 = vmatpush3.bf16.msra.mxu0 %v7052_v9 }
 0x727   : > { %7054 = vmatprep.subr.bf16.mxu0 %v12628_v38  ;;  %v5677_v38 = vld [vmem:[%s11820_s10] sm:$0x1] }
 0x72a   : > { %7056 = vmatpush3.bf16.msra.mxu0 %v7055_v10 }
 0x7f0   : > { %v5664_v24 = vpop.f32.mrb[54].mxu0 }
 0x7f1   : > { %v5665_v21 = vadd.f32 %v5664_v24, %v5597_v28  ;;  %v6662_v14 = vpop.f32.mrb[55].mxu0 }
 0x7f3   : > { %v5668_v33 = vmax.f32 %v5665_v21, 0.0 }
 0x7f5   : > { %6680 = vmatmul.mubr.msk.f32.vlgmr.msra.gmra.mrb[56].mxu0 %vm5678_vm2, %v5668_v33 }
 0x8c8   : > { %v5748_v51 = vpop.f32.mrb[56].mxu0 }
 0x8c9   : > { %v5749_v30 = vadd.f32 %v5748_v51, %v5677_v38  ;;  %v6681_v17 = vpop.f32.mrb[57].mxu0 }
 0x8cb   : > { %5753 = vst.msk [vmem:[%s393_s13] sm:$0x1] %vm5752_vm10, %v5749_v30 }
 0x8cc   : > { %7210 = shalt.err (!%p7207_p7)
}
 0x8cd   : > { %s7211_s30 = scalar_lea.hbm %s11768_s25, 16  ;;  %s7215_s29 = scalar_lea.hbm %s11821_s11, 32 }
 0x8ce   : > { %p7212_p8 = scmp.ne.s32.totalorder %s11768_s25, %s7211_s30  ;;  %p7216_p1 = scmp.lt.u32.totalorder %s11768_s25, %s11821_s11 }
 0x8cf   : > { %p7217_p0 = scmp.lt.u32.totalorder %s7215_s29, %s7211_s30  ;;  %p7219_p6 = scmp.lt.u32.totalorder %s7211_s30, %s11768_s25 }
 0x8d0   : > { %p7213_p11 = pnand %p7212_p8, %p12634_p9 }
 0x8d1   : > { %p7218_p5 = por %p7217_p0, %p7216_p1 }
 0x8d2   : > { %p7214_p13 = pneg %p7213_p11 }
 0x8d3   : > { %p7220_p10 = por %p7219_p6, %p7218_p5 }
 0x8d5   : > { %p7221_p12 = pnand %p7220_p10, %p7214_p13 }
 0x8d7   : > { %7224 = shalt.err (!%p7221_p12)
}
 0x8d8   : > { %7086 = dma.vmem_to_hbm [thread:$0]  (%p12634_p9), %s11770_s16, 16, %s11768_s25, %s5755_s24  }
 0x8d9 PF: > { %p7098_p2 = scmp.ge.s32.totalorder %s7263_s20, 2  ;;  %s5779_s12 = sand.u32 1, %s7251_s17  }
 0x8da   : > { %p12635_p3 = scmp.ne.s32.totalorder %s12041_s28, 0  ;;  %s5780_s14 = scalar_lea.sflag [#allocation6], %s5779_s12 }
 0x8dc   : > { %p7093_p4 = pnand %p7098_p2, %p12635_p3 }
 0x8de   : > { %7246 = dma.done.wait (!%p7093_p4), %s5780_s14, 16  }
 0x8df   : > { %7248 = vsyncadd (!%p7093_p4), %s5780_s14, 4294967280  ;;  %s12636_s22 = sld [smem:[#allocation10_spill]]  ;;  %p22_p7 = scmp.ge.s32.totalorder %s7365_s23, 4  }
 0x8e0   : > { %s12637_s17 = smov %s7255_s18  ;;  %s12638_s18 = smov %s7259_s19 }
 0x8e1   : > { %s12640_s20 = smov %s7365_s23  ;;  %24 = sbr.rel (!%p22_p7) target bundleno = 4 (0x4), region = 127 }
 0x8e5   : > { %s12639_s19 = smov %s12636_s22 }
 0x8e8   :  { %5784 = vsyncpa [#allocation5], 1 }
 0x8e9   :  { %5786 = vsyncpa [#allocation5 + $0x1], 1 }
 0x8ea   :  { %5787 = vsyncpa [#allocation6], 1 }
 0x8eb   :  { %5789 = vsyncpa [#allocation6 + $0x1], 1 }

</bundles_post_ra>
